<compile_context>
chip_gen: v7x
topology: tpu7x:2x2x1
jax: 0.10.0
libtpu: 0.0.40
codegen_flags: <defaults>
</compile_context>

<pallas_src>
import jax
import jax.numpy as jnp
from jax import lax
from jax.experimental import pallas as pl
from jax.experimental.pallas import tpu as pltpu  # noqa: F401  (VMEM scratch if scaled up)


# -----------------------------------------------------------------------------
# Fused forward kernel (factory closes over static layer counts / attention dims)
# -----------------------------------------------------------------------------

def _make_g2p_kernel(enc_layers, sp_layers, ipa_layers, A_s, A_i):
    def kernel(*refs):
        it = iter(refs)
        lens_ref = next(it)                 # [B, 1] int32 (input_seq_lens)
        gremb_ref = next(it)                # [B, T_enc, E] embedded graphemes
        enc_w = [[(next(it), next(it), next(it)) for _ in range(2)]  # (fwd, bwd) per layer
                 for _ in range(enc_layers)]
        wproj_ref = next(it)                # [2H_e, 2A_s + 2A_i]  (enc_s|val_s|enc_i|val_i)
        bproj_ref = next(it)                # [1,    2A_s + 2A_i]

        sp_in_ref = next(it)                # [B, T_sp, mfcc]
        sp_wdec, sp_bdec, sp_fcw, sp_fcb = next(it), next(it), next(it), next(it)
        sp_wx0, sp_wc0, sp_whh0, sp_b0 = next(it), next(it), next(it), next(it)
        sp_up = [(next(it), next(it), next(it)) for _ in range(sp_layers - 1)]

        ip_in_ref = next(it)                # [B, T_ip, E_ipa]
        ip_wdec, ip_bdec, ip_fcw, ip_fcb = next(it), next(it), next(it), next(it)
        ip_wx0, ip_wc0, ip_whh0, ip_b0 = next(it), next(it), next(it), next(it)
        ip_up = [(next(it), next(it), next(it)) for _ in range(ipa_layers - 1)]

        mfcc_out_ref = next(it)             # [B, T_sp, mfcc]
        ipa_out_ref = next(it)              # [B, T_ip, ipa_vocab-1]

        B, T_enc, _ = gremb_ref.shape

        # ---- masks built in-kernel from seq_lens ----
        lens = lens_ref[...]                                           # [B, 1] i32
        pos = lax.broadcasted_iota(jnp.int32, (B, T_enc), 1)           # [B, T_enc]
        valid = pos < lens                  # pack_padded validity (t < len)
        att_masked = pos > lens             # reference off-by-one: mask where S > L (strict)

        def slab_act(gates, c_prev, H):
            # One sigmoid + one tanh over the whole [B, 4H] slab, then slice gates.
            sig = jax.nn.sigmoid(gates)
            th = jnp.tanh(gates)
            c_new = sig[:, H:2 * H] * c_prev + sig[:, 0:H] * th[:, 2 * H:3 * H]
            h_new = sig[:, 3 * H:4 * H] * jnp.tanh(c_new)
            return h_new, c_new

        # ------------------------- Encoder -------------------------
        def run_direction(x_bti, wih_ref, whh_ref, b_ref, reverse):
            Bx, T, In = x_bti.shape
            wih = wih_ref[...]
            whh = whh_ref[...]
            b = b_ref[...]
            H = whh.shape[0]
            # Hoisted input-side matmul for all timesteps (off the serial chain).
            pre = (jnp.dot(x_bti.reshape(Bx * T, In), wih,
                           preferred_element_type=jnp.float32) + b).reshape(Bx, T, 4 * H)
            h = jnp.zeros((Bx, H), jnp.float32)
            c = jnp.zeros((Bx, H), jnp.float32)
            outs = [None] * T
            order = range(T - 1, -1, -1) if reverse else range(T)
            for t in order:                                            # fully unrolled
                m = valid[:, t:t + 1]                                  # [B, 1] bool
                gates = pre[:, t, :] + jnp.dot(h, whh, preferred_element_type=jnp.float32)
                h_new, c_new = slab_act(gates, c, H)
                outs[t] = jnp.where(m, h_new, 0.0)   # pad_packed_sequence(padding_value=0)
                h = jnp.where(m, h_new, h)
                c = jnp.where(m, c_new, c)
            return jnp.stack(outs, axis=1)                             # [B, T, H]

        x = gremb_ref[...]
        for l in range(enc_layers):
            (wf, uf, bf), (wb, ub, bb) = enc_w[l]
            fwd = run_direction(x, wf, uf, bf, reverse=False)
            bwd = run_direction(x, wb, ub, bb, reverse=True)
            x = jnp.concatenate([fwd, bwd], axis=2)                    # [B, T, 2H]
        enc_out = x                                                    # [B, T_enc, 2H_e]

        # ---- shared attention enc-side projections (one fused matmul) ----
        E2 = enc_out.shape[2]
        proj = (jnp.dot(enc_out.reshape(B * T_enc, E2), wproj_ref[...],
                        preferred_element_type=jnp.float32)
                + bproj_ref[...]).reshape(B, T_enc, 2 * A_s + 2 * A_i)
        lp_s = proj[:, :, 0:A_s]
        val_s = proj[:, :, A_s:2 * A_s]
        lp_i = proj[:, :, 2 * A_s:2 * A_s + A_i]
        val_i = proj[:, :, 2 * A_s + A_i:2 * A_s + 2 * A_i]

        # ------------------------- Decoders -------------------------
        def run_decoder(inp_ref, lp, val, wdec_ref, bdec_ref, fcw_ref, fcb_ref,
                        wx0_ref, wc0_ref, whh0_ref, b0_ref, upper_refs, out_ref):
            inp = inp_ref[...]
            Bx, T_out, In = inp.shape
            wdec = wdec_ref[...]
            bdec = bdec_ref[...]
            fcw = fcw_ref[...]
            fcb = fcb_ref[...]
            wc0 = wc0_ref[...]
            whh0 = whh0_ref[...]
            H = whh0.shape[0]
            A = wdec.shape[1]
            upper = [(w[...], u[...], bu[...]) for (w, u, bu) in upper_refs]
            nl = 1 + len(upper)

            # Hoisted x-part of layer-0 gates for all teacher-forced timesteps.
            pre = (jnp.dot(inp.reshape(Bx * T_out, In), wx0_ref[...],
                           preferred_element_type=jnp.float32)
                   + b0_ref[...]).reshape(Bx, T_out, 4 * H)

            hs = [jnp.zeros((Bx, H), jnp.float32) for _ in range(nl)]
            cs = [jnp.zeros((Bx, H), jnp.float32) for _ in range(nl)]
            ctx = jnp.zeros((Bx, A), jnp.float32)
            preds = []
            for t in range(T_out):                                     # fully unrolled
                gates0 = (pre[:, t, :]
                          + jnp.dot(ctx, wc0, preferred_element_type=jnp.float32)
                          + jnp.dot(hs[0], whh0, preferred_element_type=jnp.float32))
                hs[0], cs[0] = slab_act(gates0, cs[0], H)
                for li, (wih, whh, bu) in enumerate(upper):
                    g = (jnp.dot(hs[li], wih, preferred_element_type=jnp.float32)
                         + jnp.dot(hs[li + 1], whh, preferred_element_type=jnp.float32) + bu)
                    hs[li + 1], cs[li + 1] = slab_act(g, cs[li + 1], H)

                # Attention: only the q path is per-step; enc/value projections hoisted.
                # (T_enc=8, A=16: the VPU mul + small reduces are cheaper than a
                #  degenerate-N batched matmul at these shapes.)
                sp = jnp.dot(hs[-1], wdec, preferred_element_type=jnp.float32) + bdec  # [B, A]
                e = jnp.sum(lp * sp[:, None, :], axis=-1)                              # [B, T_enc]
                e = jnp.where(att_masked, -1.0e10, e)                  # masked_fill(S > L)
                e = e - jnp.max(e, axis=1, keepdims=True)
                p = jnp.exp(e)
                w = p / jnp.sum(p, axis=1, keepdims=True)              # softmax over T_enc
                ctx = jnp.sum(w[:, :, None] * val, axis=1)             # [B, A]
                preds.append(jnp.dot(ctx, fcw, preferred_element_type=jnp.float32) + fcb)

            # Single full-block batch-first store (no per-step narrow stores, no transpose).
            out_ref[...] = jnp.stack(preds, axis=1)                    # [B, T_out, O]

        run_decoder(sp_in_ref, lp_s, val_s, sp_wdec, sp_bdec, sp_fcw, sp_fcb,
                    sp_wx0, sp_wc0, sp_whh0, sp_b0, sp_up, mfcc_out_ref)
        run_decoder(ip_in_ref, lp_i, val_i, ip_wdec, ip_bdec, ip_fcw, ip_fcb,
                    ip_wx0, ip_wc0, ip_whh0, ip_b0, ip_up, ipa_out_ref)

    return kernel


# -----------------------------------------------------------------------------
# Wrapper: builds the flat argument list and the single pallas_call
# -----------------------------------------------------------------------------

def _g2p_pallas(params, seq_lens_b1, gr_emb, sp_in, ipa_in):
    B, T_enc, _ = gr_emb.shape
    T_sp = sp_in.shape[1]
    T_ip = ipa_in.shape[1]

    enc = params["enc"]
    spd = params["speech"]
    ipd = params["ipa"]

    enc_layers = len(enc["layers"])
    sp_layers = len(spd["cells"])
    ipa_layers = len(ipd["cells"])
    A_s = spd["att"]["w_enc"].shape[1]
    A_i = ipd["att"]["w_enc"].shape[1]
    O_s = spd["fc_w"].shape[1]
    O_i = ipd["fc_w"].shape[1]
    mfcc_size = sp_in.shape[2]
    ipa_emb_dim = ipa_in.shape[2]

    # Fuse the 4 enc-side projection weights into one matmul operand.
    w_proj = jnp.concatenate([spd["att"]["w_enc"], spd["att"]["w_val"],
                              ipd["att"]["w_enc"], ipd["att"]["w_val"]], axis=1)
    b_proj = jnp.concatenate([spd["att"]["b_enc"], spd["att"]["b_val"],
                              ipd["att"]["b_enc"], ipd["att"]["b_val"]], axis=1)

    args = [seq_lens_b1, gr_emb]
    for layer in enc["layers"]:
        args.extend(layer["fwd"])
        args.extend(layer["bwd"])
    args.extend([w_proj, b_proj])

    def dec_args(dec, inp, in_dim):
        wih0, whh0, b0 = dec["cells"][0]
        a = [inp,
             dec["att"]["w_dec"], dec["att"]["b_dec"], dec["fc_w"], dec["fc_b"],
             wih0[:in_dim], wih0[in_dim:], whh0, b0]
        for cell in dec["cells"][1:]:
            a.extend(cell)
        return a

    args += dec_args(spd, sp_in, mfcc_size)
    args += dec_args(ipd, ipa_in, ipa_emb_dim)

    kernel = _make_g2p_kernel(enc_layers, sp_layers, ipa_layers, A_s, A_i)
    mfcc_out, ipa_out = pl.pallas_call(
        kernel,
        out_shape=(jax.ShapeDtypeStruct((B, T_sp, O_s), jnp.float32),
                   jax.ShapeDtypeStruct((B, T_ip, O_i), jnp.float32)),
    )(*args)
    return mfcc_out, ipa_out


# -----------------------------------------------------------------------------
# Parameter initialization (deterministic, synthetic)
# -----------------------------------------------------------------------------

def _nrm(key, shape, scale=0.1):
    return scale * jax.random.normal(key, shape, dtype=jnp.float32)


def init_lstm_gates(key, in_dim, hid):
    k1, k2, k3 = jax.random.split(key, 3)
    # Packed per PyTorch gate order (i, f, g, o): W_ih^T, W_hh^T, (b_ih + b_hh)
    return (_nrm(k1, (in_dim, 4 * hid)), _nrm(k2, (hid, 4 * hid)), _nrm(k3, (1, 4 * hid)))


def init_attention(key, enc_dim, dec_dim, att_dim):
    ks = jax.random.split(key, 6)
    return dict(w_dec=_nrm(ks[0], (dec_dim, att_dim)), b_dec=_nrm(ks[1], (1, att_dim)),
                w_enc=_nrm(ks[2], (enc_dim, att_dim)), b_enc=_nrm(ks[3], (1, att_dim)),
                w_val=_nrm(ks[4], (enc_dim, att_dim)), b_val=_nrm(ks[5], (1, att_dim)))


def init_params(key, cfg):
    keys = iter(jax.random.split(key, 64))
    params = {}

    enc_layers = []
    for l in range(cfg["enc_layers"]):
        in_dim = cfg["grapheme_emb_dim"] if l == 0 else 2 * cfg["enc_hid_dim"]
        enc_layers.append(dict(fwd=init_lstm_gates(next(keys), in_dim, cfg["enc_hid_dim"]),
                               bwd=init_lstm_gates(next(keys), in_dim, cfg["enc_hid_dim"])))
    params["enc"] = dict(
        emb=_nrm(next(keys), (cfg["grapheme_vocab_size"], cfg["grapheme_emb_dim"])),
        layers=enc_layers)

    enc_out_dim = 2 * cfg["enc_hid_dim"]

    sp_cells = [init_lstm_gates(next(keys), cfg["mfcc_size"] + cfg["speech_att_dim"],
                                cfg["speech_hid_dim"])]
    for _ in range(1, cfg["speech_layers"]):
        sp_cells.append(init_lstm_gates(next(keys), cfg["speech_hid_dim"], cfg["speech_hid_dim"]))
    params["speech"] = dict(
        cells=sp_cells,
        att=init_attention(next(keys), enc_out_dim, cfg["speech_hid_dim"], cfg["speech_att_dim"]),
        fc_w=_nrm(next(keys), (cfg["speech_att_dim"], cfg["mfcc_size"])),
        fc_b=_nrm(next(keys), (1, cfg["mfcc_size"])),
    )

    ipa_cells = [init_lstm_gates(next(keys), cfg["ipa_emb_dim"] + cfg["ipa_att_dim"],
                                 cfg["ipa_hid_dim"])]
    for _ in range(1, cfg["ipa_layers"]):
        ipa_cells.append(init_lstm_gates(next(keys), cfg["ipa_hid_dim"], cfg["ipa_hid_dim"]))
    params["ipa"] = dict(
        emb=_nrm(next(keys), (cfg["ipa_vocab"], cfg["ipa_emb_dim"])),
        cells=ipa_cells,
        att=init_attention(next(keys), enc_out_dim, cfg["ipa_hid_dim"], cfg["ipa_att_dim"]),
        fc_w=_nrm(next(keys), (cfg["ipa_att_dim"], cfg["ipa_vocab"] - 1)),
        fc_b=_nrm(next(keys), (1, cfg["ipa_vocab"] - 1)),
    )
    return params


# -----------------------------------------------------------------------------
# Model forward (only embedding gathers + weight packing outside the kernel)
# -----------------------------------------------------------------------------

@jax.jit
def g2p_forward(params, graphemes, seq_lens, mfcc_targets, ipa_targets):
    gr_emb = jnp.take(params["enc"]["emb"], graphemes, axis=0)               # [B, T, E]
    sp_in = mfcc_targets[:, :-1, :]                                          # [B, T_m-1, mfcc]
    ipa_in = jnp.take(params["ipa"]["emb"], ipa_targets[:, :-1], axis=0)     # [B, T_i-1, E_ipa]
    seq_lens_b1 = seq_lens.astype(jnp.int32)[:, None]                        # [B, 1]
    return _g2p_pallas(params, seq_lens_b1, gr_emb, sp_in, ipa_in)


# -----------------------------------------------------------------------------
# Main
# -----------------------------------------------------------------------------

if __name__ == "__main__":
    cfg = dict(
        grapheme_vocab_size=12, grapheme_emb_dim=16, enc_hid_dim=16, enc_layers=2,
        speech_hid_dim=16, speech_att_dim=16, mfcc_size=8, speech_layers=2,
        ipa_hid_dim=16, ipa_att_dim=16, ipa_vocab=10, ipa_emb_dim=16, ipa_layers=2,
    )

    B, T_enc, T_mfcc, T_ipa = 2, 8, 6, 6

    root = jax.random.PRNGKey(0)
    k_par, k_g, k_m, k_i = jax.random.split(root, 4)

    params = init_params(k_par, cfg)

    graphemes = jax.random.randint(k_g, (B, T_enc), 0, cfg["grapheme_vocab_size"], dtype=jnp.int32)
    input_seq_lens = jnp.array([T_enc, 5], dtype=jnp.int32)  # sorted descending (pack_padded req.)
    mfcc_targets = jax.random.normal(k_m, (B, T_mfcc, cfg["mfcc_size"]), dtype=jnp.float32)
    ipa_targets = jax.random.randint(k_i, (B, T_ipa), 0, cfg["ipa_vocab"], dtype=jnp.int32)

    mfcc_out, ipa_out = g2p_forward(params, graphemes, input_seq_lens, mfcc_targets, ipa_targets)
    jax.block_until_ready((mfcc_out, ipa_out))

    assert mfcc_out.shape == (B, T_mfcc - 1, cfg["mfcc_size"])
    assert ipa_out.shape == (B, T_ipa - 1, cfg["ipa_vocab"] - 1)
    assert bool(jnp.all(jnp.isfinite(mfcc_out))) and bool(jnp.all(jnp.isfinite(ipa_out)))

    print("KERNEL_OK")
</pallas_src>

<mosaic_0001>
module attributes {stable_mosaic.version = 11 : i64} {
  func.func @kernel(%arg0: memref<2x1xi32, #tpu.memory_space<vmem>>, %arg1: memref<2x8x16xf32, #tpu.memory_space<vmem>>, %arg2: memref<16x64xf32, #tpu.memory_space<vmem>>, %arg3: memref<16x64xf32, #tpu.memory_space<vmem>>, %arg4: memref<1x64xf32, #tpu.memory_space<vmem>>, %arg5: memref<16x64xf32, #tpu.memory_space<vmem>>, %arg6: memref<16x64xf32, #tpu.memory_space<vmem>>, %arg7: memref<1x64xf32, #tpu.memory_space<vmem>>, %arg8: memref<32x64xf32, #tpu.memory_space<vmem>>, %arg9: memref<16x64xf32, #tpu.memory_space<vmem>>, %arg10: memref<1x64xf32, #tpu.memory_space<vmem>>, %arg11: memref<32x64xf32, #tpu.memory_space<vmem>>, %arg12: memref<16x64xf32, #tpu.memory_space<vmem>>, %arg13: memref<1x64xf32, #tpu.memory_space<vmem>>, %arg14: memref<32x64xf32, #tpu.memory_space<vmem>>, %arg15: memref<1x64xf32, #tpu.memory_space<vmem>>, %arg16: memref<2x5x8xf32, #tpu.memory_space<vmem>>, %arg17: memref<16x16xf32, #tpu.memory_space<vmem>>, %arg18: memref<1x16xf32, #tpu.memory_space<vmem>>, %arg19: memref<16x8xf32, #tpu.memory_space<vmem>>, %arg20: memref<1x8xf32, #tpu.memory_space<vmem>>, %arg21: memref<8x64xf32, #tpu.memory_space<vmem>>, %arg22: memref<16x64xf32, #tpu.memory_space<vmem>>, %arg23: memref<16x64xf32, #tpu.memory_space<vmem>>, %arg24: memref<1x64xf32, #tpu.memory_space<vmem>>, %arg25: memref<16x64xf32, #tpu.memory_space<vmem>>, %arg26: memref<16x64xf32, #tpu.memory_space<vmem>>, %arg27: memref<1x64xf32, #tpu.memory_space<vmem>>, %arg28: memref<2x5x16xf32, #tpu.memory_space<vmem>>, %arg29: memref<16x16xf32, #tpu.memory_space<vmem>>, %arg30: memref<1x16xf32, #tpu.memory_space<vmem>>, %arg31: memref<16x9xf32, #tpu.memory_space<vmem>>, %arg32: memref<1x9xf32, #tpu.memory_space<vmem>>, %arg33: memref<16x64xf32, #tpu.memory_space<vmem>>, %arg34: memref<16x64xf32, #tpu.memory_space<vmem>>, %arg35: memref<16x64xf32, #tpu.memory_space<vmem>>, %arg36: memref<1x64xf32, #tpu.memory_space<vmem>>, %arg37: memref<16x64xf32, #tpu.memory_space<vmem>>, %arg38: memref<16x64xf32, #tpu.memory_space<vmem>>, %arg39: memref<1x64xf32, #tpu.memory_space<vmem>>, %arg40: memref<2x5x8xf32, #tpu.memory_space<vmem>>, %arg41: memref<2x5x9xf32, #tpu.memory_space<vmem>>) attributes {dimension_semantics = [], scalar_prefetch = 0 : i64, scratch_operands = 0 : i64, tpu.core_type = #tpu.core_type<tc>} {
    %c0 = arith.constant 0 : index
    %c0_0 = arith.constant 0 : index
    %0 = vector.load %arg0[%c0, %c0_0] : memref<2x1xi32, #tpu.memory_space<vmem>>, vector<2x1xi32>
    %1 = tpu.iota {dimensions = array<i32: 1>} : vector<2x8xi32>
    %2 = vector.broadcast %0 : vector<2x1xi32> to vector<2x8xi32>
    %3 = arith.cmpi slt, %1, %2 : vector<2x8xi32>
    %4 = vector.broadcast %0 : vector<2x1xi32> to vector<2x8xi32>
    %5 = arith.cmpi sgt, %1, %4 : vector<2x8xi32>
    %c0_1 = arith.constant 0 : index
    %c0_2 = arith.constant 0 : index
    %c0_3 = arith.constant 0 : index
    %6 = vector.load %arg1[%c0_1, %c0_2, %c0_3] : memref<2x8x16xf32, #tpu.memory_space<vmem>>, vector<2x8x16xf32>
    %c0_4 = arith.constant 0 : index
    %c0_5 = arith.constant 0 : index
    %7 = vector.load %arg2[%c0_4, %c0_5] : memref<16x64xf32, #tpu.memory_space<vmem>>, vector<16x64xf32>
    %c0_6 = arith.constant 0 : index
    %c0_7 = arith.constant 0 : index
    %8 = vector.load %arg3[%c0_6, %c0_7] : memref<16x64xf32, #tpu.memory_space<vmem>>, vector<16x64xf32>
    %c0_8 = arith.constant 0 : index
    %c0_9 = arith.constant 0 : index
    %9 = vector.load %arg4[%c0_8, %c0_9] : memref<1x64xf32, #tpu.memory_space<vmem>>, vector<1x64xf32>
    %10 = vector.shape_cast %6 : vector<2x8x16xf32> to vector<16x16xf32>
    %cst = arith.constant dense<0.000000e+00> : vector<16x64xf32>
    %11 = tpu.matmul %10, %7, %cst {dimension_numbers = #tpu.dot_dimension_numbers<[1], [0], [0], [1], [0, 0, 1, 1], [], []>} : vector<16x16xf32>, vector<16x64xf32>, vector<16x64xf32> -> vector<16x64xf32>
    %12 = vector.broadcast %9 : vector<1x64xf32> to vector<16x64xf32>
    %13 = arith.addf %11, %12 : vector<16x64xf32>
    %14 = vector.shape_cast %13 : vector<16x64xf32> to vector<2x8x64xf32>
    %cst_10 = arith.constant 0.000000e+00 : f32
    %15 = vector.broadcast %cst_10 : f32 to vector<2x16xf32>
    %cst_11 = arith.constant 0.000000e+00 : f32
    %16 = vector.broadcast %cst_11 : f32 to vector<2x16xf32>
    %17 = vector.extract_strided_slice %3 {offsets = [0, 0], sizes = [2, 1], strides = [1, 1]} : vector<2x8xi1> to vector<2x1xi1>
    %18 = vector.extract_strided_slice %14 {offsets = [0, 0, 0], sizes = [2, 1, 64], strides = [1, 1, 1]} : vector<2x8x64xf32> to vector<2x1x64xf32>
    %19 = vector.shape_cast %18 : vector<2x1x64xf32> to vector<2x64xf32>
    %cst_12 = arith.constant dense<0.000000e+00> : vector<2x64xf32>
    %20 = tpu.matmul %15, %8, %cst_12 {dimension_numbers = #tpu.dot_dimension_numbers<[1], [0], [0], [1], [0, 0, 1, 1], [], []>} : vector<2x16xf32>, vector<16x64xf32>, vector<2x64xf32> -> vector<2x64xf32>
    %21 = arith.addf %19, %20 : vector<2x64xf32>
    %22 = arith.negf %21 : vector<2x64xf32>
    %23 = math.exp %22 : vector<2x64xf32>
    %cst_13 = arith.constant 1.000000e+00 : f32
    %24 = vector.broadcast %cst_13 : f32 to vector<2x64xf32>
    %25 = arith.addf %24, %23 : vector<2x64xf32>
    %26 = arith.divf %24, %25 : vector<2x64xf32>
    %27 = math.tanh %21 : vector<2x64xf32>
    %28 = vector.extract_strided_slice %26 {offsets = [0, 16], sizes = [2, 16], strides = [1, 1]} : vector<2x64xf32> to vector<2x16xf32>
    %29 = arith.mulf %28, %16 : vector<2x16xf32>
    %30 = vector.extract_strided_slice %26 {offsets = [0, 0], sizes = [2, 16], strides = [1, 1]} : vector<2x64xf32> to vector<2x16xf32>
    %31 = vector.extract_strided_slice %27 {offsets = [0, 32], sizes = [2, 16], strides = [1, 1]} : vector<2x64xf32> to vector<2x16xf32>
    %32 = arith.mulf %30, %31 : vector<2x16xf32>
    %33 = arith.addf %29, %32 : vector<2x16xf32>
    %34 = vector.extract_strided_slice %26 {offsets = [0, 48], sizes = [2, 16], strides = [1, 1]} : vector<2x64xf32> to vector<2x16xf32>
    %35 = math.tanh %33 : vector<2x16xf32>
    %36 = arith.mulf %34, %35 : vector<2x16xf32>
    %cst_14 = arith.constant 0.000000e+00 : f32
    %37 = vector.shape_cast %17 : vector<2x1xi1> to vector<2x1xi1>
    %38 = vector.broadcast %37 : vector<2x1xi1> to vector<2x16xi1>
    %39 = vector.broadcast %cst_14 : f32 to vector<2x16xf32>
    %40 = arith.select %38, %36, %39 : vector<2x16xi1>, vector<2x16xf32>
    %41 = vector.shape_cast %17 : vector<2x1xi1> to vector<2x1xi1>
    %42 = vector.broadcast %41 : vector<2x1xi1> to vector<2x16xi1>
    %43 = arith.select %42, %36, %15 : vector<2x16xi1>, vector<2x16xf32>
    %44 = vector.shape_cast %17 : vector<2x1xi1> to vector<2x1xi1>
    %45 = vector.broadcast %44 : vector<2x1xi1> to vector<2x16xi1>
    %46 = arith.select %45, %33, %16 : vector<2x16xi1>, vector<2x16xf32>
    %47 = vector.extract_strided_slice %3 {offsets = [0, 1], sizes = [2, 1], strides = [1, 1]} : vector<2x8xi1> to vector<2x1xi1>
    %48 = vector.extract_strided_slice %14 {offsets = [0, 1, 0], sizes = [2, 1, 64], strides = [1, 1, 1]} : vector<2x8x64xf32> to vector<2x1x64xf32>
    %49 = vector.shape_cast %48 : vector<2x1x64xf32> to vector<2x64xf32>
    %cst_15 = arith.constant dense<0.000000e+00> : vector<2x64xf32>
    %50 = tpu.matmul %43, %8, %cst_15 {dimension_numbers = #tpu.dot_dimension_numbers<[1], [0], [0], [1], [0, 0, 1, 1], [], []>} : vector<2x16xf32>, vector<16x64xf32>, vector<2x64xf32> -> vector<2x64xf32>
    %51 = arith.addf %49, %50 : vector<2x64xf32>
    %52 = arith.negf %51 : vector<2x64xf32>
    %53 = math.exp %52 : vector<2x64xf32>
    %cst_16 = arith.constant 1.000000e+00 : f32
    %54 = vector.broadcast %cst_16 : f32 to vector<2x64xf32>
    %55 = arith.addf %54, %53 : vector<2x64xf32>
    %56 = arith.divf %54, %55 : vector<2x64xf32>
    %57 = math.tanh %51 : vector<2x64xf32>
    %58 = vector.extract_strided_slice %56 {offsets = [0, 16], sizes = [2, 16], strides = [1, 1]} : vector<2x64xf32> to vector<2x16xf32>
    %59 = arith.mulf %58, %46 : vector<2x16xf32>
    %60 = vector.extract_strided_slice %56 {offsets = [0, 0], sizes = [2, 16], strides = [1, 1]} : vector<2x64xf32> to vector<2x16xf32>
    %61 = vector.extract_strided_slice %57 {offsets = [0, 32], sizes = [2, 16], strides = [1, 1]} : vector<2x64xf32> to vector<2x16xf32>
    %62 = arith.mulf %60, %61 : vector<2x16xf32>
    %63 = arith.addf %59, %62 : vector<2x16xf32>
    %64 = vector.extract_strided_slice %56 {offsets = [0, 48], sizes = [2, 16], strides = [1, 1]} : vector<2x64xf32> to vector<2x16xf32>
    %65 = math.tanh %63 : vector<2x16xf32>
    %66 = arith.mulf %64, %65 : vector<2x16xf32>
    %cst_17 = arith.constant 0.000000e+00 : f32
    %67 = vector.shape_cast %47 : vector<2x1xi1> to vector<2x1xi1>
    %68 = vector.broadcast %67 : vector<2x1xi1> to vector<2x16xi1>
    %69 = vector.broadcast %cst_17 : f32 to vector<2x16xf32>
    %70 = arith.select %68, %66, %69 : vector<2x16xi1>, vector<2x16xf32>
    %71 = vector.shape_cast %47 : vector<2x1xi1> to vector<2x1xi1>
    %72 = vector.broadcast %71 : vector<2x1xi1> to vector<2x16xi1>
    %73 = arith.select %72, %66, %43 : vector<2x16xi1>, vector<2x16xf32>
    %74 = vector.shape_cast %47 : vector<2x1xi1> to vector<2x1xi1>
    %75 = vector.broadcast %74 : vector<2x1xi1> to vector<2x16xi1>
    %76 = arith.select %75, %63, %46 : vector<2x16xi1>, vector<2x16xf32>
    %77 = vector.extract_strided_slice %3 {offsets = [0, 2], sizes = [2, 1], strides = [1, 1]} : vector<2x8xi1> to vector<2x1xi1>
    %78 = vector.extract_strided_slice %14 {offsets = [0, 2, 0], sizes = [2, 1, 64], strides = [1, 1, 1]} : vector<2x8x64xf32> to vector<2x1x64xf32>
    %79 = vector.shape_cast %78 : vector<2x1x64xf32> to vector<2x64xf32>
    %cst_18 = arith.constant dense<0.000000e+00> : vector<2x64xf32>
    %80 = tpu.matmul %73, %8, %cst_18 {dimension_numbers = #tpu.dot_dimension_numbers<[1], [0], [0], [1], [0, 0, 1, 1], [], []>} : vector<2x16xf32>, vector<16x64xf32>, vector<2x64xf32> -> vector<2x64xf32>
    %81 = arith.addf %79, %80 : vector<2x64xf32>
    %82 = arith.negf %81 : vector<2x64xf32>
    %83 = math.exp %82 : vector<2x64xf32>
    %cst_19 = arith.constant 1.000000e+00 : f32
    %84 = vector.broadcast %cst_19 : f32 to vector<2x64xf32>
    %85 = arith.addf %84, %83 : vector<2x64xf32>
    %86 = arith.divf %84, %85 : vector<2x64xf32>
    %87 = math.tanh %81 : vector<2x64xf32>
    %88 = vector.extract_strided_slice %86 {offsets = [0, 16], sizes = [2, 16], strides = [1, 1]} : vector<2x64xf32> to vector<2x16xf32>
    %89 = arith.mulf %88, %76 : vector<2x16xf32>
    %90 = vector.extract_strided_slice %86 {offsets = [0, 0], sizes = [2, 16], strides = [1, 1]} : vector<2x64xf32> to vector<2x16xf32>
    %91 = vector.extract_strided_slice %87 {offsets = [0, 32], sizes = [2, 16], strides = [1, 1]} : vector<2x64xf32> to vector<2x16xf32>
    %92 = arith.mulf %90, %91 : vector<2x16xf32>
    %93 = arith.addf %89, %92 : vector<2x16xf32>
    %94 = vector.extract_strided_slice %86 {offsets = [0, 48], sizes = [2, 16], strides = [1, 1]} : vector<2x64xf32> to vector<2x16xf32>
    %95 = math.tanh %93 : vector<2x16xf32>
    %96 = arith.mulf %94, %95 : vector<2x16xf32>
    %cst_20 = arith.constant 0.000000e+00 : f32
    %97 = vector.shape_cast %77 : vector<2x1xi1> to vector<2x1xi1>
    %98 = vector.broadcast %97 : vector<2x1xi1> to vector<2x16xi1>
    %99 = vector.broadcast %cst_20 : f32 to vector<2x16xf32>
    %100 = arith.select %98, %96, %99 : vector<2x16xi1>, vector<2x16xf32>
    %101 = vector.shape_cast %77 : vector<2x1xi1> to vector<2x1xi1>
    %102 = vector.broadcast %101 : vector<2x1xi1> to vector<2x16xi1>
    %103 = arith.select %102, %96, %73 : vector<2x16xi1>, vector<2x16xf32>
    %104 = vector.shape_cast %77 : vector<2x1xi1> to vector<2x1xi1>
    %105 = vector.broadcast %104 : vector<2x1xi1> to vector<2x16xi1>
    %106 = arith.select %105, %93, %76 : vector<2x16xi1>, vector<2x16xf32>
    %107 = vector.extract_strided_slice %3 {offsets = [0, 3], sizes = [2, 1], strides = [1, 1]} : vector<2x8xi1> to vector<2x1xi1>
    %108 = vector.extract_strided_slice %14 {offsets = [0, 3, 0], sizes = [2, 1, 64], strides = [1, 1, 1]} : vector<2x8x64xf32> to vector<2x1x64xf32>
    %109 = vector.shape_cast %108 : vector<2x1x64xf32> to vector<2x64xf32>
    %cst_21 = arith.constant dense<0.000000e+00> : vector<2x64xf32>
    %110 = tpu.matmul %103, %8, %cst_21 {dimension_numbers = #tpu.dot_dimension_numbers<[1], [0], [0], [1], [0, 0, 1, 1], [], []>} : vector<2x16xf32>, vector<16x64xf32>, vector<2x64xf32> -> vector<2x64xf32>
    %111 = arith.addf %109, %110 : vector<2x64xf32>
    %112 = arith.negf %111 : vector<2x64xf32>
    %113 = math.exp %112 : vector<2x64xf32>
    %cst_22 = arith.constant 1.000000e+00 : f32
    %114 = vector.broadcast %cst_22 : f32 to vector<2x64xf32>
    %115 = arith.addf %114, %113 : vector<2x64xf32>
    %116 = arith.divf %114, %115 : vector<2x64xf32>
    %117 = math.tanh %111 : vector<2x64xf32>
    %118 = vector.extract_strided_slice %116 {offsets = [0, 16], sizes = [2, 16], strides = [1, 1]} : vector<2x64xf32> to vector<2x16xf32>
    %119 = arith.mulf %118, %106 : vector<2x16xf32>
    %120 = vector.extract_strided_slice %116 {offsets = [0, 0], sizes = [2, 16], strides = [1, 1]} : vector<2x64xf32> to vector<2x16xf32>
    %121 = vector.extract_strided_slice %117 {offsets = [0, 32], sizes = [2, 16], strides = [1, 1]} : vector<2x64xf32> to vector<2x16xf32>
    %122 = arith.mulf %120, %121 : vector<2x16xf32>
    %123 = arith.addf %119, %122 : vector<2x16xf32>
    %124 = vector.extract_strided_slice %116 {offsets = [0, 48], sizes = [2, 16], strides = [1, 1]} : vector<2x64xf32> to vector<2x16xf32>
    %125 = math.tanh %123 : vector<2x16xf32>
    %126 = arith.mulf %124, %125 : vector<2x16xf32>
    %cst_23 = arith.constant 0.000000e+00 : f32
    %127 = vector.shape_cast %107 : vector<2x1xi1> to vector<2x1xi1>
    %128 = vector.broadcast %127 : vector<2x1xi1> to vector<2x16xi1>
    %129 = vector.broadcast %cst_23 : f32 to vector<2x16xf32>
    %130 = arith.select %128, %126, %129 : vector<2x16xi1>, vector<2x16xf32>
    %131 = vector.shape_cast %107 : vector<2x1xi1> to vector<2x1xi1>
    %132 = vector.broadcast %131 : vector<2x1xi1> to vector<2x16xi1>
    %133 = arith.select %132, %126, %103 : vector<2x16xi1>, vector<2x16xf32>
    %134 = vector.shape_cast %107 : vector<2x1xi1> to vector<2x1xi1>
    %135 = vector.broadcast %134 : vector<2x1xi1> to vector<2x16xi1>
    %136 = arith.select %135, %123, %106 : vector<2x16xi1>, vector<2x16xf32>
    %137 = vector.extract_strided_slice %3 {offsets = [0, 4], sizes = [2, 1], strides = [1, 1]} : vector<2x8xi1> to vector<2x1xi1>
    %138 = vector.extract_strided_slice %14 {offsets = [0, 4, 0], sizes = [2, 1, 64], strides = [1, 1, 1]} : vector<2x8x64xf32> to vector<2x1x64xf32>
    %139 = vector.shape_cast %138 : vector<2x1x64xf32> to vector<2x64xf32>
    %cst_24 = arith.constant dense<0.000000e+00> : vector<2x64xf32>
    %140 = tpu.matmul %133, %8, %cst_24 {dimension_numbers = #tpu.dot_dimension_numbers<[1], [0], [0], [1], [0, 0, 1, 1], [], []>} : vector<2x16xf32>, vector<16x64xf32>, vector<2x64xf32> -> vector<2x64xf32>
    %141 = arith.addf %139, %140 : vector<2x64xf32>
    %142 = arith.negf %141 : vector<2x64xf32>
    %143 = math.exp %142 : vector<2x64xf32>
    %cst_25 = arith.constant 1.000000e+00 : f32
    %144 = vector.broadcast %cst_25 : f32 to vector<2x64xf32>
    %145 = arith.addf %144, %143 : vector<2x64xf32>
    %146 = arith.divf %144, %145 : vector<2x64xf32>
    %147 = math.tanh %141 : vector<2x64xf32>
    %148 = vector.extract_strided_slice %146 {offsets = [0, 16], sizes = [2, 16], strides = [1, 1]} : vector<2x64xf32> to vector<2x16xf32>
    %149 = arith.mulf %148, %136 : vector<2x16xf32>
    %150 = vector.extract_strided_slice %146 {offsets = [0, 0], sizes = [2, 16], strides = [1, 1]} : vector<2x64xf32> to vector<2x16xf32>
    %151 = vector.extract_strided_slice %147 {offsets = [0, 32], sizes = [2, 16], strides = [1, 1]} : vector<2x64xf32> to vector<2x16xf32>
    %152 = arith.mulf %150, %151 : vector<2x16xf32>
    %153 = arith.addf %149, %152 : vector<2x16xf32>
    %154 = vector.extract_strided_slice %146 {offsets = [0, 48], sizes = [2, 16], strides = [1, 1]} : vector<2x64xf32> to vector<2x16xf32>
    %155 = math.tanh %153 : vector<2x16xf32>
    %156 = arith.mulf %154, %155 : vector<2x16xf32>
    %cst_26 = arith.constant 0.000000e+00 : f32
    %157 = vector.shape_cast %137 : vector<2x1xi1> to vector<2x1xi1>
    %158 = vector.broadcast %157 : vector<2x1xi1> to vector<2x16xi1>
    %159 = vector.broadcast %cst_26 : f32 to vector<2x16xf32>
    %160 = arith.select %158, %156, %159 : vector<2x16xi1>, vector<2x16xf32>
    %161 = vector.shape_cast %137 : vector<2x1xi1> to vector<2x1xi1>
    %162 = vector.broadcast %161 : vector<2x1xi1> to vector<2x16xi1>
    %163 = arith.select %162, %156, %133 : vector<2x16xi1>, vector<2x16xf32>
    %164 = vector.shape_cast %137 : vector<2x1xi1> to vector<2x1xi1>
    %165 = vector.broadcast %164 : vector<2x1xi1> to vector<2x16xi1>
    %166 = arith.select %165, %153, %136 : vector<2x16xi1>, vector<2x16xf32>
    %167 = vector.extract_strided_slice %3 {offsets = [0, 5], sizes = [2, 1], strides = [1, 1]} : vector<2x8xi1> to vector<2x1xi1>
    %168 = vector.extract_strided_slice %14 {offsets = [0, 5, 0], sizes = [2, 1, 64], strides = [1, 1, 1]} : vector<2x8x64xf32> to vector<2x1x64xf32>
    %169 = vector.shape_cast %168 : vector<2x1x64xf32> to vector<2x64xf32>
    %cst_27 = arith.constant dense<0.000000e+00> : vector<2x64xf32>
    %170 = tpu.matmul %163, %8, %cst_27 {dimension_numbers = #tpu.dot_dimension_numbers<[1], [0], [0], [1], [0, 0, 1, 1], [], []>} : vector<2x16xf32>, vector<16x64xf32>, vector<2x64xf32> -> vector<2x64xf32>
    %171 = arith.addf %169, %170 : vector<2x64xf32>
    %172 = arith.negf %171 : vector<2x64xf32>
    %173 = math.exp %172 : vector<2x64xf32>
    %cst_28 = arith.constant 1.000000e+00 : f32
    %174 = vector.broadcast %cst_28 : f32 to vector<2x64xf32>
    %175 = arith.addf %174, %173 : vector<2x64xf32>
    %176 = arith.divf %174, %175 : vector<2x64xf32>
    %177 = math.tanh %171 : vector<2x64xf32>
    %178 = vector.extract_strided_slice %176 {offsets = [0, 16], sizes = [2, 16], strides = [1, 1]} : vector<2x64xf32> to vector<2x16xf32>
    %179 = arith.mulf %178, %166 : vector<2x16xf32>
    %180 = vector.extract_strided_slice %176 {offsets = [0, 0], sizes = [2, 16], strides = [1, 1]} : vector<2x64xf32> to vector<2x16xf32>
    %181 = vector.extract_strided_slice %177 {offsets = [0, 32], sizes = [2, 16], strides = [1, 1]} : vector<2x64xf32> to vector<2x16xf32>
    %182 = arith.mulf %180, %181 : vector<2x16xf32>
    %183 = arith.addf %179, %182 : vector<2x16xf32>
    %184 = vector.extract_strided_slice %176 {offsets = [0, 48], sizes = [2, 16], strides = [1, 1]} : vector<2x64xf32> to vector<2x16xf32>
    %185 = math.tanh %183 : vector<2x16xf32>
    %186 = arith.mulf %184, %185 : vector<2x16xf32>
    %cst_29 = arith.constant 0.000000e+00 : f32
    %187 = vector.shape_cast %167 : vector<2x1xi1> to vector<2x1xi1>
    %188 = vector.broadcast %187 : vector<2x1xi1> to vector<2x16xi1>
    %189 = vector.broadcast %cst_29 : f32 to vector<2x16xf32>
    %190 = arith.select %188, %186, %189 : vector<2x16xi1>, vector<2x16xf32>
    %191 = vector.shape_cast %167 : vector<2x1xi1> to vector<2x1xi1>
    %192 = vector.broadcast %191 : vector<2x1xi1> to vector<2x16xi1>
    %193 = arith.select %192, %186, %163 : vector<2x16xi1>, vector<2x16xf32>
    %194 = vector.shape_cast %167 : vector<2x1xi1> to vector<2x1xi1>
    %195 = vector.broadcast %194 : vector<2x1xi1> to vector<2x16xi1>
    %196 = arith.select %195, %183, %166 : vector<2x16xi1>, vector<2x16xf32>
    %197 = vector.extract_strided_slice %3 {offsets = [0, 6], sizes = [2, 1], strides = [1, 1]} : vector<2x8xi1> to vector<2x1xi1>
    %198 = vector.extract_strided_slice %14 {offsets = [0, 6, 0], sizes = [2, 1, 64], strides = [1, 1, 1]} : vector<2x8x64xf32> to vector<2x1x64xf32>
    %199 = vector.shape_cast %198 : vector<2x1x64xf32> to vector<2x64xf32>
    %cst_30 = arith.constant dense<0.000000e+00> : vector<2x64xf32>
    %200 = tpu.matmul %193, %8, %cst_30 {dimension_numbers = #tpu.dot_dimension_numbers<[1], [0], [0], [1], [0, 0, 1, 1], [], []>} : vector<2x16xf32>, vector<16x64xf32>, vector<2x64xf32> -> vector<2x64xf32>
    %201 = arith.addf %199, %200 : vector<2x64xf32>
    %202 = arith.negf %201 : vector<2x64xf32>
    %203 = math.exp %202 : vector<2x64xf32>
    %cst_31 = arith.constant 1.000000e+00 : f32
    %204 = vector.broadcast %cst_31 : f32 to vector<2x64xf32>
    %205 = arith.addf %204, %203 : vector<2x64xf32>
    %206 = arith.divf %204, %205 : vector<2x64xf32>
    %207 = math.tanh %201 : vector<2x64xf32>
    %208 = vector.extract_strided_slice %206 {offsets = [0, 16], sizes = [2, 16], strides = [1, 1]} : vector<2x64xf32> to vector<2x16xf32>
    %209 = arith.mulf %208, %196 : vector<2x16xf32>
    %210 = vector.extract_strided_slice %206 {offsets = [0, 0], sizes = [2, 16], strides = [1, 1]} : vector<2x64xf32> to vector<2x16xf32>
    %211 = vector.extract_strided_slice %207 {offsets = [0, 32], sizes = [2, 16], strides = [1, 1]} : vector<2x64xf32> to vector<2x16xf32>
    %212 = arith.mulf %210, %211 : vector<2x16xf32>
    %213 = arith.addf %209, %212 : vector<2x16xf32>
    %214 = vector.extract_strided_slice %206 {offsets = [0, 48], sizes = [2, 16], strides = [1, 1]} : vector<2x64xf32> to vector<2x16xf32>
    %215 = math.tanh %213 : vector<2x16xf32>
    %216 = arith.mulf %214, %215 : vector<2x16xf32>
    %cst_32 = arith.constant 0.000000e+00 : f32
    %217 = vector.shape_cast %197 : vector<2x1xi1> to vector<2x1xi1>
    %218 = vector.broadcast %217 : vector<2x1xi1> to vector<2x16xi1>
    %219 = vector.broadcast %cst_32 : f32 to vector<2x16xf32>
    %220 = arith.select %218, %216, %219 : vector<2x16xi1>, vector<2x16xf32>
    %221 = vector.shape_cast %197 : vector<2x1xi1> to vector<2x1xi1>
    %222 = vector.broadcast %221 : vector<2x1xi1> to vector<2x16xi1>
    %223 = arith.select %222, %216, %193 : vector<2x16xi1>, vector<2x16xf32>
    %224 = vector.shape_cast %197 : vector<2x1xi1> to vector<2x1xi1>
    %225 = vector.broadcast %224 : vector<2x1xi1> to vector<2x16xi1>
    %226 = arith.select %225, %213, %196 : vector<2x16xi1>, vector<2x16xf32>
    %227 = vector.extract_strided_slice %3 {offsets = [0, 7], sizes = [2, 1], strides = [1, 1]} : vector<2x8xi1> to vector<2x1xi1>
    %228 = vector.extract_strided_slice %14 {offsets = [0, 7, 0], sizes = [2, 1, 64], strides = [1, 1, 1]} : vector<2x8x64xf32> to vector<2x1x64xf32>
    %229 = vector.shape_cast %228 : vector<2x1x64xf32> to vector<2x64xf32>
    %cst_33 = arith.constant dense<0.000000e+00> : vector<2x64xf32>
    %230 = tpu.matmul %223, %8, %cst_33 {dimension_numbers = #tpu.dot_dimension_numbers<[1], [0], [0], [1], [0, 0, 1, 1], [], []>} : vector<2x16xf32>, vector<16x64xf32>, vector<2x64xf32> -> vector<2x64xf32>
    %231 = arith.addf %229, %230 : vector<2x64xf32>
    %232 = arith.negf %231 : vector<2x64xf32>
    %233 = math.exp %232 : vector<2x64xf32>
    %cst_34 = arith.constant 1.000000e+00 : f32
    %234 = vector.broadcast %cst_34 : f32 to vector<2x64xf32>
    %235 = arith.addf %234, %233 : vector<2x64xf32>
    %236 = arith.divf %234, %235 : vector<2x64xf32>
    %237 = math.tanh %231 : vector<2x64xf32>
    %238 = vector.extract_strided_slice %236 {offsets = [0, 16], sizes = [2, 16], strides = [1, 1]} : vector<2x64xf32> to vector<2x16xf32>
    %239 = arith.mulf %238, %226 : vector<2x16xf32>
    %240 = vector.extract_strided_slice %236 {offsets = [0, 0], sizes = [2, 16], strides = [1, 1]} : vector<2x64xf32> to vector<2x16xf32>
    %241 = vector.extract_strided_slice %237 {offsets = [0, 32], sizes = [2, 16], strides = [1, 1]} : vector<2x64xf32> to vector<2x16xf32>
    %242 = arith.mulf %240, %241 : vector<2x16xf32>
    %243 = arith.addf %239, %242 : vector<2x16xf32>
    %244 = vector.extract_strided_slice %236 {offsets = [0, 48], sizes = [2, 16], strides = [1, 1]} : vector<2x64xf32> to vector<2x16xf32>
    %245 = math.tanh %243 : vector<2x16xf32>
    %246 = arith.mulf %244, %245 : vector<2x16xf32>
    %cst_35 = arith.constant 0.000000e+00 : f32
    %247 = vector.shape_cast %227 : vector<2x1xi1> to vector<2x1xi1>
    %248 = vector.broadcast %247 : vector<2x1xi1> to vector<2x16xi1>
    %249 = vector.broadcast %cst_35 : f32 to vector<2x16xf32>
    %250 = arith.select %248, %246, %249 : vector<2x16xi1>, vector<2x16xf32>
    %251 = vector.shape_cast %40 : vector<2x16xf32> to vector<2x1x16xf32>
    %252 = vector.shape_cast %70 : vector<2x16xf32> to vector<2x1x16xf32>
    %253 = vector.shape_cast %100 : vector<2x16xf32> to vector<2x1x16xf32>
    %254 = vector.shape_cast %130 : vector<2x16xf32> to vector<2x1x16xf32>
    %255 = vector.shape_cast %160 : vector<2x16xf32> to vector<2x1x16xf32>
    %256 = vector.shape_cast %190 : vector<2x16xf32> to vector<2x1x16xf32>
    %257 = vector.shape_cast %220 : vector<2x16xf32> to vector<2x1x16xf32>
    %258 = vector.shape_cast %250 : vector<2x16xf32> to vector<2x1x16xf32>
    %259 = tpu.concatenate %251, %252, %253, %254, %255, %256, %257, %258 in 1 : vector<2x1x16xf32>, vector<2x1x16xf32>, vector<2x1x16xf32>, vector<2x1x16xf32>, vector<2x1x16xf32>, vector<2x1x16xf32>, vector<2x1x16xf32>, vector<2x1x16xf32> -> vector<2x8x16xf32>
    %c0_36 = arith.constant 0 : index
    %c0_37 = arith.constant 0 : index
    %260 = vector.load %arg5[%c0_36, %c0_37] : memref<16x64xf32, #tpu.memory_space<vmem>>, vector<16x64xf32>
    %c0_38 = arith.constant 0 : index
    %c0_39 = arith.constant 0 : index
    %261 = vector.load %arg6[%c0_38, %c0_39] : memref<16x64xf32, #tpu.memory_space<vmem>>, vector<16x64xf32>
    %c0_40 = arith.constant 0 : index
    %c0_41 = arith.constant 0 : index
    %262 = vector.load %arg7[%c0_40, %c0_41] : memref<1x64xf32, #tpu.memory_space<vmem>>, vector<1x64xf32>
    %263 = vector.shape_cast %6 : vector<2x8x16xf32> to vector<16x16xf32>
    %cst_42 = arith.constant dense<0.000000e+00> : vector<16x64xf32>
    %264 = tpu.matmul %263, %260, %cst_42 {dimension_numbers = #tpu.dot_dimension_numbers<[1], [0], [0], [1], [0, 0, 1, 1], [], []>} : vector<16x16xf32>, vector<16x64xf32>, vector<16x64xf32> -> vector<16x64xf32>
    %265 = vector.broadcast %262 : vector<1x64xf32> to vector<16x64xf32>
    %266 = arith.addf %264, %265 : vector<16x64xf32>
    %267 = vector.shape_cast %266 : vector<16x64xf32> to vector<2x8x64xf32>
    %cst_43 = arith.constant 0.000000e+00 : f32
    %268 = vector.broadcast %cst_43 : f32 to vector<2x16xf32>
    %cst_44 = arith.constant 0.000000e+00 : f32
    %269 = vector.broadcast %cst_44 : f32 to vector<2x16xf32>
    %270 = vector.extract_strided_slice %3 {offsets = [0, 7], sizes = [2, 1], strides = [1, 1]} : vector<2x8xi1> to vector<2x1xi1>
    %271 = vector.extract_strided_slice %267 {offsets = [0, 7, 0], sizes = [2, 1, 64], strides = [1, 1, 1]} : vector<2x8x64xf32> to vector<2x1x64xf32>
    %272 = vector.shape_cast %271 : vector<2x1x64xf32> to vector<2x64xf32>
    %cst_45 = arith.constant dense<0.000000e+00> : vector<2x64xf32>
    %273 = tpu.matmul %268, %261, %cst_45 {dimension_numbers = #tpu.dot_dimension_numbers<[1], [0], [0], [1], [0, 0, 1, 1], [], []>} : vector<2x16xf32>, vector<16x64xf32>, vector<2x64xf32> -> vector<2x64xf32>
    %274 = arith.addf %272, %273 : vector<2x64xf32>
    %275 = arith.negf %274 : vector<2x64xf32>
    %276 = math.exp %275 : vector<2x64xf32>
    %cst_46 = arith.constant 1.000000e+00 : f32
    %277 = vector.broadcast %cst_46 : f32 to vector<2x64xf32>
    %278 = arith.addf %277, %276 : vector<2x64xf32>
    %279 = arith.divf %277, %278 : vector<2x64xf32>
    %280 = math.tanh %274 : vector<2x64xf32>
    %281 = vector.extract_strided_slice %279 {offsets = [0, 16], sizes = [2, 16], strides = [1, 1]} : vector<2x64xf32> to vector<2x16xf32>
    %282 = arith.mulf %281, %269 : vector<2x16xf32>
    %283 = vector.extract_strided_slice %279 {offsets = [0, 0], sizes = [2, 16], strides = [1, 1]} : vector<2x64xf32> to vector<2x16xf32>
    %284 = vector.extract_strided_slice %280 {offsets = [0, 32], sizes = [2, 16], strides = [1, 1]} : vector<2x64xf32> to vector<2x16xf32>
    %285 = arith.mulf %283, %284 : vector<2x16xf32>
    %286 = arith.addf %282, %285 : vector<2x16xf32>
    %287 = vector.extract_strided_slice %279 {offsets = [0, 48], sizes = [2, 16], strides = [1, 1]} : vector<2x64xf32> to vector<2x16xf32>
    %288 = math.tanh %286 : vector<2x16xf32>
    %289 = arith.mulf %287, %288 : vector<2x16xf32>
    %cst_47 = arith.constant 0.000000e+00 : f32
    %290 = vector.shape_cast %270 : vector<2x1xi1> to vector<2x1xi1>
    %291 = vector.broadcast %290 : vector<2x1xi1> to vector<2x16xi1>
    %292 = vector.broadcast %cst_47 : f32 to vector<2x16xf32>
    %293 = arith.select %291, %289, %292 : vector<2x16xi1>, vector<2x16xf32>
    %294 = vector.shape_cast %270 : vector<2x1xi1> to vector<2x1xi1>
    %295 = vector.broadcast %294 : vector<2x1xi1> to vector<2x16xi1>
    %296 = arith.select %295, %289, %268 : vector<2x16xi1>, vector<2x16xf32>
    %297 = vector.shape_cast %270 : vector<2x1xi1> to vector<2x1xi1>
    %298 = vector.broadcast %297 : vector<2x1xi1> to vector<2x16xi1>
    %299 = arith.select %298, %286, %269 : vector<2x16xi1>, vector<2x16xf32>
    %300 = vector.extract_strided_slice %3 {offsets = [0, 6], sizes = [2, 1], strides = [1, 1]} : vector<2x8xi1> to vector<2x1xi1>
    %301 = vector.extract_strided_slice %267 {offsets = [0, 6, 0], sizes = [2, 1, 64], strides = [1, 1, 1]} : vector<2x8x64xf32> to vector<2x1x64xf32>
    %302 = vector.shape_cast %301 : vector<2x1x64xf32> to vector<2x64xf32>
    %cst_48 = arith.constant dense<0.000000e+00> : vector<2x64xf32>
    %303 = tpu.matmul %296, %261, %cst_48 {dimension_numbers = #tpu.dot_dimension_numbers<[1], [0], [0], [1], [0, 0, 1, 1], [], []>} : vector<2x16xf32>, vector<16x64xf32>, vector<2x64xf32> -> vector<2x64xf32>
    %304 = arith.addf %302, %303 : vector<2x64xf32>
    %305 = arith.negf %304 : vector<2x64xf32>
    %306 = math.exp %305 : vector<2x64xf32>
    %cst_49 = arith.constant 1.000000e+00 : f32
    %307 = vector.broadcast %cst_49 : f32 to vector<2x64xf32>
    %308 = arith.addf %307, %306 : vector<2x64xf32>
    %309 = arith.divf %307, %308 : vector<2x64xf32>
    %310 = math.tanh %304 : vector<2x64xf32>
    %311 = vector.extract_strided_slice %309 {offsets = [0, 16], sizes = [2, 16], strides = [1, 1]} : vector<2x64xf32> to vector<2x16xf32>
    %312 = arith.mulf %311, %299 : vector<2x16xf32>
    %313 = vector.extract_strided_slice %309 {offsets = [0, 0], sizes = [2, 16], strides = [1, 1]} : vector<2x64xf32> to vector<2x16xf32>
    %314 = vector.extract_strided_slice %310 {offsets = [0, 32], sizes = [2, 16], strides = [1, 1]} : vector<2x64xf32> to vector<2x16xf32>
    %315 = arith.mulf %313, %314 : vector<2x16xf32>
    %316 = arith.addf %312, %315 : vector<2x16xf32>
    %317 = vector.extract_strided_slice %309 {offsets = [0, 48], sizes = [2, 16], strides = [1, 1]} : vector<2x64xf32> to vector<2x16xf32>
    %318 = math.tanh %316 : vector<2x16xf32>
    %319 = arith.mulf %317, %318 : vector<2x16xf32>
    %cst_50 = arith.constant 0.000000e+00 : f32
    %320 = vector.shape_cast %300 : vector<2x1xi1> to vector<2x1xi1>
    %321 = vector.broadcast %320 : vector<2x1xi1> to vector<2x16xi1>
    %322 = vector.broadcast %cst_50 : f32 to vector<2x16xf32>
    %323 = arith.select %321, %319, %322 : vector<2x16xi1>, vector<2x16xf32>
    %324 = vector.shape_cast %300 : vector<2x1xi1> to vector<2x1xi1>
    %325 = vector.broadcast %324 : vector<2x1xi1> to vector<2x16xi1>
    %326 = arith.select %325, %319, %296 : vector<2x16xi1>, vector<2x16xf32>
    %327 = vector.shape_cast %300 : vector<2x1xi1> to vector<2x1xi1>
    %328 = vector.broadcast %327 : vector<2x1xi1> to vector<2x16xi1>
    %329 = arith.select %328, %316, %299 : vector<2x16xi1>, vector<2x16xf32>
    %330 = vector.extract_strided_slice %3 {offsets = [0, 5], sizes = [2, 1], strides = [1, 1]} : vector<2x8xi1> to vector<2x1xi1>
    %331 = vector.extract_strided_slice %267 {offsets = [0, 5, 0], sizes = [2, 1, 64], strides = [1, 1, 1]} : vector<2x8x64xf32> to vector<2x1x64xf32>
    %332 = vector.shape_cast %331 : vector<2x1x64xf32> to vector<2x64xf32>
    %cst_51 = arith.constant dense<0.000000e+00> : vector<2x64xf32>
    %333 = tpu.matmul %326, %261, %cst_51 {dimension_numbers = #tpu.dot_dimension_numbers<[1], [0], [0], [1], [0, 0, 1, 1], [], []>} : vector<2x16xf32>, vector<16x64xf32>, vector<2x64xf32> -> vector<2x64xf32>
    %334 = arith.addf %332, %333 : vector<2x64xf32>
    %335 = arith.negf %334 : vector<2x64xf32>
    %336 = math.exp %335 : vector<2x64xf32>
    %cst_52 = arith.constant 1.000000e+00 : f32
    %337 = vector.broadcast %cst_52 : f32 to vector<2x64xf32>
    %338 = arith.addf %337, %336 : vector<2x64xf32>
    %339 = arith.divf %337, %338 : vector<2x64xf32>
    %340 = math.tanh %334 : vector<2x64xf32>
    %341 = vector.extract_strided_slice %339 {offsets = [0, 16], sizes = [2, 16], strides = [1, 1]} : vector<2x64xf32> to vector<2x16xf32>
    %342 = arith.mulf %341, %329 : vector<2x16xf32>
    %343 = vector.extract_strided_slice %339 {offsets = [0, 0], sizes = [2, 16], strides = [1, 1]} : vector<2x64xf32> to vector<2x16xf32>
    %344 = vector.extract_strided_slice %340 {offsets = [0, 32], sizes = [2, 16], strides = [1, 1]} : vector<2x64xf32> to vector<2x16xf32>
    %345 = arith.mulf %343, %344 : vector<2x16xf32>
    %346 = arith.addf %342, %345 : vector<2x16xf32>
    %347 = vector.extract_strided_slice %339 {offsets = [0, 48], sizes = [2, 16], strides = [1, 1]} : vector<2x64xf32> to vector<2x16xf32>
    %348 = math.tanh %346 : vector<2x16xf32>
    %349 = arith.mulf %347, %348 : vector<2x16xf32>
    %cst_53 = arith.constant 0.000000e+00 : f32
    %350 = vector.shape_cast %330 : vector<2x1xi1> to vector<2x1xi1>
    %351 = vector.broadcast %350 : vector<2x1xi1> to vector<2x16xi1>
    %352 = vector.broadcast %cst_53 : f32 to vector<2x16xf32>
    %353 = arith.select %351, %349, %352 : vector<2x16xi1>, vector<2x16xf32>
    %354 = vector.shape_cast %330 : vector<2x1xi1> to vector<2x1xi1>
    %355 = vector.broadcast %354 : vector<2x1xi1> to vector<2x16xi1>
    %356 = arith.select %355, %349, %326 : vector<2x16xi1>, vector<2x16xf32>
    %357 = vector.shape_cast %330 : vector<2x1xi1> to vector<2x1xi1>
    %358 = vector.broadcast %357 : vector<2x1xi1> to vector<2x16xi1>
    %359 = arith.select %358, %346, %329 : vector<2x16xi1>, vector<2x16xf32>
    %360 = vector.extract_strided_slice %3 {offsets = [0, 4], sizes = [2, 1], strides = [1, 1]} : vector<2x8xi1> to vector<2x1xi1>
    %361 = vector.extract_strided_slice %267 {offsets = [0, 4, 0], sizes = [2, 1, 64], strides = [1, 1, 1]} : vector<2x8x64xf32> to vector<2x1x64xf32>
    %362 = vector.shape_cast %361 : vector<2x1x64xf32> to vector<2x64xf32>
    %cst_54 = arith.constant dense<0.000000e+00> : vector<2x64xf32>
    %363 = tpu.matmul %356, %261, %cst_54 {dimension_numbers = #tpu.dot_dimension_numbers<[1], [0], [0], [1], [0, 0, 1, 1], [], []>} : vector<2x16xf32>, vector<16x64xf32>, vector<2x64xf32> -> vector<2x64xf32>
    %364 = arith.addf %362, %363 : vector<2x64xf32>
    %365 = arith.negf %364 : vector<2x64xf32>
    %366 = math.exp %365 : vector<2x64xf32>
    %cst_55 = arith.constant 1.000000e+00 : f32
    %367 = vector.broadcast %cst_55 : f32 to vector<2x64xf32>
    %368 = arith.addf %367, %366 : vector<2x64xf32>
    %369 = arith.divf %367, %368 : vector<2x64xf32>
    %370 = math.tanh %364 : vector<2x64xf32>
    %371 = vector.extract_strided_slice %369 {offsets = [0, 16], sizes = [2, 16], strides = [1, 1]} : vector<2x64xf32> to vector<2x16xf32>
    %372 = arith.mulf %371, %359 : vector<2x16xf32>
    %373 = vector.extract_strided_slice %369 {offsets = [0, 0], sizes = [2, 16], strides = [1, 1]} : vector<2x64xf32> to vector<2x16xf32>
    %374 = vector.extract_strided_slice %370 {offsets = [0, 32], sizes = [2, 16], strides = [1, 1]} : vector<2x64xf32> to vector<2x16xf32>
    %375 = arith.mulf %373, %374 : vector<2x16xf32>
    %376 = arith.addf %372, %375 : vector<2x16xf32>
    %377 = vector.extract_strided_slice %369 {offsets = [0, 48], sizes = [2, 16], strides = [1, 1]} : vector<2x64xf32> to vector<2x16xf32>
    %378 = math.tanh %376 : vector<2x16xf32>
    %379 = arith.mulf %377, %378 : vector<2x16xf32>
    %cst_56 = arith.constant 0.000000e+00 : f32
    %380 = vector.shape_cast %360 : vector<2x1xi1> to vector<2x1xi1>
    %381 = vector.broadcast %380 : vector<2x1xi1> to vector<2x16xi1>
    %382 = vector.broadcast %cst_56 : f32 to vector<2x16xf32>
    %383 = arith.select %381, %379, %382 : vector<2x16xi1>, vector<2x16xf32>
    %384 = vector.shape_cast %360 : vector<2x1xi1> to vector<2x1xi1>
    %385 = vector.broadcast %384 : vector<2x1xi1> to vector<2x16xi1>
    %386 = arith.select %385, %379, %356 : vector<2x16xi1>, vector<2x16xf32>
    %387 = vector.shape_cast %360 : vector<2x1xi1> to vector<2x1xi1>
    %388 = vector.broadcast %387 : vector<2x1xi1> to vector<2x16xi1>
    %389 = arith.select %388, %376, %359 : vector<2x16xi1>, vector<2x16xf32>
    %390 = vector.extract_strided_slice %3 {offsets = [0, 3], sizes = [2, 1], strides = [1, 1]} : vector<2x8xi1> to vector<2x1xi1>
    %391 = vector.extract_strided_slice %267 {offsets = [0, 3, 0], sizes = [2, 1, 64], strides = [1, 1, 1]} : vector<2x8x64xf32> to vector<2x1x64xf32>
    %392 = vector.shape_cast %391 : vector<2x1x64xf32> to vector<2x64xf32>
    %cst_57 = arith.constant dense<0.000000e+00> : vector<2x64xf32>
    %393 = tpu.matmul %386, %261, %cst_57 {dimension_numbers = #tpu.dot_dimension_numbers<[1], [0], [0], [1], [0, 0, 1, 1], [], []>} : vector<2x16xf32>, vector<16x64xf32>, vector<2x64xf32> -> vector<2x64xf32>
    %394 = arith.addf %392, %393 : vector<2x64xf32>
    %395 = arith.negf %394 : vector<2x64xf32>
    %396 = math.exp %395 : vector<2x64xf32>
    %cst_58 = arith.constant 1.000000e+00 : f32
    %397 = vector.broadcast %cst_58 : f32 to vector<2x64xf32>
    %398 = arith.addf %397, %396 : vector<2x64xf32>
    %399 = arith.divf %397, %398 : vector<2x64xf32>
    %400 = math.tanh %394 : vector<2x64xf32>
    %401 = vector.extract_strided_slice %399 {offsets = [0, 16], sizes = [2, 16], strides = [1, 1]} : vector<2x64xf32> to vector<2x16xf32>
    %402 = arith.mulf %401, %389 : vector<2x16xf32>
    %403 = vector.extract_strided_slice %399 {offsets = [0, 0], sizes = [2, 16], strides = [1, 1]} : vector<2x64xf32> to vector<2x16xf32>
    %404 = vector.extract_strided_slice %400 {offsets = [0, 32], sizes = [2, 16], strides = [1, 1]} : vector<2x64xf32> to vector<2x16xf32>
    %405 = arith.mulf %403, %404 : vector<2x16xf32>
    %406 = arith.addf %402, %405 : vector<2x16xf32>
    %407 = vector.extract_strided_slice %399 {offsets = [0, 48], sizes = [2, 16], strides = [1, 1]} : vector<2x64xf32> to vector<2x16xf32>
    %408 = math.tanh %406 : vector<2x16xf32>
    %409 = arith.mulf %407, %408 : vector<2x16xf32>
    %cst_59 = arith.constant 0.000000e+00 : f32
    %410 = vector.shape_cast %390 : vector<2x1xi1> to vector<2x1xi1>
    %411 = vector.broadcast %410 : vector<2x1xi1> to vector<2x16xi1>
    %412 = vector.broadcast %cst_59 : f32 to vector<2x16xf32>
    %413 = arith.select %411, %409, %412 : vector<2x16xi1>, vector<2x16xf32>
    %414 = vector.shape_cast %390 : vector<2x1xi1> to vector<2x1xi1>
    %415 = vector.broadcast %414 : vector<2x1xi1> to vector<2x16xi1>
    %416 = arith.select %415, %409, %386 : vector<2x16xi1>, vector<2x16xf32>
    %417 = vector.shape_cast %390 : vector<2x1xi1> to vector<2x1xi1>
    %418 = vector.broadcast %417 : vector<2x1xi1> to vector<2x16xi1>
    %419 = arith.select %418, %406, %389 : vector<2x16xi1>, vector<2x16xf32>
    %420 = vector.extract_strided_slice %3 {offsets = [0, 2], sizes = [2, 1], strides = [1, 1]} : vector<2x8xi1> to vector<2x1xi1>
    %421 = vector.extract_strided_slice %267 {offsets = [0, 2, 0], sizes = [2, 1, 64], strides = [1, 1, 1]} : vector<2x8x64xf32> to vector<2x1x64xf32>
    %422 = vector.shape_cast %421 : vector<2x1x64xf32> to vector<2x64xf32>
    %cst_60 = arith.constant dense<0.000000e+00> : vector<2x64xf32>
    %423 = tpu.matmul %416, %261, %cst_60 {dimension_numbers = #tpu.dot_dimension_numbers<[1], [0], [0], [1], [0, 0, 1, 1], [], []>} : vector<2x16xf32>, vector<16x64xf32>, vector<2x64xf32> -> vector<2x64xf32>
    %424 = arith.addf %422, %423 : vector<2x64xf32>
    %425 = arith.negf %424 : vector<2x64xf32>
    %426 = math.exp %425 : vector<2x64xf32>
    %cst_61 = arith.constant 1.000000e+00 : f32
    %427 = vector.broadcast %cst_61 : f32 to vector<2x64xf32>
    %428 = arith.addf %427, %426 : vector<2x64xf32>
    %429 = arith.divf %427, %428 : vector<2x64xf32>
    %430 = math.tanh %424 : vector<2x64xf32>
    %431 = vector.extract_strided_slice %429 {offsets = [0, 16], sizes = [2, 16], strides = [1, 1]} : vector<2x64xf32> to vector<2x16xf32>
    %432 = arith.mulf %431, %419 : vector<2x16xf32>
    %433 = vector.extract_strided_slice %429 {offsets = [0, 0], sizes = [2, 16], strides = [1, 1]} : vector<2x64xf32> to vector<2x16xf32>
    %434 = vector.extract_strided_slice %430 {offsets = [0, 32], sizes = [2, 16], strides = [1, 1]} : vector<2x64xf32> to vector<2x16xf32>
    %435 = arith.mulf %433, %434 : vector<2x16xf32>
    %436 = arith.addf %432, %435 : vector<2x16xf32>
    %437 = vector.extract_strided_slice %429 {offsets = [0, 48], sizes = [2, 16], strides = [1, 1]} : vector<2x64xf32> to vector<2x16xf32>
    %438 = math.tanh %436 : vector<2x16xf32>
    %439 = arith.mulf %437, %438 : vector<2x16xf32>
    %cst_62 = arith.constant 0.000000e+00 : f32
    %440 = vector.shape_cast %420 : vector<2x1xi1> to vector<2x1xi1>
    %441 = vector.broadcast %440 : vector<2x1xi1> to vector<2x16xi1>
    %442 = vector.broadcast %cst_62 : f32 to vector<2x16xf32>
    %443 = arith.select %441, %439, %442 : vector<2x16xi1>, vector<2x16xf32>
    %444 = vector.shape_cast %420 : vector<2x1xi1> to vector<2x1xi1>
    %445 = vector.broadcast %444 : vector<2x1xi1> to vector<2x16xi1>
    %446 = arith.select %445, %439, %416 : vector<2x16xi1>, vector<2x16xf32>
    %447 = vector.shape_cast %420 : vector<2x1xi1> to vector<2x1xi1>
    %448 = vector.broadcast %447 : vector<2x1xi1> to vector<2x16xi1>
    %449 = arith.select %448, %436, %419 : vector<2x16xi1>, vector<2x16xf32>
    %450 = vector.extract_strided_slice %3 {offsets = [0, 1], sizes = [2, 1], strides = [1, 1]} : vector<2x8xi1> to vector<2x1xi1>
    %451 = vector.extract_strided_slice %267 {offsets = [0, 1, 0], sizes = [2, 1, 64], strides = [1, 1, 1]} : vector<2x8x64xf32> to vector<2x1x64xf32>
    %452 = vector.shape_cast %451 : vector<2x1x64xf32> to vector<2x64xf32>
    %cst_63 = arith.constant dense<0.000000e+00> : vector<2x64xf32>
    %453 = tpu.matmul %446, %261, %cst_63 {dimension_numbers = #tpu.dot_dimension_numbers<[1], [0], [0], [1], [0, 0, 1, 1], [], []>} : vector<2x16xf32>, vector<16x64xf32>, vector<2x64xf32> -> vector<2x64xf32>
    %454 = arith.addf %452, %453 : vector<2x64xf32>
    %455 = arith.negf %454 : vector<2x64xf32>
    %456 = math.exp %455 : vector<2x64xf32>
    %cst_64 = arith.constant 1.000000e+00 : f32
    %457 = vector.broadcast %cst_64 : f32 to vector<2x64xf32>
    %458 = arith.addf %457, %456 : vector<2x64xf32>
    %459 = arith.divf %457, %458 : vector<2x64xf32>
    %460 = math.tanh %454 : vector<2x64xf32>
    %461 = vector.extract_strided_slice %459 {offsets = [0, 16], sizes = [2, 16], strides = [1, 1]} : vector<2x64xf32> to vector<2x16xf32>
    %462 = arith.mulf %461, %449 : vector<2x16xf32>
    %463 = vector.extract_strided_slice %459 {offsets = [0, 0], sizes = [2, 16], strides = [1, 1]} : vector<2x64xf32> to vector<2x16xf32>
    %464 = vector.extract_strided_slice %460 {offsets = [0, 32], sizes = [2, 16], strides = [1, 1]} : vector<2x64xf32> to vector<2x16xf32>
    %465 = arith.mulf %463, %464 : vector<2x16xf32>
    %466 = arith.addf %462, %465 : vector<2x16xf32>
    %467 = vector.extract_strided_slice %459 {offsets = [0, 48], sizes = [2, 16], strides = [1, 1]} : vector<2x64xf32> to vector<2x16xf32>
    %468 = math.tanh %466 : vector<2x16xf32>
    %469 = arith.mulf %467, %468 : vector<2x16xf32>
    %cst_65 = arith.constant 0.000000e+00 : f32
    %470 = vector.shape_cast %450 : vector<2x1xi1> to vector<2x1xi1>
    %471 = vector.broadcast %470 : vector<2x1xi1> to vector<2x16xi1>
    %472 = vector.broadcast %cst_65 : f32 to vector<2x16xf32>
    %473 = arith.select %471, %469, %472 : vector<2x16xi1>, vector<2x16xf32>
    %474 = vector.shape_cast %450 : vector<2x1xi1> to vector<2x1xi1>
    %475 = vector.broadcast %474 : vector<2x1xi1> to vector<2x16xi1>
    %476 = arith.select %475, %469, %446 : vector<2x16xi1>, vector<2x16xf32>
    %477 = vector.shape_cast %450 : vector<2x1xi1> to vector<2x1xi1>
    %478 = vector.broadcast %477 : vector<2x1xi1> to vector<2x16xi1>
    %479 = arith.select %478, %466, %449 : vector<2x16xi1>, vector<2x16xf32>
    %480 = vector.extract_strided_slice %3 {offsets = [0, 0], sizes = [2, 1], strides = [1, 1]} : vector<2x8xi1> to vector<2x1xi1>
    %481 = vector.extract_strided_slice %267 {offsets = [0, 0, 0], sizes = [2, 1, 64], strides = [1, 1, 1]} : vector<2x8x64xf32> to vector<2x1x64xf32>
    %482 = vector.shape_cast %481 : vector<2x1x64xf32> to vector<2x64xf32>
    %cst_66 = arith.constant dense<0.000000e+00> : vector<2x64xf32>
    %483 = tpu.matmul %476, %261, %cst_66 {dimension_numbers = #tpu.dot_dimension_numbers<[1], [0], [0], [1], [0, 0, 1, 1], [], []>} : vector<2x16xf32>, vector<16x64xf32>, vector<2x64xf32> -> vector<2x64xf32>
    %484 = arith.addf %482, %483 : vector<2x64xf32>
    %485 = arith.negf %484 : vector<2x64xf32>
    %486 = math.exp %485 : vector<2x64xf32>
    %cst_67 = arith.constant 1.000000e+00 : f32
    %487 = vector.broadcast %cst_67 : f32 to vector<2x64xf32>
    %488 = arith.addf %487, %486 : vector<2x64xf32>
    %489 = arith.divf %487, %488 : vector<2x64xf32>
    %490 = math.tanh %484 : vector<2x64xf32>
    %491 = vector.extract_strided_slice %489 {offsets = [0, 16], sizes = [2, 16], strides = [1, 1]} : vector<2x64xf32> to vector<2x16xf32>
    %492 = arith.mulf %491, %479 : vector<2x16xf32>
    %493 = vector.extract_strided_slice %489 {offsets = [0, 0], sizes = [2, 16], strides = [1, 1]} : vector<2x64xf32> to vector<2x16xf32>
    %494 = vector.extract_strided_slice %490 {offsets = [0, 32], sizes = [2, 16], strides = [1, 1]} : vector<2x64xf32> to vector<2x16xf32>
    %495 = arith.mulf %493, %494 : vector<2x16xf32>
    %496 = arith.addf %492, %495 : vector<2x16xf32>
    %497 = vector.extract_strided_slice %489 {offsets = [0, 48], sizes = [2, 16], strides = [1, 1]} : vector<2x64xf32> to vector<2x16xf32>
    %498 = math.tanh %496 : vector<2x16xf32>
    %499 = arith.mulf %497, %498 : vector<2x16xf32>
    %cst_68 = arith.constant 0.000000e+00 : f32
    %500 = vector.shape_cast %480 : vector<2x1xi1> to vector<2x1xi1>
    %501 = vector.broadcast %500 : vector<2x1xi1> to vector<2x16xi1>
    %502 = vector.broadcast %cst_68 : f32 to vector<2x16xf32>
    %503 = arith.select %501, %499, %502 : vector<2x16xi1>, vector<2x16xf32>
    %504 = vector.shape_cast %503 : vector<2x16xf32> to vector<2x1x16xf32>
    %505 = vector.shape_cast %473 : vector<2x16xf32> to vector<2x1x16xf32>
    %506 = vector.shape_cast %443 : vector<2x16xf32> to vector<2x1x16xf32>
    %507 = vector.shape_cast %413 : vector<2x16xf32> to vector<2x1x16xf32>
    %508 = vector.shape_cast %383 : vector<2x16xf32> to vector<2x1x16xf32>
    %509 = vector.shape_cast %353 : vector<2x16xf32> to vector<2x1x16xf32>
    %510 = vector.shape_cast %323 : vector<2x16xf32> to vector<2x1x16xf32>
    %511 = vector.shape_cast %293 : vector<2x16xf32> to vector<2x1x16xf32>
    %512 = tpu.concatenate %504, %505, %506, %507, %508, %509, %510, %511 in 1 : vector<2x1x16xf32>, vector<2x1x16xf32>, vector<2x1x16xf32>, vector<2x1x16xf32>, vector<2x1x16xf32>, vector<2x1x16xf32>, vector<2x1x16xf32>, vector<2x1x16xf32> -> vector<2x8x16xf32>
    %513 = tpu.concatenate %259, %512 in 2 : vector<2x8x16xf32>, vector<2x8x16xf32> -> vector<2x8x32xf32>
    %c0_69 = arith.constant 0 : index
    %c0_70 = arith.constant 0 : index
    %514 = vector.load %arg8[%c0_69, %c0_70] : memref<32x64xf32, #tpu.memory_space<vmem>>, vector<32x64xf32>
    %c0_71 = arith.constant 0 : index
    %c0_72 = arith.constant 0 : index
    %515 = vector.load %arg9[%c0_71, %c0_72] : memref<16x64xf32, #tpu.memory_space<vmem>>, vector<16x64xf32>
    %c0_73 = arith.constant 0 : index
    %c0_74 = arith.constant 0 : index
    %516 = vector.load %arg10[%c0_73, %c0_74] : memref<1x64xf32, #tpu.memory_space<vmem>>, vector<1x64xf32>
    %517 = vector.shape_cast %513 : vector<2x8x32xf32> to vector<16x32xf32>
    %cst_75 = arith.constant dense<0.000000e+00> : vector<16x64xf32>
    %518 = tpu.matmul %517, %514, %cst_75 {dimension_numbers = #tpu.dot_dimension_numbers<[1], [0], [0], [1], [0, 0, 1, 1], [], []>} : vector<16x32xf32>, vector<32x64xf32>, vector<16x64xf32> -> vector<16x64xf32>
    %519 = vector.broadcast %516 : vector<1x64xf32> to vector<16x64xf32>
    %520 = arith.addf %518, %519 : vector<16x64xf32>
    %521 = vector.shape_cast %520 : vector<16x64xf32> to vector<2x8x64xf32>
    %cst_76 = arith.constant 0.000000e+00 : f32
    %522 = vector.broadcast %cst_76 : f32 to vector<2x16xf32>
    %cst_77 = arith.constant 0.000000e+00 : f32
    %523 = vector.broadcast %cst_77 : f32 to vector<2x16xf32>
    %524 = vector.extract_strided_slice %3 {offsets = [0, 0], sizes = [2, 1], strides = [1, 1]} : vector<2x8xi1> to vector<2x1xi1>
    %525 = vector.extract_strided_slice %521 {offsets = [0, 0, 0], sizes = [2, 1, 64], strides = [1, 1, 1]} : vector<2x8x64xf32> to vector<2x1x64xf32>
    %526 = vector.shape_cast %525 : vector<2x1x64xf32> to vector<2x64xf32>
    %cst_78 = arith.constant dense<0.000000e+00> : vector<2x64xf32>
    %527 = tpu.matmul %522, %515, %cst_78 {dimension_numbers = #tpu.dot_dimension_numbers<[1], [0], [0], [1], [0, 0, 1, 1], [], []>} : vector<2x16xf32>, vector<16x64xf32>, vector<2x64xf32> -> vector<2x64xf32>
    %528 = arith.addf %526, %527 : vector<2x64xf32>
    %529 = arith.negf %528 : vector<2x64xf32>
    %530 = math.exp %529 : vector<2x64xf32>
    %cst_79 = arith.constant 1.000000e+00 : f32
    %531 = vector.broadcast %cst_79 : f32 to vector<2x64xf32>
    %532 = arith.addf %531, %530 : vector<2x64xf32>
    %533 = arith.divf %531, %532 : vector<2x64xf32>
    %534 = math.tanh %528 : vector<2x64xf32>
    %535 = vector.extract_strided_slice %533 {offsets = [0, 16], sizes = [2, 16], strides = [1, 1]} : vector<2x64xf32> to vector<2x16xf32>
    %536 = arith.mulf %535, %523 : vector<2x16xf32>
    %537 = vector.extract_strided_slice %533 {offsets = [0, 0], sizes = [2, 16], strides = [1, 1]} : vector<2x64xf32> to vector<2x16xf32>
    %538 = vector.extract_strided_slice %534 {offsets = [0, 32], sizes = [2, 16], strides = [1, 1]} : vector<2x64xf32> to vector<2x16xf32>
    %539 = arith.mulf %537, %538 : vector<2x16xf32>
    %540 = arith.addf %536, %539 : vector<2x16xf32>
    %541 = vector.extract_strided_slice %533 {offsets = [0, 48], sizes = [2, 16], strides = [1, 1]} : vector<2x64xf32> to vector<2x16xf32>
    %542 = math.tanh %540 : vector<2x16xf32>
    %543 = arith.mulf %541, %542 : vector<2x16xf32>
    %cst_80 = arith.constant 0.000000e+00 : f32
    %544 = vector.shape_cast %524 : vector<2x1xi1> to vector<2x1xi1>
    %545 = vector.broadcast %544 : vector<2x1xi1> to vector<2x16xi1>
    %546 = vector.broadcast %cst_80 : f32 to vector<2x16xf32>
    %547 = arith.select %545, %543, %546 : vector<2x16xi1>, vector<2x16xf32>
    %548 = vector.shape_cast %524 : vector<2x1xi1> to vector<2x1xi1>
    %549 = vector.broadcast %548 : vector<2x1xi1> to vector<2x16xi1>
    %550 = arith.select %549, %543, %522 : vector<2x16xi1>, vector<2x16xf32>
    %551 = vector.shape_cast %524 : vector<2x1xi1> to vector<2x1xi1>
    %552 = vector.broadcast %551 : vector<2x1xi1> to vector<2x16xi1>
    %553 = arith.select %552, %540, %523 : vector<2x16xi1>, vector<2x16xf32>
    %554 = vector.extract_strided_slice %3 {offsets = [0, 1], sizes = [2, 1], strides = [1, 1]} : vector<2x8xi1> to vector<2x1xi1>
    %555 = vector.extract_strided_slice %521 {offsets = [0, 1, 0], sizes = [2, 1, 64], strides = [1, 1, 1]} : vector<2x8x64xf32> to vector<2x1x64xf32>
    %556 = vector.shape_cast %555 : vector<2x1x64xf32> to vector<2x64xf32>
    %cst_81 = arith.constant dense<0.000000e+00> : vector<2x64xf32>
    %557 = tpu.matmul %550, %515, %cst_81 {dimension_numbers = #tpu.dot_dimension_numbers<[1], [0], [0], [1], [0, 0, 1, 1], [], []>} : vector<2x16xf32>, vector<16x64xf32>, vector<2x64xf32> -> vector<2x64xf32>
    %558 = arith.addf %556, %557 : vector<2x64xf32>
    %559 = arith.negf %558 : vector<2x64xf32>
    %560 = math.exp %559 : vector<2x64xf32>
    %cst_82 = arith.constant 1.000000e+00 : f32
    %561 = vector.broadcast %cst_82 : f32 to vector<2x64xf32>
    %562 = arith.addf %561, %560 : vector<2x64xf32>
    %563 = arith.divf %561, %562 : vector<2x64xf32>
    %564 = math.tanh %558 : vector<2x64xf32>
    %565 = vector.extract_strided_slice %563 {offsets = [0, 16], sizes = [2, 16], strides = [1, 1]} : vector<2x64xf32> to vector<2x16xf32>
    %566 = arith.mulf %565, %553 : vector<2x16xf32>
    %567 = vector.extract_strided_slice %563 {offsets = [0, 0], sizes = [2, 16], strides = [1, 1]} : vector<2x64xf32> to vector<2x16xf32>
    %568 = vector.extract_strided_slice %564 {offsets = [0, 32], sizes = [2, 16], strides = [1, 1]} : vector<2x64xf32> to vector<2x16xf32>
    %569 = arith.mulf %567, %568 : vector<2x16xf32>
    %570 = arith.addf %566, %569 : vector<2x16xf32>
    %571 = vector.extract_strided_slice %563 {offsets = [0, 48], sizes = [2, 16], strides = [1, 1]} : vector<2x64xf32> to vector<2x16xf32>
    %572 = math.tanh %570 : vector<2x16xf32>
    %573 = arith.mulf %571, %572 : vector<2x16xf32>
    %cst_83 = arith.constant 0.000000e+00 : f32
    %574 = vector.shape_cast %554 : vector<2x1xi1> to vector<2x1xi1>
    %575 = vector.broadcast %574 : vector<2x1xi1> to vector<2x16xi1>
    %576 = vector.broadcast %cst_83 : f32 to vector<2x16xf32>
    %577 = arith.select %575, %573, %576 : vector<2x16xi1>, vector<2x16xf32>
    %578 = vector.shape_cast %554 : vector<2x1xi1> to vector<2x1xi1>
    %579 = vector.broadcast %578 : vector<2x1xi1> to vector<2x16xi1>
    %580 = arith.select %579, %573, %550 : vector<2x16xi1>, vector<2x16xf32>
    %581 = vector.shape_cast %554 : vector<2x1xi1> to vector<2x1xi1>
    %582 = vector.broadcast %581 : vector<2x1xi1> to vector<2x16xi1>
    %583 = arith.select %582, %570, %553 : vector<2x16xi1>, vector<2x16xf32>
    %584 = vector.extract_strided_slice %3 {offsets = [0, 2], sizes = [2, 1], strides = [1, 1]} : vector<2x8xi1> to vector<2x1xi1>
    %585 = vector.extract_strided_slice %521 {offsets = [0, 2, 0], sizes = [2, 1, 64], strides = [1, 1, 1]} : vector<2x8x64xf32> to vector<2x1x64xf32>
    %586 = vector.shape_cast %585 : vector<2x1x64xf32> to vector<2x64xf32>
    %cst_84 = arith.constant dense<0.000000e+00> : vector<2x64xf32>
    %587 = tpu.matmul %580, %515, %cst_84 {dimension_numbers = #tpu.dot_dimension_numbers<[1], [0], [0], [1], [0, 0, 1, 1], [], []>} : vector<2x16xf32>, vector<16x64xf32>, vector<2x64xf32> -> vector<2x64xf32>
    %588 = arith.addf %586, %587 : vector<2x64xf32>
    %589 = arith.negf %588 : vector<2x64xf32>
    %590 = math.exp %589 : vector<2x64xf32>
    %cst_85 = arith.constant 1.000000e+00 : f32
    %591 = vector.broadcast %cst_85 : f32 to vector<2x64xf32>
    %592 = arith.addf %591, %590 : vector<2x64xf32>
    %593 = arith.divf %591, %592 : vector<2x64xf32>
    %594 = math.tanh %588 : vector<2x64xf32>
    %595 = vector.extract_strided_slice %593 {offsets = [0, 16], sizes = [2, 16], strides = [1, 1]} : vector<2x64xf32> to vector<2x16xf32>
    %596 = arith.mulf %595, %583 : vector<2x16xf32>
    %597 = vector.extract_strided_slice %593 {offsets = [0, 0], sizes = [2, 16], strides = [1, 1]} : vector<2x64xf32> to vector<2x16xf32>
    %598 = vector.extract_strided_slice %594 {offsets = [0, 32], sizes = [2, 16], strides = [1, 1]} : vector<2x64xf32> to vector<2x16xf32>
    %599 = arith.mulf %597, %598 : vector<2x16xf32>
    %600 = arith.addf %596, %599 : vector<2x16xf32>
    %601 = vector.extract_strided_slice %593 {offsets = [0, 48], sizes = [2, 16], strides = [1, 1]} : vector<2x64xf32> to vector<2x16xf32>
    %602 = math.tanh %600 : vector<2x16xf32>
    %603 = arith.mulf %601, %602 : vector<2x16xf32>
    %cst_86 = arith.constant 0.000000e+00 : f32
    %604 = vector.shape_cast %584 : vector<2x1xi1> to vector<2x1xi1>
    %605 = vector.broadcast %604 : vector<2x1xi1> to vector<2x16xi1>
    %606 = vector.broadcast %cst_86 : f32 to vector<2x16xf32>
    %607 = arith.select %605, %603, %606 : vector<2x16xi1>, vector<2x16xf32>
    %608 = vector.shape_cast %584 : vector<2x1xi1> to vector<2x1xi1>
    %609 = vector.broadcast %608 : vector<2x1xi1> to vector<2x16xi1>
    %610 = arith.select %609, %603, %580 : vector<2x16xi1>, vector<2x16xf32>
    %611 = vector.shape_cast %584 : vector<2x1xi1> to vector<2x1xi1>
    %612 = vector.broadcast %611 : vector<2x1xi1> to vector<2x16xi1>
    %613 = arith.select %612, %600, %583 : vector<2x16xi1>, vector<2x16xf32>
    %614 = vector.extract_strided_slice %3 {offsets = [0, 3], sizes = [2, 1], strides = [1, 1]} : vector<2x8xi1> to vector<2x1xi1>
    %615 = vector.extract_strided_slice %521 {offsets = [0, 3, 0], sizes = [2, 1, 64], strides = [1, 1, 1]} : vector<2x8x64xf32> to vector<2x1x64xf32>
    %616 = vector.shape_cast %615 : vector<2x1x64xf32> to vector<2x64xf32>
    %cst_87 = arith.constant dense<0.000000e+00> : vector<2x64xf32>
    %617 = tpu.matmul %610, %515, %cst_87 {dimension_numbers = #tpu.dot_dimension_numbers<[1], [0], [0], [1], [0, 0, 1, 1], [], []>} : vector<2x16xf32>, vector<16x64xf32>, vector<2x64xf32> -> vector<2x64xf32>
    %618 = arith.addf %616, %617 : vector<2x64xf32>
    %619 = arith.negf %618 : vector<2x64xf32>
    %620 = math.exp %619 : vector<2x64xf32>
    %cst_88 = arith.constant 1.000000e+00 : f32
    %621 = vector.broadcast %cst_88 : f32 to vector<2x64xf32>
    %622 = arith.addf %621, %620 : vector<2x64xf32>
    %623 = arith.divf %621, %622 : vector<2x64xf32>
    %624 = math.tanh %618 : vector<2x64xf32>
    %625 = vector.extract_strided_slice %623 {offsets = [0, 16], sizes = [2, 16], strides = [1, 1]} : vector<2x64xf32> to vector<2x16xf32>
    %626 = arith.mulf %625, %613 : vector<2x16xf32>
    %627 = vector.extract_strided_slice %623 {offsets = [0, 0], sizes = [2, 16], strides = [1, 1]} : vector<2x64xf32> to vector<2x16xf32>
    %628 = vector.extract_strided_slice %624 {offsets = [0, 32], sizes = [2, 16], strides = [1, 1]} : vector<2x64xf32> to vector<2x16xf32>
    %629 = arith.mulf %627, %628 : vector<2x16xf32>
    %630 = arith.addf %626, %629 : vector<2x16xf32>
    %631 = vector.extract_strided_slice %623 {offsets = [0, 48], sizes = [2, 16], strides = [1, 1]} : vector<2x64xf32> to vector<2x16xf32>
    %632 = math.tanh %630 : vector<2x16xf32>
    %633 = arith.mulf %631, %632 : vector<2x16xf32>
    %cst_89 = arith.constant 0.000000e+00 : f32
    %634 = vector.shape_cast %614 : vector<2x1xi1> to vector<2x1xi1>
    %635 = vector.broadcast %634 : vector<2x1xi1> to vector<2x16xi1>
    %636 = vector.broadcast %cst_89 : f32 to vector<2x16xf32>
    %637 = arith.select %635, %633, %636 : vector<2x16xi1>, vector<2x16xf32>
    %638 = vector.shape_cast %614 : vector<2x1xi1> to vector<2x1xi1>
    %639 = vector.broadcast %638 : vector<2x1xi1> to vector<2x16xi1>
    %640 = arith.select %639, %633, %610 : vector<2x16xi1>, vector<2x16xf32>
    %641 = vector.shape_cast %614 : vector<2x1xi1> to vector<2x1xi1>
    %642 = vector.broadcast %641 : vector<2x1xi1> to vector<2x16xi1>
    %643 = arith.select %642, %630, %613 : vector<2x16xi1>, vector<2x16xf32>
    %644 = vector.extract_strided_slice %3 {offsets = [0, 4], sizes = [2, 1], strides = [1, 1]} : vector<2x8xi1> to vector<2x1xi1>
    %645 = vector.extract_strided_slice %521 {offsets = [0, 4, 0], sizes = [2, 1, 64], strides = [1, 1, 1]} : vector<2x8x64xf32> to vector<2x1x64xf32>
    %646 = vector.shape_cast %645 : vector<2x1x64xf32> to vector<2x64xf32>
    %cst_90 = arith.constant dense<0.000000e+00> : vector<2x64xf32>
    %647 = tpu.matmul %640, %515, %cst_90 {dimension_numbers = #tpu.dot_dimension_numbers<[1], [0], [0], [1], [0, 0, 1, 1], [], []>} : vector<2x16xf32>, vector<16x64xf32>, vector<2x64xf32> -> vector<2x64xf32>
    %648 = arith.addf %646, %647 : vector<2x64xf32>
    %649 = arith.negf %648 : vector<2x64xf32>
    %650 = math.exp %649 : vector<2x64xf32>
    %cst_91 = arith.constant 1.000000e+00 : f32
    %651 = vector.broadcast %cst_91 : f32 to vector<2x64xf32>
    %652 = arith.addf %651, %650 : vector<2x64xf32>
    %653 = arith.divf %651, %652 : vector<2x64xf32>
    %654 = math.tanh %648 : vector<2x64xf32>
    %655 = vector.extract_strided_slice %653 {offsets = [0, 16], sizes = [2, 16], strides = [1, 1]} : vector<2x64xf32> to vector<2x16xf32>
    %656 = arith.mulf %655, %643 : vector<2x16xf32>
    %657 = vector.extract_strided_slice %653 {offsets = [0, 0], sizes = [2, 16], strides = [1, 1]} : vector<2x64xf32> to vector<2x16xf32>
    %658 = vector.extract_strided_slice %654 {offsets = [0, 32], sizes = [2, 16], strides = [1, 1]} : vector<2x64xf32> to vector<2x16xf32>
    %659 = arith.mulf %657, %658 : vector<2x16xf32>
    %660 = arith.addf %656, %659 : vector<2x16xf32>
    %661 = vector.extract_strided_slice %653 {offsets = [0, 48], sizes = [2, 16], strides = [1, 1]} : vector<2x64xf32> to vector<2x16xf32>
    %662 = math.tanh %660 : vector<2x16xf32>
    %663 = arith.mulf %661, %662 : vector<2x16xf32>
    %cst_92 = arith.constant 0.000000e+00 : f32
    %664 = vector.shape_cast %644 : vector<2x1xi1> to vector<2x1xi1>
    %665 = vector.broadcast %664 : vector<2x1xi1> to vector<2x16xi1>
    %666 = vector.broadcast %cst_92 : f32 to vector<2x16xf32>
    %667 = arith.select %665, %663, %666 : vector<2x16xi1>, vector<2x16xf32>
    %668 = vector.shape_cast %644 : vector<2x1xi1> to vector<2x1xi1>
    %669 = vector.broadcast %668 : vector<2x1xi1> to vector<2x16xi1>
    %670 = arith.select %669, %663, %640 : vector<2x16xi1>, vector<2x16xf32>
    %671 = vector.shape_cast %644 : vector<2x1xi1> to vector<2x1xi1>
    %672 = vector.broadcast %671 : vector<2x1xi1> to vector<2x16xi1>
    %673 = arith.select %672, %660, %643 : vector<2x16xi1>, vector<2x16xf32>
    %674 = vector.extract_strided_slice %3 {offsets = [0, 5], sizes = [2, 1], strides = [1, 1]} : vector<2x8xi1> to vector<2x1xi1>
    %675 = vector.extract_strided_slice %521 {offsets = [0, 5, 0], sizes = [2, 1, 64], strides = [1, 1, 1]} : vector<2x8x64xf32> to vector<2x1x64xf32>
    %676 = vector.shape_cast %675 : vector<2x1x64xf32> to vector<2x64xf32>
    %cst_93 = arith.constant dense<0.000000e+00> : vector<2x64xf32>
    %677 = tpu.matmul %670, %515, %cst_93 {dimension_numbers = #tpu.dot_dimension_numbers<[1], [0], [0], [1], [0, 0, 1, 1], [], []>} : vector<2x16xf32>, vector<16x64xf32>, vector<2x64xf32> -> vector<2x64xf32>
    %678 = arith.addf %676, %677 : vector<2x64xf32>
    %679 = arith.negf %678 : vector<2x64xf32>
    %680 = math.exp %679 : vector<2x64xf32>
    %cst_94 = arith.constant 1.000000e+00 : f32
    %681 = vector.broadcast %cst_94 : f32 to vector<2x64xf32>
    %682 = arith.addf %681, %680 : vector<2x64xf32>
    %683 = arith.divf %681, %682 : vector<2x64xf32>
    %684 = math.tanh %678 : vector<2x64xf32>
    %685 = vector.extract_strided_slice %683 {offsets = [0, 16], sizes = [2, 16], strides = [1, 1]} : vector<2x64xf32> to vector<2x16xf32>
    %686 = arith.mulf %685, %673 : vector<2x16xf32>
    %687 = vector.extract_strided_slice %683 {offsets = [0, 0], sizes = [2, 16], strides = [1, 1]} : vector<2x64xf32> to vector<2x16xf32>
    %688 = vector.extract_strided_slice %684 {offsets = [0, 32], sizes = [2, 16], strides = [1, 1]} : vector<2x64xf32> to vector<2x16xf32>
    %689 = arith.mulf %687, %688 : vector<2x16xf32>
    %690 = arith.addf %686, %689 : vector<2x16xf32>
    %691 = vector.extract_strided_slice %683 {offsets = [0, 48], sizes = [2, 16], strides = [1, 1]} : vector<2x64xf32> to vector<2x16xf32>
    %692 = math.tanh %690 : vector<2x16xf32>
    %693 = arith.mulf %691, %692 : vector<2x16xf32>
    %cst_95 = arith.constant 0.000000e+00 : f32
    %694 = vector.shape_cast %674 : vector<2x1xi1> to vector<2x1xi1>
    %695 = vector.broadcast %694 : vector<2x1xi1> to vector<2x16xi1>
    %696 = vector.broadcast %cst_95 : f32 to vector<2x16xf32>
    %697 = arith.select %695, %693, %696 : vector<2x16xi1>, vector<2x16xf32>
    %698 = vector.shape_cast %674 : vector<2x1xi1> to vector<2x1xi1>
    %699 = vector.broadcast %698 : vector<2x1xi1> to vector<2x16xi1>
    %700 = arith.select %699, %693, %670 : vector<2x16xi1>, vector<2x16xf32>
    %701 = vector.shape_cast %674 : vector<2x1xi1> to vector<2x1xi1>
    %702 = vector.broadcast %701 : vector<2x1xi1> to vector<2x16xi1>
    %703 = arith.select %702, %690, %673 : vector<2x16xi1>, vector<2x16xf32>
    %704 = vector.extract_strided_slice %3 {offsets = [0, 6], sizes = [2, 1], strides = [1, 1]} : vector<2x8xi1> to vector<2x1xi1>
    %705 = vector.extract_strided_slice %521 {offsets = [0, 6, 0], sizes = [2, 1, 64], strides = [1, 1, 1]} : vector<2x8x64xf32> to vector<2x1x64xf32>
    %706 = vector.shape_cast %705 : vector<2x1x64xf32> to vector<2x64xf32>
    %cst_96 = arith.constant dense<0.000000e+00> : vector<2x64xf32>
    %707 = tpu.matmul %700, %515, %cst_96 {dimension_numbers = #tpu.dot_dimension_numbers<[1], [0], [0], [1], [0, 0, 1, 1], [], []>} : vector<2x16xf32>, vector<16x64xf32>, vector<2x64xf32> -> vector<2x64xf32>
    %708 = arith.addf %706, %707 : vector<2x64xf32>
    %709 = arith.negf %708 : vector<2x64xf32>
    %710 = math.exp %709 : vector<2x64xf32>
    %cst_97 = arith.constant 1.000000e+00 : f32
    %711 = vector.broadcast %cst_97 : f32 to vector<2x64xf32>
    %712 = arith.addf %711, %710 : vector<2x64xf32>
    %713 = arith.divf %711, %712 : vector<2x64xf32>
    %714 = math.tanh %708 : vector<2x64xf32>
    %715 = vector.extract_strided_slice %713 {offsets = [0, 16], sizes = [2, 16], strides = [1, 1]} : vector<2x64xf32> to vector<2x16xf32>
    %716 = arith.mulf %715, %703 : vector<2x16xf32>
    %717 = vector.extract_strided_slice %713 {offsets = [0, 0], sizes = [2, 16], strides = [1, 1]} : vector<2x64xf32> to vector<2x16xf32>
    %718 = vector.extract_strided_slice %714 {offsets = [0, 32], sizes = [2, 16], strides = [1, 1]} : vector<2x64xf32> to vector<2x16xf32>
    %719 = arith.mulf %717, %718 : vector<2x16xf32>
    %720 = arith.addf %716, %719 : vector<2x16xf32>
    %721 = vector.extract_strided_slice %713 {offsets = [0, 48], sizes = [2, 16], strides = [1, 1]} : vector<2x64xf32> to vector<2x16xf32>
    %722 = math.tanh %720 : vector<2x16xf32>
    %723 = arith.mulf %721, %722 : vector<2x16xf32>
    %cst_98 = arith.constant 0.000000e+00 : f32
    %724 = vector.shape_cast %704 : vector<2x1xi1> to vector<2x1xi1>
    %725 = vector.broadcast %724 : vector<2x1xi1> to vector<2x16xi1>
    %726 = vector.broadcast %cst_98 : f32 to vector<2x16xf32>
    %727 = arith.select %725, %723, %726 : vector<2x16xi1>, vector<2x16xf32>
    %728 = vector.shape_cast %704 : vector<2x1xi1> to vector<2x1xi1>
    %729 = vector.broadcast %728 : vector<2x1xi1> to vector<2x16xi1>
    %730 = arith.select %729, %723, %700 : vector<2x16xi1>, vector<2x16xf32>
    %731 = vector.shape_cast %704 : vector<2x1xi1> to vector<2x1xi1>
    %732 = vector.broadcast %731 : vector<2x1xi1> to vector<2x16xi1>
    %733 = arith.select %732, %720, %703 : vector<2x16xi1>, vector<2x16xf32>
    %734 = vector.extract_strided_slice %3 {offsets = [0, 7], sizes = [2, 1], strides = [1, 1]} : vector<2x8xi1> to vector<2x1xi1>
    %735 = vector.extract_strided_slice %521 {offsets = [0, 7, 0], sizes = [2, 1, 64], strides = [1, 1, 1]} : vector<2x8x64xf32> to vector<2x1x64xf32>
    %736 = vector.shape_cast %735 : vector<2x1x64xf32> to vector<2x64xf32>
    %cst_99 = arith.constant dense<0.000000e+00> : vector<2x64xf32>
    %737 = tpu.matmul %730, %515, %cst_99 {dimension_numbers = #tpu.dot_dimension_numbers<[1], [0], [0], [1], [0, 0, 1, 1], [], []>} : vector<2x16xf32>, vector<16x64xf32>, vector<2x64xf32> -> vector<2x64xf32>
    %738 = arith.addf %736, %737 : vector<2x64xf32>
    %739 = arith.negf %738 : vector<2x64xf32>
    %740 = math.exp %739 : vector<2x64xf32>
    %cst_100 = arith.constant 1.000000e+00 : f32
    %741 = vector.broadcast %cst_100 : f32 to vector<2x64xf32>
    %742 = arith.addf %741, %740 : vector<2x64xf32>
    %743 = arith.divf %741, %742 : vector<2x64xf32>
    %744 = math.tanh %738 : vector<2x64xf32>
    %745 = vector.extract_strided_slice %743 {offsets = [0, 16], sizes = [2, 16], strides = [1, 1]} : vector<2x64xf32> to vector<2x16xf32>
    %746 = arith.mulf %745, %733 : vector<2x16xf32>
    %747 = vector.extract_strided_slice %743 {offsets = [0, 0], sizes = [2, 16], strides = [1, 1]} : vector<2x64xf32> to vector<2x16xf32>
    %748 = vector.extract_strided_slice %744 {offsets = [0, 32], sizes = [2, 16], strides = [1, 1]} : vector<2x64xf32> to vector<2x16xf32>
    %749 = arith.mulf %747, %748 : vector<2x16xf32>
    %750 = arith.addf %746, %749 : vector<2x16xf32>
    %751 = vector.extract_strided_slice %743 {offsets = [0, 48], sizes = [2, 16], strides = [1, 1]} : vector<2x64xf32> to vector<2x16xf32>
    %752 = math.tanh %750 : vector<2x16xf32>
    %753 = arith.mulf %751, %752 : vector<2x16xf32>
    %cst_101 = arith.constant 0.000000e+00 : f32
    %754 = vector.shape_cast %734 : vector<2x1xi1> to vector<2x1xi1>
    %755 = vector.broadcast %754 : vector<2x1xi1> to vector<2x16xi1>
    %756 = vector.broadcast %cst_101 : f32 to vector<2x16xf32>
    %757 = arith.select %755, %753, %756 : vector<2x16xi1>, vector<2x16xf32>
    %758 = vector.shape_cast %547 : vector<2x16xf32> to vector<2x1x16xf32>
    %759 = vector.shape_cast %577 : vector<2x16xf32> to vector<2x1x16xf32>
    %760 = vector.shape_cast %607 : vector<2x16xf32> to vector<2x1x16xf32>
    %761 = vector.shape_cast %637 : vector<2x16xf32> to vector<2x1x16xf32>
    %762 = vector.shape_cast %667 : vector<2x16xf32> to vector<2x1x16xf32>
    %763 = vector.shape_cast %697 : vector<2x16xf32> to vector<2x1x16xf32>
    %764 = vector.shape_cast %727 : vector<2x16xf32> to vector<2x1x16xf32>
    %765 = vector.shape_cast %757 : vector<2x16xf32> to vector<2x1x16xf32>
    %766 = tpu.concatenate %758, %759, %760, %761, %762, %763, %764, %765 in 1 : vector<2x1x16xf32>, vector<2x1x16xf32>, vector<2x1x16xf32>, vector<2x1x16xf32>, vector<2x1x16xf32>, vector<2x1x16xf32>, vector<2x1x16xf32>, vector<2x1x16xf32> -> vector<2x8x16xf32>
    %c0_102 = arith.constant 0 : index
    %c0_103 = arith.constant 0 : index
    %767 = vector.load %arg11[%c0_102, %c0_103] : memref<32x64xf32, #tpu.memory_space<vmem>>, vector<32x64xf32>
    %c0_104 = arith.constant 0 : index
    %c0_105 = arith.constant 0 : index
    %768 = vector.load %arg12[%c0_104, %c0_105] : memref<16x64xf32, #tpu.memory_space<vmem>>, vector<16x64xf32>
    %c0_106 = arith.constant 0 : index
    %c0_107 = arith.constant 0 : index
    %769 = vector.load %arg13[%c0_106, %c0_107] : memref<1x64xf32, #tpu.memory_space<vmem>>, vector<1x64xf32>
    %770 = vector.shape_cast %513 : vector<2x8x32xf32> to vector<16x32xf32>
    %cst_108 = arith.constant dense<0.000000e+00> : vector<16x64xf32>
    %771 = tpu.matmul %770, %767, %cst_108 {dimension_numbers = #tpu.dot_dimension_numbers<[1], [0], [0], [1], [0, 0, 1, 1], [], []>} : vector<16x32xf32>, vector<32x64xf32>, vector<16x64xf32> -> vector<16x64xf32>
    %772 = vector.broadcast %769 : vector<1x64xf32> to vector<16x64xf32>
    %773 = arith.addf %771, %772 : vector<16x64xf32>
    %774 = vector.shape_cast %773 : vector<16x64xf32> to vector<2x8x64xf32>
    %cst_109 = arith.constant 0.000000e+00 : f32
    %775 = vector.broadcast %cst_109 : f32 to vector<2x16xf32>
    %cst_110 = arith.constant 0.000000e+00 : f32
    %776 = vector.broadcast %cst_110 : f32 to vector<2x16xf32>
    %777 = vector.extract_strided_slice %3 {offsets = [0, 7], sizes = [2, 1], strides = [1, 1]} : vector<2x8xi1> to vector<2x1xi1>
    %778 = vector.extract_strided_slice %774 {offsets = [0, 7, 0], sizes = [2, 1, 64], strides = [1, 1, 1]} : vector<2x8x64xf32> to vector<2x1x64xf32>
    %779 = vector.shape_cast %778 : vector<2x1x64xf32> to vector<2x64xf32>
    %cst_111 = arith.constant dense<0.000000e+00> : vector<2x64xf32>
    %780 = tpu.matmul %775, %768, %cst_111 {dimension_numbers = #tpu.dot_dimension_numbers<[1], [0], [0], [1], [0, 0, 1, 1], [], []>} : vector<2x16xf32>, vector<16x64xf32>, vector<2x64xf32> -> vector<2x64xf32>
    %781 = arith.addf %779, %780 : vector<2x64xf32>
    %782 = arith.negf %781 : vector<2x64xf32>
    %783 = math.exp %782 : vector<2x64xf32>
    %cst_112 = arith.constant 1.000000e+00 : f32
    %784 = vector.broadcast %cst_112 : f32 to vector<2x64xf32>
    %785 = arith.addf %784, %783 : vector<2x64xf32>
    %786 = arith.divf %784, %785 : vector<2x64xf32>
    %787 = math.tanh %781 : vector<2x64xf32>
    %788 = vector.extract_strided_slice %786 {offsets = [0, 16], sizes = [2, 16], strides = [1, 1]} : vector<2x64xf32> to vector<2x16xf32>
    %789 = arith.mulf %788, %776 : vector<2x16xf32>
    %790 = vector.extract_strided_slice %786 {offsets = [0, 0], sizes = [2, 16], strides = [1, 1]} : vector<2x64xf32> to vector<2x16xf32>
    %791 = vector.extract_strided_slice %787 {offsets = [0, 32], sizes = [2, 16], strides = [1, 1]} : vector<2x64xf32> to vector<2x16xf32>
    %792 = arith.mulf %790, %791 : vector<2x16xf32>
    %793 = arith.addf %789, %792 : vector<2x16xf32>
    %794 = vector.extract_strided_slice %786 {offsets = [0, 48], sizes = [2, 16], strides = [1, 1]} : vector<2x64xf32> to vector<2x16xf32>
    %795 = math.tanh %793 : vector<2x16xf32>
    %796 = arith.mulf %794, %795 : vector<2x16xf32>
    %cst_113 = arith.constant 0.000000e+00 : f32
    %797 = vector.shape_cast %777 : vector<2x1xi1> to vector<2x1xi1>
    %798 = vector.broadcast %797 : vector<2x1xi1> to vector<2x16xi1>
    %799 = vector.broadcast %cst_113 : f32 to vector<2x16xf32>
    %800 = arith.select %798, %796, %799 : vector<2x16xi1>, vector<2x16xf32>
    %801 = vector.shape_cast %777 : vector<2x1xi1> to vector<2x1xi1>
    %802 = vector.broadcast %801 : vector<2x1xi1> to vector<2x16xi1>
    %803 = arith.select %802, %796, %775 : vector<2x16xi1>, vector<2x16xf32>
    %804 = vector.shape_cast %777 : vector<2x1xi1> to vector<2x1xi1>
    %805 = vector.broadcast %804 : vector<2x1xi1> to vector<2x16xi1>
    %806 = arith.select %805, %793, %776 : vector<2x16xi1>, vector<2x16xf32>
    %807 = vector.extract_strided_slice %3 {offsets = [0, 6], sizes = [2, 1], strides = [1, 1]} : vector<2x8xi1> to vector<2x1xi1>
    %808 = vector.extract_strided_slice %774 {offsets = [0, 6, 0], sizes = [2, 1, 64], strides = [1, 1, 1]} : vector<2x8x64xf32> to vector<2x1x64xf32>
    %809 = vector.shape_cast %808 : vector<2x1x64xf32> to vector<2x64xf32>
    %cst_114 = arith.constant dense<0.000000e+00> : vector<2x64xf32>
    %810 = tpu.matmul %803, %768, %cst_114 {dimension_numbers = #tpu.dot_dimension_numbers<[1], [0], [0], [1], [0, 0, 1, 1], [], []>} : vector<2x16xf32>, vector<16x64xf32>, vector<2x64xf32> -> vector<2x64xf32>
    %811 = arith.addf %809, %810 : vector<2x64xf32>
    %812 = arith.negf %811 : vector<2x64xf32>
    %813 = math.exp %812 : vector<2x64xf32>
    %cst_115 = arith.constant 1.000000e+00 : f32
    %814 = vector.broadcast %cst_115 : f32 to vector<2x64xf32>
    %815 = arith.addf %814, %813 : vector<2x64xf32>
    %816 = arith.divf %814, %815 : vector<2x64xf32>
    %817 = math.tanh %811 : vector<2x64xf32>
    %818 = vector.extract_strided_slice %816 {offsets = [0, 16], sizes = [2, 16], strides = [1, 1]} : vector<2x64xf32> to vector<2x16xf32>
    %819 = arith.mulf %818, %806 : vector<2x16xf32>
    %820 = vector.extract_strided_slice %816 {offsets = [0, 0], sizes = [2, 16], strides = [1, 1]} : vector<2x64xf32> to vector<2x16xf32>
    %821 = vector.extract_strided_slice %817 {offsets = [0, 32], sizes = [2, 16], strides = [1, 1]} : vector<2x64xf32> to vector<2x16xf32>
    %822 = arith.mulf %820, %821 : vector<2x16xf32>
    %823 = arith.addf %819, %822 : vector<2x16xf32>
    %824 = vector.extract_strided_slice %816 {offsets = [0, 48], sizes = [2, 16], strides = [1, 1]} : vector<2x64xf32> to vector<2x16xf32>
    %825 = math.tanh %823 : vector<2x16xf32>
    %826 = arith.mulf %824, %825 : vector<2x16xf32>
    %cst_116 = arith.constant 0.000000e+00 : f32
    %827 = vector.shape_cast %807 : vector<2x1xi1> to vector<2x1xi1>
    %828 = vector.broadcast %827 : vector<2x1xi1> to vector<2x16xi1>
    %829 = vector.broadcast %cst_116 : f32 to vector<2x16xf32>
    %830 = arith.select %828, %826, %829 : vector<2x16xi1>, vector<2x16xf32>
    %831 = vector.shape_cast %807 : vector<2x1xi1> to vector<2x1xi1>
    %832 = vector.broadcast %831 : vector<2x1xi1> to vector<2x16xi1>
    %833 = arith.select %832, %826, %803 : vector<2x16xi1>, vector<2x16xf32>
    %834 = vector.shape_cast %807 : vector<2x1xi1> to vector<2x1xi1>
    %835 = vector.broadcast %834 : vector<2x1xi1> to vector<2x16xi1>
    %836 = arith.select %835, %823, %806 : vector<2x16xi1>, vector<2x16xf32>
    %837 = vector.extract_strided_slice %3 {offsets = [0, 5], sizes = [2, 1], strides = [1, 1]} : vector<2x8xi1> to vector<2x1xi1>
    %838 = vector.extract_strided_slice %774 {offsets = [0, 5, 0], sizes = [2, 1, 64], strides = [1, 1, 1]} : vector<2x8x64xf32> to vector<2x1x64xf32>
    %839 = vector.shape_cast %838 : vector<2x1x64xf32> to vector<2x64xf32>
    %cst_117 = arith.constant dense<0.000000e+00> : vector<2x64xf32>
    %840 = tpu.matmul %833, %768, %cst_117 {dimension_numbers = #tpu.dot_dimension_numbers<[1], [0], [0], [1], [0, 0, 1, 1], [], []>} : vector<2x16xf32>, vector<16x64xf32>, vector<2x64xf32> -> vector<2x64xf32>
    %841 = arith.addf %839, %840 : vector<2x64xf32>
    %842 = arith.negf %841 : vector<2x64xf32>
    %843 = math.exp %842 : vector<2x64xf32>
    %cst_118 = arith.constant 1.000000e+00 : f32
    %844 = vector.broadcast %cst_118 : f32 to vector<2x64xf32>
    %845 = arith.addf %844, %843 : vector<2x64xf32>
    %846 = arith.divf %844, %845 : vector<2x64xf32>
    %847 = math.tanh %841 : vector<2x64xf32>
    %848 = vector.extract_strided_slice %846 {offsets = [0, 16], sizes = [2, 16], strides = [1, 1]} : vector<2x64xf32> to vector<2x16xf32>
    %849 = arith.mulf %848, %836 : vector<2x16xf32>
    %850 = vector.extract_strided_slice %846 {offsets = [0, 0], sizes = [2, 16], strides = [1, 1]} : vector<2x64xf32> to vector<2x16xf32>
    %851 = vector.extract_strided_slice %847 {offsets = [0, 32], sizes = [2, 16], strides = [1, 1]} : vector<2x64xf32> to vector<2x16xf32>
    %852 = arith.mulf %850, %851 : vector<2x16xf32>
    %853 = arith.addf %849, %852 : vector<2x16xf32>
    %854 = vector.extract_strided_slice %846 {offsets = [0, 48], sizes = [2, 16], strides = [1, 1]} : vector<2x64xf32> to vector<2x16xf32>
    %855 = math.tanh %853 : vector<2x16xf32>
    %856 = arith.mulf %854, %855 : vector<2x16xf32>
    %cst_119 = arith.constant 0.000000e+00 : f32
    %857 = vector.shape_cast %837 : vector<2x1xi1> to vector<2x1xi1>
    %858 = vector.broadcast %857 : vector<2x1xi1> to vector<2x16xi1>
    %859 = vector.broadcast %cst_119 : f32 to vector<2x16xf32>
    %860 = arith.select %858, %856, %859 : vector<2x16xi1>, vector<2x16xf32>
    %861 = vector.shape_cast %837 : vector<2x1xi1> to vector<2x1xi1>
    %862 = vector.broadcast %861 : vector<2x1xi1> to vector<2x16xi1>
    %863 = arith.select %862, %856, %833 : vector<2x16xi1>, vector<2x16xf32>
    %864 = vector.shape_cast %837 : vector<2x1xi1> to vector<2x1xi1>
    %865 = vector.broadcast %864 : vector<2x1xi1> to vector<2x16xi1>
    %866 = arith.select %865, %853, %836 : vector<2x16xi1>, vector<2x16xf32>
    %867 = vector.extract_strided_slice %3 {offsets = [0, 4], sizes = [2, 1], strides = [1, 1]} : vector<2x8xi1> to vector<2x1xi1>
    %868 = vector.extract_strided_slice %774 {offsets = [0, 4, 0], sizes = [2, 1, 64], strides = [1, 1, 1]} : vector<2x8x64xf32> to vector<2x1x64xf32>
    %869 = vector.shape_cast %868 : vector<2x1x64xf32> to vector<2x64xf32>
    %cst_120 = arith.constant dense<0.000000e+00> : vector<2x64xf32>
    %870 = tpu.matmul %863, %768, %cst_120 {dimension_numbers = #tpu.dot_dimension_numbers<[1], [0], [0], [1], [0, 0, 1, 1], [], []>} : vector<2x16xf32>, vector<16x64xf32>, vector<2x64xf32> -> vector<2x64xf32>
    %871 = arith.addf %869, %870 : vector<2x64xf32>
    %872 = arith.negf %871 : vector<2x64xf32>
    %873 = math.exp %872 : vector<2x64xf32>
    %cst_121 = arith.constant 1.000000e+00 : f32
    %874 = vector.broadcast %cst_121 : f32 to vector<2x64xf32>
    %875 = arith.addf %874, %873 : vector<2x64xf32>
    %876 = arith.divf %874, %875 : vector<2x64xf32>
    %877 = math.tanh %871 : vector<2x64xf32>
    %878 = vector.extract_strided_slice %876 {offsets = [0, 16], sizes = [2, 16], strides = [1, 1]} : vector<2x64xf32> to vector<2x16xf32>
    %879 = arith.mulf %878, %866 : vector<2x16xf32>
    %880 = vector.extract_strided_slice %876 {offsets = [0, 0], sizes = [2, 16], strides = [1, 1]} : vector<2x64xf32> to vector<2x16xf32>
    %881 = vector.extract_strided_slice %877 {offsets = [0, 32], sizes = [2, 16], strides = [1, 1]} : vector<2x64xf32> to vector<2x16xf32>
    %882 = arith.mulf %880, %881 : vector<2x16xf32>
    %883 = arith.addf %879, %882 : vector<2x16xf32>
    %884 = vector.extract_strided_slice %876 {offsets = [0, 48], sizes = [2, 16], strides = [1, 1]} : vector<2x64xf32> to vector<2x16xf32>
    %885 = math.tanh %883 : vector<2x16xf32>
    %886 = arith.mulf %884, %885 : vector<2x16xf32>
    %cst_122 = arith.constant 0.000000e+00 : f32
    %887 = vector.shape_cast %867 : vector<2x1xi1> to vector<2x1xi1>
    %888 = vector.broadcast %887 : vector<2x1xi1> to vector<2x16xi1>
    %889 = vector.broadcast %cst_122 : f32 to vector<2x16xf32>
    %890 = arith.select %888, %886, %889 : vector<2x16xi1>, vector<2x16xf32>
    %891 = vector.shape_cast %867 : vector<2x1xi1> to vector<2x1xi1>
    %892 = vector.broadcast %891 : vector<2x1xi1> to vector<2x16xi1>
    %893 = arith.select %892, %886, %863 : vector<2x16xi1>, vector<2x16xf32>
    %894 = vector.shape_cast %867 : vector<2x1xi1> to vector<2x1xi1>
    %895 = vector.broadcast %894 : vector<2x1xi1> to vector<2x16xi1>
    %896 = arith.select %895, %883, %866 : vector<2x16xi1>, vector<2x16xf32>
    %897 = vector.extract_strided_slice %3 {offsets = [0, 3], sizes = [2, 1], strides = [1, 1]} : vector<2x8xi1> to vector<2x1xi1>
    %898 = vector.extract_strided_slice %774 {offsets = [0, 3, 0], sizes = [2, 1, 64], strides = [1, 1, 1]} : vector<2x8x64xf32> to vector<2x1x64xf32>
    %899 = vector.shape_cast %898 : vector<2x1x64xf32> to vector<2x64xf32>
    %cst_123 = arith.constant dense<0.000000e+00> : vector<2x64xf32>
    %900 = tpu.matmul %893, %768, %cst_123 {dimension_numbers = #tpu.dot_dimension_numbers<[1], [0], [0], [1], [0, 0, 1, 1], [], []>} : vector<2x16xf32>, vector<16x64xf32>, vector<2x64xf32> -> vector<2x64xf32>
    %901 = arith.addf %899, %900 : vector<2x64xf32>
    %902 = arith.negf %901 : vector<2x64xf32>
    %903 = math.exp %902 : vector<2x64xf32>
    %cst_124 = arith.constant 1.000000e+00 : f32
    %904 = vector.broadcast %cst_124 : f32 to vector<2x64xf32>
    %905 = arith.addf %904, %903 : vector<2x64xf32>
    %906 = arith.divf %904, %905 : vector<2x64xf32>
    %907 = math.tanh %901 : vector<2x64xf32>
    %908 = vector.extract_strided_slice %906 {offsets = [0, 16], sizes = [2, 16], strides = [1, 1]} : vector<2x64xf32> to vector<2x16xf32>
    %909 = arith.mulf %908, %896 : vector<2x16xf32>
    %910 = vector.extract_strided_slice %906 {offsets = [0, 0], sizes = [2, 16], strides = [1, 1]} : vector<2x64xf32> to vector<2x16xf32>
    %911 = vector.extract_strided_slice %907 {offsets = [0, 32], sizes = [2, 16], strides = [1, 1]} : vector<2x64xf32> to vector<2x16xf32>
    %912 = arith.mulf %910, %911 : vector<2x16xf32>
    %913 = arith.addf %909, %912 : vector<2x16xf32>
    %914 = vector.extract_strided_slice %906 {offsets = [0, 48], sizes = [2, 16], strides = [1, 1]} : vector<2x64xf32> to vector<2x16xf32>
    %915 = math.tanh %913 : vector<2x16xf32>
    %916 = arith.mulf %914, %915 : vector<2x16xf32>
    %cst_125 = arith.constant 0.000000e+00 : f32
    %917 = vector.shape_cast %897 : vector<2x1xi1> to vector<2x1xi1>
    %918 = vector.broadcast %917 : vector<2x1xi1> to vector<2x16xi1>
    %919 = vector.broadcast %cst_125 : f32 to vector<2x16xf32>
    %920 = arith.select %918, %916, %919 : vector<2x16xi1>, vector<2x16xf32>
    %921 = vector.shape_cast %897 : vector<2x1xi1> to vector<2x1xi1>
    %922 = vector.broadcast %921 : vector<2x1xi1> to vector<2x16xi1>
    %923 = arith.select %922, %916, %893 : vector<2x16xi1>, vector<2x16xf32>
    %924 = vector.shape_cast %897 : vector<2x1xi1> to vector<2x1xi1>
    %925 = vector.broadcast %924 : vector<2x1xi1> to vector<2x16xi1>
    %926 = arith.select %925, %913, %896 : vector<2x16xi1>, vector<2x16xf32>
    %927 = vector.extract_strided_slice %3 {offsets = [0, 2], sizes = [2, 1], strides = [1, 1]} : vector<2x8xi1> to vector<2x1xi1>
    %928 = vector.extract_strided_slice %774 {offsets = [0, 2, 0], sizes = [2, 1, 64], strides = [1, 1, 1]} : vector<2x8x64xf32> to vector<2x1x64xf32>
    %929 = vector.shape_cast %928 : vector<2x1x64xf32> to vector<2x64xf32>
    %cst_126 = arith.constant dense<0.000000e+00> : vector<2x64xf32>
    %930 = tpu.matmul %923, %768, %cst_126 {dimension_numbers = #tpu.dot_dimension_numbers<[1], [0], [0], [1], [0, 0, 1, 1], [], []>} : vector<2x16xf32>, vector<16x64xf32>, vector<2x64xf32> -> vector<2x64xf32>
    %931 = arith.addf %929, %930 : vector<2x64xf32>
    %932 = arith.negf %931 : vector<2x64xf32>
    %933 = math.exp %932 : vector<2x64xf32>
    %cst_127 = arith.constant 1.000000e+00 : f32
    %934 = vector.broadcast %cst_127 : f32 to vector<2x64xf32>
    %935 = arith.addf %934, %933 : vector<2x64xf32>
    %936 = arith.divf %934, %935 : vector<2x64xf32>
    %937 = math.tanh %931 : vector<2x64xf32>
    %938 = vector.extract_strided_slice %936 {offsets = [0, 16], sizes = [2, 16], strides = [1, 1]} : vector<2x64xf32> to vector<2x16xf32>
    %939 = arith.mulf %938, %926 : vector<2x16xf32>
    %940 = vector.extract_strided_slice %936 {offsets = [0, 0], sizes = [2, 16], strides = [1, 1]} : vector<2x64xf32> to vector<2x16xf32>
    %941 = vector.extract_strided_slice %937 {offsets = [0, 32], sizes = [2, 16], strides = [1, 1]} : vector<2x64xf32> to vector<2x16xf32>
    %942 = arith.mulf %940, %941 : vector<2x16xf32>
    %943 = arith.addf %939, %942 : vector<2x16xf32>
    %944 = vector.extract_strided_slice %936 {offsets = [0, 48], sizes = [2, 16], strides = [1, 1]} : vector<2x64xf32> to vector<2x16xf32>
    %945 = math.tanh %943 : vector<2x16xf32>
    %946 = arith.mulf %944, %945 : vector<2x16xf32>
    %cst_128 = arith.constant 0.000000e+00 : f32
    %947 = vector.shape_cast %927 : vector<2x1xi1> to vector<2x1xi1>
    %948 = vector.broadcast %947 : vector<2x1xi1> to vector<2x16xi1>
    %949 = vector.broadcast %cst_128 : f32 to vector<2x16xf32>
    %950 = arith.select %948, %946, %949 : vector<2x16xi1>, vector<2x16xf32>
    %951 = vector.shape_cast %927 : vector<2x1xi1> to vector<2x1xi1>
    %952 = vector.broadcast %951 : vector<2x1xi1> to vector<2x16xi1>
    %953 = arith.select %952, %946, %923 : vector<2x16xi1>, vector<2x16xf32>
    %954 = vector.shape_cast %927 : vector<2x1xi1> to vector<2x1xi1>
    %955 = vector.broadcast %954 : vector<2x1xi1> to vector<2x16xi1>
    %956 = arith.select %955, %943, %926 : vector<2x16xi1>, vector<2x16xf32>
    %957 = vector.extract_strided_slice %3 {offsets = [0, 1], sizes = [2, 1], strides = [1, 1]} : vector<2x8xi1> to vector<2x1xi1>
    %958 = vector.extract_strided_slice %774 {offsets = [0, 1, 0], sizes = [2, 1, 64], strides = [1, 1, 1]} : vector<2x8x64xf32> to vector<2x1x64xf32>
    %959 = vector.shape_cast %958 : vector<2x1x64xf32> to vector<2x64xf32>
    %cst_129 = arith.constant dense<0.000000e+00> : vector<2x64xf32>
    %960 = tpu.matmul %953, %768, %cst_129 {dimension_numbers = #tpu.dot_dimension_numbers<[1], [0], [0], [1], [0, 0, 1, 1], [], []>} : vector<2x16xf32>, vector<16x64xf32>, vector<2x64xf32> -> vector<2x64xf32>
    %961 = arith.addf %959, %960 : vector<2x64xf32>
    %962 = arith.negf %961 : vector<2x64xf32>
    %963 = math.exp %962 : vector<2x64xf32>
    %cst_130 = arith.constant 1.000000e+00 : f32
    %964 = vector.broadcast %cst_130 : f32 to vector<2x64xf32>
    %965 = arith.addf %964, %963 : vector<2x64xf32>
    %966 = arith.divf %964, %965 : vector<2x64xf32>
    %967 = math.tanh %961 : vector<2x64xf32>
    %968 = vector.extract_strided_slice %966 {offsets = [0, 16], sizes = [2, 16], strides = [1, 1]} : vector<2x64xf32> to vector<2x16xf32>
    %969 = arith.mulf %968, %956 : vector<2x16xf32>
    %970 = vector.extract_strided_slice %966 {offsets = [0, 0], sizes = [2, 16], strides = [1, 1]} : vector<2x64xf32> to vector<2x16xf32>
    %971 = vector.extract_strided_slice %967 {offsets = [0, 32], sizes = [2, 16], strides = [1, 1]} : vector<2x64xf32> to vector<2x16xf32>
    %972 = arith.mulf %970, %971 : vector<2x16xf32>
    %973 = arith.addf %969, %972 : vector<2x16xf32>
    %974 = vector.extract_strided_slice %966 {offsets = [0, 48], sizes = [2, 16], strides = [1, 1]} : vector<2x64xf32> to vector<2x16xf32>
    %975 = math.tanh %973 : vector<2x16xf32>
    %976 = arith.mulf %974, %975 : vector<2x16xf32>
    %cst_131 = arith.constant 0.000000e+00 : f32
    %977 = vector.shape_cast %957 : vector<2x1xi1> to vector<2x1xi1>
    %978 = vector.broadcast %977 : vector<2x1xi1> to vector<2x16xi1>
    %979 = vector.broadcast %cst_131 : f32 to vector<2x16xf32>
    %980 = arith.select %978, %976, %979 : vector<2x16xi1>, vector<2x16xf32>
    %981 = vector.shape_cast %957 : vector<2x1xi1> to vector<2x1xi1>
    %982 = vector.broadcast %981 : vector<2x1xi1> to vector<2x16xi1>
    %983 = arith.select %982, %976, %953 : vector<2x16xi1>, vector<2x16xf32>
    %984 = vector.shape_cast %957 : vector<2x1xi1> to vector<2x1xi1>
    %985 = vector.broadcast %984 : vector<2x1xi1> to vector<2x16xi1>
    %986 = arith.select %985, %973, %956 : vector<2x16xi1>, vector<2x16xf32>
    %987 = vector.extract_strided_slice %3 {offsets = [0, 0], sizes = [2, 1], strides = [1, 1]} : vector<2x8xi1> to vector<2x1xi1>
    %988 = vector.extract_strided_slice %774 {offsets = [0, 0, 0], sizes = [2, 1, 64], strides = [1, 1, 1]} : vector<2x8x64xf32> to vector<2x1x64xf32>
    %989 = vector.shape_cast %988 : vector<2x1x64xf32> to vector<2x64xf32>
    %cst_132 = arith.constant dense<0.000000e+00> : vector<2x64xf32>
    %990 = tpu.matmul %983, %768, %cst_132 {dimension_numbers = #tpu.dot_dimension_numbers<[1], [0], [0], [1], [0, 0, 1, 1], [], []>} : vector<2x16xf32>, vector<16x64xf32>, vector<2x64xf32> -> vector<2x64xf32>
    %991 = arith.addf %989, %990 : vector<2x64xf32>
    %992 = arith.negf %991 : vector<2x64xf32>
    %993 = math.exp %992 : vector<2x64xf32>
    %cst_133 = arith.constant 1.000000e+00 : f32
    %994 = vector.broadcast %cst_133 : f32 to vector<2x64xf32>
    %995 = arith.addf %994, %993 : vector<2x64xf32>
    %996 = arith.divf %994, %995 : vector<2x64xf32>
    %997 = math.tanh %991 : vector<2x64xf32>
    %998 = vector.extract_strided_slice %996 {offsets = [0, 16], sizes = [2, 16], strides = [1, 1]} : vector<2x64xf32> to vector<2x16xf32>
    %999 = arith.mulf %998, %986 : vector<2x16xf32>
    %1000 = vector.extract_strided_slice %996 {offsets = [0, 0], sizes = [2, 16], strides = [1, 1]} : vector<2x64xf32> to vector<2x16xf32>
    %1001 = vector.extract_strided_slice %997 {offsets = [0, 32], sizes = [2, 16], strides = [1, 1]} : vector<2x64xf32> to vector<2x16xf32>
    %1002 = arith.mulf %1000, %1001 : vector<2x16xf32>
    %1003 = arith.addf %999, %1002 : vector<2x16xf32>
    %1004 = vector.extract_strided_slice %996 {offsets = [0, 48], sizes = [2, 16], strides = [1, 1]} : vector<2x64xf32> to vector<2x16xf32>
    %1005 = math.tanh %1003 : vector<2x16xf32>
    %1006 = arith.mulf %1004, %1005 : vector<2x16xf32>
    %cst_134 = arith.constant 0.000000e+00 : f32
    %1007 = vector.shape_cast %987 : vector<2x1xi1> to vector<2x1xi1>
    %1008 = vector.broadcast %1007 : vector<2x1xi1> to vector<2x16xi1>
    %1009 = vector.broadcast %cst_134 : f32 to vector<2x16xf32>
    %1010 = arith.select %1008, %1006, %1009 : vector<2x16xi1>, vector<2x16xf32>
    %1011 = vector.shape_cast %1010 : vector<2x16xf32> to vector<2x1x16xf32>
    %1012 = vector.shape_cast %980 : vector<2x16xf32> to vector<2x1x16xf32>
    %1013 = vector.shape_cast %950 : vector<2x16xf32> to vector<2x1x16xf32>
    %1014 = vector.shape_cast %920 : vector<2x16xf32> to vector<2x1x16xf32>
    %1015 = vector.shape_cast %890 : vector<2x16xf32> to vector<2x1x16xf32>
    %1016 = vector.shape_cast %860 : vector<2x16xf32> to vector<2x1x16xf32>
    %1017 = vector.shape_cast %830 : vector<2x16xf32> to vector<2x1x16xf32>
    %1018 = vector.shape_cast %800 : vector<2x16xf32> to vector<2x1x16xf32>
    %1019 = tpu.concatenate %1011, %1012, %1013, %1014, %1015, %1016, %1017, %1018 in 1 : vector<2x1x16xf32>, vector<2x1x16xf32>, vector<2x1x16xf32>, vector<2x1x16xf32>, vector<2x1x16xf32>, vector<2x1x16xf32>, vector<2x1x16xf32>, vector<2x1x16xf32> -> vector<2x8x16xf32>
    %1020 = tpu.concatenate %766, %1019 in 2 : vector<2x8x16xf32>, vector<2x8x16xf32> -> vector<2x8x32xf32>
    %1021 = vector.shape_cast %1020 : vector<2x8x32xf32> to vector<16x32xf32>
    %c0_135 = arith.constant 0 : index
    %c0_136 = arith.constant 0 : index
    %1022 = vector.load %arg14[%c0_135, %c0_136] : memref<32x64xf32, #tpu.memory_space<vmem>>, vector<32x64xf32>
    %cst_137 = arith.constant dense<0.000000e+00> : vector<16x64xf32>
    %1023 = tpu.matmul %1021, %1022, %cst_137 {dimension_numbers = #tpu.dot_dimension_numbers<[1], [0], [0], [1], [0, 0, 1, 1], [], []>} : vector<16x32xf32>, vector<32x64xf32>, vector<16x64xf32> -> vector<16x64xf32>
    %c0_138 = arith.constant 0 : index
    %c0_139 = arith.constant 0 : index
    %1024 = vector.load %arg15[%c0_138, %c0_139] : memref<1x64xf32, #tpu.memory_space<vmem>>, vector<1x64xf32>
    %1025 = vector.broadcast %1024 : vector<1x64xf32> to vector<16x64xf32>
    %1026 = arith.addf %1023, %1025 : vector<16x64xf32>
    %1027 = vector.shape_cast %1026 : vector<16x64xf32> to vector<2x8x64xf32>
    %1028 = vector.extract_strided_slice %1027 {offsets = [0, 0, 0], sizes = [2, 8, 16], strides = [1, 1, 1]} : vector<2x8x64xf32> to vector<2x8x16xf32>
    %1029 = vector.extract_strided_slice %1027 {offsets = [0, 0, 16], sizes = [2, 8, 16], strides = [1, 1, 1]} : vector<2x8x64xf32> to vector<2x8x16xf32>
    %1030 = vector.extract_strided_slice %1027 {offsets = [0, 0, 32], sizes = [2, 8, 16], strides = [1, 1, 1]} : vector<2x8x64xf32> to vector<2x8x16xf32>
    %1031 = vector.extract_strided_slice %1027 {offsets = [0, 0, 48], sizes = [2, 8, 16], strides = [1, 1, 1]} : vector<2x8x64xf32> to vector<2x8x16xf32>
    %c0_140 = arith.constant 0 : index
    %c0_141 = arith.constant 0 : index
    %c0_142 = arith.constant 0 : index
    %1032 = vector.load %arg16[%c0_140, %c0_141, %c0_142] : memref<2x5x8xf32, #tpu.memory_space<vmem>>, vector<2x5x8xf32>
    %c0_143 = arith.constant 0 : index
    %c0_144 = arith.constant 0 : index
    %1033 = vector.load %arg17[%c0_143, %c0_144] : memref<16x16xf32, #tpu.memory_space<vmem>>, vector<16x16xf32>
    %c0_145 = arith.constant 0 : index
    %c0_146 = arith.constant 0 : index
    %1034 = vector.load %arg18[%c0_145, %c0_146] : memref<1x16xf32, #tpu.memory_space<vmem>>, vector<1x16xf32>
    %c0_147 = arith.constant 0 : index
    %c0_148 = arith.constant 0 : index
    %1035 = vector.load %arg19[%c0_147, %c0_148] : memref<16x8xf32, #tpu.memory_space<vmem>>, vector<16x8xf32>
    %c0_149 = arith.constant 0 : index
    %c0_150 = arith.constant 0 : index
    %1036 = vector.load %arg20[%c0_149, %c0_150] : memref<1x8xf32, #tpu.memory_space<vmem>>, vector<1x8xf32>
    %c0_151 = arith.constant 0 : index
    %c0_152 = arith.constant 0 : index
    %1037 = vector.load %arg22[%c0_151, %c0_152] : memref<16x64xf32, #tpu.memory_space<vmem>>, vector<16x64xf32>
    %c0_153 = arith.constant 0 : index
    %c0_154 = arith.constant 0 : index
    %1038 = vector.load %arg23[%c0_153, %c0_154] : memref<16x64xf32, #tpu.memory_space<vmem>>, vector<16x64xf32>
    %c0_155 = arith.constant 0 : index
    %c0_156 = arith.constant 0 : index
    %1039 = vector.load %arg25[%c0_155, %c0_156] : memref<16x64xf32, #tpu.memory_space<vmem>>, vector<16x64xf32>
    %c0_157 = arith.constant 0 : index
    %c0_158 = arith.constant 0 : index
    %1040 = vector.load %arg26[%c0_157, %c0_158] : memref<16x64xf32, #tpu.memory_space<vmem>>, vector<16x64xf32>
    %c0_159 = arith.constant 0 : index
    %c0_160 = arith.constant 0 : index
    %1041 = vector.load %arg27[%c0_159, %c0_160] : memref<1x64xf32, #tpu.memory_space<vmem>>, vector<1x64xf32>
    %1042 = vector.shape_cast %1032 : vector<2x5x8xf32> to vector<10x8xf32>
    %c0_161 = arith.constant 0 : index
    %c0_162 = arith.constant 0 : index
    %1043 = vector.load %arg21[%c0_161, %c0_162] : memref<8x64xf32, #tpu.memory_space<vmem>>, vector<8x64xf32>
    %cst_163 = arith.constant dense<0.000000e+00> : vector<10x64xf32>
    %1044 = tpu.matmul %1042, %1043, %cst_163 {dimension_numbers = #tpu.dot_dimension_numbers<[1], [0], [0], [1], [0, 0, 1, 1], [], []>} : vector<10x8xf32>, vector<8x64xf32>, vector<10x64xf32> -> vector<10x64xf32>
    %c0_164 = arith.constant 0 : index
    %c0_165 = arith.constant 0 : index
    %1045 = vector.load %arg24[%c0_164, %c0_165] : memref<1x64xf32, #tpu.memory_space<vmem>>, vector<1x64xf32>
    %1046 = vector.broadcast %1045 : vector<1x64xf32> to vector<10x64xf32>
    %1047 = arith.addf %1044, %1046 : vector<10x64xf32>
    %1048 = vector.shape_cast %1047 : vector<10x64xf32> to vector<2x5x64xf32>
    %cst_166 = arith.constant 0.000000e+00 : f32
    %1049 = vector.broadcast %cst_166 : f32 to vector<2x16xf32>
    %cst_167 = arith.constant 0.000000e+00 : f32
    %1050 = vector.broadcast %cst_167 : f32 to vector<2x16xf32>
    %cst_168 = arith.constant 0.000000e+00 : f32
    %1051 = vector.broadcast %cst_168 : f32 to vector<2x16xf32>
    %cst_169 = arith.constant 0.000000e+00 : f32
    %1052 = vector.broadcast %cst_169 : f32 to vector<2x16xf32>
    %cst_170 = arith.constant 0.000000e+00 : f32
    %1053 = vector.broadcast %cst_170 : f32 to vector<2x16xf32>
    %1054 = vector.extract_strided_slice %1048 {offsets = [0, 0, 0], sizes = [2, 1, 64], strides = [1, 1, 1]} : vector<2x5x64xf32> to vector<2x1x64xf32>
    %1055 = vector.shape_cast %1054 : vector<2x1x64xf32> to vector<2x64xf32>
    %cst_171 = arith.constant dense<0.000000e+00> : vector<2x64xf32>
    %1056 = tpu.matmul %1053, %1037, %cst_171 {dimension_numbers = #tpu.dot_dimension_numbers<[1], [0], [0], [1], [0, 0, 1, 1], [], []>} : vector<2x16xf32>, vector<16x64xf32>, vector<2x64xf32> -> vector<2x64xf32>
    %1057 = arith.addf %1055, %1056 : vector<2x64xf32>
    %cst_172 = arith.constant dense<0.000000e+00> : vector<2x64xf32>
    %1058 = tpu.matmul %1049, %1038, %cst_172 {dimension_numbers = #tpu.dot_dimension_numbers<[1], [0], [0], [1], [0, 0, 1, 1], [], []>} : vector<2x16xf32>, vector<16x64xf32>, vector<2x64xf32> -> vector<2x64xf32>
    %1059 = arith.addf %1057, %1058 : vector<2x64xf32>
    %1060 = arith.negf %1059 : vector<2x64xf32>
    %1061 = math.exp %1060 : vector<2x64xf32>
    %cst_173 = arith.constant 1.000000e+00 : f32
    %1062 = vector.broadcast %cst_173 : f32 to vector<2x64xf32>
    %1063 = arith.addf %1062, %1061 : vector<2x64xf32>
    %1064 = arith.divf %1062, %1063 : vector<2x64xf32>
    %1065 = math.tanh %1059 : vector<2x64xf32>
    %1066 = vector.extract_strided_slice %1064 {offsets = [0, 16], sizes = [2, 16], strides = [1, 1]} : vector<2x64xf32> to vector<2x16xf32>
    %1067 = arith.mulf %1066, %1051 : vector<2x16xf32>
    %1068 = vector.extract_strided_slice %1064 {offsets = [0, 0], sizes = [2, 16], strides = [1, 1]} : vector<2x64xf32> to vector<2x16xf32>
    %1069 = vector.extract_strided_slice %1065 {offsets = [0, 32], sizes = [2, 16], strides = [1, 1]} : vector<2x64xf32> to vector<2x16xf32>
    %1070 = arith.mulf %1068, %1069 : vector<2x16xf32>
    %1071 = arith.addf %1067, %1070 : vector<2x16xf32>
    %1072 = vector.extract_strided_slice %1064 {offsets = [0, 48], sizes = [2, 16], strides = [1, 1]} : vector<2x64xf32> to vector<2x16xf32>
    %1073 = math.tanh %1071 : vector<2x16xf32>
    %1074 = arith.mulf %1072, %1073 : vector<2x16xf32>
    %cst_174 = arith.constant dense<0.000000e+00> : vector<2x64xf32>
    %1075 = tpu.matmul %1074, %1039, %cst_174 {dimension_numbers = #tpu.dot_dimension_numbers<[1], [0], [0], [1], [0, 0, 1, 1], [], []>} : vector<2x16xf32>, vector<16x64xf32>, vector<2x64xf32> -> vector<2x64xf32>
    %cst_175 = arith.constant dense<0.000000e+00> : vector<2x64xf32>
    %1076 = tpu.matmul %1050, %1040, %cst_175 {dimension_numbers = #tpu.dot_dimension_numbers<[1], [0], [0], [1], [0, 0, 1, 1], [], []>} : vector<2x16xf32>, vector<16x64xf32>, vector<2x64xf32> -> vector<2x64xf32>
    %1077 = arith.addf %1075, %1076 : vector<2x64xf32>
    %1078 = vector.broadcast %1041 : vector<1x64xf32> to vector<2x64xf32>
    %1079 = arith.addf %1077, %1078 : vector<2x64xf32>
    %1080 = arith.negf %1079 : vector<2x64xf32>
    %1081 = math.exp %1080 : vector<2x64xf32>
    %cst_176 = arith.constant 1.000000e+00 : f32
    %1082 = vector.broadcast %cst_176 : f32 to vector<2x64xf32>
    %1083 = arith.addf %1082, %1081 : vector<2x64xf32>
    %1084 = arith.divf %1082, %1083 : vector<2x64xf32>
    %1085 = math.tanh %1079 : vector<2x64xf32>
    %1086 = vector.extract_strided_slice %1084 {offsets = [0, 16], sizes = [2, 16], strides = [1, 1]} : vector<2x64xf32> to vector<2x16xf32>
    %1087 = arith.mulf %1086, %1052 : vector<2x16xf32>
    %1088 = vector.extract_strided_slice %1084 {offsets = [0, 0], sizes = [2, 16], strides = [1, 1]} : vector<2x64xf32> to vector<2x16xf32>
    %1089 = vector.extract_strided_slice %1085 {offsets = [0, 32], sizes = [2, 16], strides = [1, 1]} : vector<2x64xf32> to vector<2x16xf32>
    %1090 = arith.mulf %1088, %1089 : vector<2x16xf32>
    %1091 = arith.addf %1087, %1090 : vector<2x16xf32>
    %1092 = vector.extract_strided_slice %1084 {offsets = [0, 48], sizes = [2, 16], strides = [1, 1]} : vector<2x64xf32> to vector<2x16xf32>
    %1093 = math.tanh %1091 : vector<2x16xf32>
    %1094 = arith.mulf %1092, %1093 : vector<2x16xf32>
    %cst_177 = arith.constant dense<0.000000e+00> : vector<2x16xf32>
    %1095 = tpu.matmul %1094, %1033, %cst_177 {dimension_numbers = #tpu.dot_dimension_numbers<[1], [0], [0], [1], [0, 0, 1, 1], [], []>} : vector<2x16xf32>, vector<16x16xf32>, vector<2x16xf32> -> vector<2x16xf32>
    %1096 = vector.broadcast %1034 : vector<1x16xf32> to vector<2x16xf32>
    %1097 = arith.addf %1095, %1096 : vector<2x16xf32>
    %1098 = vector.shape_cast %1097 : vector<2x16xf32> to vector<2x1x16xf32>
    %1099 = vector.broadcast %1098 : vector<2x1x16xf32> to vector<2x8x16xf32>
    %1100 = arith.mulf %1028, %1099 : vector<2x8x16xf32>
    %cst_178 = arith.constant dense<0.000000e+00> : vector<2x8xf32>
    %1101 = vector.multi_reduction <add>, %1100, %cst_178 [2] : vector<2x8x16xf32> to vector<2x8xf32>
    %cst_179 = arith.constant -1.000000e+10 : f32
    %1102 = vector.broadcast %cst_179 : f32 to vector<2x8xf32>
    %1103 = arith.select %5, %1102, %1101 : vector<2x8xi1>, vector<2x8xf32>
    %cst_180 = arith.constant dense<0xFF800000> : vector<2xf32>
    %1104 = vector.multi_reduction <maximumf>, %1103, %cst_180 [1] : vector<2x8xf32> to vector<2xf32>
    %1105 = vector.shape_cast %1104 : vector<2xf32> to vector<2x1xf32>
    %1106 = vector.broadcast %1105 : vector<2x1xf32> to vector<2x8xf32>
    %1107 = arith.subf %1103, %1106 : vector<2x8xf32>
    %1108 = math.exp %1107 : vector<2x8xf32>
    %cst_181 = arith.constant dense<0.000000e+00> : vector<2xf32>
    %1109 = vector.multi_reduction <add>, %1108, %cst_181 [1] : vector<2x8xf32> to vector<2xf32>
    %1110 = vector.shape_cast %1109 : vector<2xf32> to vector<2x1xf32>
    %1111 = vector.broadcast %1110 : vector<2x1xf32> to vector<2x8xf32>
    %1112 = arith.divf %1108, %1111 : vector<2x8xf32>
    %1113 = vector.shape_cast %1112 : vector<2x8xf32> to vector<2x8x1xf32>
    %1114 = vector.broadcast %1113 : vector<2x8x1xf32> to vector<2x8x16xf32>
    %1115 = arith.mulf %1114, %1029 : vector<2x8x16xf32>
    %cst_182 = arith.constant dense<0.000000e+00> : vector<2x16xf32>
    %1116 = vector.multi_reduction <add>, %1115, %cst_182 [1] : vector<2x8x16xf32> to vector<2x16xf32>
    %cst_183 = arith.constant dense<0.000000e+00> : vector<2x8xf32>
    %1117 = tpu.matmul %1116, %1035, %cst_183 {dimension_numbers = #tpu.dot_dimension_numbers<[1], [0], [0], [1], [0, 0, 1, 1], [], []>} : vector<2x16xf32>, vector<16x8xf32>, vector<2x8xf32> -> vector<2x8xf32>
    %1118 = vector.broadcast %1036 : vector<1x8xf32> to vector<2x8xf32>
    %1119 = arith.addf %1117, %1118 : vector<2x8xf32>
    %1120 = vector.extract_strided_slice %1048 {offsets = [0, 1, 0], sizes = [2, 1, 64], strides = [1, 1, 1]} : vector<2x5x64xf32> to vector<2x1x64xf32>
    %1121 = vector.shape_cast %1120 : vector<2x1x64xf32> to vector<2x64xf32>
    %cst_184 = arith.constant dense<0.000000e+00> : vector<2x64xf32>
    %1122 = tpu.matmul %1116, %1037, %cst_184 {dimension_numbers = #tpu.dot_dimension_numbers<[1], [0], [0], [1], [0, 0, 1, 1], [], []>} : vector<2x16xf32>, vector<16x64xf32>, vector<2x64xf32> -> vector<2x64xf32>
    %1123 = arith.addf %1121, %1122 : vector<2x64xf32>
    %cst_185 = arith.constant dense<0.000000e+00> : vector<2x64xf32>
    %1124 = tpu.matmul %1074, %1038, %cst_185 {dimension_numbers = #tpu.dot_dimension_numbers<[1], [0], [0], [1], [0, 0, 1, 1], [], []>} : vector<2x16xf32>, vector<16x64xf32>, vector<2x64xf32> -> vector<2x64xf32>
    %1125 = arith.addf %1123, %1124 : vector<2x64xf32>
    %1126 = arith.negf %1125 : vector<2x64xf32>
    %1127 = math.exp %1126 : vector<2x64xf32>
    %cst_186 = arith.constant 1.000000e+00 : f32
    %1128 = vector.broadcast %cst_186 : f32 to vector<2x64xf32>
    %1129 = arith.addf %1128, %1127 : vector<2x64xf32>
    %1130 = arith.divf %1128, %1129 : vector<2x64xf32>
    %1131 = math.tanh %1125 : vector<2x64xf32>
    %1132 = vector.extract_strided_slice %1130 {offsets = [0, 16], sizes = [2, 16], strides = [1, 1]} : vector<2x64xf32> to vector<2x16xf32>
    %1133 = arith.mulf %1132, %1071 : vector<2x16xf32>
    %1134 = vector.extract_strided_slice %1130 {offsets = [0, 0], sizes = [2, 16], strides = [1, 1]} : vector<2x64xf32> to vector<2x16xf32>
    %1135 = vector.extract_strided_slice %1131 {offsets = [0, 32], sizes = [2, 16], strides = [1, 1]} : vector<2x64xf32> to vector<2x16xf32>
    %1136 = arith.mulf %1134, %1135 : vector<2x16xf32>
    %1137 = arith.addf %1133, %1136 : vector<2x16xf32>
    %1138 = vector.extract_strided_slice %1130 {offsets = [0, 48], sizes = [2, 16], strides = [1, 1]} : vector<2x64xf32> to vector<2x16xf32>
    %1139 = math.tanh %1137 : vector<2x16xf32>
    %1140 = arith.mulf %1138, %1139 : vector<2x16xf32>
    %cst_187 = arith.constant dense<0.000000e+00> : vector<2x64xf32>
    %1141 = tpu.matmul %1140, %1039, %cst_187 {dimension_numbers = #tpu.dot_dimension_numbers<[1], [0], [0], [1], [0, 0, 1, 1], [], []>} : vector<2x16xf32>, vector<16x64xf32>, vector<2x64xf32> -> vector<2x64xf32>
    %cst_188 = arith.constant dense<0.000000e+00> : vector<2x64xf32>
    %1142 = tpu.matmul %1094, %1040, %cst_188 {dimension_numbers = #tpu.dot_dimension_numbers<[1], [0], [0], [1], [0, 0, 1, 1], [], []>} : vector<2x16xf32>, vector<16x64xf32>, vector<2x64xf32> -> vector<2x64xf32>
    %1143 = arith.addf %1141, %1142 : vector<2x64xf32>
    %1144 = vector.broadcast %1041 : vector<1x64xf32> to vector<2x64xf32>
    %1145 = arith.addf %1143, %1144 : vector<2x64xf32>
    %1146 = arith.negf %1145 : vector<2x64xf32>
    %1147 = math.exp %1146 : vector<2x64xf32>
    %cst_189 = arith.constant 1.000000e+00 : f32
    %1148 = vector.broadcast %cst_189 : f32 to vector<2x64xf32>
    %1149 = arith.addf %1148, %1147 : vector<2x64xf32>
    %1150 = arith.divf %1148, %1149 : vector<2x64xf32>
    %1151 = math.tanh %1145 : vector<2x64xf32>
    %1152 = vector.extract_strided_slice %1150 {offsets = [0, 16], sizes = [2, 16], strides = [1, 1]} : vector<2x64xf32> to vector<2x16xf32>
    %1153 = arith.mulf %1152, %1091 : vector<2x16xf32>
    %1154 = vector.extract_strided_slice %1150 {offsets = [0, 0], sizes = [2, 16], strides = [1, 1]} : vector<2x64xf32> to vector<2x16xf32>
    %1155 = vector.extract_strided_slice %1151 {offsets = [0, 32], sizes = [2, 16], strides = [1, 1]} : vector<2x64xf32> to vector<2x16xf32>
    %1156 = arith.mulf %1154, %1155 : vector<2x16xf32>
    %1157 = arith.addf %1153, %1156 : vector<2x16xf32>
    %1158 = vector.extract_strided_slice %1150 {offsets = [0, 48], sizes = [2, 16], strides = [1, 1]} : vector<2x64xf32> to vector<2x16xf32>
    %1159 = math.tanh %1157 : vector<2x16xf32>
    %1160 = arith.mulf %1158, %1159 : vector<2x16xf32>
    %cst_190 = arith.constant dense<0.000000e+00> : vector<2x16xf32>
    %1161 = tpu.matmul %1160, %1033, %cst_190 {dimension_numbers = #tpu.dot_dimension_numbers<[1], [0], [0], [1], [0, 0, 1, 1], [], []>} : vector<2x16xf32>, vector<16x16xf32>, vector<2x16xf32> -> vector<2x16xf32>
    %1162 = vector.broadcast %1034 : vector<1x16xf32> to vector<2x16xf32>
    %1163 = arith.addf %1161, %1162 : vector<2x16xf32>
    %1164 = vector.shape_cast %1163 : vector<2x16xf32> to vector<2x1x16xf32>
    %1165 = vector.broadcast %1164 : vector<2x1x16xf32> to vector<2x8x16xf32>
    %1166 = arith.mulf %1028, %1165 : vector<2x8x16xf32>
    %cst_191 = arith.constant dense<0.000000e+00> : vector<2x8xf32>
    %1167 = vector.multi_reduction <add>, %1166, %cst_191 [2] : vector<2x8x16xf32> to vector<2x8xf32>
    %cst_192 = arith.constant -1.000000e+10 : f32
    %1168 = vector.broadcast %cst_192 : f32 to vector<2x8xf32>
    %1169 = arith.select %5, %1168, %1167 : vector<2x8xi1>, vector<2x8xf32>
    %cst_193 = arith.constant dense<0xFF800000> : vector<2xf32>
    %1170 = vector.multi_reduction <maximumf>, %1169, %cst_193 [1] : vector<2x8xf32> to vector<2xf32>
    %1171 = vector.shape_cast %1170 : vector<2xf32> to vector<2x1xf32>
    %1172 = vector.broadcast %1171 : vector<2x1xf32> to vector<2x8xf32>
    %1173 = arith.subf %1169, %1172 : vector<2x8xf32>
    %1174 = math.exp %1173 : vector<2x8xf32>
    %cst_194 = arith.constant dense<0.000000e+00> : vector<2xf32>
    %1175 = vector.multi_reduction <add>, %1174, %cst_194 [1] : vector<2x8xf32> to vector<2xf32>
    %1176 = vector.shape_cast %1175 : vector<2xf32> to vector<2x1xf32>
    %1177 = vector.broadcast %1176 : vector<2x1xf32> to vector<2x8xf32>
    %1178 = arith.divf %1174, %1177 : vector<2x8xf32>
    %1179 = vector.shape_cast %1178 : vector<2x8xf32> to vector<2x8x1xf32>
    %1180 = vector.broadcast %1179 : vector<2x8x1xf32> to vector<2x8x16xf32>
    %1181 = arith.mulf %1180, %1029 : vector<2x8x16xf32>
    %cst_195 = arith.constant dense<0.000000e+00> : vector<2x16xf32>
    %1182 = vector.multi_reduction <add>, %1181, %cst_195 [1] : vector<2x8x16xf32> to vector<2x16xf32>
    %cst_196 = arith.constant dense<0.000000e+00> : vector<2x8xf32>
    %1183 = tpu.matmul %1182, %1035, %cst_196 {dimension_numbers = #tpu.dot_dimension_numbers<[1], [0], [0], [1], [0, 0, 1, 1], [], []>} : vector<2x16xf32>, vector<16x8xf32>, vector<2x8xf32> -> vector<2x8xf32>
    %1184 = vector.broadcast %1036 : vector<1x8xf32> to vector<2x8xf32>
    %1185 = arith.addf %1183, %1184 : vector<2x8xf32>
    %1186 = vector.extract_strided_slice %1048 {offsets = [0, 2, 0], sizes = [2, 1, 64], strides = [1, 1, 1]} : vector<2x5x64xf32> to vector<2x1x64xf32>
    %1187 = vector.shape_cast %1186 : vector<2x1x64xf32> to vector<2x64xf32>
    %cst_197 = arith.constant dense<0.000000e+00> : vector<2x64xf32>
    %1188 = tpu.matmul %1182, %1037, %cst_197 {dimension_numbers = #tpu.dot_dimension_numbers<[1], [0], [0], [1], [0, 0, 1, 1], [], []>} : vector<2x16xf32>, vector<16x64xf32>, vector<2x64xf32> -> vector<2x64xf32>
    %1189 = arith.addf %1187, %1188 : vector<2x64xf32>
    %cst_198 = arith.constant dense<0.000000e+00> : vector<2x64xf32>
    %1190 = tpu.matmul %1140, %1038, %cst_198 {dimension_numbers = #tpu.dot_dimension_numbers<[1], [0], [0], [1], [0, 0, 1, 1], [], []>} : vector<2x16xf32>, vector<16x64xf32>, vector<2x64xf32> -> vector<2x64xf32>
    %1191 = arith.addf %1189, %1190 : vector<2x64xf32>
    %1192 = arith.negf %1191 : vector<2x64xf32>
    %1193 = math.exp %1192 : vector<2x64xf32>
    %cst_199 = arith.constant 1.000000e+00 : f32
    %1194 = vector.broadcast %cst_199 : f32 to vector<2x64xf32>
    %1195 = arith.addf %1194, %1193 : vector<2x64xf32>
    %1196 = arith.divf %1194, %1195 : vector<2x64xf32>
    %1197 = math.tanh %1191 : vector<2x64xf32>
    %1198 = vector.extract_strided_slice %1196 {offsets = [0, 16], sizes = [2, 16], strides = [1, 1]} : vector<2x64xf32> to vector<2x16xf32>
    %1199 = arith.mulf %1198, %1137 : vector<2x16xf32>
    %1200 = vector.extract_strided_slice %1196 {offsets = [0, 0], sizes = [2, 16], strides = [1, 1]} : vector<2x64xf32> to vector<2x16xf32>
    %1201 = vector.extract_strided_slice %1197 {offsets = [0, 32], sizes = [2, 16], strides = [1, 1]} : vector<2x64xf32> to vector<2x16xf32>
    %1202 = arith.mulf %1200, %1201 : vector<2x16xf32>
    %1203 = arith.addf %1199, %1202 : vector<2x16xf32>
    %1204 = vector.extract_strided_slice %1196 {offsets = [0, 48], sizes = [2, 16], strides = [1, 1]} : vector<2x64xf32> to vector<2x16xf32>
    %1205 = math.tanh %1203 : vector<2x16xf32>
    %1206 = arith.mulf %1204, %1205 : vector<2x16xf32>
    %cst_200 = arith.constant dense<0.000000e+00> : vector<2x64xf32>
    %1207 = tpu.matmul %1206, %1039, %cst_200 {dimension_numbers = #tpu.dot_dimension_numbers<[1], [0], [0], [1], [0, 0, 1, 1], [], []>} : vector<2x16xf32>, vector<16x64xf32>, vector<2x64xf32> -> vector<2x64xf32>
    %cst_201 = arith.constant dense<0.000000e+00> : vector<2x64xf32>
    %1208 = tpu.matmul %1160, %1040, %cst_201 {dimension_numbers = #tpu.dot_dimension_numbers<[1], [0], [0], [1], [0, 0, 1, 1], [], []>} : vector<2x16xf32>, vector<16x64xf32>, vector<2x64xf32> -> vector<2x64xf32>
    %1209 = arith.addf %1207, %1208 : vector<2x64xf32>
    %1210 = vector.broadcast %1041 : vector<1x64xf32> to vector<2x64xf32>
    %1211 = arith.addf %1209, %1210 : vector<2x64xf32>
    %1212 = arith.negf %1211 : vector<2x64xf32>
    %1213 = math.exp %1212 : vector<2x64xf32>
    %cst_202 = arith.constant 1.000000e+00 : f32
    %1214 = vector.broadcast %cst_202 : f32 to vector<2x64xf32>
    %1215 = arith.addf %1214, %1213 : vector<2x64xf32>
    %1216 = arith.divf %1214, %1215 : vector<2x64xf32>
    %1217 = math.tanh %1211 : vector<2x64xf32>
    %1218 = vector.extract_strided_slice %1216 {offsets = [0, 16], sizes = [2, 16], strides = [1, 1]} : vector<2x64xf32> to vector<2x16xf32>
    %1219 = arith.mulf %1218, %1157 : vector<2x16xf32>
    %1220 = vector.extract_strided_slice %1216 {offsets = [0, 0], sizes = [2, 16], strides = [1, 1]} : vector<2x64xf32> to vector<2x16xf32>
    %1221 = vector.extract_strided_slice %1217 {offsets = [0, 32], sizes = [2, 16], strides = [1, 1]} : vector<2x64xf32> to vector<2x16xf32>
    %1222 = arith.mulf %1220, %1221 : vector<2x16xf32>
    %1223 = arith.addf %1219, %1222 : vector<2x16xf32>
    %1224 = vector.extract_strided_slice %1216 {offsets = [0, 48], sizes = [2, 16], strides = [1, 1]} : vector<2x64xf32> to vector<2x16xf32>
    %1225 = math.tanh %1223 : vector<2x16xf32>
    %1226 = arith.mulf %1224, %1225 : vector<2x16xf32>
    %cst_203 = arith.constant dense<0.000000e+00> : vector<2x16xf32>
    %1227 = tpu.matmul %1226, %1033, %cst_203 {dimension_numbers = #tpu.dot_dimension_numbers<[1], [0], [0], [1], [0, 0, 1, 1], [], []>} : vector<2x16xf32>, vector<16x16xf32>, vector<2x16xf32> -> vector<2x16xf32>
    %1228 = vector.broadcast %1034 : vector<1x16xf32> to vector<2x16xf32>
    %1229 = arith.addf %1227, %1228 : vector<2x16xf32>
    %1230 = vector.shape_cast %1229 : vector<2x16xf32> to vector<2x1x16xf32>
    %1231 = vector.broadcast %1230 : vector<2x1x16xf32> to vector<2x8x16xf32>
    %1232 = arith.mulf %1028, %1231 : vector<2x8x16xf32>
    %cst_204 = arith.constant dense<0.000000e+00> : vector<2x8xf32>
    %1233 = vector.multi_reduction <add>, %1232, %cst_204 [2] : vector<2x8x16xf32> to vector<2x8xf32>
    %cst_205 = arith.constant -1.000000e+10 : f32
    %1234 = vector.broadcast %cst_205 : f32 to vector<2x8xf32>
    %1235 = arith.select %5, %1234, %1233 : vector<2x8xi1>, vector<2x8xf32>
    %cst_206 = arith.constant dense<0xFF800000> : vector<2xf32>
    %1236 = vector.multi_reduction <maximumf>, %1235, %cst_206 [1] : vector<2x8xf32> to vector<2xf32>
    %1237 = vector.shape_cast %1236 : vector<2xf32> to vector<2x1xf32>
    %1238 = vector.broadcast %1237 : vector<2x1xf32> to vector<2x8xf32>
    %1239 = arith.subf %1235, %1238 : vector<2x8xf32>
    %1240 = math.exp %1239 : vector<2x8xf32>
    %cst_207 = arith.constant dense<0.000000e+00> : vector<2xf32>
    %1241 = vector.multi_reduction <add>, %1240, %cst_207 [1] : vector<2x8xf32> to vector<2xf32>
    %1242 = vector.shape_cast %1241 : vector<2xf32> to vector<2x1xf32>
    %1243 = vector.broadcast %1242 : vector<2x1xf32> to vector<2x8xf32>
    %1244 = arith.divf %1240, %1243 : vector<2x8xf32>
    %1245 = vector.shape_cast %1244 : vector<2x8xf32> to vector<2x8x1xf32>
    %1246 = vector.broadcast %1245 : vector<2x8x1xf32> to vector<2x8x16xf32>
    %1247 = arith.mulf %1246, %1029 : vector<2x8x16xf32>
    %cst_208 = arith.constant dense<0.000000e+00> : vector<2x16xf32>
    %1248 = vector.multi_reduction <add>, %1247, %cst_208 [1] : vector<2x8x16xf32> to vector<2x16xf32>
    %cst_209 = arith.constant dense<0.000000e+00> : vector<2x8xf32>
    %1249 = tpu.matmul %1248, %1035, %cst_209 {dimension_numbers = #tpu.dot_dimension_numbers<[1], [0], [0], [1], [0, 0, 1, 1], [], []>} : vector<2x16xf32>, vector<16x8xf32>, vector<2x8xf32> -> vector<2x8xf32>
    %1250 = vector.broadcast %1036 : vector<1x8xf32> to vector<2x8xf32>
    %1251 = arith.addf %1249, %1250 : vector<2x8xf32>
    %1252 = vector.extract_strided_slice %1048 {offsets = [0, 3, 0], sizes = [2, 1, 64], strides = [1, 1, 1]} : vector<2x5x64xf32> to vector<2x1x64xf32>
    %1253 = vector.shape_cast %1252 : vector<2x1x64xf32> to vector<2x64xf32>
    %cst_210 = arith.constant dense<0.000000e+00> : vector<2x64xf32>
    %1254 = tpu.matmul %1248, %1037, %cst_210 {dimension_numbers = #tpu.dot_dimension_numbers<[1], [0], [0], [1], [0, 0, 1, 1], [], []>} : vector<2x16xf32>, vector<16x64xf32>, vector<2x64xf32> -> vector<2x64xf32>
    %1255 = arith.addf %1253, %1254 : vector<2x64xf32>
    %cst_211 = arith.constant dense<0.000000e+00> : vector<2x64xf32>
    %1256 = tpu.matmul %1206, %1038, %cst_211 {dimension_numbers = #tpu.dot_dimension_numbers<[1], [0], [0], [1], [0, 0, 1, 1], [], []>} : vector<2x16xf32>, vector<16x64xf32>, vector<2x64xf32> -> vector<2x64xf32>
    %1257 = arith.addf %1255, %1256 : vector<2x64xf32>
    %1258 = arith.negf %1257 : vector<2x64xf32>
    %1259 = math.exp %1258 : vector<2x64xf32>
    %cst_212 = arith.constant 1.000000e+00 : f32
    %1260 = vector.broadcast %cst_212 : f32 to vector<2x64xf32>
    %1261 = arith.addf %1260, %1259 : vector<2x64xf32>
    %1262 = arith.divf %1260, %1261 : vector<2x64xf32>
    %1263 = math.tanh %1257 : vector<2x64xf32>
    %1264 = vector.extract_strided_slice %1262 {offsets = [0, 16], sizes = [2, 16], strides = [1, 1]} : vector<2x64xf32> to vector<2x16xf32>
    %1265 = arith.mulf %1264, %1203 : vector<2x16xf32>
    %1266 = vector.extract_strided_slice %1262 {offsets = [0, 0], sizes = [2, 16], strides = [1, 1]} : vector<2x64xf32> to vector<2x16xf32>
    %1267 = vector.extract_strided_slice %1263 {offsets = [0, 32], sizes = [2, 16], strides = [1, 1]} : vector<2x64xf32> to vector<2x16xf32>
    %1268 = arith.mulf %1266, %1267 : vector<2x16xf32>
    %1269 = arith.addf %1265, %1268 : vector<2x16xf32>
    %1270 = vector.extract_strided_slice %1262 {offsets = [0, 48], sizes = [2, 16], strides = [1, 1]} : vector<2x64xf32> to vector<2x16xf32>
    %1271 = math.tanh %1269 : vector<2x16xf32>
    %1272 = arith.mulf %1270, %1271 : vector<2x16xf32>
    %cst_213 = arith.constant dense<0.000000e+00> : vector<2x64xf32>
    %1273 = tpu.matmul %1272, %1039, %cst_213 {dimension_numbers = #tpu.dot_dimension_numbers<[1], [0], [0], [1], [0, 0, 1, 1], [], []>} : vector<2x16xf32>, vector<16x64xf32>, vector<2x64xf32> -> vector<2x64xf32>
    %cst_214 = arith.constant dense<0.000000e+00> : vector<2x64xf32>
    %1274 = tpu.matmul %1226, %1040, %cst_214 {dimension_numbers = #tpu.dot_dimension_numbers<[1], [0], [0], [1], [0, 0, 1, 1], [], []>} : vector<2x16xf32>, vector<16x64xf32>, vector<2x64xf32> -> vector<2x64xf32>
    %1275 = arith.addf %1273, %1274 : vector<2x64xf32>
    %1276 = vector.broadcast %1041 : vector<1x64xf32> to vector<2x64xf32>
    %1277 = arith.addf %1275, %1276 : vector<2x64xf32>
    %1278 = arith.negf %1277 : vector<2x64xf32>
    %1279 = math.exp %1278 : vector<2x64xf32>
    %cst_215 = arith.constant 1.000000e+00 : f32
    %1280 = vector.broadcast %cst_215 : f32 to vector<2x64xf32>
    %1281 = arith.addf %1280, %1279 : vector<2x64xf32>
    %1282 = arith.divf %1280, %1281 : vector<2x64xf32>
    %1283 = math.tanh %1277 : vector<2x64xf32>
    %1284 = vector.extract_strided_slice %1282 {offsets = [0, 16], sizes = [2, 16], strides = [1, 1]} : vector<2x64xf32> to vector<2x16xf32>
    %1285 = arith.mulf %1284, %1223 : vector<2x16xf32>
    %1286 = vector.extract_strided_slice %1282 {offsets = [0, 0], sizes = [2, 16], strides = [1, 1]} : vector<2x64xf32> to vector<2x16xf32>
    %1287 = vector.extract_strided_slice %1283 {offsets = [0, 32], sizes = [2, 16], strides = [1, 1]} : vector<2x64xf32> to vector<2x16xf32>
    %1288 = arith.mulf %1286, %1287 : vector<2x16xf32>
    %1289 = arith.addf %1285, %1288 : vector<2x16xf32>
    %1290 = vector.extract_strided_slice %1282 {offsets = [0, 48], sizes = [2, 16], strides = [1, 1]} : vector<2x64xf32> to vector<2x16xf32>
    %1291 = math.tanh %1289 : vector<2x16xf32>
    %1292 = arith.mulf %1290, %1291 : vector<2x16xf32>
    %cst_216 = arith.constant dense<0.000000e+00> : vector<2x16xf32>
    %1293 = tpu.matmul %1292, %1033, %cst_216 {dimension_numbers = #tpu.dot_dimension_numbers<[1], [0], [0], [1], [0, 0, 1, 1], [], []>} : vector<2x16xf32>, vector<16x16xf32>, vector<2x16xf32> -> vector<2x16xf32>
    %1294 = vector.broadcast %1034 : vector<1x16xf32> to vector<2x16xf32>
    %1295 = arith.addf %1293, %1294 : vector<2x16xf32>
    %1296 = vector.shape_cast %1295 : vector<2x16xf32> to vector<2x1x16xf32>
    %1297 = vector.broadcast %1296 : vector<2x1x16xf32> to vector<2x8x16xf32>
    %1298 = arith.mulf %1028, %1297 : vector<2x8x16xf32>
    %cst_217 = arith.constant dense<0.000000e+00> : vector<2x8xf32>
    %1299 = vector.multi_reduction <add>, %1298, %cst_217 [2] : vector<2x8x16xf32> to vector<2x8xf32>
    %cst_218 = arith.constant -1.000000e+10 : f32
    %1300 = vector.broadcast %cst_218 : f32 to vector<2x8xf32>
    %1301 = arith.select %5, %1300, %1299 : vector<2x8xi1>, vector<2x8xf32>
    %cst_219 = arith.constant dense<0xFF800000> : vector<2xf32>
    %1302 = vector.multi_reduction <maximumf>, %1301, %cst_219 [1] : vector<2x8xf32> to vector<2xf32>
    %1303 = vector.shape_cast %1302 : vector<2xf32> to vector<2x1xf32>
    %1304 = vector.broadcast %1303 : vector<2x1xf32> to vector<2x8xf32>
    %1305 = arith.subf %1301, %1304 : vector<2x8xf32>
    %1306 = math.exp %1305 : vector<2x8xf32>
    %cst_220 = arith.constant dense<0.000000e+00> : vector<2xf32>
    %1307 = vector.multi_reduction <add>, %1306, %cst_220 [1] : vector<2x8xf32> to vector<2xf32>
    %1308 = vector.shape_cast %1307 : vector<2xf32> to vector<2x1xf32>
    %1309 = vector.broadcast %1308 : vector<2x1xf32> to vector<2x8xf32>
    %1310 = arith.divf %1306, %1309 : vector<2x8xf32>
    %1311 = vector.shape_cast %1310 : vector<2x8xf32> to vector<2x8x1xf32>
    %1312 = vector.broadcast %1311 : vector<2x8x1xf32> to vector<2x8x16xf32>
    %1313 = arith.mulf %1312, %1029 : vector<2x8x16xf32>
    %cst_221 = arith.constant dense<0.000000e+00> : vector<2x16xf32>
    %1314 = vector.multi_reduction <add>, %1313, %cst_221 [1] : vector<2x8x16xf32> to vector<2x16xf32>
    %cst_222 = arith.constant dense<0.000000e+00> : vector<2x8xf32>
    %1315 = tpu.matmul %1314, %1035, %cst_222 {dimension_numbers = #tpu.dot_dimension_numbers<[1], [0], [0], [1], [0, 0, 1, 1], [], []>} : vector<2x16xf32>, vector<16x8xf32>, vector<2x8xf32> -> vector<2x8xf32>
    %1316 = vector.broadcast %1036 : vector<1x8xf32> to vector<2x8xf32>
    %1317 = arith.addf %1315, %1316 : vector<2x8xf32>
    %1318 = vector.extract_strided_slice %1048 {offsets = [0, 4, 0], sizes = [2, 1, 64], strides = [1, 1, 1]} : vector<2x5x64xf32> to vector<2x1x64xf32>
    %1319 = vector.shape_cast %1318 : vector<2x1x64xf32> to vector<2x64xf32>
    %cst_223 = arith.constant dense<0.000000e+00> : vector<2x64xf32>
    %1320 = tpu.matmul %1314, %1037, %cst_223 {dimension_numbers = #tpu.dot_dimension_numbers<[1], [0], [0], [1], [0, 0, 1, 1], [], []>} : vector<2x16xf32>, vector<16x64xf32>, vector<2x64xf32> -> vector<2x64xf32>
    %1321 = arith.addf %1319, %1320 : vector<2x64xf32>
    %cst_224 = arith.constant dense<0.000000e+00> : vector<2x64xf32>
    %1322 = tpu.matmul %1272, %1038, %cst_224 {dimension_numbers = #tpu.dot_dimension_numbers<[1], [0], [0], [1], [0, 0, 1, 1], [], []>} : vector<2x16xf32>, vector<16x64xf32>, vector<2x64xf32> -> vector<2x64xf32>
    %1323 = arith.addf %1321, %1322 : vector<2x64xf32>
    %1324 = arith.negf %1323 : vector<2x64xf32>
    %1325 = math.exp %1324 : vector<2x64xf32>
    %cst_225 = arith.constant 1.000000e+00 : f32
    %1326 = vector.broadcast %cst_225 : f32 to vector<2x64xf32>
    %1327 = arith.addf %1326, %1325 : vector<2x64xf32>
    %1328 = arith.divf %1326, %1327 : vector<2x64xf32>
    %1329 = math.tanh %1323 : vector<2x64xf32>
    %1330 = vector.extract_strided_slice %1328 {offsets = [0, 16], sizes = [2, 16], strides = [1, 1]} : vector<2x64xf32> to vector<2x16xf32>
    %1331 = arith.mulf %1330, %1269 : vector<2x16xf32>
    %1332 = vector.extract_strided_slice %1328 {offsets = [0, 0], sizes = [2, 16], strides = [1, 1]} : vector<2x64xf32> to vector<2x16xf32>
    %1333 = vector.extract_strided_slice %1329 {offsets = [0, 32], sizes = [2, 16], strides = [1, 1]} : vector<2x64xf32> to vector<2x16xf32>
    %1334 = arith.mulf %1332, %1333 : vector<2x16xf32>
    %1335 = arith.addf %1331, %1334 : vector<2x16xf32>
    %1336 = vector.extract_strided_slice %1328 {offsets = [0, 48], sizes = [2, 16], strides = [1, 1]} : vector<2x64xf32> to vector<2x16xf32>
    %1337 = math.tanh %1335 : vector<2x16xf32>
    %1338 = arith.mulf %1336, %1337 : vector<2x16xf32>
    %cst_226 = arith.constant dense<0.000000e+00> : vector<2x64xf32>
    %1339 = tpu.matmul %1338, %1039, %cst_226 {dimension_numbers = #tpu.dot_dimension_numbers<[1], [0], [0], [1], [0, 0, 1, 1], [], []>} : vector<2x16xf32>, vector<16x64xf32>, vector<2x64xf32> -> vector<2x64xf32>
    %cst_227 = arith.constant dense<0.000000e+00> : vector<2x64xf32>
    %1340 = tpu.matmul %1292, %1040, %cst_227 {dimension_numbers = #tpu.dot_dimension_numbers<[1], [0], [0], [1], [0, 0, 1, 1], [], []>} : vector<2x16xf32>, vector<16x64xf32>, vector<2x64xf32> -> vector<2x64xf32>
    %1341 = arith.addf %1339, %1340 : vector<2x64xf32>
    %1342 = vector.broadcast %1041 : vector<1x64xf32> to vector<2x64xf32>
    %1343 = arith.addf %1341, %1342 : vector<2x64xf32>
    %1344 = arith.negf %1343 : vector<2x64xf32>
    %1345 = math.exp %1344 : vector<2x64xf32>
    %cst_228 = arith.constant 1.000000e+00 : f32
    %1346 = vector.broadcast %cst_228 : f32 to vector<2x64xf32>
    %1347 = arith.addf %1346, %1345 : vector<2x64xf32>
    %1348 = arith.divf %1346, %1347 : vector<2x64xf32>
    %1349 = math.tanh %1343 : vector<2x64xf32>
    %1350 = vector.extract_strided_slice %1348 {offsets = [0, 16], sizes = [2, 16], strides = [1, 1]} : vector<2x64xf32> to vector<2x16xf32>
    %1351 = arith.mulf %1350, %1289 : vector<2x16xf32>
    %1352 = vector.extract_strided_slice %1348 {offsets = [0, 0], sizes = [2, 16], strides = [1, 1]} : vector<2x64xf32> to vector<2x16xf32>
    %1353 = vector.extract_strided_slice %1349 {offsets = [0, 32], sizes = [2, 16], strides = [1, 1]} : vector<2x64xf32> to vector<2x16xf32>
    %1354 = arith.mulf %1352, %1353 : vector<2x16xf32>
    %1355 = arith.addf %1351, %1354 : vector<2x16xf32>
    %1356 = vector.extract_strided_slice %1348 {offsets = [0, 48], sizes = [2, 16], strides = [1, 1]} : vector<2x64xf32> to vector<2x16xf32>
    %1357 = math.tanh %1355 : vector<2x16xf32>
    %1358 = arith.mulf %1356, %1357 : vector<2x16xf32>
    %cst_229 = arith.constant dense<0.000000e+00> : vector<2x16xf32>
    %1359 = tpu.matmul %1358, %1033, %cst_229 {dimension_numbers = #tpu.dot_dimension_numbers<[1], [0], [0], [1], [0, 0, 1, 1], [], []>} : vector<2x16xf32>, vector<16x16xf32>, vector<2x16xf32> -> vector<2x16xf32>
    %1360 = vector.broadcast %1034 : vector<1x16xf32> to vector<2x16xf32>
    %1361 = arith.addf %1359, %1360 : vector<2x16xf32>
    %1362 = vector.shape_cast %1361 : vector<2x16xf32> to vector<2x1x16xf32>
    %1363 = vector.broadcast %1362 : vector<2x1x16xf32> to vector<2x8x16xf32>
    %1364 = arith.mulf %1028, %1363 : vector<2x8x16xf32>
    %cst_230 = arith.constant dense<0.000000e+00> : vector<2x8xf32>
    %1365 = vector.multi_reduction <add>, %1364, %cst_230 [2] : vector<2x8x16xf32> to vector<2x8xf32>
    %cst_231 = arith.constant -1.000000e+10 : f32
    %1366 = vector.broadcast %cst_231 : f32 to vector<2x8xf32>
    %1367 = arith.select %5, %1366, %1365 : vector<2x8xi1>, vector<2x8xf32>
    %cst_232 = arith.constant dense<0xFF800000> : vector<2xf32>
    %1368 = vector.multi_reduction <maximumf>, %1367, %cst_232 [1] : vector<2x8xf32> to vector<2xf32>
    %1369 = vector.shape_cast %1368 : vector<2xf32> to vector<2x1xf32>
    %1370 = vector.broadcast %1369 : vector<2x1xf32> to vector<2x8xf32>
    %1371 = arith.subf %1367, %1370 : vector<2x8xf32>
    %1372 = math.exp %1371 : vector<2x8xf32>
    %cst_233 = arith.constant dense<0.000000e+00> : vector<2xf32>
    %1373 = vector.multi_reduction <add>, %1372, %cst_233 [1] : vector<2x8xf32> to vector<2xf32>
    %1374 = vector.shape_cast %1373 : vector<2xf32> to vector<2x1xf32>
    %1375 = vector.broadcast %1374 : vector<2x1xf32> to vector<2x8xf32>
    %1376 = arith.divf %1372, %1375 : vector<2x8xf32>
    %1377 = vector.shape_cast %1376 : vector<2x8xf32> to vector<2x8x1xf32>
    %1378 = vector.broadcast %1377 : vector<2x8x1xf32> to vector<2x8x16xf32>
    %1379 = arith.mulf %1378, %1029 : vector<2x8x16xf32>
    %cst_234 = arith.constant dense<0.000000e+00> : vector<2x16xf32>
    %1380 = vector.multi_reduction <add>, %1379, %cst_234 [1] : vector<2x8x16xf32> to vector<2x16xf32>
    %cst_235 = arith.constant dense<0.000000e+00> : vector<2x8xf32>
    %1381 = tpu.matmul %1380, %1035, %cst_235 {dimension_numbers = #tpu.dot_dimension_numbers<[1], [0], [0], [1], [0, 0, 1, 1], [], []>} : vector<2x16xf32>, vector<16x8xf32>, vector<2x8xf32> -> vector<2x8xf32>
    %1382 = vector.broadcast %1036 : vector<1x8xf32> to vector<2x8xf32>
    %1383 = arith.addf %1381, %1382 : vector<2x8xf32>
    %1384 = vector.shape_cast %1119 : vector<2x8xf32> to vector<2x1x8xf32>
    %1385 = vector.shape_cast %1185 : vector<2x8xf32> to vector<2x1x8xf32>
    %1386 = vector.shape_cast %1251 : vector<2x8xf32> to vector<2x1x8xf32>
    %1387 = vector.shape_cast %1317 : vector<2x8xf32> to vector<2x1x8xf32>
    %1388 = vector.shape_cast %1383 : vector<2x8xf32> to vector<2x1x8xf32>
    %1389 = tpu.concatenate %1384, %1385, %1386, %1387, %1388 in 1 : vector<2x1x8xf32>, vector<2x1x8xf32>, vector<2x1x8xf32>, vector<2x1x8xf32>, vector<2x1x8xf32> -> vector<2x5x8xf32>
    %c0_236 = arith.constant 0 : index
    %c0_237 = arith.constant 0 : index
    %c0_238 = arith.constant 0 : index
    %1390 = vector.load %arg40[%c0_236, %c0_237, %c0_238] : memref<2x5x8xf32, #tpu.memory_space<vmem>>, vector<2x5x8xf32>
    tpu.vector_store %arg40[%c0_236, %c0_237, %c0_238], %1389 {strides = array<i32>} : memref<2x5x8xf32, #tpu.memory_space<vmem>>, vector<2x5x8xf32>,
    %c0_239 = arith.constant 0 : index
    %c0_240 = arith.constant 0 : index
    %c0_241 = arith.constant 0 : index
    %1391 = vector.load %arg28[%c0_239, %c0_240, %c0_241] : memref<2x5x16xf32, #tpu.memory_space<vmem>>, vector<2x5x16xf32>
    %c0_242 = arith.constant 0 : index
    %c0_243 = arith.constant 0 : index
    %1392 = vector.load %arg29[%c0_242, %c0_243] : memref<16x16xf32, #tpu.memory_space<vmem>>, vector<16x16xf32>
    %c0_244 = arith.constant 0 : index
    %c0_245 = arith.constant 0 : index
    %1393 = vector.load %arg30[%c0_244, %c0_245] : memref<1x16xf32, #tpu.memory_space<vmem>>, vector<1x16xf32>
    %c0_246 = arith.constant 0 : index
    %c0_247 = arith.constant 0 : index
    %1394 = vector.load %arg31[%c0_246, %c0_247] : memref<16x9xf32, #tpu.memory_space<vmem>>, vector<16x9xf32>
    %c0_248 = arith.constant 0 : index
    %c0_249 = arith.constant 0 : index
    %1395 = vector.load %arg32[%c0_248, %c0_249] : memref<1x9xf32, #tpu.memory_space<vmem>>, vector<1x9xf32>
    %c0_250 = arith.constant 0 : index
    %c0_251 = arith.constant 0 : index
    %1396 = vector.load %arg34[%c0_250, %c0_251] : memref<16x64xf32, #tpu.memory_space<vmem>>, vector<16x64xf32>
    %c0_252 = arith.constant 0 : index
    %c0_253 = arith.constant 0 : index
    %1397 = vector.load %arg35[%c0_252, %c0_253] : memref<16x64xf32, #tpu.memory_space<vmem>>, vector<16x64xf32>
    %c0_254 = arith.constant 0 : index
    %c0_255 = arith.constant 0 : index
    %1398 = vector.load %arg37[%c0_254, %c0_255] : memref<16x64xf32, #tpu.memory_space<vmem>>, vector<16x64xf32>
    %c0_256 = arith.constant 0 : index
    %c0_257 = arith.constant 0 : index
    %1399 = vector.load %arg38[%c0_256, %c0_257] : memref<16x64xf32, #tpu.memory_space<vmem>>, vector<16x64xf32>
    %c0_258 = arith.constant 0 : index
    %c0_259 = arith.constant 0 : index
    %1400 = vector.load %arg39[%c0_258, %c0_259] : memref<1x64xf32, #tpu.memory_space<vmem>>, vector<1x64xf32>
    %1401 = vector.shape_cast %1391 : vector<2x5x16xf32> to vector<10x16xf32>
    %c0_260 = arith.constant 0 : index
    %c0_261 = arith.constant 0 : index
    %1402 = vector.load %arg33[%c0_260, %c0_261] : memref<16x64xf32, #tpu.memory_space<vmem>>, vector<16x64xf32>
    %cst_262 = arith.constant dense<0.000000e+00> : vector<10x64xf32>
    %1403 = tpu.matmul %1401, %1402, %cst_262 {dimension_numbers = #tpu.dot_dimension_numbers<[1], [0], [0], [1], [0, 0, 1, 1], [], []>} : vector<10x16xf32>, vector<16x64xf32>, vector<10x64xf32> -> vector<10x64xf32>
    %c0_263 = arith.constant 0 : index
    %c0_264 = arith.constant 0 : index
    %1404 = vector.load %arg36[%c0_263, %c0_264] : memref<1x64xf32, #tpu.memory_space<vmem>>, vector<1x64xf32>
    %1405 = vector.broadcast %1404 : vector<1x64xf32> to vector<10x64xf32>
    %1406 = arith.addf %1403, %1405 : vector<10x64xf32>
    %1407 = vector.shape_cast %1406 : vector<10x64xf32> to vector<2x5x64xf32>
    %cst_265 = arith.constant 0.000000e+00 : f32
    %1408 = vector.broadcast %cst_265 : f32 to vector<2x16xf32>
    %cst_266 = arith.constant 0.000000e+00 : f32
    %1409 = vector.broadcast %cst_266 : f32 to vector<2x16xf32>
    %cst_267 = arith.constant 0.000000e+00 : f32
    %1410 = vector.broadcast %cst_267 : f32 to vector<2x16xf32>
    %cst_268 = arith.constant 0.000000e+00 : f32
    %1411 = vector.broadcast %cst_268 : f32 to vector<2x16xf32>
    %cst_269 = arith.constant 0.000000e+00 : f32
    %1412 = vector.broadcast %cst_269 : f32 to vector<2x16xf32>
    %1413 = vector.extract_strided_slice %1407 {offsets = [0, 0, 0], sizes = [2, 1, 64], strides = [1, 1, 1]} : vector<2x5x64xf32> to vector<2x1x64xf32>
    %1414 = vector.shape_cast %1413 : vector<2x1x64xf32> to vector<2x64xf32>
    %cst_270 = arith.constant dense<0.000000e+00> : vector<2x64xf32>
    %1415 = tpu.matmul %1412, %1396, %cst_270 {dimension_numbers = #tpu.dot_dimension_numbers<[1], [0], [0], [1], [0, 0, 1, 1], [], []>} : vector<2x16xf32>, vector<16x64xf32>, vector<2x64xf32> -> vector<2x64xf32>
    %1416 = arith.addf %1414, %1415 : vector<2x64xf32>
    %cst_271 = arith.constant dense<0.000000e+00> : vector<2x64xf32>
    %1417 = tpu.matmul %1408, %1397, %cst_271 {dimension_numbers = #tpu.dot_dimension_numbers<[1], [0], [0], [1], [0, 0, 1, 1], [], []>} : vector<2x16xf32>, vector<16x64xf32>, vector<2x64xf32> -> vector<2x64xf32>
    %1418 = arith.addf %1416, %1417 : vector<2x64xf32>
    %1419 = arith.negf %1418 : vector<2x64xf32>
    %1420 = math.exp %1419 : vector<2x64xf32>
    %cst_272 = arith.constant 1.000000e+00 : f32
    %1421 = vector.broadcast %cst_272 : f32 to vector<2x64xf32>
    %1422 = arith.addf %1421, %1420 : vector<2x64xf32>
    %1423 = arith.divf %1421, %1422 : vector<2x64xf32>
    %1424 = math.tanh %1418 : vector<2x64xf32>
    %1425 = vector.extract_strided_slice %1423 {offsets = [0, 16], sizes = [2, 16], strides = [1, 1]} : vector<2x64xf32> to vector<2x16xf32>
    %1426 = arith.mulf %1425, %1410 : vector<2x16xf32>
    %1427 = vector.extract_strided_slice %1423 {offsets = [0, 0], sizes = [2, 16], strides = [1, 1]} : vector<2x64xf32> to vector<2x16xf32>
    %1428 = vector.extract_strided_slice %1424 {offsets = [0, 32], sizes = [2, 16], strides = [1, 1]} : vector<2x64xf32> to vector<2x16xf32>
    %1429 = arith.mulf %1427, %1428 : vector<2x16xf32>
    %1430 = arith.addf %1426, %1429 : vector<2x16xf32>
    %1431 = vector.extract_strided_slice %1423 {offsets = [0, 48], sizes = [2, 16], strides = [1, 1]} : vector<2x64xf32> to vector<2x16xf32>
    %1432 = math.tanh %1430 : vector<2x16xf32>
    %1433 = arith.mulf %1431, %1432 : vector<2x16xf32>
    %cst_273 = arith.constant dense<0.000000e+00> : vector<2x64xf32>
    %1434 = tpu.matmul %1433, %1398, %cst_273 {dimension_numbers = #tpu.dot_dimension_numbers<[1], [0], [0], [1], [0, 0, 1, 1], [], []>} : vector<2x16xf32>, vector<16x64xf32>, vector<2x64xf32> -> vector<2x64xf32>
    %cst_274 = arith.constant dense<0.000000e+00> : vector<2x64xf32>
    %1435 = tpu.matmul %1409, %1399, %cst_274 {dimension_numbers = #tpu.dot_dimension_numbers<[1], [0], [0], [1], [0, 0, 1, 1], [], []>} : vector<2x16xf32>, vector<16x64xf32>, vector<2x64xf32> -> vector<2x64xf32>
    %1436 = arith.addf %1434, %1435 : vector<2x64xf32>
    %1437 = vector.broadcast %1400 : vector<1x64xf32> to vector<2x64xf32>
    %1438 = arith.addf %1436, %1437 : vector<2x64xf32>
    %1439 = arith.negf %1438 : vector<2x64xf32>
    %1440 = math.exp %1439 : vector<2x64xf32>
    %cst_275 = arith.constant 1.000000e+00 : f32
    %1441 = vector.broadcast %cst_275 : f32 to vector<2x64xf32>
    %1442 = arith.addf %1441, %1440 : vector<2x64xf32>
    %1443 = arith.divf %1441, %1442 : vector<2x64xf32>
    %1444 = math.tanh %1438 : vector<2x64xf32>
    %1445 = vector.extract_strided_slice %1443 {offsets = [0, 16], sizes = [2, 16], strides = [1, 1]} : vector<2x64xf32> to vector<2x16xf32>
    %1446 = arith.mulf %1445, %1411 : vector<2x16xf32>
    %1447 = vector.extract_strided_slice %1443 {offsets = [0, 0], sizes = [2, 16], strides = [1, 1]} : vector<2x64xf32> to vector<2x16xf32>
    %1448 = vector.extract_strided_slice %1444 {offsets = [0, 32], sizes = [2, 16], strides = [1, 1]} : vector<2x64xf32> to vector<2x16xf32>
    %1449 = arith.mulf %1447, %1448 : vector<2x16xf32>
    %1450 = arith.addf %1446, %1449 : vector<2x16xf32>
    %1451 = vector.extract_strided_slice %1443 {offsets = [0, 48], sizes = [2, 16], strides = [1, 1]} : vector<2x64xf32> to vector<2x16xf32>
    %1452 = math.tanh %1450 : vector<2x16xf32>
    %1453 = arith.mulf %1451, %1452 : vector<2x16xf32>
    %cst_276 = arith.constant dense<0.000000e+00> : vector<2x16xf32>
    %1454 = tpu.matmul %1453, %1392, %cst_276 {dimension_numbers = #tpu.dot_dimension_numbers<[1], [0], [0], [1], [0, 0, 1, 1], [], []>} : vector<2x16xf32>, vector<16x16xf32>, vector<2x16xf32> -> vector<2x16xf32>
    %1455 = vector.broadcast %1393 : vector<1x16xf32> to vector<2x16xf32>
    %1456 = arith.addf %1454, %1455 : vector<2x16xf32>
    %1457 = vector.shape_cast %1456 : vector<2x16xf32> to vector<2x1x16xf32>
    %1458 = vector.broadcast %1457 : vector<2x1x16xf32> to vector<2x8x16xf32>
    %1459 = arith.mulf %1030, %1458 : vector<2x8x16xf32>
    %cst_277 = arith.constant dense<0.000000e+00> : vector<2x8xf32>
    %1460 = vector.multi_reduction <add>, %1459, %cst_277 [2] : vector<2x8x16xf32> to vector<2x8xf32>
    %cst_278 = arith.constant -1.000000e+10 : f32
    %1461 = vector.broadcast %cst_278 : f32 to vector<2x8xf32>
    %1462 = arith.select %5, %1461, %1460 : vector<2x8xi1>, vector<2x8xf32>
    %cst_279 = arith.constant dense<0xFF800000> : vector<2xf32>
    %1463 = vector.multi_reduction <maximumf>, %1462, %cst_279 [1] : vector<2x8xf32> to vector<2xf32>
    %1464 = vector.shape_cast %1463 : vector<2xf32> to vector<2x1xf32>
    %1465 = vector.broadcast %1464 : vector<2x1xf32> to vector<2x8xf32>
    %1466 = arith.subf %1462, %1465 : vector<2x8xf32>
    %1467 = math.exp %1466 : vector<2x8xf32>
    %cst_280 = arith.constant dense<0.000000e+00> : vector<2xf32>
    %1468 = vector.multi_reduction <add>, %1467, %cst_280 [1] : vector<2x8xf32> to vector<2xf32>
    %1469 = vector.shape_cast %1468 : vector<2xf32> to vector<2x1xf32>
    %1470 = vector.broadcast %1469 : vector<2x1xf32> to vector<2x8xf32>
    %1471 = arith.divf %1467, %1470 : vector<2x8xf32>
    %1472 = vector.shape_cast %1471 : vector<2x8xf32> to vector<2x8x1xf32>
    %1473 = vector.broadcast %1472 : vector<2x8x1xf32> to vector<2x8x16xf32>
    %1474 = arith.mulf %1473, %1031 : vector<2x8x16xf32>
    %cst_281 = arith.constant dense<0.000000e+00> : vector<2x16xf32>
    %1475 = vector.multi_reduction <add>, %1474, %cst_281 [1] : vector<2x8x16xf32> to vector<2x16xf32>
    %cst_282 = arith.constant dense<0.000000e+00> : vector<2x9xf32>
    %1476 = tpu.matmul %1475, %1394, %cst_282 {dimension_numbers = #tpu.dot_dimension_numbers<[1], [0], [0], [1], [0, 0, 1, 1], [], []>} : vector<2x16xf32>, vector<16x9xf32>, vector<2x9xf32> -> vector<2x9xf32>
    %1477 = vector.broadcast %1395 : vector<1x9xf32> to vector<2x9xf32>
    %1478 = arith.addf %1476, %1477 : vector<2x9xf32>
    %1479 = vector.extract_strided_slice %1407 {offsets = [0, 1, 0], sizes = [2, 1, 64], strides = [1, 1, 1]} : vector<2x5x64xf32> to vector<2x1x64xf32>
    %1480 = vector.shape_cast %1479 : vector<2x1x64xf32> to vector<2x64xf32>
    %cst_283 = arith.constant dense<0.000000e+00> : vector<2x64xf32>
    %1481 = tpu.matmul %1475, %1396, %cst_283 {dimension_numbers = #tpu.dot_dimension_numbers<[1], [0], [0], [1], [0, 0, 1, 1], [], []>} : vector<2x16xf32>, vector<16x64xf32>, vector<2x64xf32> -> vector<2x64xf32>
    %1482 = arith.addf %1480, %1481 : vector<2x64xf32>
    %cst_284 = arith.constant dense<0.000000e+00> : vector<2x64xf32>
    %1483 = tpu.matmul %1433, %1397, %cst_284 {dimension_numbers = #tpu.dot_dimension_numbers<[1], [0], [0], [1], [0, 0, 1, 1], [], []>} : vector<2x16xf32>, vector<16x64xf32>, vector<2x64xf32> -> vector<2x64xf32>
    %1484 = arith.addf %1482, %1483 : vector<2x64xf32>
    %1485 = arith.negf %1484 : vector<2x64xf32>
    %1486 = math.exp %1485 : vector<2x64xf32>
    %cst_285 = arith.constant 1.000000e+00 : f32
    %1487 = vector.broadcast %cst_285 : f32 to vector<2x64xf32>
    %1488 = arith.addf %1487, %1486 : vector<2x64xf32>
    %1489 = arith.divf %1487, %1488 : vector<2x64xf32>
    %1490 = math.tanh %1484 : vector<2x64xf32>
    %1491 = vector.extract_strided_slice %1489 {offsets = [0, 16], sizes = [2, 16], strides = [1, 1]} : vector<2x64xf32> to vector<2x16xf32>
    %1492 = arith.mulf %1491, %1430 : vector<2x16xf32>
    %1493 = vector.extract_strided_slice %1489 {offsets = [0, 0], sizes = [2, 16], strides = [1, 1]} : vector<2x64xf32> to vector<2x16xf32>
    %1494 = vector.extract_strided_slice %1490 {offsets = [0, 32], sizes = [2, 16], strides = [1, 1]} : vector<2x64xf32> to vector<2x16xf32>
    %1495 = arith.mulf %1493, %1494 : vector<2x16xf32>
    %1496 = arith.addf %1492, %1495 : vector<2x16xf32>
    %1497 = vector.extract_strided_slice %1489 {offsets = [0, 48], sizes = [2, 16], strides = [1, 1]} : vector<2x64xf32> to vector<2x16xf32>
    %1498 = math.tanh %1496 : vector<2x16xf32>
    %1499 = arith.mulf %1497, %1498 : vector<2x16xf32>
    %cst_286 = arith.constant dense<0.000000e+00> : vector<2x64xf32>
    %1500 = tpu.matmul %1499, %1398, %cst_286 {dimension_numbers = #tpu.dot_dimension_numbers<[1], [0], [0], [1], [0, 0, 1, 1], [], []>} : vector<2x16xf32>, vector<16x64xf32>, vector<2x64xf32> -> vector<2x64xf32>
    %cst_287 = arith.constant dense<0.000000e+00> : vector<2x64xf32>
    %1501 = tpu.matmul %1453, %1399, %cst_287 {dimension_numbers = #tpu.dot_dimension_numbers<[1], [0], [0], [1], [0, 0, 1, 1], [], []>} : vector<2x16xf32>, vector<16x64xf32>, vector<2x64xf32> -> vector<2x64xf32>
    %1502 = arith.addf %1500, %1501 : vector<2x64xf32>
    %1503 = vector.broadcast %1400 : vector<1x64xf32> to vector<2x64xf32>
    %1504 = arith.addf %1502, %1503 : vector<2x64xf32>
    %1505 = arith.negf %1504 : vector<2x64xf32>
    %1506 = math.exp %1505 : vector<2x64xf32>
    %cst_288 = arith.constant 1.000000e+00 : f32
    %1507 = vector.broadcast %cst_288 : f32 to vector<2x64xf32>
    %1508 = arith.addf %1507, %1506 : vector<2x64xf32>
    %1509 = arith.divf %1507, %1508 : vector<2x64xf32>
    %1510 = math.tanh %1504 : vector<2x64xf32>
    %1511 = vector.extract_strided_slice %1509 {offsets = [0, 16], sizes = [2, 16], strides = [1, 1]} : vector<2x64xf32> to vector<2x16xf32>
    %1512 = arith.mulf %1511, %1450 : vector<2x16xf32>
    %1513 = vector.extract_strided_slice %1509 {offsets = [0, 0], sizes = [2, 16], strides = [1, 1]} : vector<2x64xf32> to vector<2x16xf32>
    %1514 = vector.extract_strided_slice %1510 {offsets = [0, 32], sizes = [2, 16], strides = [1, 1]} : vector<2x64xf32> to vector<2x16xf32>
    %1515 = arith.mulf %1513, %1514 : vector<2x16xf32>
    %1516 = arith.addf %1512, %1515 : vector<2x16xf32>
    %1517 = vector.extract_strided_slice %1509 {offsets = [0, 48], sizes = [2, 16], strides = [1, 1]} : vector<2x64xf32> to vector<2x16xf32>
    %1518 = math.tanh %1516 : vector<2x16xf32>
    %1519 = arith.mulf %1517, %1518 : vector<2x16xf32>
    %cst_289 = arith.constant dense<0.000000e+00> : vector<2x16xf32>
    %1520 = tpu.matmul %1519, %1392, %cst_289 {dimension_numbers = #tpu.dot_dimension_numbers<[1], [0], [0], [1], [0, 0, 1, 1], [], []>} : vector<2x16xf32>, vector<16x16xf32>, vector<2x16xf32> -> vector<2x16xf32>
    %1521 = vector.broadcast %1393 : vector<1x16xf32> to vector<2x16xf32>
    %1522 = arith.addf %1520, %1521 : vector<2x16xf32>
    %1523 = vector.shape_cast %1522 : vector<2x16xf32> to vector<2x1x16xf32>
    %1524 = vector.broadcast %1523 : vector<2x1x16xf32> to vector<2x8x16xf32>
    %1525 = arith.mulf %1030, %1524 : vector<2x8x16xf32>
    %cst_290 = arith.constant dense<0.000000e+00> : vector<2x8xf32>
    %1526 = vector.multi_reduction <add>, %1525, %cst_290 [2] : vector<2x8x16xf32> to vector<2x8xf32>
    %cst_291 = arith.constant -1.000000e+10 : f32
    %1527 = vector.broadcast %cst_291 : f32 to vector<2x8xf32>
    %1528 = arith.select %5, %1527, %1526 : vector<2x8xi1>, vector<2x8xf32>
    %cst_292 = arith.constant dense<0xFF800000> : vector<2xf32>
    %1529 = vector.multi_reduction <maximumf>, %1528, %cst_292 [1] : vector<2x8xf32> to vector<2xf32>
    %1530 = vector.shape_cast %1529 : vector<2xf32> to vector<2x1xf32>
    %1531 = vector.broadcast %1530 : vector<2x1xf32> to vector<2x8xf32>
    %1532 = arith.subf %1528, %1531 : vector<2x8xf32>
    %1533 = math.exp %1532 : vector<2x8xf32>
    %cst_293 = arith.constant dense<0.000000e+00> : vector<2xf32>
    %1534 = vector.multi_reduction <add>, %1533, %cst_293 [1] : vector<2x8xf32> to vector<2xf32>
    %1535 = vector.shape_cast %1534 : vector<2xf32> to vector<2x1xf32>
    %1536 = vector.broadcast %1535 : vector<2x1xf32> to vector<2x8xf32>
    %1537 = arith.divf %1533, %1536 : vector<2x8xf32>
    %1538 = vector.shape_cast %1537 : vector<2x8xf32> to vector<2x8x1xf32>
    %1539 = vector.broadcast %1538 : vector<2x8x1xf32> to vector<2x8x16xf32>
    %1540 = arith.mulf %1539, %1031 : vector<2x8x16xf32>
    %cst_294 = arith.constant dense<0.000000e+00> : vector<2x16xf32>
    %1541 = vector.multi_reduction <add>, %1540, %cst_294 [1] : vector<2x8x16xf32> to vector<2x16xf32>
    %cst_295 = arith.constant dense<0.000000e+00> : vector<2x9xf32>
    %1542 = tpu.matmul %1541, %1394, %cst_295 {dimension_numbers = #tpu.dot_dimension_numbers<[1], [0], [0], [1], [0, 0, 1, 1], [], []>} : vector<2x16xf32>, vector<16x9xf32>, vector<2x9xf32> -> vector<2x9xf32>
    %1543 = vector.broadcast %1395 : vector<1x9xf32> to vector<2x9xf32>
    %1544 = arith.addf %1542, %1543 : vector<2x9xf32>
    %1545 = vector.extract_strided_slice %1407 {offsets = [0, 2, 0], sizes = [2, 1, 64], strides = [1, 1, 1]} : vector<2x5x64xf32> to vector<2x1x64xf32>
    %1546 = vector.shape_cast %1545 : vector<2x1x64xf32> to vector<2x64xf32>
    %cst_296 = arith.constant dense<0.000000e+00> : vector<2x64xf32>
    %1547 = tpu.matmul %1541, %1396, %cst_296 {dimension_numbers = #tpu.dot_dimension_numbers<[1], [0], [0], [1], [0, 0, 1, 1], [], []>} : vector<2x16xf32>, vector<16x64xf32>, vector<2x64xf32> -> vector<2x64xf32>
    %1548 = arith.addf %1546, %1547 : vector<2x64xf32>
    %cst_297 = arith.constant dense<0.000000e+00> : vector<2x64xf32>
    %1549 = tpu.matmul %1499, %1397, %cst_297 {dimension_numbers = #tpu.dot_dimension_numbers<[1], [0], [0], [1], [0, 0, 1, 1], [], []>} : vector<2x16xf32>, vector<16x64xf32>, vector<2x64xf32> -> vector<2x64xf32>
    %1550 = arith.addf %1548, %1549 : vector<2x64xf32>
    %1551 = arith.negf %1550 : vector<2x64xf32>
    %1552 = math.exp %1551 : vector<2x64xf32>
    %cst_298 = arith.constant 1.000000e+00 : f32
    %1553 = vector.broadcast %cst_298 : f32 to vector<2x64xf32>
    %1554 = arith.addf %1553, %1552 : vector<2x64xf32>
    %1555 = arith.divf %1553, %1554 : vector<2x64xf32>
    %1556 = math.tanh %1550 : vector<2x64xf32>
    %1557 = vector.extract_strided_slice %1555 {offsets = [0, 16], sizes = [2, 16], strides = [1, 1]} : vector<2x64xf32> to vector<2x16xf32>
    %1558 = arith.mulf %1557, %1496 : vector<2x16xf32>
    %1559 = vector.extract_strided_slice %1555 {offsets = [0, 0], sizes = [2, 16], strides = [1, 1]} : vector<2x64xf32> to vector<2x16xf32>
    %1560 = vector.extract_strided_slice %1556 {offsets = [0, 32], sizes = [2, 16], strides = [1, 1]} : vector<2x64xf32> to vector<2x16xf32>
    %1561 = arith.mulf %1559, %1560 : vector<2x16xf32>
    %1562 = arith.addf %1558, %1561 : vector<2x16xf32>
    %1563 = vector.extract_strided_slice %1555 {offsets = [0, 48], sizes = [2, 16], strides = [1, 1]} : vector<2x64xf32> to vector<2x16xf32>
    %1564 = math.tanh %1562 : vector<2x16xf32>
    %1565 = arith.mulf %1563, %1564 : vector<2x16xf32>
    %cst_299 = arith.constant dense<0.000000e+00> : vector<2x64xf32>
    %1566 = tpu.matmul %1565, %1398, %cst_299 {dimension_numbers = #tpu.dot_dimension_numbers<[1], [0], [0], [1], [0, 0, 1, 1], [], []>} : vector<2x16xf32>, vector<16x64xf32>, vector<2x64xf32> -> vector<2x64xf32>
    %cst_300 = arith.constant dense<0.000000e+00> : vector<2x64xf32>
    %1567 = tpu.matmul %1519, %1399, %cst_300 {dimension_numbers = #tpu.dot_dimension_numbers<[1], [0], [0], [1], [0, 0, 1, 1], [], []>} : vector<2x16xf32>, vector<16x64xf32>, vector<2x64xf32> -> vector<2x64xf32>
    %1568 = arith.addf %1566, %1567 : vector<2x64xf32>
    %1569 = vector.broadcast %1400 : vector<1x64xf32> to vector<2x64xf32>
    %1570 = arith.addf %1568, %1569 : vector<2x64xf32>
    %1571 = arith.negf %1570 : vector<2x64xf32>
    %1572 = math.exp %1571 : vector<2x64xf32>
    %cst_301 = arith.constant 1.000000e+00 : f32
    %1573 = vector.broadcast %cst_301 : f32 to vector<2x64xf32>
    %1574 = arith.addf %1573, %1572 : vector<2x64xf32>
    %1575 = arith.divf %1573, %1574 : vector<2x64xf32>
    %1576 = math.tanh %1570 : vector<2x64xf32>
    %1577 = vector.extract_strided_slice %1575 {offsets = [0, 16], sizes = [2, 16], strides = [1, 1]} : vector<2x64xf32> to vector<2x16xf32>
    %1578 = arith.mulf %1577, %1516 : vector<2x16xf32>
    %1579 = vector.extract_strided_slice %1575 {offsets = [0, 0], sizes = [2, 16], strides = [1, 1]} : vector<2x64xf32> to vector<2x16xf32>
    %1580 = vector.extract_strided_slice %1576 {offsets = [0, 32], sizes = [2, 16], strides = [1, 1]} : vector<2x64xf32> to vector<2x16xf32>
    %1581 = arith.mulf %1579, %1580 : vector<2x16xf32>
    %1582 = arith.addf %1578, %1581 : vector<2x16xf32>
    %1583 = vector.extract_strided_slice %1575 {offsets = [0, 48], sizes = [2, 16], strides = [1, 1]} : vector<2x64xf32> to vector<2x16xf32>
    %1584 = math.tanh %1582 : vector<2x16xf32>
    %1585 = arith.mulf %1583, %1584 : vector<2x16xf32>
    %cst_302 = arith.constant dense<0.000000e+00> : vector<2x16xf32>
    %1586 = tpu.matmul %1585, %1392, %cst_302 {dimension_numbers = #tpu.dot_dimension_numbers<[1], [0], [0], [1], [0, 0, 1, 1], [], []>} : vector<2x16xf32>, vector<16x16xf32>, vector<2x16xf32> -> vector<2x16xf32>
    %1587 = vector.broadcast %1393 : vector<1x16xf32> to vector<2x16xf32>
    %1588 = arith.addf %1586, %1587 : vector<2x16xf32>
    %1589 = vector.shape_cast %1588 : vector<2x16xf32> to vector<2x1x16xf32>
    %1590 = vector.broadcast %1589 : vector<2x1x16xf32> to vector<2x8x16xf32>
    %1591 = arith.mulf %1030, %1590 : vector<2x8x16xf32>
    %cst_303 = arith.constant dense<0.000000e+00> : vector<2x8xf32>
    %1592 = vector.multi_reduction <add>, %1591, %cst_303 [2] : vector<2x8x16xf32> to vector<2x8xf32>
    %cst_304 = arith.constant -1.000000e+10 : f32
    %1593 = vector.broadcast %cst_304 : f32 to vector<2x8xf32>
    %1594 = arith.select %5, %1593, %1592 : vector<2x8xi1>, vector<2x8xf32>
    %cst_305 = arith.constant dense<0xFF800000> : vector<2xf32>
    %1595 = vector.multi_reduction <maximumf>, %1594, %cst_305 [1] : vector<2x8xf32> to vector<2xf32>
    %1596 = vector.shape_cast %1595 : vector<2xf32> to vector<2x1xf32>
    %1597 = vector.broadcast %1596 : vector<2x1xf32> to vector<2x8xf32>
    %1598 = arith.subf %1594, %1597 : vector<2x8xf32>
    %1599 = math.exp %1598 : vector<2x8xf32>
    %cst_306 = arith.constant dense<0.000000e+00> : vector<2xf32>
    %1600 = vector.multi_reduction <add>, %1599, %cst_306 [1] : vector<2x8xf32> to vector<2xf32>
    %1601 = vector.shape_cast %1600 : vector<2xf32> to vector<2x1xf32>
    %1602 = vector.broadcast %1601 : vector<2x1xf32> to vector<2x8xf32>
    %1603 = arith.divf %1599, %1602 : vector<2x8xf32>
    %1604 = vector.shape_cast %1603 : vector<2x8xf32> to vector<2x8x1xf32>
    %1605 = vector.broadcast %1604 : vector<2x8x1xf32> to vector<2x8x16xf32>
    %1606 = arith.mulf %1605, %1031 : vector<2x8x16xf32>
    %cst_307 = arith.constant dense<0.000000e+00> : vector<2x16xf32>
    %1607 = vector.multi_reduction <add>, %1606, %cst_307 [1] : vector<2x8x16xf32> to vector<2x16xf32>
    %cst_308 = arith.constant dense<0.000000e+00> : vector<2x9xf32>
    %1608 = tpu.matmul %1607, %1394, %cst_308 {dimension_numbers = #tpu.dot_dimension_numbers<[1], [0], [0], [1], [0, 0, 1, 1], [], []>} : vector<2x16xf32>, vector<16x9xf32>, vector<2x9xf32> -> vector<2x9xf32>
    %1609 = vector.broadcast %1395 : vector<1x9xf32> to vector<2x9xf32>
    %1610 = arith.addf %1608, %1609 : vector<2x9xf32>
    %1611 = vector.extract_strided_slice %1407 {offsets = [0, 3, 0], sizes = [2, 1, 64], strides = [1, 1, 1]} : vector<2x5x64xf32> to vector<2x1x64xf32>
    %1612 = vector.shape_cast %1611 : vector<2x1x64xf32> to vector<2x64xf32>
    %cst_309 = arith.constant dense<0.000000e+00> : vector<2x64xf32>
    %1613 = tpu.matmul %1607, %1396, %cst_309 {dimension_numbers = #tpu.dot_dimension_numbers<[1], [0], [0], [1], [0, 0, 1, 1], [], []>} : vector<2x16xf32>, vector<16x64xf32>, vector<2x64xf32> -> vector<2x64xf32>
    %1614 = arith.addf %1612, %1613 : vector<2x64xf32>
    %cst_310 = arith.constant dense<0.000000e+00> : vector<2x64xf32>
    %1615 = tpu.matmul %1565, %1397, %cst_310 {dimension_numbers = #tpu.dot_dimension_numbers<[1], [0], [0], [1], [0, 0, 1, 1], [], []>} : vector<2x16xf32>, vector<16x64xf32>, vector<2x64xf32> -> vector<2x64xf32>
    %1616 = arith.addf %1614, %1615 : vector<2x64xf32>
    %1617 = arith.negf %1616 : vector<2x64xf32>
    %1618 = math.exp %1617 : vector<2x64xf32>
    %cst_311 = arith.constant 1.000000e+00 : f32
    %1619 = vector.broadcast %cst_311 : f32 to vector<2x64xf32>
    %1620 = arith.addf %1619, %1618 : vector<2x64xf32>
    %1621 = arith.divf %1619, %1620 : vector<2x64xf32>
    %1622 = math.tanh %1616 : vector<2x64xf32>
    %1623 = vector.extract_strided_slice %1621 {offsets = [0, 16], sizes = [2, 16], strides = [1, 1]} : vector<2x64xf32> to vector<2x16xf32>
    %1624 = arith.mulf %1623, %1562 : vector<2x16xf32>
    %1625 = vector.extract_strided_slice %1621 {offsets = [0, 0], sizes = [2, 16], strides = [1, 1]} : vector<2x64xf32> to vector<2x16xf32>
    %1626 = vector.extract_strided_slice %1622 {offsets = [0, 32], sizes = [2, 16], strides = [1, 1]} : vector<2x64xf32> to vector<2x16xf32>
    %1627 = arith.mulf %1625, %1626 : vector<2x16xf32>
    %1628 = arith.addf %1624, %1627 : vector<2x16xf32>
    %1629 = vector.extract_strided_slice %1621 {offsets = [0, 48], sizes = [2, 16], strides = [1, 1]} : vector<2x64xf32> to vector<2x16xf32>
    %1630 = math.tanh %1628 : vector<2x16xf32>
    %1631 = arith.mulf %1629, %1630 : vector<2x16xf32>
    %cst_312 = arith.constant dense<0.000000e+00> : vector<2x64xf32>
    %1632 = tpu.matmul %1631, %1398, %cst_312 {dimension_numbers = #tpu.dot_dimension_numbers<[1], [0], [0], [1], [0, 0, 1, 1], [], []>} : vector<2x16xf32>, vector<16x64xf32>, vector<2x64xf32> -> vector<2x64xf32>
    %cst_313 = arith.constant dense<0.000000e+00> : vector<2x64xf32>
    %1633 = tpu.matmul %1585, %1399, %cst_313 {dimension_numbers = #tpu.dot_dimension_numbers<[1], [0], [0], [1], [0, 0, 1, 1], [], []>} : vector<2x16xf32>, vector<16x64xf32>, vector<2x64xf32> -> vector<2x64xf32>
    %1634 = arith.addf %1632, %1633 : vector<2x64xf32>
    %1635 = vector.broadcast %1400 : vector<1x64xf32> to vector<2x64xf32>
    %1636 = arith.addf %1634, %1635 : vector<2x64xf32>
    %1637 = arith.negf %1636 : vector<2x64xf32>
    %1638 = math.exp %1637 : vector<2x64xf32>
    %cst_314 = arith.constant 1.000000e+00 : f32
    %1639 = vector.broadcast %cst_314 : f32 to vector<2x64xf32>
    %1640 = arith.addf %1639, %1638 : vector<2x64xf32>
    %1641 = arith.divf %1639, %1640 : vector<2x64xf32>
    %1642 = math.tanh %1636 : vector<2x64xf32>
    %1643 = vector.extract_strided_slice %1641 {offsets = [0, 16], sizes = [2, 16], strides = [1, 1]} : vector<2x64xf32> to vector<2x16xf32>
    %1644 = arith.mulf %1643, %1582 : vector<2x16xf32>
    %1645 = vector.extract_strided_slice %1641 {offsets = [0, 0], sizes = [2, 16], strides = [1, 1]} : vector<2x64xf32> to vector<2x16xf32>
    %1646 = vector.extract_strided_slice %1642 {offsets = [0, 32], sizes = [2, 16], strides = [1, 1]} : vector<2x64xf32> to vector<2x16xf32>
    %1647 = arith.mulf %1645, %1646 : vector<2x16xf32>
    %1648 = arith.addf %1644, %1647 : vector<2x16xf32>
    %1649 = vector.extract_strided_slice %1641 {offsets = [0, 48], sizes = [2, 16], strides = [1, 1]} : vector<2x64xf32> to vector<2x16xf32>
    %1650 = math.tanh %1648 : vector<2x16xf32>
    %1651 = arith.mulf %1649, %1650 : vector<2x16xf32>
    %cst_315 = arith.constant dense<0.000000e+00> : vector<2x16xf32>
    %1652 = tpu.matmul %1651, %1392, %cst_315 {dimension_numbers = #tpu.dot_dimension_numbers<[1], [0], [0], [1], [0, 0, 1, 1], [], []>} : vector<2x16xf32>, vector<16x16xf32>, vector<2x16xf32> -> vector<2x16xf32>
    %1653 = vector.broadcast %1393 : vector<1x16xf32> to vector<2x16xf32>
    %1654 = arith.addf %1652, %1653 : vector<2x16xf32>
    %1655 = vector.shape_cast %1654 : vector<2x16xf32> to vector<2x1x16xf32>
    %1656 = vector.broadcast %1655 : vector<2x1x16xf32> to vector<2x8x16xf32>
    %1657 = arith.mulf %1030, %1656 : vector<2x8x16xf32>
    %cst_316 = arith.constant dense<0.000000e+00> : vector<2x8xf32>
    %1658 = vector.multi_reduction <add>, %1657, %cst_316 [2] : vector<2x8x16xf32> to vector<2x8xf32>
    %cst_317 = arith.constant -1.000000e+10 : f32
    %1659 = vector.broadcast %cst_317 : f32 to vector<2x8xf32>
    %1660 = arith.select %5, %1659, %1658 : vector<2x8xi1>, vector<2x8xf32>
    %cst_318 = arith.constant dense<0xFF800000> : vector<2xf32>
    %1661 = vector.multi_reduction <maximumf>, %1660, %cst_318 [1] : vector<2x8xf32> to vector<2xf32>
    %1662 = vector.shape_cast %1661 : vector<2xf32> to vector<2x1xf32>
    %1663 = vector.broadcast %1662 : vector<2x1xf32> to vector<2x8xf32>
    %1664 = arith.subf %1660, %1663 : vector<2x8xf32>
    %1665 = math.exp %1664 : vector<2x8xf32>
    %cst_319 = arith.constant dense<0.000000e+00> : vector<2xf32>
    %1666 = vector.multi_reduction <add>, %1665, %cst_319 [1] : vector<2x8xf32> to vector<2xf32>
    %1667 = vector.shape_cast %1666 : vector<2xf32> to vector<2x1xf32>
    %1668 = vector.broadcast %1667 : vector<2x1xf32> to vector<2x8xf32>
    %1669 = arith.divf %1665, %1668 : vector<2x8xf32>
    %1670 = vector.shape_cast %1669 : vector<2x8xf32> to vector<2x8x1xf32>
    %1671 = vector.broadcast %1670 : vector<2x8x1xf32> to vector<2x8x16xf32>
    %1672 = arith.mulf %1671, %1031 : vector<2x8x16xf32>
    %cst_320 = arith.constant dense<0.000000e+00> : vector<2x16xf32>
    %1673 = vector.multi_reduction <add>, %1672, %cst_320 [1] : vector<2x8x16xf32> to vector<2x16xf32>
    %cst_321 = arith.constant dense<0.000000e+00> : vector<2x9xf32>
    %1674 = tpu.matmul %1673, %1394, %cst_321 {dimension_numbers = #tpu.dot_dimension_numbers<[1], [0], [0], [1], [0, 0, 1, 1], [], []>} : vector<2x16xf32>, vector<16x9xf32>, vector<2x9xf32> -> vector<2x9xf32>
    %1675 = vector.broadcast %1395 : vector<1x9xf32> to vector<2x9xf32>
    %1676 = arith.addf %1674, %1675 : vector<2x9xf32>
    %1677 = vector.extract_strided_slice %1407 {offsets = [0, 4, 0], sizes = [2, 1, 64], strides = [1, 1, 1]} : vector<2x5x64xf32> to vector<2x1x64xf32>
    %1678 = vector.shape_cast %1677 : vector<2x1x64xf32> to vector<2x64xf32>
    %cst_322 = arith.constant dense<0.000000e+00> : vector<2x64xf32>
    %1679 = tpu.matmul %1673, %1396, %cst_322 {dimension_numbers = #tpu.dot_dimension_numbers<[1], [0], [0], [1], [0, 0, 1, 1], [], []>} : vector<2x16xf32>, vector<16x64xf32>, vector<2x64xf32> -> vector<2x64xf32>
    %1680 = arith.addf %1678, %1679 : vector<2x64xf32>
    %cst_323 = arith.constant dense<0.000000e+00> : vector<2x64xf32>
    %1681 = tpu.matmul %1631, %1397, %cst_323 {dimension_numbers = #tpu.dot_dimension_numbers<[1], [0], [0], [1], [0, 0, 1, 1], [], []>} : vector<2x16xf32>, vector<16x64xf32>, vector<2x64xf32> -> vector<2x64xf32>
    %1682 = arith.addf %1680, %1681 : vector<2x64xf32>
    %1683 = arith.negf %1682 : vector<2x64xf32>
    %1684 = math.exp %1683 : vector<2x64xf32>
    %cst_324 = arith.constant 1.000000e+00 : f32
    %1685 = vector.broadcast %cst_324 : f32 to vector<2x64xf32>
    %1686 = arith.addf %1685, %1684 : vector<2x64xf32>
    %1687 = arith.divf %1685, %1686 : vector<2x64xf32>
    %1688 = math.tanh %1682 : vector<2x64xf32>
    %1689 = vector.extract_strided_slice %1687 {offsets = [0, 16], sizes = [2, 16], strides = [1, 1]} : vector<2x64xf32> to vector<2x16xf32>
    %1690 = arith.mulf %1689, %1628 : vector<2x16xf32>
    %1691 = vector.extract_strided_slice %1687 {offsets = [0, 0], sizes = [2, 16], strides = [1, 1]} : vector<2x64xf32> to vector<2x16xf32>
    %1692 = vector.extract_strided_slice %1688 {offsets = [0, 32], sizes = [2, 16], strides = [1, 1]} : vector<2x64xf32> to vector<2x16xf32>
    %1693 = arith.mulf %1691, %1692 : vector<2x16xf32>
    %1694 = arith.addf %1690, %1693 : vector<2x16xf32>
    %1695 = vector.extract_strided_slice %1687 {offsets = [0, 48], sizes = [2, 16], strides = [1, 1]} : vector<2x64xf32> to vector<2x16xf32>
    %1696 = math.tanh %1694 : vector<2x16xf32>
    %1697 = arith.mulf %1695, %1696 : vector<2x16xf32>
    %cst_325 = arith.constant dense<0.000000e+00> : vector<2x64xf32>
    %1698 = tpu.matmul %1697, %1398, %cst_325 {dimension_numbers = #tpu.dot_dimension_numbers<[1], [0], [0], [1], [0, 0, 1, 1], [], []>} : vector<2x16xf32>, vector<16x64xf32>, vector<2x64xf32> -> vector<2x64xf32>
    %cst_326 = arith.constant dense<0.000000e+00> : vector<2x64xf32>
    %1699 = tpu.matmul %1651, %1399, %cst_326 {dimension_numbers = #tpu.dot_dimension_numbers<[1], [0], [0], [1], [0, 0, 1, 1], [], []>} : vector<2x16xf32>, vector<16x64xf32>, vector<2x64xf32> -> vector<2x64xf32>
    %1700 = arith.addf %1698, %1699 : vector<2x64xf32>
    %1701 = vector.broadcast %1400 : vector<1x64xf32> to vector<2x64xf32>
    %1702 = arith.addf %1700, %1701 : vector<2x64xf32>
    %1703 = arith.negf %1702 : vector<2x64xf32>
    %1704 = math.exp %1703 : vector<2x64xf32>
    %cst_327 = arith.constant 1.000000e+00 : f32
    %1705 = vector.broadcast %cst_327 : f32 to vector<2x64xf32>
    %1706 = arith.addf %1705, %1704 : vector<2x64xf32>
    %1707 = arith.divf %1705, %1706 : vector<2x64xf32>
    %1708 = math.tanh %1702 : vector<2x64xf32>
    %1709 = vector.extract_strided_slice %1707 {offsets = [0, 16], sizes = [2, 16], strides = [1, 1]} : vector<2x64xf32> to vector<2x16xf32>
    %1710 = arith.mulf %1709, %1648 : vector<2x16xf32>
    %1711 = vector.extract_strided_slice %1707 {offsets = [0, 0], sizes = [2, 16], strides = [1, 1]} : vector<2x64xf32> to vector<2x16xf32>
    %1712 = vector.extract_strided_slice %1708 {offsets = [0, 32], sizes = [2, 16], strides = [1, 1]} : vector<2x64xf32> to vector<2x16xf32>
    %1713 = arith.mulf %1711, %1712 : vector<2x16xf32>
    %1714 = arith.addf %1710, %1713 : vector<2x16xf32>
    %1715 = vector.extract_strided_slice %1707 {offsets = [0, 48], sizes = [2, 16], strides = [1, 1]} : vector<2x64xf32> to vector<2x16xf32>
    %1716 = math.tanh %1714 : vector<2x16xf32>
    %1717 = arith.mulf %1715, %1716 : vector<2x16xf32>
    %cst_328 = arith.constant dense<0.000000e+00> : vector<2x16xf32>
    %1718 = tpu.matmul %1717, %1392, %cst_328 {dimension_numbers = #tpu.dot_dimension_numbers<[1], [0], [0], [1], [0, 0, 1, 1], [], []>} : vector<2x16xf32>, vector<16x16xf32>, vector<2x16xf32> -> vector<2x16xf32>
    %1719 = vector.broadcast %1393 : vector<1x16xf32> to vector<2x16xf32>
    %1720 = arith.addf %1718, %1719 : vector<2x16xf32>
    %1721 = vector.shape_cast %1720 : vector<2x16xf32> to vector<2x1x16xf32>
    %1722 = vector.broadcast %1721 : vector<2x1x16xf32> to vector<2x8x16xf32>
    %1723 = arith.mulf %1030, %1722 : vector<2x8x16xf32>
    %cst_329 = arith.constant dense<0.000000e+00> : vector<2x8xf32>
    %1724 = vector.multi_reduction <add>, %1723, %cst_329 [2] : vector<2x8x16xf32> to vector<2x8xf32>
    %cst_330 = arith.constant -1.000000e+10 : f32
    %1725 = vector.broadcast %cst_330 : f32 to vector<2x8xf32>
    %1726 = arith.select %5, %1725, %1724 : vector<2x8xi1>, vector<2x8xf32>
    %cst_331 = arith.constant dense<0xFF800000> : vector<2xf32>
    %1727 = vector.multi_reduction <maximumf>, %1726, %cst_331 [1] : vector<2x8xf32> to vector<2xf32>
    %1728 = vector.shape_cast %1727 : vector<2xf32> to vector<2x1xf32>
    %1729 = vector.broadcast %1728 : vector<2x1xf32> to vector<2x8xf32>
    %1730 = arith.subf %1726, %1729 : vector<2x8xf32>
    %1731 = math.exp %1730 : vector<2x8xf32>
    %cst_332 = arith.constant dense<0.000000e+00> : vector<2xf32>
    %1732 = vector.multi_reduction <add>, %1731, %cst_332 [1] : vector<2x8xf32> to vector<2xf32>
    %1733 = vector.shape_cast %1732 : vector<2xf32> to vector<2x1xf32>
    %1734 = vector.broadcast %1733 : vector<2x1xf32> to vector<2x8xf32>
    %1735 = arith.divf %1731, %1734 : vector<2x8xf32>
    %1736 = vector.shape_cast %1735 : vector<2x8xf32> to vector<2x8x1xf32>
    %1737 = vector.broadcast %1736 : vector<2x8x1xf32> to vector<2x8x16xf32>
    %1738 = arith.mulf %1737, %1031 : vector<2x8x16xf32>
    %cst_333 = arith.constant dense<0.000000e+00> : vector<2x16xf32>
    %1739 = vector.multi_reduction <add>, %1738, %cst_333 [1] : vector<2x8x16xf32> to vector<2x16xf32>
    %cst_334 = arith.constant dense<0.000000e+00> : vector<2x9xf32>
    %1740 = tpu.matmul %1739, %1394, %cst_334 {dimension_numbers = #tpu.dot_dimension_numbers<[1], [0], [0], [1], [0, 0, 1, 1], [], []>} : vector<2x16xf32>, vector<16x9xf32>, vector<2x9xf32> -> vector<2x9xf32>
    %1741 = vector.broadcast %1395 : vector<1x9xf32> to vector<2x9xf32>
    %1742 = arith.addf %1740, %1741 : vector<2x9xf32>
    %1743 = vector.shape_cast %1478 : vector<2x9xf32> to vector<2x1x9xf32>
    %1744 = vector.shape_cast %1544 : vector<2x9xf32> to vector<2x1x9xf32>
    %1745 = vector.shape_cast %1610 : vector<2x9xf32> to vector<2x1x9xf32>
    %1746 = vector.shape_cast %1676 : vector<2x9xf32> to vector<2x1x9xf32>
    %1747 = vector.shape_cast %1742 : vector<2x9xf32> to vector<2x1x9xf32>
    %1748 = tpu.concatenate %1743, %1744, %1745, %1746, %1747 in 1 : vector<2x1x9xf32>, vector<2x1x9xf32>, vector<2x1x9xf32>, vector<2x1x9xf32>, vector<2x1x9xf32> -> vector<2x5x9xf32>
    %c0_335 = arith.constant 0 : index
    %c0_336 = arith.constant 0 : index
    %c0_337 = arith.constant 0 : index
    %1749 = vector.load %arg41[%c0_335, %c0_336, %c0_337] : memref<2x5x9xf32, #tpu.memory_space<vmem>>, vector<2x5x9xf32>
    tpu.vector_store %arg41[%c0_335, %c0_336, %c0_337], %1748 {strides = array<i32>} : memref<2x5x9xf32, #tpu.memory_space<vmem>>, vector<2x5x9xf32>,
    return
  }
}

</mosaic_0001>

<bundles_post_ra>
// kernel: g2p_forward.1
= control target key start
LH: loop header
LB: loop body
LE: loop exit
PB: predicated region body
PF: predicated region fallthrough
CT: control target
= control target key end

     0   :  { %v16940_v0 = vmov 0.0|0.0   ;;  %s16941_s3 = smov 2   ;;  %s16942_s7 = smov 3   ;;  %vm19935_vm0 = vmmov 0   ;;  %v16944_v1 = vmov 0.0   ;;  %vm190_vm1 = vcmask 130048   ;;  %s19928_s0 = inlined_call_operand.smem [shape: u32[42], index: -1, kind: input, shape index: {}] }
   0x1   :  { %15764 = vmatprep.subr.bf16.mxu1 %v16940_v0  ;;  %s14503_s6 = sld [smem:[%s19928_s0 + %s16941_s3]]   ;;  %15068 = vmatprep.mubr.msk.f32.mxu1 %vm19935_vm0, %v16944_v1  ;;  %s16945_s11 = smov 1   ;;  %v16946_v10 = vmov 0   ;;  %v170_v36 = vlaneseq  ;;  %vm19930_vm3 = vcmask 1041409   ;;  %vm19931_vm12 = vcmask 1040384  }
   0x2   :  { %s14504_s10 = sld [smem:[%s19928_s0 + %s16942_s7]]   ;;  %16128 = vset.pattern.permute.xlu0 %v16946_v10  ;;  %s16947_s15 = smov 4   ;;  %vm1785_vm13 = vcmask 1041408   ;;  %vm1788_vm14 = vcmask 1042432   ;;  %vm1791_vm15 = vcmask 1043456  }
   0x3   :  { %s17013_s14 = sld [smem:[%s19928_s0 + %s16945_s11]]   ;;  %s16948_s22 = smov 96   ;;  %v17053_v37 = vand.u32 127, %v170_v36 }
   0x4   :  { %s14505_s18 = sld [smem:[%s19928_s0 + %s16947_s15]]   ;;  %s16949_s23 = smov 16  }
   0x5   :  { %s1_s21 = sld [smem:[%s19928_s0]]   ;;  %s16950_s24 = smov 112  }
   0x6   :  { %s16951_s25 = smov 32   ;;  %s16952_s26 = smov 80  }
   0x7   :  { %v179_v2 = vld [vmem:[%s14503_s6] sm:$0xff]  ;;  %v180_v3 = vld [vmem:[%s14503_s6 + $0x8] sm:$0xff]  ;;  %s16959_s27 = smov 5   ;;  %s16960_s1 = smov 6  }
   0x8   :  { %v181_v4 = vld [vmem:[%s14504_s10] sm:$0xff]  ;;  %v15760_v5 = vpack.c.bf16 %v180_v3, %v179_v2  ;;  %v182_v6 = vld [vmem:[%s14504_s10 + $0x8] sm:$0xff]  ;;  %s14506_s30 = sld [smem:[%s19928_s0 + %s16959_s27]]   ;;  %s16961_s5 = smov 7  }
   0x9   :  { %v17015_v7 = vpack.c.bf16 %v182_v6, %v181_v4  ;;  %v17018_v8 = vld [vmem:[%s17013_s14] sm:$0xff]  ;;  %v178_v9 = vld [vmem:[%s17013_s14 + $0x8] sm:$0xff]  ;;  %s14507_s4 = sld [smem:[%s19928_s0 + %s16960_s1]]   ;;  %s16964_s9 = smov 8  }
   0xa   :  { %15761 = vmatprep.subr.bf16.mxu0 %v15760_v5  ;;  %15061 = vmatprep.mubr.msk.f32.mxu0 %vm190_vm1, %v17018_v8  ;;  %v14543_v11 = vld [vmem:[%s14505_s18] ss:$0 sm:$0xff]  ;;  %s14508_s8 = sld [smem:[%s19928_s0 + %s16961_s5]]   ;;  %s16965_s13 = smov 9  }
   0xb   :  { %15766 = vmatpush3.bf16.msra.mxu1 %v17015_v7  ;;  %15763 = vmatpush3.bf16.msra.mxu0 %v15760_v5  ;;  %v169_v23 = vld [vmem:[%s1_s21] sm:$0x3]  ;;  %s17611_s12 = sld [smem:[%s19928_s0 + %s16964_s9]]   ;;  %s16966_s17 = smov 10  }
   0xc   :  { %15767 = vmatprep.subr.bf16.mxu0 %v16940_v0  ;;  %15770 = vmatprep.subr.bf16.mxu1 %v16940_v0  ;;  %s17636_s16 = sld [smem:[%s19928_s0 + %s16965_s13]]   ;;  %s16967_s21 = smov 11  }
   0xd   :  { %s14511_s20 = sld [smem:[%s19928_s0 + %s16966_s17]]   ;;  %s16970_s11 = smov 14  }
   0xe   :  { %15069 = vmatmul.mubr.f32.vlgmr.msra.gmra.mrb[0].mxu1 %v16944_v1  ;;  %15062 = vmatmul.mubr.msk.f32.vlgmr.msra.gmra.mrb[0].mxu0 %vm190_vm1, %v178_v9  ;;  %s14512_s29 = sld [smem:[%s19928_s0 + %s16967_s21]]   ;;  %s16971_s15 = smov 21  }
   0xf   :  { %15769 = vmatpush3.bf16.msra.mxu0 %v17015_v7  ;;  %15075 = vmatprep.mubr.msk.f32.mxu0 %vm19935_vm0, %v16944_v1  ;;  %s14517_s10 = sld [smem:[%s19928_s0 + %s16949_s23]]   ;;  %s16972_s19 = smov 22  }
  0x10   :  { %15772 = vmatpush3.bf16.msra.mxu1 %v17015_v7  ;;  %15082 = vmatprep.mubr.msk.f32.mxu1 %vm19935_vm0, %v16944_v1  ;;  %s18386_s18 = sld [smem:[%s19928_s0 + %s16971_s15]]   ;;  %s16973_s28 = smov 23  }
  0x11   :  { %15773 = vmatprep.subr.bf16.mxu0 %v16940_v0  ;;  %15776 = vmatprep.subr.bf16.mxu1 %v16940_v0  ;;  %s18399_s27 = sld [smem:[%s19928_s0 + %s16972_s19]]   ;;  %s16974_s2 = smov 24  }
  0x12   :  { %s18550_s1 = sld [smem:[%s19928_s0 + %s16973_s28]]   ;;  %s16975_s6 = smov 26  }
  0x13   :  { %s14525_s5 = sld [smem:[%s19928_s0 + %s16974_s2]]   ;;  %s16990_s15 = smov 37  }
  0x14   :  { %s14527_s9 = sld [smem:[%s19928_s0 + %s16975_s6]]   ;;  %s16991_s19 = smov 39  }
  0x15   :  { %s16992_s28 = smov 29   ;;  %s16993_s2 = smov 30  }
  0x16   :  { %s16994_s6 = smov 31  }
  0xe1   :  { %v341_v12 = vpop.f32.mrb[0].mxu1  ;;  %v15063_v13 = vpop.f32.mrb[0].mxu0 }
  0xe2   :  { %v346_v14 = vrot.slane %v341_v12, 1  ;;  %v17039_v15 = vadd.f32 %v15063_v13, %v14543_v11  ;;  %v15070_v16 = vpop.f32.mrb[1].mxu1  ;;  %v263_v17 = vpop.f32.mrb[1].mxu0 }
  0xe3   :  { %v17041_v18 = vadd.f32 %v14543_v11, %v263_v17 }
  0xe4   :  { %v350_v19 = vadd.f32 %v346_v14, %v17039_v15 }
  0xe5   :  { %v349_v20 = vadd.f32 %v341_v12, %v17041_v18 }
  0xe6   :  { %16141 = vtanh.f32 %v350_v19  ;;  %v14547_v24 = vmul.f32 -1.442695, %v350_v19 }
  0xe7   :  { %16143 = vtanh.f32 %v349_v20  ;;  %v14546_v25 = vmul.f32 -1.442695, %v349_v20 }
  0xe8   :  { %16145 = vpow2.f32 %v14547_v24 }
  0xe9   :  { %16147 = vpow2.f32 %v14546_v25 }
  0xf0   :  { %v16142_v21 = vpop.eup %16141 }
  0xf1   :  { %371 = vrot.lane.b32.xlu0 %v16142_v21, %s16948_s22  ;;  %v16144_v22 = vpop.eup %16143 }
  0xf2   :  { %v16146_v26 = vpop.eup %16145 }
  0xf3   :  { %v358_v27 = vadd.f32 1.0, %v16146_v26  ;;  %v16148_v28 = vpop.eup %16147 }
  0xf4   :  { %v357_v29 = vadd.f32 1.0, %v16148_v28 }
  0xf5   :  { %369 = vrot.lane.b32.xlu0 %v16144_v22, %s16948_s22  ;;  %16149 = vrcp.f32 %v358_v27 }
  0xf6   :  { %16151 = vrcp.f32 %v357_v29 }
  0xf9   :  { %173 = vperm.xlu0 %16128, %v169_v23   ;;  %v16953_v23 = vmov 1  }
  0xfa   :  { %16129 = vset.pattern.permute.xlu1 %v16953_v23 }
  0xff   :  { %v16150_v30 = vpop.eup %16149 }
 0x100   :  { %v16152_v33 = vpop.eup %16151  ;;  %v366_v40 = vmul.f32 0.0, %v16150_v30 }
 0x101   :  { %v365_v43 = vmul.f32 0.0, %v16152_v33 }
 0x163   :  { %v372_v31 = vpop.permute.xlu0 %371 }
 0x164   :  { %v376_v32 = vmul.f32 %v16150_v30, %v372_v31 }
 0x166   :  { %381 = vrot.lane.b32.xlu1 %v376_v32, %s16949_s23 }
 0x167   :  { %v370_v34 = vpop.permute.xlu0 %369 }
 0x168   :  { %v375_v35 = vmul.f32 %v16152_v33, %v370_v34 }
 0x16a   :  { %379 = vrot.lane.b32.xlu1 %v375_v35, %s16949_s23 }
 0x178   :  { %v17055_v38 = vpop.permute.xlu0 %173 }
 0x179   :  { %vm175_vm2 = vcmp.lt.s32.totalorder %v17053_v37, %v17055_v38 }
 0x17a   :  { %v17059_v39 = vsel %vm175_vm2, 1, %v16946_v10  ;;  %vm19934_vm2 = vcmask 1044480  }
 0x17b   :  { %401 = vperm.xlu0 %16128, %v17059_v39  }
 0x1d8   :  { %v382_v41 = vpop.permute.xlu1 %381 }
 0x1d9   :  { %v386_v42 = vadd.f32 %v382_v41, %v366_v40 }
 0x1db   :  { %16153 = vtanh.f32 %v386_v42  ;;  %v415_v45 = vrot.slane %v386_v42, 7 }
 0x1dc   :  { %v380_v44 = vpop.permute.xlu1 %379 }
 0x1dd   :  { %v385_v46 = vadd.f32 %v380_v44, %v365_v43 }
 0x1df   :  { %16155 = vtanh.f32 %v385_v46  ;;  %v416_v47 = vsel %vm19930_vm3, %v415_v45, %v385_v46 }
 0x1e0   :  { %417 = vrot.lane.b32.xlu0 %v416_v47, %s16950_s24 }
 0x1e5   :  { %v16154_v48 = vpop.eup %16153 }
 0x1e6   :  { %393 = vrot.lane.b32.xlu1 %v16154_v48, %s16951_s25 }
 0x1e9   :  { %v16156_v49 = vpop.eup %16155 }
 0x1ea   :  { %391 = vrot.lane.b32.xlu1 %v16156_v49, %s16951_s25 }
 0x1fa   :  { %v17068_v56 = vpop.permute.xlu0 %401 }
 0x1fb   :  { %vm19929_vm4 = vcmp.eq.s32.totalorder %v17068_v56, 1 }
 0x252   :  { %v418_v3 = vpop.permute.xlu0 %417 }
 0x253   :  { %v17086_v5 = vsel %vm19929_vm4, %v418_v3, 0.0 }
 0x254   :  { %v515_v6 = vrot.slane %v17086_v5, 7 }
 0x258   :  { %v394_v50 = vpop.permute.xlu1 %393 }
 0x259   :  { %v398_v51 = vmul.f32 %v16150_v30, %v394_v50 }
 0x25b   :  { %v406_v53 = vrot.slane %v398_v51, 7 }
 0x25c   :  { %v392_v52 = vpop.permute.xlu1 %391 }
 0x25d   :  { %v397_v54 = vmul.f32 %v16152_v33, %v392_v52 }
 0x25f   :  { %v408_v55 = vsel %vm19930_vm3, %v406_v53, %v397_v54 }
 0x260   :  { %409 = vrot.lane.b32.xlu1 %v408_v55, %s16952_s26 }
 0x2d2   :  { %v410_v57 = vpop.permute.xlu1 %409 }
 0x2d3   :  { %v17073_v58 = vsel %vm19929_vm4, %v410_v57, 0.0 }
 0x2d4   :  { %15076 = vmatmul.mubr.msk.f32.vlgmr.msra.gmra.mrb[2].mxu0 %vm190_vm1, %v17073_v58 }
 0x2d5   :  { %15775 = vmatpush3.bf16.msra.mxu0 %v17015_v7  ;;  %15089 = vmatprep.mubr.msk.f32.mxu0 %vm19935_vm0, %v16944_v1 }
 0x2d6   :  { %15779 = vmatprep.subr.bf16.mxu0 %v16940_v0 }
 0x3a7   :  { %v490_v59 = vpop.f32.mrb[2].mxu0 }
 0x3a8   :  { %v495_v60 = vrot.slane %v490_v59, 7  ;;  %v499_v61 = vadd.f32 %v490_v59, %v17039_v15  ;;  %v15077_v62 = vpop.f32.mrb[3].mxu0 }
 0x3aa   :  { %v498_v63 = vadd.f32 %v495_v60, %v17041_v18  ;;  %16157 = vtanh.f32 %v499_v61  ;;  %v14550_v9 = vmul.f32 -1.442695, %v499_v61 }
 0x3ac   :  { %16159 = vtanh.f32 %v498_v63  ;;  %v14549_v10 = vmul.f32 -1.442695, %v498_v63 }
 0x3ad   :  { %16161 = vpow2.f32 %v14550_v9 }
 0x3ae   :  { %16163 = vpow2.f32 %v14549_v10 }
 0x3b4   :  { %v16158_v2 = vpop.eup %16157 }
 0x3b5   :  { %528 = vrot.lane.b32.xlu0 %v16158_v2, %s16948_s22 }
 0x3b6   :  { %v16160_v4 = vpop.eup %16159 }
 0x3b7   :  { %526 = vrot.lane.b32.xlu1 %v16160_v4, %s16948_s22  ;;  %v16162_v11 = vpop.eup %16161 }
 0x3b8   :  { %v16164_v12 = vpop.eup %16163  ;;  %v507_v13 = vadd.f32 1.0, %v16162_v11 }
 0x3b9   :  { %518 = vrot.lane.b32.xlu0 %v17086_v5, %s16949_s23  ;;  %v506_v14 = vadd.f32 1.0, %v16164_v12 }
 0x3ba   :  { %16165 = vrcp.f32 %v507_v13 }
 0x3bb   :  { %516 = vrot.lane.b32.xlu1 %v515_v6, %s16949_s23  ;;  %16167 = vrcp.f32 %v506_v14 }
 0x3c4   :  { %v16166_v16 = vpop.eup %16165 }
 0x3c5   :  { %v16168_v20 = vpop.eup %16167 }
 0x427   :  { %v529_v17 = vpop.permute.xlu0 %528 }
 0x428   :  { %v533_v19 = vmul.f32 %v16166_v16, %v529_v17 }
 0x429   :  { %v527_v21 = vpop.permute.xlu1 %526 }
 0x42a   :  { %538 = vrot.lane.b32.xlu0 %v533_v19, %s16949_s23  ;;  %v532_v22 = vmul.f32 %v16168_v20, %v527_v21 }
 0x42b   :  { %v519_v24 = vpop.permute.xlu0 %518 }
 0x42c   :  { %536 = vrot.lane.b32.xlu1 %v532_v22, %s16949_s23  ;;  %v523_v25 = vmul.f32 %v16166_v16, %v519_v24 }
 0x42d   :  { %v517_v26 = vpop.permute.xlu1 %516 }
 0x42e   :  { %v522_v29 = vmul.f32 %v16168_v20, %v517_v26 }
 0x49c   :  { %v539_v27 = vpop.permute.xlu0 %538 }
 0x49d   :  { %v543_v28 = vadd.f32 %v539_v27, %v523_v25 }
 0x49e   :  { %v537_v30 = vpop.permute.xlu1 %536 }
 0x49f   :  { %16169 = vtanh.f32 %v543_v28  ;;  %v542_v31 = vadd.f32 %v537_v30, %v522_v29 }
 0x4a1   :  { %16171 = vtanh.f32 %v542_v31  ;;  %v571_v34 = vrot.slane %v542_v31, 1 }
 0x4a3   :  { %v572_v35 = vsel %vm19930_vm3, %v543_v28, %v571_v34 }
 0x4a9   :  { %v16170_v32 = vpop.eup %16169 }
 0x4aa   :  { %550 = vrot.lane.b32.xlu0 %v16170_v32, %s16951_s25 }
 0x4ab   :  { %v16172_v33 = vpop.eup %16171 }
 0x4ac   :  { %548 = vrot.lane.b32.xlu1 %v16172_v33, %s16951_s25 }
 0x4b0   :  { %557 = vperm.xlu1 %16129, %v17059_v39  }
 0x4b4   :  { %573 = vrot.lane.b32.xlu1 %v572_v35, %s16950_s24 }
 0x51c   :  { %v551_v40 = vpop.permute.xlu0 %550 }
 0x51d   :  { %v555_v43 = vmul.f32 %v16166_v16, %v551_v40  ;;  %v16954_v16 = vmov 2  }
 0x51e   :  { %v549_v41 = vpop.permute.xlu1 %548  ;;  %16130 = vset.pattern.permute.xlu0 %v16954_v16 }
 0x51f   :  { %v554_v42 = vmul.f32 %v16168_v20, %v549_v41 }
 0x521   :  { %v562_v44 = vrot.slane %v554_v42, 1 }
 0x523   :  { %v563_v45 = vsel %vm19930_vm3, %v555_v43, %v562_v44 }
 0x524   :  { %564 = vrot.lane.b32.xlu0 %v563_v45, %s16952_s26 }
 0x52f   :  { %v17102_v46 = vpop.permute.xlu1 %557 }
 0x530   :  { %vm559_vm5 = vcmp.eq.s32.totalorder %v17102_v46, 1 }
 0x533   :  { %v574_v55 = vpop.permute.xlu1 %573 }
 0x534   :  { %v17124_v59 = vsel %vm559_vm5, %v574_v55, %v17086_v5 }
 0x535   :  { %v672_v61 = vrot.slane %v17124_v59, 6  ;;  %v673_v62 = vrot.slane %v17124_v59, 7 }
 0x596   :  { %v17105_v47 = vpop.permute.xlu0 %564 }
 0x597   :  { %v17111_v48 = vsel %vm559_vm5, %v17105_v47, %v17073_v58 }
 0x598   :  { %15083 = vmatmul.mubr.msk.f32.vlgmr.msra.gmra.mrb[2].mxu1 %vm190_vm1, %v17111_v48 }
 0x599   :  { %15778 = vmatpush3.bf16.msra.mxu1 %v17015_v7  ;;  %15096 = vmatprep.mubr.msk.f32.mxu1 %vm19935_vm0, %v16944_v1 }
 0x59a   :  { %15782 = vmatprep.subr.bf16.mxu1 %v16940_v0 }
 0x66b   :  { %v646_v49 = vpop.f32.mrb[2].mxu1 }
 0x66c   :  { %v651_v50 = vrot.slane %v646_v49, 6  ;;  %v652_v51 = vrot.slane %v646_v49, 7  ;;  %v15084_v52 = vpop.f32.mrb[3].mxu1 }
 0x66e   :  { %v655_v53 = vadd.f32 %v651_v50, %v17041_v18  ;;  %v656_v54 = vadd.f32 %v652_v51, %v17039_v15 }
 0x670   :  { %16173 = vtanh.f32 %v655_v53  ;;  %v14552_v63 = vmul.f32 -1.442695, %v655_v53  ;;  %v14553_v2 = vmul.f32 -1.442695, %v656_v54 }
 0x671   :  { %16175 = vtanh.f32 %v656_v54 }
 0x672   :  { %16177 = vpow2.f32 %v14552_v63 }
 0x673   :  { %16179 = vpow2.f32 %v14553_v2 }
 0x67a   :  { %v16174_v57 = vpop.eup %16173 }
 0x67b   :  { %v16176_v60 = vpop.eup %16175  ;;  %684 = vrot.lane.b32.xlu0 %v16174_v57, %s16948_s22 }
 0x67c   :  { %686 = vrot.lane.b32.xlu1 %v16176_v60, %s16948_s22  ;;  %v16178_v3 = vpop.eup %16177 }
 0x67d   :  { %v16180_v4 = vpop.eup %16179  ;;  %v663_v5 = vadd.f32 1.0, %v16178_v3 }
 0x67e   :  { %v664_v6 = vadd.f32 1.0, %v16180_v4 }
 0x67f   :  { %674 = vrot.lane.b32.xlu0 %v672_v61, %s16949_s23  ;;  %16181 = vrcp.f32 %v663_v5 }
 0x680   :  { %676 = vrot.lane.b32.xlu1 %v673_v62, %s16949_s23  ;;  %16183 = vrcp.f32 %v664_v6 }
 0x689   :  { %v16182_v9 = vpop.eup %16181 }
 0x68a   :  { %v16184_v11 = vpop.eup %16183 }
 0x6ed   :  { %v685_v10 = vpop.permute.xlu0 %684 }
 0x6ee   :  { %v687_v12 = vpop.permute.xlu1 %686  ;;  %v690_v13 = vmul.f32 %v16182_v9, %v685_v10 }
 0x6ef   :  { %v691_v14 = vmul.f32 %v16184_v11, %v687_v12 }
 0x6f0   :  { %694 = vrot.lane.b32.xlu0 %v690_v13, %s16949_s23  ;;  %v16955_v13 = vmov 3  }
 0x6f1   :  { %696 = vrot.lane.b32.xlu1 %v691_v14, %s16949_s23  ;;  %v675_v17 = vpop.permute.xlu0 %674 }
 0x6f2   :  { %v677_v19 = vpop.permute.xlu1 %676  ;;  %v680_v20 = vmul.f32 %v16182_v9, %v675_v17 }
 0x6f3   :  { %v681_v21 = vmul.f32 %v16184_v11, %v677_v19 }
 0x762   :  { %v695_v22 = vpop.permute.xlu0 %694 }
 0x763   :  { %v697_v23 = vpop.permute.xlu1 %696  ;;  %v700_v24 = vadd.f32 %v695_v22, %v680_v20 }
 0x764   :  { %v701_v25 = vadd.f32 %v697_v23, %v681_v21 }
 0x765   :  { %16185 = vtanh.f32 %v700_v24  ;;  %v730_v26 = vrot.slane %v700_v24, 2 }
 0x766   :  { %16187 = vtanh.f32 %v701_v25  ;;  %v731_v27 = vrot.slane %v701_v25, 1 }
 0x768   :  { %v732_v28 = vsel %vm19930_vm3, %v731_v27, %v730_v26 }
 0x76f   :  { %v16186_v29 = vpop.eup %16185 }
 0x770   :  { %v16188_v30 = vpop.eup %16187  ;;  %706 = vrot.lane.b32.xlu0 %v16186_v29, %s16951_s25 }
 0x771   :  { %708 = vrot.lane.b32.xlu1 %v16188_v30, %s16951_s25 }
 0x774   :  { %715 = vperm.xlu0 %16130, %v17059_v39  }
 0x778   :  { %16131 = vset.pattern.permute.xlu0 %v16955_v13  ;;  %v16956_v13 = vmov 4  }
 0x7e2   :  { %v707_v31 = vpop.permute.xlu0 %706 }
 0x7e3   :  { %v709_v32 = vpop.permute.xlu1 %708  ;;  %v712_v33 = vmul.f32 %v16182_v9, %v707_v31 }
 0x7e4   :  { %v713_v34 = vmul.f32 %v16184_v11, %v709_v32 }
 0x7e5   :  { %v720_v35 = vrot.slane %v712_v33, 2 }
 0x7e6   :  { %v721_v40 = vrot.slane %v713_v34, 1 }
 0x7e8   :  { %v722_v41 = vsel %vm19930_vm3, %v721_v40, %v720_v35 }
 0x7e9   :  { %723 = vrot.lane.b32.xlu1 %v722_v41, %s16952_s26 }
 0x7ed   :  { %733 = vrot.lane.b32.xlu1 %v732_v28, %s16950_s24 }
 0x7f3   :  { %v17141_v42 = vpop.permute.xlu0 %715 }
 0x7f4   :  { %vm717_vm6 = vcmp.eq.s32.totalorder %v17141_v42, 1 }
 0x85b   :  { %v17144_v43 = vpop.permute.xlu1 %723 }
 0x85c   :  { %v17150_v44 = vsel %vm717_vm6, %v17144_v43, %v17111_v48 }
 0x85d   :  { %15090 = vmatmul.mubr.msk.f32.vlgmr.msra.gmra.mrb[4].mxu0 %vm190_vm1, %v17150_v44 }
 0x85e   :  { %15781 = vmatpush3.bf16.msra.mxu0 %v17015_v7  ;;  %15103 = vmatprep.mubr.msk.f32.mxu0 %vm19935_vm0, %v16944_v1 }
 0x85f   :  { %15785 = vmatprep.subr.bf16.mxu0 %v16940_v0  ;;  %v734_v48 = vpop.permute.xlu1 %733 }
 0x860   :  { %v17163_v55 = vsel %vm717_vm6, %v734_v48, %v17124_v59 }
 0x861   :  { %v832_v60 = vrot.slane %v17163_v55, 5  ;;  %v833_v61 = vrot.slane %v17163_v55, 6 }
 0x930   :  { %v806_v45 = vpop.f32.mrb[4].mxu0 }
 0x931   :  { %v811_v49 = vrot.slane %v806_v45, 5  ;;  %v812_v50 = vrot.slane %v806_v45, 6  ;;  %v15091_v51 = vpop.f32.mrb[5].mxu0 }
 0x933   :  { %v815_v52 = vadd.f32 %v811_v49, %v17041_v18  ;;  %v816_v53 = vadd.f32 %v812_v50, %v17039_v15 }
 0x935   :  { %16189 = vtanh.f32 %v815_v52  ;;  %v14555_v62 = vmul.f32 -1.442695, %v815_v52  ;;  %v14556_v63 = vmul.f32 -1.442695, %v816_v53 }
 0x936   :  { %16191 = vtanh.f32 %v816_v53 }
 0x937   :  { %16193 = vpow2.f32 %v14555_v62 }
 0x938   :  { %16195 = vpow2.f32 %v14556_v63 }
 0x93f   :  { %v16190_v54 = vpop.eup %16189 }
 0x940   :  { %v16192_v57 = vpop.eup %16191  ;;  %844 = vrot.lane.b32.xlu0 %v16190_v54, %s16948_s22 }
 0x941   :  { %846 = vrot.lane.b32.xlu1 %v16192_v57, %s16948_s22  ;;  %v16194_v2 = vpop.eup %16193 }
 0x942   :  { %v16196_v59 = vpop.eup %16195  ;;  %v823_v3 = vadd.f32 1.0, %v16194_v2 }
 0x943   :  { %v824_v4 = vadd.f32 1.0, %v16196_v59 }
 0x944   :  { %834 = vrot.lane.b32.xlu0 %v832_v60, %s16949_s23  ;;  %16197 = vrcp.f32 %v823_v3 }
 0x945   :  { %836 = vrot.lane.b32.xlu1 %v833_v61, %s16949_s23  ;;  %16199 = vrcp.f32 %v824_v4 }
 0x94e   :  { %v16198_v5 = vpop.eup %16197 }
 0x94f   :  { %v16200_v9 = vpop.eup %16199 }
 0x9b2   :  { %v845_v6 = vpop.permute.xlu0 %844 }
 0x9b3   :  { %v847_v10 = vpop.permute.xlu1 %846  ;;  %v850_v11 = vmul.f32 %v16198_v5, %v845_v6 }
 0x9b4   :  { %v851_v12 = vmul.f32 %v16200_v9, %v847_v10 }
 0x9b5   :  { %854 = vrot.lane.b32.xlu0 %v850_v11, %s16949_s23 }
 0x9b6   :  { %856 = vrot.lane.b32.xlu1 %v851_v12, %s16949_s23  ;;  %v835_v14 = vpop.permute.xlu0 %834 }
 0x9b7   :  { %v837_v16 = vpop.permute.xlu1 %836  ;;  %v840_v17 = vmul.f32 %v16198_v5, %v835_v14 }
 0x9b8   :  { %v841_v19 = vmul.f32 %v16200_v9, %v837_v16 }
 0xa27   :  { %v855_v20 = vpop.permute.xlu0 %854 }
 0xa28   :  { %v857_v21 = vpop.permute.xlu1 %856  ;;  %v860_v22 = vadd.f32 %v855_v20, %v840_v17 }
 0xa29   :  { %v861_v23 = vadd.f32 %v857_v21, %v841_v19 }
 0xa2a   :  { %16201 = vtanh.f32 %v860_v22  ;;  %v890_v24 = vrot.slane %v860_v22, 3 }
 0xa2b   :  { %16203 = vtanh.f32 %v861_v23  ;;  %v891_v25 = vrot.slane %v861_v23, 2 }
 0xa2d   :  { %v892_v26 = vsel %vm19930_vm3, %v891_v25, %v890_v24 }
 0xa34   :  { %v16202_v27 = vpop.eup %16201 }
 0xa35   :  { %v16204_v28 = vpop.eup %16203  ;;  %866 = vrot.lane.b32.xlu0 %v16202_v27, %s16951_s25 }
 0xa36   :  { %868 = vrot.lane.b32.xlu1 %v16204_v28, %s16951_s25 }
 0xa39   :  { %875 = vperm.xlu0 %16131, %v17059_v39  }
 0xa3d   :  { %16132 = vset.pattern.permute.xlu0 %v16956_v13 }
 0xaa7   :  { %v867_v29 = vpop.permute.xlu0 %866 }
 0xaa8   :  { %v869_v30 = vpop.permute.xlu1 %868  ;;  %v872_v31 = vmul.f32 %v16198_v5, %v867_v29 }
 0xaa9   :  { %v873_v32 = vmul.f32 %v16200_v9, %v869_v30 }
 0xaaa   :  { %v880_v33 = vrot.slane %v872_v31, 3 }
 0xaab   :  { %v881_v34 = vrot.slane %v873_v32, 2 }
 0xaad   :  { %v882_v35 = vsel %vm19930_vm3, %v881_v34, %v880_v33 }
 0xaae   :  { %883 = vrot.lane.b32.xlu1 %v882_v35, %s16952_s26 }
 0xab2   :  { %893 = vrot.lane.b32.xlu1 %v892_v26, %s16950_s24 }
 0xab8   :  { %v17180_v40 = vpop.permute.xlu0 %875 }
 0xab9   :  { %vm877_vm7 = vcmp.eq.s32.totalorder %v17180_v40, 1 }
 0xb20   :  { %v17183_v41 = vpop.permute.xlu1 %883 }
 0xb21   :  { %v17189_v45 = vsel %vm877_vm7, %v17183_v41, %v17150_v44 }
 0xb22   :  { %15097 = vmatmul.mubr.msk.f32.vlgmr.msra.gmra.mrb[4].mxu1 %vm190_vm1, %v17189_v45 }
 0xb23   :  { %15784 = vmatpush3.bf16.msra.mxu1 %v17015_v7  ;;  %15110 = vmatprep.mubr.msk.f32.mxu1 %vm19935_vm0, %v16944_v1 }
 0xb24   :  { %v894_v44 = vpop.permute.xlu1 %893 }
 0xb25   :  { %v17201_v57 = vsel %vm877_vm7, %v894_v44, %v17163_v55 }
 0xb26   :  { %v992_v61 = vrot.slane %v17201_v57, 4  ;;  %v993_v62 = vrot.slane %v17201_v57, 5 }
 0xbf5   :  { %v966_v49 = vpop.f32.mrb[4].mxu1 }
 0xbf6   :  { %v971_v50 = vrot.slane %v966_v49, 4  ;;  %v972_v51 = vrot.slane %v966_v49, 5  ;;  %v15098_v52 = vpop.f32.mrb[5].mxu1 }
 0xbf8   :  { %v975_v53 = vadd.f32 %v971_v50, %v17041_v18  ;;  %v976_v48 = vadd.f32 %v972_v51, %v17039_v15 }
 0xbfa   :  { %16205 = vtanh.f32 %v975_v53  ;;  %v14558_v63 = vmul.f32 -1.442695, %v975_v53  ;;  %v14559_v2 = vmul.f32 -1.442695, %v976_v48 }
 0xbfb   :  { %16207 = vtanh.f32 %v976_v48 }
 0xbfc   :  { %16209 = vpow2.f32 %v14558_v63 }
 0xbfd   :  { %16211 = vpow2.f32 %v14559_v2 }
 0xc04   :  { %v16206_v54 = vpop.eup %16205 }
 0xc05   :  { %v16208_v60 = vpop.eup %16207  ;;  %1004 = vrot.lane.b32.xlu0 %v16206_v54, %s16948_s22 }
 0xc06   :  { %1006 = vrot.lane.b32.xlu1 %v16208_v60, %s16948_s22  ;;  %v16210_v59 = vpop.eup %16209 }
 0xc07   :  { %v16212_v55 = vpop.eup %16211  ;;  %v983_v3 = vadd.f32 1.0, %v16210_v59 }
 0xc08   :  { %v984_v4 = vadd.f32 1.0, %v16212_v55 }
 0xc09   :  { %994 = vrot.lane.b32.xlu0 %v992_v61, %s16949_s23  ;;  %16213 = vrcp.f32 %v983_v3 }
 0xc0a   :  { %996 = vrot.lane.b32.xlu1 %v993_v62, %s16949_s23  ;;  %16215 = vrcp.f32 %v984_v4 }
 0xc13   :  { %v16214_v5 = vpop.eup %16213 }
 0xc14   :  { %v16216_v9 = vpop.eup %16215 }
 0xc77   :  { %v1005_v6 = vpop.permute.xlu0 %1004 }
 0xc78   :  { %v1007_v10 = vpop.permute.xlu1 %1006  ;;  %v1010_v11 = vmul.f32 %v16214_v5, %v1005_v6 }
 0xc79   :  { %v1011_v12 = vmul.f32 %v16216_v9, %v1007_v10 }
 0xc7a   :  { %1014 = vrot.lane.b32.xlu0 %v1010_v11, %s16949_s23 }
 0xc7b   :  { %1016 = vrot.lane.b32.xlu1 %v1011_v12, %s16949_s23  ;;  %v995_v14 = vpop.permute.xlu0 %994 }
 0xc7c   :  { %v997_v16 = vpop.permute.xlu1 %996  ;;  %v1000_v17 = vmul.f32 %v16214_v5, %v995_v14  ;;  %v16957_v14 = vmov 5  }
 0xc7d   :  { %v1001_v19 = vmul.f32 %v16216_v9, %v997_v16 }
 0xcec   :  { %v1015_v20 = vpop.permute.xlu0 %1014 }
 0xced   :  { %v1017_v21 = vpop.permute.xlu1 %1016  ;;  %v1020_v22 = vadd.f32 %v1015_v20, %v1000_v17 }
 0xcee   :  { %v1021_v23 = vadd.f32 %v1017_v21, %v1001_v19 }
 0xcef   :  { %16217 = vtanh.f32 %v1020_v22  ;;  %v1050_v24 = vrot.slane %v1020_v22, 4 }
 0xcf0   :  { %16219 = vtanh.f32 %v1021_v23  ;;  %v1051_v25 = vrot.slane %v1021_v23, 3 }
 0xcf2   :  { %v1052_v26 = vsel %vm19930_vm3, %v1051_v25, %v1050_v24 }
 0xcf9   :  { %v16218_v27 = vpop.eup %16217 }
 0xcfa   :  { %v16220_v28 = vpop.eup %16219  ;;  %1026 = vrot.lane.b32.xlu0 %v16218_v27, %s16951_s25 }
 0xcfb   :  { %1028 = vrot.lane.b32.xlu1 %v16220_v28, %s16951_s25 }
 0xcfe   :  { %1035 = vperm.xlu0 %16132, %v17059_v39  }
 0xd02   :  { %16133 = vset.pattern.permute.xlu0 %v16957_v14 }
 0xd6c   :  { %v1027_v29 = vpop.permute.xlu0 %1026 }
 0xd6d   :  { %v1029_v30 = vpop.permute.xlu1 %1028  ;;  %v1032_v31 = vmul.f32 %v16214_v5, %v1027_v29 }
 0xd6e   :  { %v1033_v32 = vmul.f32 %v16216_v9, %v1029_v30 }
 0xd6f   :  { %v1040_v33 = vrot.slane %v1032_v31, 4 }
 0xd70   :  { %v1041_v34 = vrot.slane %v1033_v32, 3 }
 0xd72   :  { %v1042_v35 = vsel %vm19930_vm3, %v1041_v34, %v1040_v33 }
 0xd73   :  { %1043 = vrot.lane.b32.xlu1 %v1042_v35, %s16952_s26 }
 0xd77   :  { %1053 = vrot.lane.b32.xlu1 %v1052_v26, %s16950_s24 }
 0xd7d   :  { %v17218_v49 = vpop.permute.xlu0 %1035 }
 0xd7e   :  { %vm1037_vm8 = vcmp.eq.s32.totalorder %v17218_v49, 1 }
 0xde5   :  { %v17221_v50 = vpop.permute.xlu1 %1043 }
 0xde6   :  { %v17227_v51 = vsel %vm1037_vm8, %v17221_v50, %v17189_v45 }
 0xde7   :  { %15104 = vmatmul.mubr.msk.f32.vlgmr.msra.gmra.mrb[6].mxu0 %vm190_vm1, %v17227_v51 }
 0xde8   :  { %15787 = vmatpush3.bf16.msra.mxu0 %v17015_v7  ;;  %15117 = vmatprep.mubr.msk.f32.mxu0 %vm19935_vm0, %v16944_v1 }
 0xde9   :  { %15792 = vmatprep.subr.bf16.mxu0 %v16940_v0  ;;  %v1054_v45 = vpop.permute.xlu1 %1053 }
 0xdea   :  { %v17240_v7 = vsel %vm1037_vm8, %v1054_v45, %v17201_v57 }
 0xdeb   :  { %v1152_v63 = vrot.slane %v17240_v7, 3  ;;  %v1153_v2 = vrot.slane %v17240_v7, 4 }
 0xeba   :  { %v1126_v52 = vpop.f32.mrb[6].mxu0 }
 0xebb   :  { %v1131_v53 = vrot.slane %v1126_v52, 3  ;;  %v1132_v48 = vrot.slane %v1126_v52, 4  ;;  %v15105_v44 = vpop.f32.mrb[7].mxu0 }
 0xebd   :  { %v1135_v54 = vadd.f32 %v1131_v53, %v17041_v18  ;;  %v1136_v60 = vadd.f32 %v1132_v48, %v17039_v15 }
 0xebf   :  { %16221 = vtanh.f32 %v1135_v54  ;;  %v14561_v59 = vmul.f32 -1.442695, %v1135_v54  ;;  %v14562_v55 = vmul.f32 -1.442695, %v1136_v60 }
 0xec0   :  { %16223 = vtanh.f32 %v1136_v60 }
 0xec1   :  { %16225 = vpow2.f32 %v14561_v59 }
 0xec2   :  { %16227 = vpow2.f32 %v14562_v55 }
 0xec9   :  { %v16222_v61 = vpop.eup %16221 }
 0xeca   :  { %v16224_v62 = vpop.eup %16223  ;;  %1164 = vrot.lane.b32.xlu0 %v16222_v61, %s16948_s22 }
 0xecb   :  { %1166 = vrot.lane.b32.xlu1 %v16224_v62, %s16948_s22  ;;  %v16226_v3 = vpop.eup %16225 }
 0xecc   :  { %v16228_v57 = vpop.eup %16227  ;;  %v1143_v4 = vadd.f32 1.0, %v16226_v3 }
 0xecd   :  { %v1144_v5 = vadd.f32 1.0, %v16228_v57 }
 0xece   :  { %1154 = vrot.lane.b32.xlu0 %v1152_v63, %s16949_s23  ;;  %16229 = vrcp.f32 %v1143_v4 }
 0xecf   :  { %1156 = vrot.lane.b32.xlu1 %v1153_v2, %s16949_s23  ;;  %16231 = vrcp.f32 %v1144_v5 }
 0xed8   :  { %v16230_v6 = vpop.eup %16229 }
 0xed9   :  { %v16232_v10 = vpop.eup %16231 }
 0xf3c   :  { %v1165_v9 = vpop.permute.xlu0 %1164 }
 0xf3d   :  { %v1167_v11 = vpop.permute.xlu1 %1166  ;;  %v1170_v12 = vmul.f32 %v16230_v6, %v1165_v9 }
 0xf3e   :  { %v1171_v13 = vmul.f32 %v16232_v10, %v1167_v11 }
 0xf3f   :  { %1174 = vrot.lane.b32.xlu0 %v1170_v12, %s16949_s23 }
 0xf40   :  { %1176 = vrot.lane.b32.xlu1 %v1171_v13, %s16949_s23  ;;  %v1155_v16 = vpop.permute.xlu0 %1154 }
 0xf41   :  { %v1157_v17 = vpop.permute.xlu1 %1156  ;;  %v1160_v19 = vmul.f32 %v16230_v6, %v1155_v16 }
 0xf42   :  { %v1161_v20 = vmul.f32 %v16232_v10, %v1157_v17  ;;  %v16958_v17 = vmov 6  }
 0xfb1   :  { %v1175_v21 = vpop.permute.xlu0 %1174 }
 0xfb2   :  { %v1177_v22 = vpop.permute.xlu1 %1176  ;;  %v1180_v23 = vadd.f32 %v1175_v21, %v1160_v19 }
 0xfb3   :  { %v1181_v24 = vadd.f32 %v1177_v22, %v1161_v20 }
 0xfb4   :  { %16233 = vtanh.f32 %v1180_v23  ;;  %v1210_v25 = vrot.slane %v1180_v23, 5 }
 0xfb5   :  { %16235 = vtanh.f32 %v1181_v24  ;;  %v1211_v26 = vrot.slane %v1181_v24, 4 }
 0xfb7   :  { %v1212_v27 = vsel %vm19930_vm3, %v1211_v26, %v1210_v25 }
 0xfbe   :  { %v16234_v28 = vpop.eup %16233 }
 0xfbf   :  { %v16236_v29 = vpop.eup %16235  ;;  %1186 = vrot.lane.b32.xlu0 %v16234_v28, %s16951_s25 }
 0xfc0   :  { %1188 = vrot.lane.b32.xlu1 %v16236_v29, %s16951_s25 }
 0xfc3   :  { %1195 = vperm.xlu0 %16133, %v17059_v39  }
 0xfc7   :  { %16134 = vset.pattern.permute.xlu0 %v16958_v17 }
0x1031   :  { %v1187_v30 = vpop.permute.xlu0 %1186 }
0x1032   :  { %v1189_v31 = vpop.permute.xlu1 %1188  ;;  %v1192_v32 = vmul.f32 %v16230_v6, %v1187_v30 }
0x1033   :  { %v1193_v33 = vmul.f32 %v16232_v10, %v1189_v31 }
0x1034   :  { %v1200_v34 = vrot.slane %v1192_v32, 5  ;;  %v1803_v32 = vld [vmem:[%s14506_s30] sm:$0xff] }
0x1035   :  { %v1201_v35 = vrot.slane %v1193_v33, 4  ;;  %v1804_v33 = vld [vmem:[%s14506_s30 + $0x8] sm:$0xff]  ;;  %s16968_s30 = smov 12  }
0x1036   :  { %s14513_s3 = sld [smem:[%s19928_s0 + %s16968_s30]]  }
0x1037   :  { %v1202_v52 = vsel %vm19930_vm3, %v1201_v35, %v1200_v34  ;;  %v15788_v34 = vpack.c.bf16 %v1804_v33, %v1803_v32  ;;  %v16933_v35 = vld [vmem:[%s17013_s14 + $0x8] sm:$0xff]  ;;  %s18368_s14 = sld [smem:[%s19928_s0 + %s16970_s11]]   ;;  %s16989_s11 = smov 38  }
0x1038   :  { %1203 = vrot.lane.b32.xlu1 %v1202_v52, %s16952_s26  ;;  %v1805_v52 = vld [vmem:[%s14507_s4] sm:$0xff] }
0x1039   :  { %15789 = vmatprep.subr.bf16.mxu1 %v15788_v34 }
0x103c   :  { %1213 = vrot.lane.b32.xlu1 %v1212_v27, %s16950_s24 }
0x1042   :  { %v17257_v53 = vpop.permute.xlu0 %1195 }
0x1043   :  { %vm1197_vm9 = vcmp.eq.s32.totalorder %v17257_v53, 1 }
0x10aa   :  { %v17260_v48 = vpop.permute.xlu1 %1203 }
0x10ab   :  { %v17266_v44 = vsel %vm1197_vm9, %v17260_v48, %v17227_v51 }
0x10ac   :  { %15111 = vmatmul.mubr.msk.f32.vlgmr.msra.gmra.mrb[6].mxu1 %vm190_vm1, %v17266_v44 }
0x10ad   :  { %15124 = vmatprep.mubr.msk.f32.mxu1 %vm190_vm1, %v17018_v8  ;;  %15791 = vmatpush3.bf16.msra.mxu1 %v15788_v34  ;;  %v16962_v34 = vmov 7  }
0x10ae   :  { %v1214_v2 = vpop.permute.xlu1 %1213  ;;  %15795 = vmatprep.subr.bf16.mxu1 %v16940_v0  ;;  %16135 = vset.pattern.permute.xlu1 %v16962_v34 }
0x10af   :  { %v17277_v51 = vsel %vm1197_vm9, %v1214_v2, %v17240_v7 }
0x10b0   :  { %v1312_v8 = vrot.slane %v17277_v51, 2  ;;  %v1313_v3 = vrot.slane %v17277_v51, 3  ;;  %15125 = vmatmul.mubr.msk.f32.vlgmr.msra.gmra.mrb[8].mxu1 %vm190_vm1, %v16933_v35 }
0x10b1   :  { %15138 = vmatprep.mubr.msk.f32.mxu1 %vm19935_vm0, %v16944_v1 }
0x117f   :  { %v1286_v54 = vpop.f32.mrb[6].mxu1 }
0x1180   :  { %v1291_v60 = vrot.slane %v1286_v54, 2  ;;  %v1292_v45 = vrot.slane %v1286_v54, 3  ;;  %v15112_v61 = vpop.f32.mrb[7].mxu1  ;;  %v1806_v54 = vld [vmem:[%s14507_s4 + $0x8] sm:$0xff]  ;;  %s16969_s4 = smov 13  }
0x1181   :  { %s14514_s7 = sld [smem:[%s19928_s0 + %s16969_s4]]  }
0x1182   :  { %v1295_v62 = vadd.f32 %v1291_v60, %v17041_v18  ;;  %v1296_v63 = vadd.f32 %v1292_v45, %v17039_v15  ;;  %v17304_v60 = vpack.c.bf16 %v1806_v54, %v1805_v52 }
0x1184   :  { %16237 = vtanh.f32 %v1295_v62  ;;  %v14564_v57 = vmul.f32 -1.442695, %v1295_v62  ;;  %v14565_v4 = vmul.f32 -1.442695, %v1296_v63  ;;  %15797 = vmatpush3.bf16.msra.mxu1 %v17304_v60 }
0x1185   :  { %16239 = vtanh.f32 %v1296_v63  ;;  %15801 = vmatprep.subr.bf16.mxu1 %v16940_v0 }
0x1186   :  { %16241 = vpow2.f32 %v14564_v57 }
0x1187   :  { %16243 = vpow2.f32 %v14565_v4  ;;  %v15126_v4 = vpop.f32.mrb[8].mxu1 }
0x118e   :  { %v16238_v59 = vpop.eup %16237 }
0x118f   :  { %v16240_v55 = vpop.eup %16239  ;;  %1324 = vrot.lane.b32.xlu0 %v16238_v59, %s16948_s22 }
0x1190   :  { %1326 = vrot.lane.b32.xlu1 %v16240_v55, %s16948_s22  ;;  %v16242_v5 = vpop.eup %16241 }
0x1191   :  { %v16244_v7 = vpop.eup %16243  ;;  %v1303_v6 = vadd.f32 1.0, %v16242_v5 }
0x1192   :  { %v1304_v9 = vadd.f32 1.0, %v16244_v7  ;;  %v14569_v7 = vld [vmem:[%s14508_s8] ss:$0 sm:$0xff] }
0x1193   :  { %1314 = vrot.lane.b32.xlu0 %v1312_v8, %s16949_s23  ;;  %16245 = vrcp.f32 %v1303_v6 }
0x1194   :  { %1316 = vrot.lane.b32.xlu1 %v1313_v3, %s16949_s23  ;;  %16247 = vrcp.f32 %v1304_v9 }
0x119d   :  { %v16246_v10 = vpop.eup %16245 }
0x119e   :  { %v16248_v12 = vpop.eup %16247 }
0x1201   :  { %v1325_v11 = vpop.permute.xlu0 %1324 }
0x1202   :  { %v1327_v13 = vpop.permute.xlu1 %1326  ;;  %v1330_v14 = vmul.f32 %v16246_v10, %v1325_v11 }
0x1203   :  { %v1331_v16 = vmul.f32 %v16248_v12, %v1327_v13 }
0x1204   :  { %1334 = vrot.lane.b32.xlu0 %v1330_v14, %s16949_s23 }
0x1205   :  { %1336 = vrot.lane.b32.xlu1 %v1331_v16, %s16949_s23  ;;  %v1315_v19 = vpop.permute.xlu0 %1314 }
0x1206   :  { %v1317_v20 = vpop.permute.xlu1 %1316  ;;  %v1320_v21 = vmul.f32 %v16246_v10, %v1315_v19 }
0x1207   :  { %v1321_v22 = vmul.f32 %v16248_v12, %v1317_v20 }
0x1276   :  { %v1335_v23 = vpop.permute.xlu0 %1334 }
0x1277   :  { %v1337_v24 = vpop.permute.xlu1 %1336  ;;  %v1340_v25 = vadd.f32 %v1335_v23, %v1320_v21 }
0x1278   :  { %v1341_v26 = vadd.f32 %v1337_v24, %v1321_v22 }
0x1279   :  { %16249 = vtanh.f32 %v1340_v25  ;;  %v1370_v27 = vrot.slane %v1340_v25, 6 }
0x127a   :  { %16251 = vtanh.f32 %v1341_v26  ;;  %v1371_v28 = vrot.slane %v1341_v26, 5 }
0x127c   :  { %v17288_v29 = vsel %vm19930_vm3, %v1371_v28, %v1370_v27 }
0x1283   :  { %v16250_v30 = vpop.eup %16249 }
0x1284   :  { %v16252_v31 = vpop.eup %16251  ;;  %1346 = vrot.lane.b32.xlu0 %v16250_v30, %s16951_s25 }
0x1285   :  { %1348 = vrot.lane.b32.xlu1 %v16252_v31, %s16951_s25 }
0x1288   :  { %1355 = vperm.xlu0 %16134, %v17059_v39  }
0x128c   :  { %16136 = vset.pattern.permute.xlu0 %v16962_v34 }
0x12f6   :  { %v1347_v45 = vpop.permute.xlu0 %1346 }
0x12f7   :  { %v1349_v61 = vpop.permute.xlu1 %1348  ;;  %v1352_v62 = vmul.f32 %v16246_v10, %v1347_v45  ;;  %v17336_v10 = vadd.f32 %v15126_v4, %v14569_v7 }
0x12f8   :  { %v1353_v63 = vmul.f32 %v16248_v12, %v1349_v61 }
0x12f9   :  { %v1360_v2 = vrot.slane %v1352_v62, 6 }
0x12fa   :  { %v1361_v59 = vrot.slane %v1353_v63, 5 }
0x12fc   :  { %v1362_v55 = vsel %vm19930_vm3, %v1361_v59, %v1360_v2 }
0x12fd   :  { %1363 = vrot.lane.b32.xlu1 %v1362_v55, %s16952_s26 }
0x1307   :  { %v17310_v8 = vpop.permute.xlu0 %1355 }
0x1308   :  { %vm1357_vm10 = vcmp.eq.s32.totalorder %v17310_v8, 1 }
0x136f   :  { %v17313_v3 = vpop.permute.xlu1 %1363 }
0x1370   :  { %v1367_v57 = vsel %vm1357_vm10, %v17313_v3, %v17266_v44  ;;  %v1880_v44 = vpop.f32.mrb[9].mxu1 }
0x1371   :  { %15118 = vmatmul.mubr.msk.f32.vlgmr.msra.gmra.mrb[8].mxu0 %vm190_vm1, %v1367_v57  ;;  %v17334_v9 = vadd.f32 %v14569_v7, %v1880_v44 }
0x1372   :  { %15794 = vmatpush3.bf16.msra.mxu0 %v17304_v60  ;;  %15131 = vmatprep.mubr.msk.f32.mxu0 %vm19935_vm0, %v16944_v1 }
0x1373   :  { %15798 = vmatprep.subr.bf16.mxu0 %v16940_v0 }
0x1375   :  { %15132 = vmatmul.mubr.f32.vlgmr.msra.gmra.mrb[10].mxu0 %v16944_v1 }
0x1376   :  { %15800 = vmatpush3.bf16.msra.mxu0 %v17304_v60  ;;  %15145 = vmatprep.mubr.msk.f32.mxu0 %vm19935_vm0, %v16944_v1 }
0x1377   :  { %15804 = vmatprep.subr.bf16.mxu0 %v16940_v0 }
0x1444   :  { %v17332_v5 = vpop.f32.mrb[8].mxu0 }
0x1445   :  { %v15119_v6 = vpop.f32.mrb[9].mxu0 }
0x1448   :  { %v1955_v11 = vpop.f32.mrb[10].mxu0 }
0x1449   :  { %v1960_v12 = vrot.slane %v1955_v11, 1  ;;  %v15133_v13 = vpop.f32.mrb[11].mxu0  ;;  %v1961_v14 = vrot.slane %v1955_v11, 2 }
0x144b   :  { %v1964_v16 = vadd.f32 %v1960_v12, %v17334_v9  ;;  %v1965_v17 = vadd.f32 %v1961_v14, %v17336_v10 }
0x144d   :  { %16253 = vtanh.f32 %v1964_v16  ;;  %v14572_v21 = vmul.f32 -1.442695, %v1964_v16  ;;  %v14573_v22 = vmul.f32 -1.442695, %v1965_v17 }
0x144e   :  { %16255 = vtanh.f32 %v1965_v17 }
0x144f   :  { %16257 = vpow2.f32 %v14572_v21 }
0x1450   :  { %16259 = vpow2.f32 %v14573_v22 }
0x1457   :  { %v16254_v19 = vpop.eup %16253 }
0x1458   :  { %v16256_v20 = vpop.eup %16255  ;;  %1984 = vrot.lane.b32.xlu1 %v16254_v19, %s16948_s22 }
0x1459   :  { %1986 = vrot.lane.b32.xlu0 %v16256_v20, %s16948_s22  ;;  %v16258_v23 = vpop.eup %16257 }
0x145a   :  { %v16260_v24 = vpop.eup %16259  ;;  %v1972_v25 = vadd.f32 1.0, %v16258_v23 }
0x145b   :  { %v1973_v26 = vadd.f32 1.0, %v16260_v24 }
0x145c   :  { %16261 = vrcp.f32 %v1972_v25 }
0x145d   :  { %16263 = vrcp.f32 %v1973_v26 }
0x1466   :  { %v16262_v27 = vpop.eup %16261 }
0x1467   :  { %v16264_v30 = vpop.eup %16263  ;;  %v1980_v35 = vmul.f32 0.0, %v16262_v27 }
0x1468   :  { %v1981_v52 = vmul.f32 0.0, %v16264_v30 }
0x14ca   :  { %v1985_v28 = vpop.permute.xlu1 %1984 }
0x14cb   :  { %v1987_v31 = vpop.permute.xlu0 %1986  ;;  %v1990_v32 = vmul.f32 %v16262_v27, %v1985_v28 }
0x14cc   :  { %v1991_v33 = vmul.f32 %v16264_v30, %v1987_v31 }
0x14cd   :  { %1994 = vrot.lane.b32.xlu1 %v1990_v32, %s16949_s23 }
0x14ce   :  { %1996 = vrot.lane.b32.xlu0 %v1991_v33, %s16949_s23 }
0x153f   :  { %v1995_v54 = vpop.permute.xlu1 %1994 }
0x1540   :  { %v1997_v45 = vpop.permute.xlu0 %1996  ;;  %v2000_v61 = vadd.f32 %v1995_v54, %v1980_v35 }
0x1541   :  { %v2001_v62 = vadd.f32 %v1997_v45, %v1981_v52 }
0x1542   :  { %16265 = vtanh.f32 %v2000_v61  ;;  %v2025_v55 = vrot.slane %v2000_v61, 7 }
0x1543   :  { %16267 = vtanh.f32 %v2001_v62  ;;  %v2026_v59 = vrot.slane %v2001_v62, 6 }
0x1545   :  { %v2027_v57 = vsel %vm19930_vm3, %v2026_v59, %v2025_v55 }
0x154c   :  { %v16266_v63 = vpop.eup %16265 }
0x154d   :  { %v16268_v2 = vpop.eup %16267  ;;  %2006 = vrot.lane.b32.xlu1 %v16266_v63, %s16951_s25 }
0x154e   :  { %2008 = vrot.lane.b32.xlu0 %v16268_v2, %s16951_s25 }
0x1551   :  { %1515 = vperm.xlu1 %16135, %v17059_v39  }
0x1555   :  { %2028 = vrot.lane.b32.xlu1 %v2027_v57, %s16950_s24 }
0x15bf   :  { %v2007_v4 = vpop.permute.xlu1 %2006 }
0x15c0   :  { %v2009_v44 = vpop.permute.xlu0 %2008  ;;  %v2012_v7 = vmul.f32 %v16262_v27, %v2007_v4 }
0x15c1   :  { %v2013_v6 = vmul.f32 %v16264_v30, %v2009_v44 }
0x15c2   :  { %v2016_v11 = vrot.slane %v2012_v7, 7 }
0x15c3   :  { %v2017_v12 = vrot.slane %v2013_v6, 6 }
0x15c5   :  { %v2018_v13 = vsel %vm19930_vm3, %v2017_v12, %v2016_v11 }
0x15c6   :  { %2019 = vrot.lane.b32.xlu0 %v2018_v13, %s16952_s26 }
0x15d0   :  { %v17351_v14 = vpop.permute.xlu1 %1515 }
0x15d1   :  { %vm1517_vm11 = vcmp.eq.s32.totalorder %v17351_v14, 1 }
0x15d4   :  { %v2029_v24 = vpop.permute.xlu1 %2028 }
0x15d5   :  { %v17368_v26 = vsel %vm1517_vm11, %v2029_v24, 0.0 }
0x15d6   :  { %v2127_v28 = vrot.slane %v17368_v26, 2  ;;  %v2128_v30 = vrot.slane %v17368_v26, 3 }
0x1638   :  { %v2020_v16 = vpop.permute.xlu0 %2019 }
0x1639   :  { %v17356_v39 = vsel %vm1517_vm11, %v2020_v16, 0.0 }
0x163a   :  { %15139 = vmatmul.mubr.msk.f32.vlgmr.msra.gmra.mrb[10].mxu1 %vm190_vm1, %v17356_v39 }
0x163b   :  { %15803 = vmatpush3.bf16.msra.mxu1 %v17304_v60  ;;  %15152 = vmatprep.mubr.msk.f32.mxu1 %vm19935_vm0, %v16944_v1 }
0x163c   :  { %15807 = vmatprep.subr.bf16.mxu1 %v16940_v0 }
0x170d   :  { %v2101_v17 = vpop.f32.mrb[10].mxu1 }
0x170e   :  { %v2106_v19 = vrot.slane %v2101_v17, 2  ;;  %v2107_v20 = vrot.slane %v2101_v17, 3  ;;  %v15140_v21 = vpop.f32.mrb[11].mxu1 }
0x1710   :  { %v2110_v22 = vadd.f32 %v2106_v19, %v17334_v9  ;;  %v2111_v23 = vadd.f32 %v2107_v20, %v17336_v10 }
0x1712   :  { %16269 = vtanh.f32 %v2110_v22  ;;  %v14575_v31 = vmul.f32 -1.442695, %v2110_v22  ;;  %v14576_v32 = vmul.f32 -1.442695, %v2111_v23 }
0x1713   :  { %16271 = vtanh.f32 %v2111_v23 }
0x1714   :  { %16273 = vpow2.f32 %v14575_v31 }
0x1715   :  { %16275 = vpow2.f32 %v14576_v32 }
0x171c   :  { %v16270_v25 = vpop.eup %16269 }
0x171d   :  { %v16272_v27 = vpop.eup %16271  ;;  %2139 = vrot.lane.b32.xlu0 %v16270_v25, %s16948_s22 }
0x171e   :  { %2141 = vrot.lane.b32.xlu1 %v16272_v27, %s16948_s22  ;;  %v16274_v33 = vpop.eup %16273 }
0x171f   :  { %v16276_v34 = vpop.eup %16275  ;;  %v2118_v35 = vadd.f32 1.0, %v16274_v33 }
0x1720   :  { %v2119_v52 = vadd.f32 1.0, %v16276_v34 }
0x1721   :  { %2129 = vrot.lane.b32.xlu0 %v2127_v28, %s16949_s23  ;;  %16277 = vrcp.f32 %v2118_v35 }
0x1722   :  { %2131 = vrot.lane.b32.xlu1 %v2128_v30, %s16949_s23  ;;  %16279 = vrcp.f32 %v2119_v52 }
0x172b   :  { %v16278_v54 = vpop.eup %16277 }
0x172c   :  { %v16280_v61 = vpop.eup %16279 }
0x178f   :  { %v2140_v45 = vpop.permute.xlu0 %2139 }
0x1790   :  { %v2145_v62 = vmul.f32 %v16278_v54, %v2140_v45  ;;  %v2142_v63 = vpop.permute.xlu1 %2141 }
0x1791   :  { %v2146_v2 = vmul.f32 %v16280_v61, %v2142_v63 }
0x1792   :  { %2149 = vrot.lane.b32.xlu0 %v2145_v62, %s16949_s23 }
0x1793   :  { %2151 = vrot.lane.b32.xlu1 %v2146_v2, %s16949_s23  ;;  %v2130_v59 = vpop.permute.xlu0 %2129 }
0x1794   :  { %v2132_v55 = vpop.permute.xlu1 %2131  ;;  %v2135_v57 = vmul.f32 %v16278_v54, %v2130_v59 }
0x1795   :  { %v2136_v4 = vmul.f32 %v16280_v61, %v2132_v55 }
0x1804   :  { %v2150_v44 = vpop.permute.xlu0 %2149 }
0x1805   :  { %v2155_v7 = vadd.f32 %v2150_v44, %v2135_v57  ;;  %v2152_v6 = vpop.permute.xlu1 %2151 }
0x1806   :  { %v2156_v11 = vadd.f32 %v2152_v6, %v2136_v4 }
0x1807   :  { %16281 = vtanh.f32 %v2155_v7  ;;  %v2181_v16 = vrot.slane %v2155_v7, 6 }
0x1808   :  { %16283 = vtanh.f32 %v2156_v11  ;;  %v2182_v17 = vrot.slane %v2156_v11, 5 }
0x180a   :  { %v2183_v19 = vsel %vm19930_vm3, %v2182_v17, %v2181_v16 }
0x1811   :  { %v16282_v12 = vpop.eup %16281 }
0x1812   :  { %v16284_v13 = vpop.eup %16283  ;;  %2161 = vrot.lane.b32.xlu0 %v16282_v12, %s16951_s25 }
0x1813   :  { %2163 = vrot.lane.b32.xlu1 %v16284_v13, %s16951_s25 }
0x1817   :  { %2184 = vrot.lane.b32.xlu1 %v2183_v19, %s16950_s24 }
0x1884   :  { %v2162_v20 = vpop.permute.xlu0 %2161 }
0x1885   :  { %v2167_v21 = vmul.f32 %v16278_v54, %v2162_v20  ;;  %v2164_v22 = vpop.permute.xlu1 %2163 }
0x1886   :  { %v2168_v23 = vmul.f32 %v16280_v61, %v2164_v22 }
0x1887   :  { %v2171_v24 = vrot.slane %v2167_v21, 6 }
0x1888   :  { %v2172_v25 = vrot.slane %v2168_v23, 5 }
0x1889   :  { %v2185_v54 = vpop.permute.xlu1 %2184 }
0x188a   :  { %v2173_v27 = vsel %vm19930_vm3, %v2172_v25, %v2171_v24  ;;  %v17403_v61 = vsel %vm1357_vm10, %v2185_v54, %v17368_v26 }
0x188b   :  { %2174 = vrot.lane.b32.xlu0 %v2173_v27, %s16952_s26  ;;  %v2283_v63 = vrot.slane %v17403_v61, 3  ;;  %v2284_v2 = vrot.slane %v17403_v61, 4 }
0x18fd   :  { %v17384_v28 = vpop.permute.xlu0 %2174 }
0x18fe   :  { %v17390_v30 = vsel %vm1357_vm10, %v17384_v28, %v17356_v39 }
0x18ff   :  { %15146 = vmatmul.mubr.msk.f32.vlgmr.msra.gmra.mrb[12].mxu0 %vm190_vm1, %v17390_v30 }
0x1900   :  { %15806 = vmatpush3.bf16.msra.mxu0 %v17304_v60  ;;  %15159 = vmatprep.mubr.msk.f32.mxu0 %vm19935_vm0, %v16944_v1 }
0x1901   :  { %15810 = vmatprep.subr.bf16.mxu0 %v16940_v0 }
0x19d2   :  { %v2257_v31 = vpop.f32.mrb[12].mxu0 }
0x19d3   :  { %v2262_v32 = vrot.slane %v2257_v31, 3  ;;  %v2263_v33 = vrot.slane %v2257_v31, 4  ;;  %v15147_v34 = vpop.f32.mrb[13].mxu0 }
0x19d5   :  { %v2266_v35 = vadd.f32 %v2262_v32, %v17334_v9  ;;  %v2267_v52 = vadd.f32 %v2263_v33, %v17336_v10 }
0x19d7   :  { %16285 = vtanh.f32 %v2266_v35  ;;  %v14578_v59 = vmul.f32 -1.442695, %v2266_v35  ;;  %v14579_v55 = vmul.f32 -1.442695, %v2267_v52 }
0x19d8   :  { %16287 = vtanh.f32 %v2267_v52 }
0x19d9   :  { %16289 = vpow2.f32 %v14578_v59 }
0x19da   :  { %16291 = vpow2.f32 %v14579_v55 }
0x19e1   :  { %v16286_v45 = vpop.eup %16285 }
0x19e2   :  { %v16288_v62 = vpop.eup %16287  ;;  %2295 = vrot.lane.b32.xlu0 %v16286_v45, %s16948_s22 }
0x19e3   :  { %2297 = vrot.lane.b32.xlu1 %v16288_v62, %s16948_s22  ;;  %v16290_v57 = vpop.eup %16289 }
0x19e4   :  { %v16292_v26 = vpop.eup %16291  ;;  %v2274_v4 = vadd.f32 1.0, %v16290_v57 }
0x19e5   :  { %v2275_v44 = vadd.f32 1.0, %v16292_v26 }
0x19e6   :  { %2285 = vrot.lane.b32.xlu0 %v2283_v63, %s16949_s23  ;;  %16293 = vrcp.f32 %v2274_v4 }
0x19e7   :  { %2287 = vrot.lane.b32.xlu1 %v2284_v2, %s16949_s23  ;;  %16295 = vrcp.f32 %v2275_v44 }
0x19f0   :  { %v16294_v7 = vpop.eup %16293 }
0x19f1   :  { %v16296_v11 = vpop.eup %16295 }
0x1a54   :  { %v2296_v6 = vpop.permute.xlu0 %2295 }
0x1a55   :  { %v2301_v12 = vmul.f32 %v16294_v7, %v2296_v6  ;;  %v2298_v13 = vpop.permute.xlu1 %2297 }
0x1a56   :  { %v2302_v16 = vmul.f32 %v16296_v11, %v2298_v13 }
0x1a57   :  { %2305 = vrot.lane.b32.xlu0 %v2301_v12, %s16949_s23 }
0x1a58   :  { %2307 = vrot.lane.b32.xlu1 %v2302_v16, %s16949_s23  ;;  %v2286_v17 = vpop.permute.xlu0 %2285 }
0x1a59   :  { %v2288_v19 = vpop.permute.xlu1 %2287  ;;  %v2291_v20 = vmul.f32 %v16294_v7, %v2286_v17 }
0x1a5a   :  { %v2292_v21 = vmul.f32 %v16296_v11, %v2288_v19 }
0x1ac9   :  { %v2306_v22 = vpop.permute.xlu0 %2305 }
0x1aca   :  { %v2311_v23 = vadd.f32 %v2306_v22, %v2291_v20  ;;  %v2308_v24 = vpop.permute.xlu1 %2307 }
0x1acb   :  { %v2312_v25 = vadd.f32 %v2308_v24, %v2292_v21 }
0x1acc   :  { %16297 = vtanh.f32 %v2311_v23  ;;  %v2337_v32 = vrot.slane %v2311_v23, 5 }
0x1acd   :  { %16299 = vtanh.f32 %v2312_v25  ;;  %v2338_v33 = vrot.slane %v2312_v25, 4 }
0x1acf   :  { %v2339_v34 = vsel %vm19930_vm3, %v2338_v33, %v2337_v32 }
0x1ad6   :  { %v16298_v27 = vpop.eup %16297 }
0x1ad7   :  { %v16300_v31 = vpop.eup %16299  ;;  %2317 = vrot.lane.b32.xlu0 %v16298_v27, %s16951_s25 }
0x1ad8   :  { %2319 = vrot.lane.b32.xlu1 %v16300_v31, %s16951_s25 }
0x1adc   :  { %2340 = vrot.lane.b32.xlu1 %v2339_v34, %s16950_s24 }
0x1b49   :  { %v2318_v35 = vpop.permute.xlu0 %2317 }
0x1b4a   :  { %v2323_v52 = vmul.f32 %v16294_v7, %v2318_v35  ;;  %v2320_v54 = vpop.permute.xlu1 %2319 }
0x1b4b   :  { %v2324_v45 = vmul.f32 %v16296_v11, %v2320_v54 }
0x1b4c   :  { %v2327_v62 = vrot.slane %v2323_v52, 5 }
0x1b4d   :  { %v2328_v63 = vrot.slane %v2324_v45, 4 }
0x1b4f   :  { %v2329_v2 = vsel %vm19930_vm3, %v2328_v63, %v2327_v62 }
0x1b50   :  { %2330 = vrot.lane.b32.xlu0 %v2329_v2, %s16952_s26 }
0x1bc2   :  { %v17419_v59 = vpop.permute.xlu0 %2330 }
0x1bc3   :  { %v17425_v55 = vsel %vm1197_vm9, %v17419_v59, %v17390_v30  ;;  %v2341_v30 = vpop.permute.xlu1 %2340 }
0x1bc4   :  { %15153 = vmatmul.mubr.msk.f32.vlgmr.msra.gmra.mrb[12].mxu1 %vm190_vm1, %v17425_v55  ;;  %v17438_v12 = vsel %vm1197_vm9, %v2341_v30, %v17403_v61 }
0x1bc5   :  { %15809 = vmatpush3.bf16.msra.mxu1 %v17304_v60  ;;  %15166 = vmatprep.mubr.msk.f32.mxu1 %vm19935_vm0, %v16944_v1  ;;  %v2439_v16 = vrot.slane %v17438_v12, 4  ;;  %v2440_v17 = vrot.slane %v17438_v12, 5 }
0x1bc6   :  { %15813 = vmatprep.subr.bf16.mxu1 %v16940_v0 }
0x1c97   :  { %v2413_v57 = vpop.f32.mrb[12].mxu1 }
0x1c98   :  { %v2418_v26 = vrot.slane %v2413_v57, 4  ;;  %v2419_v4 = vrot.slane %v2413_v57, 5  ;;  %v15154_v44 = vpop.f32.mrb[13].mxu1 }
0x1c9a   :  { %v2422_v7 = vadd.f32 %v2418_v26, %v17334_v9  ;;  %v2423_v6 = vadd.f32 %v2419_v4, %v17336_v10 }
0x1c9c   :  { %16301 = vtanh.f32 %v2422_v7  ;;  %v14581_v19 = vmul.f32 -1.442695, %v2422_v7  ;;  %v14582_v20 = vmul.f32 -1.442695, %v2423_v6 }
0x1c9d   :  { %16303 = vtanh.f32 %v2423_v6 }
0x1c9e   :  { %16305 = vpow2.f32 %v14581_v19 }
0x1c9f   :  { %16307 = vpow2.f32 %v14582_v20 }
0x1ca6   :  { %v16302_v11 = vpop.eup %16301 }
0x1ca7   :  { %v16304_v13 = vpop.eup %16303  ;;  %2451 = vrot.lane.b32.xlu0 %v16302_v11, %s16948_s22 }
0x1ca8   :  { %2453 = vrot.lane.b32.xlu1 %v16304_v13, %s16948_s22  ;;  %v16306_v21 = vpop.eup %16305 }
0x1ca9   :  { %v16308_v61 = vpop.eup %16307  ;;  %v2430_v22 = vadd.f32 1.0, %v16306_v21 }
0x1caa   :  { %v2431_v23 = vadd.f32 1.0, %v16308_v61 }
0x1cab   :  { %2441 = vrot.lane.b32.xlu0 %v2439_v16, %s16949_s23  ;;  %16309 = vrcp.f32 %v2430_v22 }
0x1cac   :  { %2443 = vrot.lane.b32.xlu1 %v2440_v17, %s16949_s23  ;;  %16311 = vrcp.f32 %v2431_v23 }
0x1cb5   :  { %v16310_v24 = vpop.eup %16309 }
0x1cb6   :  { %v16312_v27 = vpop.eup %16311 }
0x1d19   :  { %v2452_v25 = vpop.permute.xlu0 %2451 }
0x1d1a   :  { %v2457_v31 = vmul.f32 %v16310_v24, %v2452_v25  ;;  %v2454_v32 = vpop.permute.xlu1 %2453 }
0x1d1b   :  { %v2458_v33 = vmul.f32 %v16312_v27, %v2454_v32 }
0x1d1c   :  { %2461 = vrot.lane.b32.xlu0 %v2457_v31, %s16949_s23 }
0x1d1d   :  { %2463 = vrot.lane.b32.xlu1 %v2458_v33, %s16949_s23  ;;  %v2442_v34 = vpop.permute.xlu0 %2441 }
0x1d1e   :  { %v2444_v35 = vpop.permute.xlu1 %2443  ;;  %v2447_v52 = vmul.f32 %v16310_v24, %v2442_v34 }
0x1d1f   :  { %v2448_v54 = vmul.f32 %v16312_v27, %v2444_v35 }
0x1d8e   :  { %v2462_v45 = vpop.permute.xlu0 %2461 }
0x1d8f   :  { %v2467_v62 = vadd.f32 %v2462_v45, %v2447_v52  ;;  %v2464_v63 = vpop.permute.xlu1 %2463 }
0x1d90   :  { %v2468_v2 = vadd.f32 %v2464_v63, %v2448_v54 }
0x1d91   :  { %16313 = vtanh.f32 %v2467_v62  ;;  %v2493_v4 = vrot.slane %v2467_v62, 4 }
0x1d92   :  { %16315 = vtanh.f32 %v2468_v2  ;;  %v2494_v44 = vrot.slane %v2468_v2, 3 }
0x1d94   :  { %v2495_v7 = vsel %vm19930_vm3, %v2494_v44, %v2493_v4 }
0x1d9b   :  { %v16314_v57 = vpop.eup %16313 }
0x1d9c   :  { %v16316_v26 = vpop.eup %16315  ;;  %2473 = vrot.lane.b32.xlu0 %v16314_v57, %s16951_s25 }
0x1d9d   :  { %2475 = vrot.lane.b32.xlu1 %v16316_v26, %s16951_s25 }
0x1da1   :  { %2496 = vrot.lane.b32.xlu1 %v2495_v7, %s16950_s24 }
0x1e0e   :  { %v2474_v6 = vpop.permute.xlu0 %2473 }
0x1e0f   :  { %v2479_v30 = vmul.f32 %v16310_v24, %v2474_v6  ;;  %v2476_v11 = vpop.permute.xlu1 %2475 }
0x1e10   :  { %v2480_v13 = vmul.f32 %v16312_v27, %v2476_v11 }
0x1e11   :  { %v2483_v16 = vrot.slane %v2479_v30, 4 }
0x1e12   :  { %v2484_v17 = vrot.slane %v2480_v13, 3 }
0x1e14   :  { %v2485_v19 = vsel %vm19930_vm3, %v2484_v17, %v2483_v16 }
0x1e15   :  { %2486 = vrot.lane.b32.xlu0 %v2485_v19, %s16952_s26 }
0x1e87   :  { %v17454_v20 = vpop.permute.xlu0 %2486 }
0x1e88   :  { %v17460_v21 = vsel %vm1037_vm8, %v17454_v20, %v17425_v55  ;;  %v2497_v55 = vpop.permute.xlu1 %2496 }
0x1e89   :  { %15160 = vmatmul.mubr.msk.f32.vlgmr.msra.gmra.mrb[14].mxu0 %vm190_vm1, %v17460_v21  ;;  %v17472_v32 = vsel %vm1037_vm8, %v2497_v55, %v17438_v12 }
0x1e8a   :  { %15812 = vmatpush3.bf16.msra.mxu0 %v17304_v60  ;;  %15173 = vmatprep.mubr.msk.f32.mxu0 %vm19935_vm0, %v16944_v1  ;;  %v2595_v34 = vrot.slane %v17472_v32, 5  ;;  %v2596_v35 = vrot.slane %v17472_v32, 6 }
0x1f5c   :  { %v2569_v61 = vpop.f32.mrb[14].mxu0 }
0x1f5d   :  { %v2574_v22 = vrot.slane %v2569_v61, 5  ;;  %v2575_v23 = vrot.slane %v2569_v61, 6  ;;  %v15161_v24 = vpop.f32.mrb[15].mxu0 }
0x1f5f   :  { %v2578_v25 = vadd.f32 %v2574_v22, %v17334_v9  ;;  %v2579_v27 = vadd.f32 %v2575_v23, %v17336_v10 }
0x1f61   :  { %16317 = vtanh.f32 %v2578_v25  ;;  %v14584_v52 = vmul.f32 -1.442695, %v2578_v25  ;;  %v14585_v54 = vmul.f32 -1.442695, %v2579_v27 }
0x1f62   :  { %16319 = vtanh.f32 %v2579_v27 }
0x1f63   :  { %16321 = vpow2.f32 %v14584_v52 }
0x1f64   :  { %16323 = vpow2.f32 %v14585_v54 }
0x1f6b   :  { %v16318_v31 = vpop.eup %16317 }
0x1f6c   :  { %v16320_v33 = vpop.eup %16319  ;;  %2607 = vrot.lane.b32.xlu0 %v16318_v31, %s16948_s22 }
0x1f6d   :  { %2609 = vrot.lane.b32.xlu1 %v16320_v33, %s16948_s22  ;;  %v16322_v45 = vpop.eup %16321 }
0x1f6e   :  { %v16324_v12 = vpop.eup %16323  ;;  %v2586_v62 = vadd.f32 1.0, %v16322_v45 }
0x1f6f   :  { %v2587_v63 = vadd.f32 1.0, %v16324_v12 }
0x1f70   :  { %2597 = vrot.lane.b32.xlu0 %v2595_v34, %s16949_s23  ;;  %16325 = vrcp.f32 %v2586_v62 }
0x1f71   :  { %2599 = vrot.lane.b32.xlu1 %v2596_v35, %s16949_s23  ;;  %16327 = vrcp.f32 %v2587_v63 }
0x1f7a   :  { %v16326_v2 = vpop.eup %16325 }
0x1f7b   :  { %v16328_v26 = vpop.eup %16327 }
0x1fde   :  { %v2608_v57 = vpop.permute.xlu0 %2607 }
0x1fdf   :  { %v2613_v4 = vmul.f32 %v16326_v2, %v2608_v57  ;;  %v2610_v44 = vpop.permute.xlu1 %2609 }
0x1fe0   :  { %v2614_v7 = vmul.f32 %v16328_v26, %v2610_v44 }
0x1fe1   :  { %2617 = vrot.lane.b32.xlu0 %v2613_v4, %s16949_s23 }
0x1fe2   :  { %2619 = vrot.lane.b32.xlu1 %v2614_v7, %s16949_s23  ;;  %v2598_v6 = vpop.permute.xlu0 %2597 }
0x1fe3   :  { %v2600_v30 = vpop.permute.xlu1 %2599  ;;  %v2603_v11 = vmul.f32 %v16326_v2, %v2598_v6 }
0x1fe4   :  { %v2604_v13 = vmul.f32 %v16328_v26, %v2600_v30 }
0x2053   :  { %v2618_v16 = vpop.permute.xlu0 %2617 }
0x2054   :  { %v2623_v17 = vadd.f32 %v2618_v16, %v2603_v11  ;;  %v2620_v19 = vpop.permute.xlu1 %2619 }
0x2055   :  { %v2624_v61 = vadd.f32 %v2620_v19, %v2604_v13 }
0x2056   :  { %16329 = vtanh.f32 %v2623_v17  ;;  %v2649_v24 = vrot.slane %v2623_v17, 3 }
0x2057   :  { %16331 = vtanh.f32 %v2624_v61  ;;  %v2650_v25 = vrot.slane %v2624_v61, 2 }
0x2059   :  { %v2651_v27 = vsel %vm19930_vm3, %v2650_v25, %v2649_v24 }
0x2060   :  { %v16330_v22 = vpop.eup %16329 }
0x2061   :  { %v16332_v23 = vpop.eup %16331  ;;  %2629 = vrot.lane.b32.xlu0 %v16330_v22, %s16951_s25 }
0x2062   :  { %2631 = vrot.lane.b32.xlu1 %v16332_v23, %s16951_s25 }
0x2066   :  { %2652 = vrot.lane.b32.xlu1 %v2651_v27, %s16950_s24 }
0x20d3   :  { %v2630_v55 = vpop.permute.xlu0 %2629 }
0x20d4   :  { %v2635_v31 = vmul.f32 %v16326_v2, %v2630_v55  ;;  %v2632_v33 = vpop.permute.xlu1 %2631 }
0x20d5   :  { %v2636_v34 = vmul.f32 %v16328_v26, %v2632_v33 }
0x20d6   :  { %v2639_v35 = vrot.slane %v2635_v31, 3 }
0x20d7   :  { %v2640_v52 = vrot.slane %v2636_v34, 2 }
0x20d9   :  { %v2641_v54 = vsel %vm19930_vm3, %v2640_v52, %v2639_v35 }
0x20da   :  { %2642 = vrot.lane.b32.xlu0 %v2641_v54, %s16952_s26 }
0x214c   :  { %v17488_v45 = vpop.permute.xlu0 %2642 }
0x214d   :  { %v17494_v12 = vsel %vm877_vm7, %v17488_v45, %v17460_v21  ;;  %v2653_v21 = vpop.permute.xlu1 %2652 }
0x214e   :  { %15167 = vmatmul.mubr.msk.f32.vlgmr.msra.gmra.mrb[14].mxu1 %vm190_vm1, %v17494_v12 }
0x214f   :  { %15815 = vmatpush3.bf16.msra.mxu1 %v17304_v60  ;;  %15180 = vmatprep.mubr.msk.f32.mxu1 %vm19935_vm0, %v16944_v1  ;;  %v17507_v60 = vsel %vm877_vm7, %v2653_v21, %v17472_v32 }
0x2150   :  { %15824 = vmatprep.subr.bf16.mxu1 %v16940_v0  ;;  %v2751_v6 = vrot.slane %v17507_v60, 6  ;;  %v2752_v30 = vrot.slane %v17507_v60, 7 }
0x2221   :  { %v2725_v62 = vpop.f32.mrb[14].mxu1 }
0x2222   :  { %v2730_v63 = vrot.slane %v2725_v62, 6  ;;  %v2731_v2 = vrot.slane %v2725_v62, 7  ;;  %v15168_v57 = vpop.f32.mrb[15].mxu1 }
0x2224   :  { %v2734_v26 = vadd.f32 %v2730_v63, %v17334_v9  ;;  %v2735_v4 = vadd.f32 %v2731_v2, %v17336_v10 }
0x2226   :  { %16333 = vtanh.f32 %v2734_v26  ;;  %v14587_v11 = vmul.f32 -1.442695, %v2734_v26  ;;  %v14588_v13 = vmul.f32 -1.442695, %v2735_v4 }
0x2227   :  { %16335 = vtanh.f32 %v2735_v4 }
0x2228   :  { %16337 = vpow2.f32 %v14587_v11 }
0x2229   :  { %16339 = vpow2.f32 %v14588_v13 }
0x2230   :  { %v16334_v44 = vpop.eup %16333 }
0x2231   :  { %v16336_v7 = vpop.eup %16335  ;;  %2763 = vrot.lane.b32.xlu0 %v16334_v44, %s16948_s22 }
0x2232   :  { %2765 = vrot.lane.b32.xlu1 %v16336_v7, %s16948_s22  ;;  %v16338_v16 = vpop.eup %16337 }
0x2233   :  { %v16340_v32 = vpop.eup %16339  ;;  %v2742_v17 = vadd.f32 1.0, %v16338_v16 }
0x2234   :  { %v2743_v19 = vadd.f32 1.0, %v16340_v32 }
0x2235   :  { %2753 = vrot.lane.b32.xlu0 %v2751_v6, %s16949_s23  ;;  %16341 = vrcp.f32 %v2742_v17 }
0x2236   :  { %2755 = vrot.lane.b32.xlu1 %v2752_v30, %s16949_s23  ;;  %16343 = vrcp.f32 %v2743_v19 }
0x223f   :  { %v16342_v61 = vpop.eup %16341 }
0x2240   :  { %v16344_v23 = vpop.eup %16343 }
0x22a3   :  { %v2764_v22 = vpop.permute.xlu0 %2763 }
0x22a4   :  { %v2769_v24 = vmul.f32 %v16342_v61, %v2764_v22  ;;  %v2766_v25 = vpop.permute.xlu1 %2765 }
0x22a5   :  { %v2770_v27 = vmul.f32 %v16344_v23, %v2766_v25 }
0x22a6   :  { %2773 = vrot.lane.b32.xlu0 %v2769_v24, %s16949_s23 }
0x22a7   :  { %2775 = vrot.lane.b32.xlu1 %v2770_v27, %s16949_s23  ;;  %v2754_v55 = vpop.permute.xlu0 %2753 }
0x22a8   :  { %v2756_v31 = vpop.permute.xlu1 %2755  ;;  %v2759_v33 = vmul.f32 %v16342_v61, %v2754_v55 }
0x22a9   :  { %v2760_v34 = vmul.f32 %v16344_v23, %v2756_v31 }
0x2318   :  { %v2774_v35 = vpop.permute.xlu0 %2773 }
0x2319   :  { %v2779_v52 = vadd.f32 %v2774_v35, %v2759_v33  ;;  %v2776_v54 = vpop.permute.xlu1 %2775 }
0x231a   :  { %v2780_v62 = vadd.f32 %v2776_v54, %v2760_v34 }
0x231b   :  { %16345 = vtanh.f32 %v2779_v52  ;;  %v2805_v57 = vrot.slane %v2779_v52, 2 }
0x231c   :  { %16347 = vtanh.f32 %v2780_v62  ;;  %v2806_v26 = vrot.slane %v2780_v62, 1 }
0x231e   :  { %v2807_v4 = vsel %vm19930_vm3, %v2806_v26, %v2805_v57 }
0x2325   :  { %v16346_v63 = vpop.eup %16345 }
0x2326   :  { %v16348_v2 = vpop.eup %16347  ;;  %2785 = vrot.lane.b32.xlu0 %v16346_v63, %s16951_s25 }
0x2327   :  { %2787 = vrot.lane.b32.xlu1 %v16348_v2, %s16951_s25 }
0x232b   :  { %2808 = vrot.lane.b32.xlu1 %v2807_v4, %s16950_s24 }
0x2398   :  { %v2786_v21 = vpop.permute.xlu0 %2785 }
0x2399   :  { %v2791_v44 = vmul.f32 %v16342_v61, %v2786_v21  ;;  %v2788_v7 = vpop.permute.xlu1 %2787 }
0x239a   :  { %v2792_v6 = vmul.f32 %v16344_v23, %v2788_v7 }
0x239b   :  { %v2795_v30 = vrot.slane %v2791_v44, 2 }
0x239c   :  { %v2796_v11 = vrot.slane %v2792_v6, 1 }
0x239d   :  { %v2809_v25 = vpop.permute.xlu1 %2808 }
0x239e   :  { %v2797_v13 = vsel %vm19930_vm3, %v2796_v11, %v2795_v30 }
0x239f   :  { %2798 = vrot.lane.b32.xlu0 %v2797_v13, %s16952_s26 }
0x2411   :  { %v17523_v16 = vpop.permute.xlu0 %2798 }
0x2412   :  { %v2802_v32 = vsel %vm717_vm6, %v17523_v16, %v17494_v12  ;;  %v17536_v12 = vsel %vm717_vm6, %v2809_v25, %v17507_v60 }
0x2413   :  { %15174 = vmatmul.mubr.msk.f32.vlgmr.msra.gmra.mrb[16].mxu0 %vm190_vm1, %v2802_v32  ;;  %v2906_v55 = vrot.slane %v17536_v12, 7 }
0x24e6   :  { %v2881_v17 = vpop.f32.mrb[16].mxu0 }
0x24e7   :  { %v2886_v19 = vrot.slane %v2881_v17, 7  ;;  %v2890_v61 = vadd.f32 %v2881_v17, %v17336_v10  ;;  %v15175_v22 = vpop.f32.mrb[17].mxu0 }
0x24e9   :  { %v2889_v23 = vadd.f32 %v2886_v19, %v17334_v9  ;;  %16349 = vtanh.f32 %v2890_v61  ;;  %v14591_v31 = vmul.f32 -1.442695, %v2890_v61 }
0x24eb   :  { %16351 = vtanh.f32 %v2889_v23  ;;  %v14590_v33 = vmul.f32 -1.442695, %v2889_v23 }
0x24ec   :  { %16353 = vpow2.f32 %v14591_v31 }
0x24ed   :  { %16355 = vpow2.f32 %v14590_v33 }
0x24f3   :  { %v16350_v24 = vpop.eup %16349 }
0x24f4   :  { %2919 = vrot.lane.b32.xlu1 %v16350_v24, %s16948_s22 }
0x24f5   :  { %v16352_v27 = vpop.eup %16351 }
0x24f6   :  { %2917 = vrot.lane.b32.xlu0 %v16352_v27, %s16948_s22  ;;  %v16354_v34 = vpop.eup %16353 }
0x24f7   :  { %v16356_v35 = vpop.eup %16355  ;;  %v2898_v52 = vadd.f32 1.0, %v16354_v34 }
0x24f8   :  { %2909 = vrot.lane.b32.xlu1 %v17536_v12, %s16949_s23  ;;  %v2897_v54 = vadd.f32 1.0, %v16356_v35 }
0x24f9   :  { %16357 = vrcp.f32 %v2898_v52 }
0x24fa   :  { %2907 = vrot.lane.b32.xlu0 %v2906_v55, %s16949_s23  ;;  %16359 = vrcp.f32 %v2897_v54 }
0x2503   :  { %v16358_v60 = vpop.eup %16357 }
0x2504   :  { %v16360_v2 = vpop.eup %16359 }
0x2566   :  { %v2920_v62 = vpop.permute.xlu1 %2919 }
0x2567   :  { %v2924_v63 = vmul.f32 %v16358_v60, %v2920_v62 }
0x2568   :  { %v2918_v57 = vpop.permute.xlu0 %2917 }
0x2569   :  { %2929 = vrot.lane.b32.xlu1 %v2924_v63, %s16949_s23  ;;  %v2923_v26 = vmul.f32 %v16360_v2, %v2918_v57  ;;  %v1451_v63 = vrot.slane %v17332_v5, 1 }
0x256a   :  { %v2910_v4 = vpop.permute.xlu1 %2909 }
0x256b   :  { %2927 = vrot.lane.b32.xlu0 %v2923_v26, %s16949_s23  ;;  %v2914_v21 = vmul.f32 %v16358_v60, %v2910_v4 }
0x256c   :  { %v2908_v44 = vpop.permute.xlu0 %2907 }
0x256d   :  { %v2913_v30 = vmul.f32 %v16360_v2, %v2908_v44 }
0x25db   :  { %v2930_v7 = vpop.permute.xlu1 %2929 }
0x25dc   :  { %v2934_v6 = vadd.f32 %v2930_v7, %v2914_v21 }
0x25dd   :  { %v2928_v11 = vpop.permute.xlu0 %2927 }
0x25de   :  { %16361 = vtanh.f32 %v2934_v6  ;;  %v2933_v13 = vadd.f32 %v2928_v11, %v2913_v30 }
0x25e0   :  { %16363 = vtanh.f32 %v2933_v13  ;;  %v2958_v19 = vrot.slane %v2933_v13, 1 }
0x25e2   :  { %v2959_v22 = vsel %vm19930_vm3, %v2934_v6, %v2958_v19 }
0x25e8   :  { %v16362_v17 = vpop.eup %16361 }
0x25e9   :  { %2941 = vrot.lane.b32.xlu1 %v16362_v17, %s16951_s25 }
0x25ea   :  { %v16364_v61 = vpop.eup %16363 }
0x25eb   :  { %2939 = vrot.lane.b32.xlu0 %v16364_v61, %s16951_s25 }
0x25ed   :  { %2960 = vrot.lane.b32.xlu1 %v2959_v22, %s16950_s24 }
0x265b   :  { %v2942_v23 = vpop.permute.xlu1 %2941 }
0x265c   :  { %v2946_v27 = vmul.f32 %v16358_v60, %v2942_v23 }
0x265d   :  { %v2940_v24 = vpop.permute.xlu0 %2939 }
0x265e   :  { %v2945_v25 = vmul.f32 %v16360_v2, %v2940_v24 }
0x265f   :  { %v2961_v57 = vpop.permute.xlu1 %2960 }
0x2660   :  { %v2949_v55 = vrot.slane %v2945_v25, 1  ;;  %v2963_v4 = vsel %vm559_vm5, %v2961_v57, %v17536_v12 }
0x2662   :  { %v2950_v31 = vsel %vm19930_vm3, %v2946_v27, %v2949_v55 }
0x2663   :  { %2951 = vrot.lane.b32.xlu0 %v2950_v31, %s16952_s26 }
0x26d5   :  { %v17551_v33 = vpop.permute.xlu0 %2951 }
0x26d6   :  { %v2955_v34 = vsel %vm559_vm5, %v17551_v33, %v2802_v32  ;;  %v1455_v32 = vadd.f32 %v1451_v63, %v17041_v18 }
0x26d7   :  { %15181 = vmatmul.mubr.msk.f32.vlgmr.msra.gmra.mrb[16].mxu1 %vm190_vm1, %v2955_v34 }
0x26d8   :  { %15198 = vmatprep.mubr.msk.f32.mxu1 %vm19935_vm0, %v16944_v1  ;;  %v14567_v12 = vmul.f32 -1.442695, %v1455_v32 }
0x27aa   :  { %v3033_v35 = vpop.f32.mrb[16].mxu1 }
0x27ab   :  { %v3038_v52 = vrot.slane %v3033_v35, 1  ;;  %v3041_v54 = vadd.f32 %v3033_v35, %v17334_v9  ;;  %v15182_v60 = vpop.f32.mrb[17].mxu1  ;;  %v3058_v9 = vrot.slane %v2963_v4, 1 }
0x27ad   :  { %v3042_v62 = vadd.f32 %v3038_v52, %v17336_v10  ;;  %16365 = vtanh.f32 %v3041_v54  ;;  %v14593_v18 = vmul.f32 -1.442695, %v3041_v54 }
0x27af   :  { %16367 = vtanh.f32 %v3042_v62  ;;  %v14594_v21 = vmul.f32 -1.442695, %v3042_v62 }
0x27b0   :  { %16369 = vtanh.f32 %v1455_v32 }
0x27b1   :  { %16371 = vpow2.f32 %v14593_v18 }
0x27b2   :  { %16373 = vpow2.f32 %v14594_v21 }
0x27b3   :  { %16375 = vpow2.f32 %v14567_v12 }
0x27b7   :  { %v16366_v2 = vpop.eup %16365 }
0x27b8   :  { %3069 = vrot.lane.b32.xlu1 %v16366_v2, %s16948_s22 }
0x27b9   :  { %v16368_v26 = vpop.eup %16367 }
0x27ba   :  { %3071 = vrot.lane.b32.xlu0 %v16368_v26, %s16948_s22  ;;  %v16370_v10 = vpop.eup %16369 }
0x27bb   :  { %v16372_v44 = vpop.eup %16371 }
0x27bc   :  { %1373 = vrot.lane.b32.xlu1 %v17288_v29, %s16950_s24  ;;  %v16374_v7 = vpop.eup %16373  ;;  %v3049_v6 = vadd.f32 1.0, %v16372_v44  ;;  %v1452_v29 = vrot.slane %v17332_v5, 2 }
0x27bd   :  { %v3050_v30 = vadd.f32 1.0, %v16374_v7  ;;  %v16376_v13 = vpop.eup %16375 }
0x27be   :  { %3061 = vrot.lane.b32.xlu0 %v3058_v9, %s16949_s23  ;;  %16377 = vrcp.f32 %v3049_v6  ;;  %v1456_v11 = vadd.f32 %v1452_v29, %v17039_v15  ;;  %v1463_v61 = vadd.f32 1.0, %v16376_v13 }
0x27bf   :  { %16379 = vrcp.f32 %v3050_v30 }
0x27c0   :  { %16381 = vtanh.f32 %v1456_v11 }
0x27c1   :  { %16383 = vrcp.f32 %v1463_v61 }
0x27c2   :  { %3059 = vrot.lane.b32.xlu0 %v2963_v4, %s16949_s23 }
0x27c6   :  { %1484 = vrot.lane.b32.xlu0 %v16370_v10, %s16948_s22 }
0x27c8   :  { %v16378_v17 = vpop.eup %16377 }
0x27c9   :  { %v16380_v23 = vpop.eup %16379 }
0x27ca   :  { %v16382_v31 = vpop.eup %16381 }
0x27cb   :  { %v17583_v52 = vpop.eup %16383 }
0x282a   :  { %v3070_v19 = vpop.permute.xlu1 %3069 }
0x282b   :  { %v3075_v22 = vmul.f32 %v16378_v17, %v3070_v19 }
0x282c   :  { %v3072_v24 = vpop.permute.xlu0 %3071 }
0x282d   :  { %3079 = vrot.lane.b32.xlu0 %v3075_v22, %s16949_s23  ;;  %v3076_v25 = vmul.f32 %v16380_v23, %v3072_v24 }
0x282e   :  { %v1374_v27 = vpop.permute.xlu1 %1373 }
0x282f   :  { %v1376_v5 = vsel %vm1357_vm10, %v1374_v27, %v17277_v51  ;;  %3081 = vrot.lane.b32.xlu1 %v3076_v25, %s16949_s23  ;;  %v14568_v51 = vmul.f32 -1.442695, %v1456_v11 }
0x2830   :  { %v1473_v55 = vrot.slane %v1376_v5, 2  ;;  %v3062_v15 = vpop.permute.xlu0 %3061  ;;  %v1472_v35 = vrot.slane %v1376_v5, 1 }
0x2831   :  { %16385 = vpow2.f32 %v14568_v51  ;;  %v3066_v26 = vmul.f32 %v16380_v23, %v3062_v15  ;;  %v2177_v51 = vsel %vm1357_vm10, %v17384_v28, 0.0 }
0x2832   :  { %1476 = vrot.lane.b32.xlu0 %v1473_v55, %s16949_s23 }
0x2833   :  { %1486 = vrot.lane.b32.xlu1 %v16382_v31, %s16948_s22 }
0x2834   :  { %v3060_v34 = vpop.permute.xlu0 %3059 }
0x2835   :  { %v3065_v2 = vmul.f32 %v16378_v17, %v3060_v34  ;;  %v16963_v34 = vmov 1966171168  }
0x2837   :  { %1474 = vrot.lane.b32.xlu1 %v1472_v35, %s16949_s23  ;;  %v1528_v35 = vunpack.c.l.s4 %v16963_v34 }
0x2838   :  { %v1485_v54 = vpop.permute.xlu0 %1484 }
0x2839   :  { %v1490_v60 = vmul.f32 %v17583_v52, %v1485_v54  ;;  %v1529_v54 = vunpack.c.0.s8 %v1528_v35 }
0x283b   :  { %1494 = vrot.lane.b32.xlu1 %v1490_v60, %s16949_s23  ;;  %v16386_v62 = vpop.eup %16385  ;;  %v17600_v60 = vshrl.u32 %v170_v36, 7  ;;  %v2333_v36 = vsel %vm1197_vm9, %v17419_v59, 0.0  ;;  %v2801_v59 = vsel %vm717_vm6, %v17523_v16, 0.0  ;;  %v3387_v16 = vld [vmem:[%s17611_s12 + $0x8] sm:$0xff] }
0x283c   :  { %v1464_v63 = vadd.f32 1.0, %v16386_v62  ;;  %v2954_v62 = vsel %vm559_vm5, %v17551_v33, 0.0 }
0x283e   :  { %16387 = vrcp.f32 %v1464_v63 }
0x2848   :  { %v17587_v10 = vpop.eup %16387 }
0x289f   :  { %v3080_v57 = vpop.permute.xlu0 %3079 }
0x28a0   :  { %v3085_v32 = vadd.f32 %v3080_v57, %v3065_v2  ;;  %v2645_v2 = vsel %vm877_vm7, %v17488_v45, 0.0 }
0x28a1   :  { %v3082_v4 = vpop.permute.xlu1 %3081 }
0x28a2   :  { %16389 = vtanh.f32 %v3085_v32  ;;  %v3086_v9 = vadd.f32 %v3082_v4, %v3066_v26  ;;  %v3386_v26 = vld [vmem:[%s17611_s12] sm:$0xff] }
0x28a4   :  { %16391 = vtanh.f32 %v3086_v9  ;;  %v1477_v13 = vpop.permute.xlu0 %1476 }
0x28a5   :  { %v1487_v18 = vpop.permute.xlu1 %1486  ;;  %v1481_v19 = vmul.f32 %v17587_v10, %v1477_v13 }
0x28a6   :  { %v1491_v21 = vmul.f32 %v17587_v10, %v1487_v18  ;;  %v15816_v18 = vpack.c.bf16 %v3387_v16, %v3386_v26 }
0x28a8   :  { %1496 = vrot.lane.b32.xlu0 %v1491_v21, %s16949_s23  ;;  %v17650_v21 = vsub.s32 0, %v17600_v60  ;;  %15817 = vmatprep.subr.bf16.mxu0 %v15816_v18 }
0x28a9   :  { %v1475_v44 = vpop.permute.xlu1 %1474  ;;  %15819 = vmatpush3.bf16.msra.mxu0 %v15816_v18 }
0x28aa   :  { %v1480_v7 = vmul.f32 %v17583_v52, %v1475_v44 }
0x28ac   :  { %v16390_v12 = vpop.eup %16389 }
0x28ad   :  { %3091 = vrot.lane.b32.xlu0 %v16390_v12, %s16951_s25  ;;  %v1495_v6 = vpop.permute.xlu1 %1494 }
0x28ae   :  { %v16392_v30 = vpop.eup %16391  ;;  %v1500_v29 = vadd.f32 %v1495_v6, %v1480_v7 }
0x28af   :  { %3093 = vrot.lane.b32.xlu1 %v16392_v30, %s16951_s25 }
0x28b0   :  { %16393 = vtanh.f32 %v1500_v29 }
0x28ba   :  { %v16394_v11 = vpop.eup %16393 }
0x28bb   :  { %1506 = vrot.lane.b32.xlu1 %v16394_v11, %s16951_s25 }
0x291a   :  { %v1497_v61 = vpop.permute.xlu0 %1496 }
0x291b   :  { %v1501_v22 = vadd.f32 %v1497_v61, %v1481_v19  ;;  %v3388_v19 = vld [vmem:[%s17611_s12 + $0x10] sm:$0xff]  ;;  %v3389_v61 = vld [vmem:[%s17611_s12 + $0x18] sm:$0xff] }
0x291d   :  { %16395 = vtanh.f32 %v1501_v22  ;;  %v3390_v22 = vld [vmem:[%s17636_s16] sm:$0xff] }
0x291f   :  { %v3092_v24 = vpop.permute.xlu0 %3091 }
0x2920   :  { %v3097_v5 = vmul.f32 %v16378_v17, %v3092_v24  ;;  %v17606_v17 = vsub.s32 %v1529_v54, %v17600_v60 }
0x2921   :  { %v3094_v25 = vpop.permute.xlu1 %3093 }
0x2922   :  { %v3098_v27 = vmul.f32 %v16380_v23, %v3094_v25  ;;  %v17618_v23 = vrot.slane %v17356_v39, %v17606_v17  ;;  %v3254_v28 = vrot.slane %v2177_v51, %v17606_v17  ;;  %v17625_v63 = vrot.slane %v2333_v36, %v17606_v17 }
0x2923   :  { %v2489_v39 = vsel %vm1037_vm8, %v17454_v20, 0.0  ;;  %v3139_v33 = vrot.slane %v2954_v62, %v17606_v17  ;;  %v3185_v4 = vrot.slane %v2645_v2, %v17606_v17  ;;  %v3162_v9 = vrot.slane %v2801_v59, %v17606_v17 }
0x2924   :  { %v3101_v55 = vrot.slane %v3098_v27, 7  ;;  %v3277_v57 = vcombine.high %v17618_v23, %v17618_v23  ;;  %v3255_v45 = vcombine.high %v3254_v28, %v3254_v28  ;;  %v3262_v32 = vrot.slane %v3254_v28, %v17606_v17 }
0x2925   :  { %v3232_v20 = vcombine.high %v17625_v63, %v17625_v63  ;;  %v3208_v44 = vrot.slane %v2489_v39, %v17606_v17  ;;  %v3284_v7 = vrot.slane %v17618_v23, %v17606_v17  ;;  %v3140_v6 = vcombine.high %v3139_v33, %v3139_v33 }
0x2926   :  { %v3102_v15 = vsel %vm19930_vm3, %v3101_v55, %v3097_v5  ;;  %v17658_v30 = vrot.slane %v3277_v57, %v17606_v17  ;;  %v17661_v29 = vrot.slane %v3255_v45, %v17606_v17  ;;  %v17664_v11 = vrot.slane %v3262_v32, %v17650_v21  ;;  %v3391_v55 = vld [vmem:[%s17636_s16 + $0x8] sm:$0xff] }
0x2927   :  { %v16396_v31 = vpop.eup %16395  ;;  %3103 = vrot.lane.b32.xlu1 %v3102_v15, %s16952_s26  ;;  %v3239_v13 = vrot.slane %v17625_v63, %v17606_v17  ;;  %v3186_v24 = vcombine.high %v3185_v4, %v3185_v4  ;;  %v3163_v25 = vcombine.high %v3162_v9, %v3162_v9  ;;  %v3147_v27 = vrot.slane %v3139_v33, %v17606_v17 }
0x2928   :  { %1508 = vrot.lane.b32.xlu0 %v16396_v31, %s16951_s25  ;;  %v15820_v5 = vpack.c.bf16 %v3389_v61, %v3388_v19  ;;  %v17674_v15 = vrot.slane %v3232_v20, %v17606_v17  ;;  %v3209_v31 = vcombine.high %v3208_v44, %v3208_v44  ;;  %v17677_v54 = vpack.c.bf16 %v3391_v55, %v3390_v22 }
0x2929   :  { %v3193_v51 = vrot.slane %v3185_v4, %v17606_v17  ;;  %v3170_v36 = vrot.slane %v3162_v9, %v17606_v17  ;;  %v3154_v28 = vrot.slane %v3140_v6, %v17606_v17  ;;  %v3216_v2 = vrot.slane %v3208_v44, %v17606_v17 }
0x292a   :  { %15821 = vmatprep.subr.bf16.mxu0 %v15820_v5  ;;  %15826 = vmatpush3.bf16.msra.mxu1 %v17677_v54  ;;  %v3200_v39 = vrot.slane %v3186_v24, %v17606_v17  ;;  %v3177_v33 = vrot.slane %v3163_v25, %v17606_v17  ;;  %v3295_v57 = vrot.slane %v3147_v27, %v17650_v21 }
0x292b   :  { %15823 = vmatpush3.bf16.msra.mxu0 %v15820_v5  ;;  %15827 = vmatprep.subr.bf16.mxu1 %v16940_v0  ;;  %v3223_v16 = vrot.slane %v3209_v31, %v17606_v17  ;;  %v3315_v4 = vrot.slane %v3193_v51, %v17650_v21  ;;  %v3305_v9 = vrot.slane %v3170_v36, %v17650_v21 }
0x292c   :  { %15830 = vmatprep.subr.bf16.mxu0 %v16940_v0  ;;  %v3299_v18 = vrot.slane %v3154_v28, %v17650_v21  ;;  %v3325_v6 = vrot.slane %v3216_v2, %v17650_v21  ;;  %v3309_v19 = vrot.slane %v3177_v33, %v17650_v21  ;;  %v3335_v22 = vrot.slane %v3239_v13, %v17650_v21 }
0x292d   :  { %v1507_v12 = vpop.permute.xlu1 %1506  ;;  %15199 = vmatmul.mubr.f32.vlgmr.msra.gmra.mrb[18].mxu1 %v16944_v1  ;;  %v3319_v24 = vrot.slane %v3200_v39, %v17650_v21  ;;  %v3329_v5 = vrot.slane %v3223_v16, %v17650_v21  ;;  %v3355_v13 = vrot.slane %v3284_v7, %v17650_v21  ;;  %v3349_v28 = vrot.slane %v17661_v29, %v17650_v21 }
0x292e   :  { %v1512_v34 = vmul.f32 %v17583_v52, %v1507_v12  ;;  %15829 = vmatpush3.bf16.msra.mxu1 %v17677_v54  ;;  %15205 = vmatprep.mubr.msk.f32.mxu1 %vm19935_vm0, %v16944_v1  ;;  %v567_v29 = vsel %vm559_vm5, %v17105_v47, 0.0  ;;  %v1206_v47 = vsel %vm1197_vm9, %v17260_v48, 0.0 }
0x292f   :  { %15833 = vmatprep.subr.bf16.mxu1 %v16940_v0 }
0x2930   :  { %v1520_v45 = vrot.slane %v1512_v34, 7  ;;  %v3339_v34 = vrot.slane %v17674_v15, %v17650_v21  ;;  %v3359_v15 = vrot.slane %v17658_v30, %v17650_v21  ;;  %v1558_v30 = vrot.slane %v567_v29, %v17606_v17 }
0x2999   :  { %v3104_v35 = vpop.permute.xlu1 %3103 }
0x299a   :  { %v3106_v62 = vsel %vm19929_vm4, %v3104_v35, 0.0  ;;  %v1509_v63 = vpop.permute.xlu0 %1508  ;;  %vm19933_vm4 = vcmask 1045504  }
0x299b   :  { %v3114_v59 = vrot.slane %v3106_v62, %v17606_v17  ;;  %v1513_v52 = vmul.f32 %v17587_v10, %v1509_v63 }
0x299d   :  { %v3115_v32 = vcombine.high %v3114_v59, %v3114_v59  ;;  %v3122_v26 = vrot.slane %v3114_v59, %v17606_v17  ;;  %v1521_v10 = vrot.slane %v1513_v52, 6  ;;  %v886_v59 = vsel %vm877_vm7, %v17183_v41, 0.0 }
0x299e   :  { %v1046_v52 = vsel %vm1037_vm8, %v17221_v50, 0.0  ;;  %v1604_v33 = vrot.slane %v886_v59, %v17606_v17  ;;  %v1533_v41 = vrot.slane %v17073_v58, %v17606_v17  ;;  %v1650_v50 = vrot.slane %v1206_v47, %v17606_v17 }
0x299f   :  { %v3129_v20 = vrot.slane %v3115_v32, %v17606_v17  ;;  %v3362_v44 = vsel %vm19931_vm12, %v3122_v26, %v3295_v57  ;;  %v1522_v12 = vsel %vm19930_vm3, %v1521_v10, %v1520_v45  ;;  %vm19932_vm3 = vcmask 1046528  }
0x29a0   :  { %v3364_v61 = vsel %vm1785_vm13, %v3362_v44, %v3305_v9  ;;  %1523 = vrot.lane.b32.xlu0 %v1522_v12, %s16952_s26  ;;  %v1559_v57 = vcombine.high %v1558_v30, %v1558_v30  ;;  %v1627_v45 = vrot.slane %v1046_v52, %v17606_v17  ;;  %v1566_v10 = vrot.slane %v1558_v30, %v17606_v17 }
0x29a1   :  { %v3363_v25 = vsel %vm19931_vm12, %v3129_v20, %v3299_v18  ;;  %v3366_v27 = vsel %vm1788_vm14, %v3364_v61, %v3315_v4  ;;  %v1605_v48 = vcombine.high %v1604_v33, %v1604_v33  ;;  %v1612_v18 = vrot.slane %v1604_v33, %v17606_v17 }
0x29a2   :  { %v3365_v55 = vsel %vm1785_vm13, %v3363_v25, %v3309_v19  ;;  %v3368_v31 = vsel %vm1791_vm15, %v3366_v27, %v3325_v6  ;;  %v1573_v16 = vrot.slane %v1559_v57, %v17606_v17  ;;  %v1628_v9 = vcombine.high %v1627_v45, %v1627_v45 }
0x29a3   :  { %v3370_v35 = vsel %vm19934_vm2, %v3368_v31, %v3335_v22  ;;  %v3367_v51 = vsel %vm1788_vm14, %v3365_v55, %v3319_v24  ;;  %v1651_v20 = vcombine.high %v1650_v50, %v1650_v50  ;;  %v1635_v58 = vrot.slane %v1627_v45, %v17606_v17 }
0x29a4   :  { %v3372_v36 = vsel %vm19933_vm4, %v3370_v35, %v17664_v11  ;;  %v3369_v62 = vsel %vm1791_vm15, %v3367_v51, %v3329_v5  ;;  %v726_v11 = vsel %vm717_vm6, %v17144_v43, 0.0  ;;  %v1366_v43 = vsel %vm1357_vm10, %v17313_v3, 0.0 }
0x29a5   :  { %v3374_v63 = vsel %vm19932_vm3, %v3372_v36, %v3355_v13  ;;  %v3371_v23 = vsel %vm19934_vm2, %v3369_v62, %v3339_v34  ;;  %v1581_v39 = vrot.slane %v726_v11, %v17606_v17  ;;  %v1673_v26 = vrot.slane %v1366_v43, %v17606_v17 }
0x29a6   :  { %3378 = vrot.lane.b32.xlu1 %v3374_v63, %s16949_s23  ;;  %v3373_v7 = vsel %vm19933_vm4, %v3371_v23, %v3349_v28  ;;  %v1534_v3 = vcombine.high %v1533_v41, %v1533_v41  ;;  %v1715_v6 = vrot.slane %v1566_v10, %v17650_v21  ;;  %v1619_v19 = vrot.slane %v1605_v48, %v17606_v17 }
0x29a7   :  { %v3375_v2 = vsel %vm19932_vm3, %v3373_v7, %v3359_v15  ;;  %v1582_v32 = vcombine.high %v1581_v39, %v1581_v39  ;;  %v1589_v4 = vrot.slane %v1581_v39, %v17606_v17  ;;  %v1674_v12 = vcombine.high %v1673_v26, %v1673_v26 }
0x29a8   :  { %3380 = vrot.lane.b32.xlu0 %v3375_v2, %s16949_s23  ;;  %v1658_v61 = vrot.slane %v1650_v50, %v17606_v17  ;;  %v1719_v22 = vrot.slane %v1573_v16, %v17650_v21  ;;  %v1642_v25 = vrot.slane %v1628_v9, %v17606_v17  ;;  %v1681_v27 = vrot.slane %v1673_v26, %v17606_v17 }
0x29a9   :  { %v1596_v44 = vrot.slane %v1582_v32, %v17606_v17  ;;  %v1725_v24 = vrot.slane %v1589_v4, %v17650_v21  ;;  %v1541_v5 = vrot.slane %v1533_v41, %v17606_v17  ;;  %v1548_v55 = vrot.slane %v1534_v3, %v17606_v17 }
0x29aa   :  { %v1735_v31 = vrot.slane %v1612_v18, %v17650_v21  ;;  %v1665_v34 = vrot.slane %v1651_v20, %v17606_v17  ;;  %v1745_v51 = vrot.slane %v1635_v58, %v17650_v21  ;;  %v1688_v36 = vrot.slane %v1674_v12, %v17606_v17 }
0x29ab   :  { %v1729_v35 = vrot.slane %v1596_v44, %v17650_v21  ;;  %v1783_v62 = vsel %vm19931_vm12, %v1541_v5, %v1715_v6  ;;  %v1739_v63 = vrot.slane %v1619_v19, %v17650_v21  ;;  %v1755_v15 = vrot.slane %v1658_v61, %v17650_v21  ;;  %v14595_v6 = vld [vmem:[%s14511_s20] ss:$0 sm:$0xff] }
0x29ac   :  { %v1784_v7 = vsel %vm19931_vm12, %v1548_v55, %v1719_v22  ;;  %v1786_v2 = vsel %vm1785_vm13, %v1783_v62, %v1725_v24  ;;  %v1749_v29 = vrot.slane %v1642_v25, %v17650_v21  ;;  %v1765_v11 = vrot.slane %v1681_v27, %v17650_v21 }
0x29ad   :  { %v1759_v30 = vrot.slane %v1665_v34, %v17650_v21  ;;  %v1789_v39 = vsel %vm1788_vm14, %v1786_v2, %v1735_v31  ;;  %v1787_v47 = vsel %vm1785_vm13, %v1784_v7, %v1729_v35  ;;  %v1769_v33 = vrot.slane %v1688_v36, %v17650_v21 }
0x29ae   :  { %v1792_v43 = vsel %vm1791_vm15, %v1789_v39, %v1745_v51  ;;  %v1790_v50 = vsel %vm1788_vm14, %v1787_v47, %v1739_v63  ;;  %vm19937_vm12 = vcmask 261120  }
0x29af   :  { %v1795_v41 = vsel %vm19934_vm2, %v1792_v43, %v1755_v15  ;;  %v1793_v26 = vsel %vm1791_vm15, %v1790_v50, %v1749_v29 }
0x29b0   :  { %v1798_v32 = vsel %vm19933_vm4, %v1795_v41, %v1765_v11  ;;  %v1796_v4 = vsel %vm19934_vm2, %v1793_v26, %v1759_v30  ;;  %vm19940_vm2 = vcmp.eq.s32.totalorder %v17068_v56, 1 }
0x29b1   :  { %v1799_v3 = vsel %vm19933_vm4, %v1796_v4, %v1769_v33 }
0x2a00   :  { %v3547_v58 = vpop.f32.mrb[18].mxu1 }
0x2a01   :  { %v15200_v12 = vpop.f32.mrb[19].mxu1  ;;  %v3552_v19 = vrot.slane %v3547_v58, 1 }
0x2a12   :  { %v1524_v13 = vpop.permute.xlu0 %1523 }
0x2a13   :  { %v1526_v28 = vsel %vm1517_vm11, %v1524_v13, 0.0 }
0x2a14   :  { %v1696_v23 = vrot.slane %v1526_v28, %v17606_v17 }
0x2a16   :  { %v1697_v59 = vcombine.high %v1696_v23, %v1696_v23  ;;  %v1704_v52 = vrot.slane %v1696_v23, %v17606_v17 }
0x2a18   :  { %v1711_v57 = vrot.slane %v1697_v59, %v17606_v17  ;;  %v1775_v45 = vrot.slane %v1704_v52, %v17650_v21  ;;  %v3379_v10 = vpop.permute.xlu1 %3378 }
0x2a1a   :  { %v1801_v48 = vsel %vm19932_vm3, %v1798_v32, %v1775_v45  ;;  %v1779_v16 = vrot.slane %v1711_v57, %v17650_v21  ;;  %v3381_v18 = vpop.permute.xlu0 %3380 }
0x2a1b   :  { %v17810_v9 = vsel %vm190_vm1, %v1801_v48, %v3379_v10 }
0x2a1c   :  { %v1802_v20 = vsel %vm19932_vm3, %v1799_v3, %v1779_v16  ;;  %15191 = vmatprep.mubr.msk.f32.mxu0 %vm19937_vm12, %v17810_v9  ;;  %vm19938_vm3 = vcmask 1041409  }
0x2a1d   :  { %v17817_v44 = vsel %vm190_vm1, %v1802_v20, %v3381_v18  ;;  %vm19939_vm4 = vmmov %vm19938_vm3 }
0x2a1e   :  { %15192 = vmatmul.mubr.msk.f32.vlgmr.msra.gmra.mrb[18].mxu0 %vm19937_vm12, %v17817_v44 }
0x2a1f   :  { %15832 = vmatpush3.bf16.msra.mxu0 %v17677_v54  ;;  %15212 = vmatprep.mubr.msk.f32.mxu0 %vm19935_vm0, %v16944_v1 }
0x2a20   :  { %15836 = vmatprep.subr.bf16.mxu0 %v16940_v0 }
0x2af1   :  { %v15193_v61 = vpop.f32.mrb[18].mxu0 }
0x2af2   :  { %v17828_v22 = vadd.f32 %v15193_v61, %v14595_v6  ;;  %v3472_v24 = vpop.f32.mrb[19].mxu0 }
0x2af3   :  { %v17830_v25 = vadd.f32 %v14595_v6, %v3472_v24 }
0x2af4   :  { %v3556_v27 = vadd.f32 %v3552_v19, %v17828_v22 }
0x2af5   :  { %v3555_v5 = vadd.f32 %v3547_v58, %v17830_v25 }
0x2af6   :  { %16397 = vtanh.f32 %v3556_v27  ;;  %v14599_v34 = vmul.f32 -1.442695, %v3556_v27 }
0x2af7   :  { %16399 = vtanh.f32 %v3555_v5  ;;  %v14598_v13 = vmul.f32 -1.442695, %v3555_v5 }
0x2af8   :  { %16401 = vpow2.f32 %v14599_v34 }
0x2af9   :  { %16403 = vpow2.f32 %v14598_v13 }
0x2b00   :  { %v16398_v55 = vpop.eup %16397 }
0x2b01   :  { %v16400_v31 = vpop.eup %16399  ;;  %3577 = vrot.lane.b32.xlu1 %v16398_v55, %s16948_s22 }
0x2b02   :  { %3575 = vrot.lane.b32.xlu0 %v16400_v31, %s16948_s22  ;;  %v16402_v35 = vpop.eup %16401 }
0x2b03   :  { %v16404_v51 = vpop.eup %16403  ;;  %v3564_v36 = vadd.f32 1.0, %v16402_v35 }
0x2b04   :  { %v3563_v28 = vadd.f32 1.0, %v16404_v51 }
0x2b05   :  { %16405 = vrcp.f32 %v3564_v36 }
0x2b06   :  { %16407 = vrcp.f32 %v3563_v28 }
0x2b0f   :  { %v16406_v62 = vpop.eup %16405 }
0x2b10   :  { %v16408_v15 = vpop.eup %16407  ;;  %v3572_v29 = vmul.f32 0.0, %v16406_v62 }
0x2b11   :  { %v3571_v30 = vmul.f32 0.0, %v16408_v15 }
0x2b73   :  { %v3578_v63 = vpop.permute.xlu1 %3577 }
0x2b74   :  { %v3582_v23 = vmul.f32 %v16406_v62, %v3578_v63  ;;  %v3576_v7 = vpop.permute.xlu0 %3575 }
0x2b75   :  { %v3581_v2 = vmul.f32 %v16408_v15, %v3576_v7 }
0x2b76   :  { %3587 = vrot.lane.b32.xlu1 %v3582_v23, %s16949_s23 }
0x2b77   :  { %3585 = vrot.lane.b32.xlu0 %v3581_v2, %s16949_s23 }
0x2be8   :  { %v3588_v11 = vpop.permute.xlu1 %3587 }
0x2be9   :  { %v3592_v59 = vadd.f32 %v3588_v11, %v3572_v29  ;;  %v3586_v52 = vpop.permute.xlu0 %3585 }
0x2bea   :  { %v3591_v39 = vadd.f32 %v3586_v52, %v3571_v30 }
0x2beb   :  { %16409 = vtanh.f32 %v3592_v59  ;;  %v3615_v43 = vrot.slane %v3592_v59, 7 }
0x2bec   :  { %16411 = vtanh.f32 %v3591_v39 }
0x2bed   :  { %v3616_v57 = vsel %vm19938_vm3, %v3615_v43, %v3591_v39  ;;  %vm19941_vm3 = vmmov %vm19940_vm2 }
0x2bf5   :  { %v16410_v47 = vpop.eup %16409 }
0x2bf6   :  { %v16412_v33 = vpop.eup %16411  ;;  %3599 = vrot.lane.b32.xlu1 %v16410_v47, %s16951_s25 }
0x2bf7   :  { %3597 = vrot.lane.b32.xlu0 %v16412_v33, %s16951_s25 }
0x2bfb   :  { %3617 = vrot.lane.b32.xlu0 %v3616_v57, %s16950_s24 }
0x2c68   :  { %v3600_v45 = vpop.permute.xlu1 %3599 }
0x2c69   :  { %v3604_v41 = vmul.f32 %v16406_v62, %v3600_v45  ;;  %v3598_v50 = vpop.permute.xlu0 %3597 }
0x2c6a   :  { %v3603_v32 = vmul.f32 %v16408_v15, %v3598_v50 }
0x2c6b   :  { %v3607_v26 = vrot.slane %v3604_v41, 7 }
0x2c6d   :  { %v3608_v10 = vsel %vm19939_vm4, %v3607_v26, %v3603_v32  ;;  %v3618_v6 = vpop.permute.xlu0 %3617 }
0x2c6e   :  { %3609 = vrot.lane.b32.xlu1 %v3608_v10, %s16952_s26  ;;  %v17859_v61 = vsel %vm19941_vm3, %v3618_v6, 0.0 }
0x2c6f   :  { %v3715_v24 = vrot.slane %v17859_v61, 7 }
0x2ce0   :  { %v3610_v48 = vpop.permute.xlu1 %3609 }
0x2ce1   :  { %v17846_v16 = vsel %vm19940_vm2, %v3610_v48, 0.0  ;;  %vm19942_vm2 = vmmov %vm19939_vm4 }
0x2ce2   :  { %15206 = vmatmul.mubr.msk.f32.vlgmr.msra.gmra.mrb[20].mxu1 %vm190_vm1, %v17846_v16  ;;  %vm19943_vm3 = vmmov %vm19942_vm2 }
0x2ce3   :  { %15835 = vmatpush3.bf16.msra.mxu1 %v17677_v54  ;;  %15219 = vmatprep.mubr.msk.f32.mxu1 %vm19935_vm0, %v16944_v1 }
0x2ce4   :  { %15839 = vmatprep.subr.bf16.mxu1 %v16940_v0 }
0x2db5   :  { %v3690_v4 = vpop.f32.mrb[20].mxu1 }
0x2db6   :  { %v3695_v3 = vrot.slane %v3690_v4, 7  ;;  %v3699_v18 = vadd.f32 %v3690_v4, %v17828_v22  ;;  %v15207_v20 = vpop.f32.mrb[21].mxu1 }
0x2db8   :  { %v3698_v58 = vadd.f32 %v3695_v3, %v17830_v25  ;;  %16413 = vtanh.f32 %v3699_v18  ;;  %v14602_v27 = vmul.f32 -1.442695, %v3699_v18 }
0x2dba   :  { %16415 = vtanh.f32 %v3698_v58  ;;  %v14601_v5 = vmul.f32 -1.442695, %v3698_v58 }
0x2dbb   :  { %16417 = vpow2.f32 %v14602_v27 }
0x2dbc   :  { %16419 = vpow2.f32 %v14601_v5 }
0x2dc2   :  { %v16414_v12 = vpop.eup %16413 }
0x2dc3   :  { %3728 = vrot.lane.b32.xlu0 %v16414_v12, %s16948_s22 }
0x2dc4   :  { %v16416_v19 = vpop.eup %16415 }
0x2dc5   :  { %3726 = vrot.lane.b32.xlu1 %v16416_v19, %s16948_s22  ;;  %v16418_v55 = vpop.eup %16417 }
0x2dc6   :  { %v16420_v31 = vpop.eup %16419  ;;  %v3707_v34 = vadd.f32 1.0, %v16418_v55 }
0x2dc7   :  { %3718 = vrot.lane.b32.xlu0 %v17859_v61, %s16949_s23  ;;  %v3706_v13 = vadd.f32 1.0, %v16420_v31 }
0x2dc8   :  { %16421 = vrcp.f32 %v3707_v34 }
0x2dc9   :  { %3716 = vrot.lane.b32.xlu1 %v3715_v24, %s16949_s23  ;;  %16423 = vrcp.f32 %v3706_v13 }
0x2dd2   :  { %v16422_v35 = vpop.eup %16421 }
0x2dd3   :  { %v16424_v28 = vpop.eup %16423 }
0x2e35   :  { %v3729_v51 = vpop.permute.xlu0 %3728 }
0x2e36   :  { %v3733_v36 = vmul.f32 %v16422_v35, %v3729_v51 }
0x2e37   :  { %v3727_v62 = vpop.permute.xlu1 %3726 }
0x2e38   :  { %3738 = vrot.lane.b32.xlu0 %v3733_v36, %s16949_s23  ;;  %v3732_v63 = vmul.f32 %v16424_v28, %v3727_v62 }
0x2e39   :  { %v3719_v15 = vpop.permute.xlu0 %3718 }
0x2e3a   :  { %3736 = vrot.lane.b32.xlu1 %v3732_v63, %s16949_s23  ;;  %v3723_v23 = vmul.f32 %v16422_v35, %v3719_v15 }
0x2e3b   :  { %v3717_v7 = vpop.permute.xlu1 %3716 }
0x2e3c   :  { %v3722_v11 = vmul.f32 %v16424_v28, %v3717_v7 }
0x2eaa   :  { %v3739_v2 = vpop.permute.xlu0 %3738 }
0x2eab   :  { %v3743_v29 = vadd.f32 %v3739_v2, %v3723_v23 }
0x2eac   :  { %v3737_v30 = vpop.permute.xlu1 %3736 }
0x2ead   :  { %16425 = vtanh.f32 %v3743_v29  ;;  %v3742_v59 = vadd.f32 %v3737_v30, %v3722_v11 }
0x2eaf   :  { %16427 = vtanh.f32 %v3742_v59  ;;  %v3767_v39 = vrot.slane %v3742_v59, 1 }
0x2eb1   :  { %v3768_v33 = vsel %vm19939_vm4, %v3743_v29, %v3767_v39  ;;  %vm19944_vm4 = vmmov %vm19942_vm2 }
0x2eb7   :  { %v16426_v52 = vpop.eup %16425 }
0x2eb8   :  { %3750 = vrot.lane.b32.xlu0 %v16426_v52, %s16951_s25 }
0x2eb9   :  { %v16428_v47 = vpop.eup %16427 }
0x2eba   :  { %3748 = vrot.lane.b32.xlu1 %v16428_v47, %s16951_s25 }
0x2ebc   :  { %3769 = vrot.lane.b32.xlu0 %v3768_v33, %s16950_s24 }
0x2f2a   :  { %v3751_v43 = vpop.permute.xlu0 %3750 }
0x2f2b   :  { %v3755_v41 = vmul.f32 %v16422_v35, %v3751_v43 }
0x2f2c   :  { %v3749_v57 = vpop.permute.xlu1 %3748 }
0x2f2d   :  { %v3754_v45 = vmul.f32 %v16424_v28, %v3749_v57 }
0x2f2e   :  { %v3770_v12 = vpop.permute.xlu0 %3769 }
0x2f2f   :  { %v3758_v50 = vrot.slane %v3754_v45, 1  ;;  %v17893_v19 = vsel %vm559_vm5, %v3770_v12, %v17859_v61 }
0x2f30   :  { %v3868_v27 = vrot.slane %v17893_v19, 6  ;;  %v3869_v5 = vrot.slane %v17893_v19, 7 }
0x2f31   :  { %v3759_v32 = vsel %vm19942_vm2, %v3755_v41, %v3758_v50 }
0x2f32   :  { %3760 = vrot.lane.b32.xlu1 %v3759_v32, %s16952_s26 }
0x2fa4   :  { %v17874_v26 = vpop.permute.xlu1 %3760 }
0x2fa5   :  { %v17880_v10 = vsel %vm559_vm5, %v17874_v26, %v17846_v16 }
0x2fa6   :  { %15213 = vmatmul.mubr.msk.f32.vlgmr.msra.gmra.mrb[20].mxu0 %vm190_vm1, %v17880_v10 }
0x2fa7   :  { %15838 = vmatpush3.bf16.msra.mxu0 %v17677_v54  ;;  %15226 = vmatprep.mubr.msk.f32.mxu0 %vm19935_vm0, %v16944_v1 }
0x2fa8   :  { %15842 = vmatprep.subr.bf16.mxu0 %v16940_v0 }
0x3079   :  { %v3842_v48 = vpop.f32.mrb[20].mxu0 }
0x307a   :  { %v3847_v4 = vrot.slane %v3842_v48, 6  ;;  %v3848_v3 = vrot.slane %v3842_v48, 7  ;;  %v15214_v18 = vpop.f32.mrb[21].mxu0 }
0x307c   :  { %v3851_v20 = vadd.f32 %v3847_v4, %v17830_v25  ;;  %v3852_v58 = vadd.f32 %v3848_v3, %v17828_v22 }
0x307e   :  { %16429 = vtanh.f32 %v3851_v20  ;;  %v14604_v55 = vmul.f32 -1.442695, %v3851_v20  ;;  %v14605_v31 = vmul.f32 -1.442695, %v3852_v58 }
0x307f   :  { %16431 = vtanh.f32 %v3852_v58 }
0x3080   :  { %16433 = vpow2.f32 %v14604_v55 }
0x3081   :  { %16435 = vpow2.f32 %v14605_v31 }
0x3088   :  { %v16430_v6 = vpop.eup %16429 }
0x3089   :  { %v16432_v24 = vpop.eup %16431  ;;  %3880 = vrot.lane.b32.xlu1 %v16430_v6, %s16948_s22 }
0x308a   :  { %3882 = vrot.lane.b32.xlu0 %v16432_v24, %s16948_s22  ;;  %v16434_v34 = vpop.eup %16433 }
0x308b   :  { %v16436_v61 = vpop.eup %16435  ;;  %v3859_v13 = vadd.f32 1.0, %v16434_v34 }
0x308c   :  { %v3860_v35 = vadd.f32 1.0, %v16436_v61 }
0x308d   :  { %3870 = vrot.lane.b32.xlu1 %v3868_v27, %s16949_s23  ;;  %16437 = vrcp.f32 %v3859_v13 }
0x308e   :  { %3872 = vrot.lane.b32.xlu0 %v3869_v5, %s16949_s23  ;;  %16439 = vrcp.f32 %v3860_v35 }
0x3097   :  { %v16438_v51 = vpop.eup %16437 }
0x3098   :  { %v16440_v28 = vpop.eup %16439 }
0x30fb   :  { %v3881_v36 = vpop.permute.xlu1 %3880 }
0x30fc   :  { %v3886_v62 = vmul.f32 %v16438_v51, %v3881_v36  ;;  %v3883_v63 = vpop.permute.xlu0 %3882 }
0x30fd   :  { %v3887_v15 = vmul.f32 %v16440_v28, %v3883_v63 }
0x30fe   :  { %3890 = vrot.lane.b32.xlu1 %v3886_v62, %s16949_s23 }
0x30ff   :  { %3892 = vrot.lane.b32.xlu0 %v3887_v15, %s16949_s23  ;;  %v3871_v23 = vpop.permute.xlu1 %3870 }
0x3100   :  { %v3873_v7 = vpop.permute.xlu0 %3872  ;;  %v3876_v2 = vmul.f32 %v16438_v51, %v3871_v23 }
0x3101   :  { %v3877_v29 = vmul.f32 %v16440_v28, %v3873_v7 }
0x3170   :  { %v3891_v11 = vpop.permute.xlu1 %3890 }
0x3171   :  { %v3896_v30 = vadd.f32 %v3891_v11, %v3876_v2  ;;  %v3893_v59 = vpop.permute.xlu0 %3892 }
0x3172   :  { %v3897_v52 = vadd.f32 %v3893_v59, %v3877_v29 }
0x3173   :  { %16441 = vtanh.f32 %v3896_v30  ;;  %v3922_v33 = vrot.slane %v3896_v30, 2 }
0x3174   :  { %16443 = vtanh.f32 %v3897_v52  ;;  %v3923_v43 = vrot.slane %v3897_v52, 1 }
0x3176   :  { %v3924_v57 = vsel %vm19943_vm3, %v3923_v43, %v3922_v33  ;;  %vm19945_vm3 = vmmov %vm19942_vm2 }
0x317d   :  { %v16442_v39 = vpop.eup %16441 }
0x317e   :  { %v16444_v47 = vpop.eup %16443  ;;  %3902 = vrot.lane.b32.xlu1 %v16442_v39, %s16951_s25 }
0x317f   :  { %3904 = vrot.lane.b32.xlu0 %v16444_v47, %s16951_s25 }
0x3183   :  { %3925 = vrot.lane.b32.xlu0 %v3924_v57, %s16950_s24 }
0x31f0   :  { %v3903_v45 = vpop.permute.xlu1 %3902 }
0x31f1   :  { %v3908_v41 = vmul.f32 %v16438_v51, %v3903_v45  ;;  %v3905_v50 = vpop.permute.xlu0 %3904 }
0x31f2   :  { %v3909_v32 = vmul.f32 %v16440_v28, %v3905_v50 }
0x31f3   :  { %v3912_v48 = vrot.slane %v3908_v41, 2 }
0x31f4   :  { %v3913_v4 = vrot.slane %v3909_v32, 1 }
0x31f6   :  { %v3914_v3 = vsel %vm19944_vm4, %v3913_v4, %v3912_v48  ;;  %vm19946_vm4 = vmmov %vm19942_vm2 }
0x31f7   :  { %3915 = vrot.lane.b32.xlu1 %v3914_v3, %s16952_s26 }
0x3269   :  { %v17909_v18 = vpop.permute.xlu1 %3915 }
0x326a   :  { %v17915_v20 = vsel %vm717_vm6, %v17909_v18, %v17880_v10  ;;  %v3926_v10 = vpop.permute.xlu0 %3925 }
0x326b   :  { %15220 = vmatmul.mubr.msk.f32.vlgmr.msra.gmra.mrb[22].mxu1 %vm190_vm1, %v17915_v20  ;;  %v17928_v31 = vsel %vm717_vm6, %v3926_v10, %v17893_v19 }
0x326c   :  { %15841 = vmatpush3.bf16.msra.mxu1 %v17677_v54  ;;  %15233 = vmatprep.mubr.msk.f32.mxu1 %vm19935_vm0, %v16944_v1  ;;  %v4024_v61 = vrot.slane %v17928_v31, 5  ;;  %v4025_v13 = vrot.slane %v17928_v31, 6 }
0x326d   :  { %15845 = vmatprep.subr.bf16.mxu1 %v16940_v0 }
0x333e   :  { %v3998_v58 = vpop.f32.mrb[22].mxu1 }
0x333f   :  { %v4003_v12 = vrot.slane %v3998_v58, 5  ;;  %v4004_v6 = vrot.slane %v3998_v58, 6  ;;  %v15221_v24 = vpop.f32.mrb[23].mxu1 }
0x3341   :  { %v4007_v27 = vadd.f32 %v4003_v12, %v17830_v25  ;;  %v4008_v5 = vadd.f32 %v4004_v6, %v17828_v22 }
0x3343   :  { %16445 = vtanh.f32 %v4007_v27  ;;  %v14607_v35 = vmul.f32 -1.442695, %v4007_v27  ;;  %v14608_v51 = vmul.f32 -1.442695, %v4008_v5 }
0x3344   :  { %16447 = vtanh.f32 %v4008_v5 }
0x3345   :  { %16449 = vpow2.f32 %v14607_v35 }
0x3346   :  { %16451 = vpow2.f32 %v14608_v51 }
0x334d   :  { %v16446_v55 = vpop.eup %16445 }
0x334e   :  { %v16448_v34 = vpop.eup %16447  ;;  %4036 = vrot.lane.b32.xlu1 %v16446_v55, %s16948_s22 }
0x334f   :  { %4038 = vrot.lane.b32.xlu0 %v16448_v34, %s16948_s22  ;;  %v16450_v36 = vpop.eup %16449 }
0x3350   :  { %v16452_v19 = vpop.eup %16451  ;;  %v4015_v28 = vadd.f32 1.0, %v16450_v36 }
0x3351   :  { %v4016_v62 = vadd.f32 1.0, %v16452_v19 }
0x3352   :  { %4026 = vrot.lane.b32.xlu1 %v4024_v61, %s16949_s23  ;;  %16453 = vrcp.f32 %v4015_v28 }
0x3353   :  { %4028 = vrot.lane.b32.xlu0 %v4025_v13, %s16949_s23  ;;  %16455 = vrcp.f32 %v4016_v62 }
0x335c   :  { %v16454_v63 = vpop.eup %16453 }
0x335d   :  { %v16456_v23 = vpop.eup %16455 }
0x33c0   :  { %v4037_v15 = vpop.permute.xlu1 %4036 }
0x33c1   :  { %v4042_v7 = vmul.f32 %v16454_v63, %v4037_v15  ;;  %v4039_v2 = vpop.permute.xlu0 %4038 }
0x33c2   :  { %v4043_v29 = vmul.f32 %v16456_v23, %v4039_v2 }
0x33c3   :  { %4046 = vrot.lane.b32.xlu1 %v4042_v7, %s16949_s23 }
0x33c4   :  { %4048 = vrot.lane.b32.xlu0 %v4043_v29, %s16949_s23  ;;  %v4027_v11 = vpop.permute.xlu1 %4026 }
0x33c5   :  { %v4029_v30 = vpop.permute.xlu0 %4028  ;;  %v4032_v59 = vmul.f32 %v16454_v63, %v4027_v11 }
0x33c6   :  { %v4033_v52 = vmul.f32 %v16456_v23, %v4029_v30 }
0x3435   :  { %v4047_v39 = vpop.permute.xlu1 %4046 }
0x3436   :  { %v4052_v47 = vadd.f32 %v4047_v39, %v4032_v59  ;;  %v4049_v33 = vpop.permute.xlu0 %4048 }
0x3437   :  { %v4053_v43 = vadd.f32 %v4049_v33, %v4033_v52 }
0x3438   :  { %16457 = vtanh.f32 %v4052_v47  ;;  %v4078_v41 = vrot.slane %v4052_v47, 3 }
0x3439   :  { %16459 = vtanh.f32 %v4053_v43  ;;  %v4079_v50 = vrot.slane %v4053_v43, 2 }
0x343b   :  { %v4080_v32 = vsel %vm19942_vm2, %v4079_v50, %v4078_v41 }
0x3442   :  { %v16458_v57 = vpop.eup %16457 }
0x3443   :  { %v16460_v45 = vpop.eup %16459  ;;  %4058 = vrot.lane.b32.xlu1 %v16458_v57, %s16951_s25 }
0x3444   :  { %4060 = vrot.lane.b32.xlu0 %v16460_v45, %s16951_s25 }
0x3448   :  { %4081 = vrot.lane.b32.xlu0 %v4080_v32, %s16950_s24 }
0x34b5   :  { %v4059_v48 = vpop.permute.xlu1 %4058 }
0x34b6   :  { %v4064_v4 = vmul.f32 %v16454_v63, %v4059_v48  ;;  %v4061_v3 = vpop.permute.xlu0 %4060 }
0x34b7   :  { %v4065_v58 = vmul.f32 %v16456_v23, %v4061_v3 }
0x34b8   :  { %v4068_v12 = vrot.slane %v4064_v4, 3 }
0x34b9   :  { %v4069_v6 = vrot.slane %v4065_v58, 2 }
0x34bb   :  { %v4070_v24 = vsel %vm19945_vm3, %v4069_v6, %v4068_v12  ;;  %vm19947_vm3 = vmmov %vm19942_vm2 }
0x34bc   :  { %4071 = vrot.lane.b32.xlu1 %v4070_v24, %s16952_s26 }
0x352e   :  { %v17944_v27 = vpop.permute.xlu1 %4071 }
0x352f   :  { %v17950_v5 = vsel %vm877_vm7, %v17944_v27, %v17915_v20  ;;  %v4082_v20 = vpop.permute.xlu0 %4081 }
0x3530   :  { %15227 = vmatmul.mubr.msk.f32.vlgmr.msra.gmra.mrb[22].mxu0 %vm190_vm1, %v17950_v5  ;;  %v17962_v36 = vsel %vm877_vm7, %v4082_v20, %v17928_v31 }
0x3531   :  { %15844 = vmatpush3.bf16.msra.mxu0 %v17677_v54  ;;  %15240 = vmatprep.mubr.msk.f32.mxu0 %vm19935_vm0, %v16944_v1  ;;  %v4180_v28 = vrot.slane %v17962_v36, 4  ;;  %v4181_v62 = vrot.slane %v17962_v36, 5 }
0x3603   :  { %v4154_v10 = vpop.f32.mrb[22].mxu0 }
0x3604   :  { %v4159_v55 = vrot.slane %v4154_v10, 4  ;;  %v4160_v34 = vrot.slane %v4154_v10, 5  ;;  %v15228_v61 = vpop.f32.mrb[23].mxu0 }
0x3606   :  { %v4163_v13 = vadd.f32 %v4159_v55, %v17830_v25  ;;  %v4164_v35 = vadd.f32 %v4160_v34, %v17828_v22 }
0x3608   :  { %16461 = vtanh.f32 %v4163_v13  ;;  %v14610_v63 = vmul.f32 -1.442695, %v4163_v13  ;;  %v14611_v15 = vmul.f32 -1.442695, %v4164_v35 }
0x3609   :  { %16463 = vtanh.f32 %v4164_v35 }
0x360a   :  { %16465 = vpow2.f32 %v14610_v63 }
0x360b   :  { %16467 = vpow2.f32 %v14611_v15 }
0x3612   :  { %v16462_v51 = vpop.eup %16461 }
0x3613   :  { %v16464_v19 = vpop.eup %16463  ;;  %4192 = vrot.lane.b32.xlu1 %v16462_v51, %s16948_s22 }
0x3614   :  { %4194 = vrot.lane.b32.xlu0 %v16464_v19, %s16948_s22  ;;  %v16466_v23 = vpop.eup %16465 }
0x3615   :  { %v16468_v31 = vpop.eup %16467  ;;  %v4171_v7 = vadd.f32 1.0, %v16466_v23 }
0x3616   :  { %v4172_v2 = vadd.f32 1.0, %v16468_v31 }
0x3617   :  { %4182 = vrot.lane.b32.xlu1 %v4180_v28, %s16949_s23  ;;  %16469 = vrcp.f32 %v4171_v7 }
0x3618   :  { %4184 = vrot.lane.b32.xlu0 %v4181_v62, %s16949_s23  ;;  %16471 = vrcp.f32 %v4172_v2 }
0x3621   :  { %v16470_v29 = vpop.eup %16469 }
0x3622   :  { %v16472_v30 = vpop.eup %16471 }
0x3685   :  { %v4193_v11 = vpop.permute.xlu1 %4192 }
0x3686   :  { %v4198_v59 = vmul.f32 %v16470_v29, %v4193_v11  ;;  %v4195_v52 = vpop.permute.xlu0 %4194 }
0x3687   :  { %v4199_v39 = vmul.f32 %v16472_v30, %v4195_v52 }
0x3688   :  { %4202 = vrot.lane.b32.xlu1 %v4198_v59, %s16949_s23 }
0x3689   :  { %4204 = vrot.lane.b32.xlu0 %v4199_v39, %s16949_s23  ;;  %v4183_v47 = vpop.permute.xlu1 %4182 }
0x368a   :  { %v4185_v33 = vpop.permute.xlu0 %4184  ;;  %v4188_v43 = vmul.f32 %v16470_v29, %v4183_v47 }
0x368b   :  { %v4189_v57 = vmul.f32 %v16472_v30, %v4185_v33 }
0x36fa   :  { %v4203_v45 = vpop.permute.xlu1 %4202 }
0x36fb   :  { %v4208_v41 = vadd.f32 %v4203_v45, %v4188_v43  ;;  %v4205_v50 = vpop.permute.xlu0 %4204 }
0x36fc   :  { %v4209_v32 = vadd.f32 %v4205_v50, %v4189_v57 }
0x36fd   :  { %16473 = vtanh.f32 %v4208_v41  ;;  %v4234_v3 = vrot.slane %v4208_v41, 4 }
0x36fe   :  { %16475 = vtanh.f32 %v4209_v32  ;;  %v4235_v58 = vrot.slane %v4209_v32, 3 }
0x3700   :  { %v4236_v12 = vsel %vm19946_vm4, %v4235_v58, %v4234_v3  ;;  %vm19948_vm4 = vmmov %vm19942_vm2 }
0x3707   :  { %v16474_v48 = vpop.eup %16473 }
0x3708   :  { %v16476_v4 = vpop.eup %16475  ;;  %4214 = vrot.lane.b32.xlu1 %v16474_v48, %s16951_s25 }
0x3709   :  { %4216 = vrot.lane.b32.xlu0 %v16476_v4, %s16951_s25 }
0x370d   :  { %4237 = vrot.lane.b32.xlu0 %v4236_v12, %s16950_s24 }
0x377a   :  { %v4215_v6 = vpop.permute.xlu1 %4214 }
0x377b   :  { %v4220_v24 = vmul.f32 %v16470_v29, %v4215_v6  ;;  %v4217_v10 = vpop.permute.xlu0 %4216 }
0x377c   :  { %v4221_v55 = vmul.f32 %v16472_v30, %v4217_v10 }
0x377d   :  { %v4224_v34 = vrot.slane %v4220_v24, 4 }
0x377e   :  { %v4225_v61 = vrot.slane %v4221_v55, 3 }
0x3780   :  { %v4226_v13 = vsel %vm19942_vm2, %v4225_v61, %v4224_v34  ;;  %v4968_v61 = vld [vmem:[%s14512_s29] sm:$0xff] }
0x3781   :  { %4227 = vrot.lane.b32.xlu1 %v4226_v13, %s16952_s26  ;;  %v4969_v13 = vld [vmem:[%s14512_s29 + $0x8] sm:$0xff] }
0x37f3   :  { %v17978_v35 = vpop.permute.xlu1 %4227 }
0x37f4   :  { %v17984_v20 = vsel %vm1037_vm8, %v17978_v35, %v17950_v5  ;;  %v4238_v5 = vpop.permute.xlu0 %4237 }
0x37f5   :  { %15234 = vmatmul.mubr.msk.f32.vlgmr.msra.gmra.mrb[24].mxu1 %vm190_vm1, %v17984_v20 }
0x37f6   :  { %15847 = vmatpush3.bf16.msra.mxu1 %v17677_v54  ;;  %15247 = vmatprep.mubr.msk.f32.mxu1 %vm19935_vm0, %v16944_v1  ;;  %v17997_v54 = vsel %vm1037_vm8, %v4238_v5, %v17962_v36 }
0x37f7   :  { %15856 = vmatprep.subr.bf16.mxu1 %v16940_v0  ;;  %v4336_v7 = vrot.slane %v17997_v54, 3  ;;  %v4337_v2 = vrot.slane %v17997_v54, 4 }
0x38c8   :  { %v4310_v51 = vpop.f32.mrb[24].mxu1 }
0x38c9   :  { %v4315_v19 = vrot.slane %v4310_v51, 3  ;;  %v4316_v28 = vrot.slane %v4310_v51, 4  ;;  %v15235_v62 = vpop.f32.mrb[25].mxu1  ;;  %v15848_v51 = vpack.c.bf16 %v4969_v13, %v4968_v61 }
0x38cb   :  { %v4319_v63 = vadd.f32 %v4315_v19, %v17830_v25  ;;  %v4320_v15 = vadd.f32 %v4316_v28, %v17828_v22  ;;  %15849 = vmatprep.subr.bf16.mxu0 %v15848_v51 }
0x38cd   :  { %16477 = vtanh.f32 %v4319_v63  ;;  %v14613_v29 = vmul.f32 -1.442695, %v4319_v63  ;;  %v14614_v11 = vmul.f32 -1.442695, %v4320_v15 }
0x38ce   :  { %16479 = vtanh.f32 %v4320_v15 }
0x38cf   :  { %16481 = vpow2.f32 %v14613_v29 }
0x38d0   :  { %16483 = vpow2.f32 %v14614_v11 }
0x38d7   :  { %v16478_v23 = vpop.eup %16477 }
0x38d8   :  { %v16480_v31 = vpop.eup %16479  ;;  %4348 = vrot.lane.b32.xlu1 %v16478_v23, %s16948_s22 }
0x38d9   :  { %4350 = vrot.lane.b32.xlu0 %v16480_v31, %s16948_s22  ;;  %v16482_v30 = vpop.eup %16481  ;;  %v4970_v31 = vld [vmem:[%s14512_s29 + $0x10] sm:$0xff] }
0x38da   :  { %v16484_v36 = vpop.eup %16483  ;;  %v4327_v59 = vadd.f32 1.0, %v16482_v30 }
0x38db   :  { %v4328_v52 = vadd.f32 1.0, %v16484_v36 }
0x38dc   :  { %4338 = vrot.lane.b32.xlu1 %v4336_v7, %s16949_s23  ;;  %16485 = vrcp.f32 %v4327_v59  ;;  %v4971_v7 = vld [vmem:[%s14512_s29 + $0x18] sm:$0xff] }
0x38dd   :  { %4340 = vrot.lane.b32.xlu0 %v4337_v2, %s16949_s23  ;;  %16487 = vrcp.f32 %v4328_v52  ;;  %v15852_v29 = vpack.c.bf16 %v4971_v7, %v4970_v31 }
0x38e6   :  { %v16486_v39 = vpop.eup %16485 }
0x38e7   :  { %v16488_v33 = vpop.eup %16487 }
0x394a   :  { %v4349_v47 = vpop.permute.xlu1 %4348 }
0x394b   :  { %v4354_v43 = vmul.f32 %v16486_v39, %v4349_v47  ;;  %v4351_v57 = vpop.permute.xlu0 %4350 }
0x394c   :  { %v4355_v45 = vmul.f32 %v16488_v33, %v4351_v57 }
0x394d   :  { %4358 = vrot.lane.b32.xlu1 %v4354_v43, %s16949_s23 }
0x394e   :  { %4360 = vrot.lane.b32.xlu0 %v4355_v45, %s16949_s23  ;;  %v4339_v41 = vpop.permute.xlu1 %4338 }
0x394f   :  { %v4341_v50 = vpop.permute.xlu0 %4340  ;;  %v4344_v32 = vmul.f32 %v16486_v39, %v4339_v41 }
0x3950   :  { %v4345_v48 = vmul.f32 %v16488_v33, %v4341_v50 }
0x39bf   :  { %v4359_v4 = vpop.permute.xlu1 %4358 }
0x39c0   :  { %v4364_v3 = vadd.f32 %v4359_v4, %v4344_v32  ;;  %v4361_v58 = vpop.permute.xlu0 %4360 }
0x39c1   :  { %v4365_v12 = vadd.f32 %v4361_v58, %v4345_v48 }
0x39c2   :  { %16489 = vtanh.f32 %v4364_v3  ;;  %v4390_v10 = vrot.slane %v4364_v3, 5 }
0x39c3   :  { %16491 = vtanh.f32 %v4365_v12  ;;  %v4391_v55 = vrot.slane %v4365_v12, 4 }
0x39c5   :  { %v4392_v34 = vsel %vm19947_vm3, %v4391_v55, %v4390_v10  ;;  %vm19949_vm3 = vmmov %vm19942_vm2 }
0x39cc   :  { %v16490_v6 = vpop.eup %16489 }
0x39cd   :  { %v16492_v24 = vpop.eup %16491  ;;  %4370 = vrot.lane.b32.xlu1 %v16490_v6, %s16951_s25 }
0x39ce   :  { %4372 = vrot.lane.b32.xlu0 %v16492_v24, %s16951_s25 }
0x39d2   :  { %4393 = vrot.lane.b32.xlu0 %v4392_v34, %s16950_s24 }
0x3a3f   :  { %v4371_v19 = vpop.permute.xlu1 %4370 }
0x3a40   :  { %v4376_v28 = vmul.f32 %v16486_v39, %v4371_v19  ;;  %v4373_v62 = vpop.permute.xlu0 %4372 }
0x3a41   :  { %v4377_v63 = vmul.f32 %v16488_v33, %v4373_v62 }
0x3a42   :  { %v4380_v15 = vrot.slane %v4376_v28, 5 }
0x3a43   :  { %v4381_v5 = vrot.slane %v4377_v63, 4 }
0x3a44   :  { %v4394_v33 = vpop.permute.xlu0 %4393 }
0x3a45   :  { %v4382_v23 = vsel %vm19948_vm4, %v4381_v5, %v4380_v15  ;;  %vm19950_vm4 = vmmov %vm19942_vm2 }
0x3a46   :  { %4383 = vrot.lane.b32.xlu1 %v4382_v23, %s16952_s26 }
0x3ab8   :  { %v18016_v2 = vpop.permute.xlu1 %4383 }
0x3ab9   :  { %v18022_v11 = vsel %vm1197_vm9, %v18016_v2, %v17984_v20  ;;  %v4386_v46 = vsel %vm1197_vm9, %v18016_v2, 0.0 }
0x3aba   :  { %15241 = vmatmul.mubr.msk.f32.vlgmr.msra.gmra.mrb[24].mxu0 %vm190_vm1, %v18022_v11  ;;  %v4822_v49 = vrot.slane %v4386_v46, %v17606_v17  ;;  %v6656_v46 = vld [vmem:[%s18550_s1 + $0x8] sm:$0xff] }
0x3abb   :  { %15851 = vmatpush3.bf16.msra.mxu0 %v15848_v51  ;;  %15258 = vmatprep.mubr.msk.f32.mxu0 %vm19937_vm12, %v17810_v9 }
0x3abc   :  { %15853 = vmatprep.subr.bf16.mxu0 %v15852_v29 }
0x3abf   :  { %15855 = vmatpush3.bf16.msra.mxu0 %v15852_v29  ;;  %v4972_v29 = vld [vmem:[%s14513_s3] sm:$0xff] }
0x3ac0   :  { %15862 = vmatprep.subr.bf16.mxu0 %v16940_v0 }
0x3ac2   :  { %15259 = vmatmul.mubr.msk.f32.vlgmr.msra.gmra.mrb[26].mxu0 %vm19937_vm12, %v17817_v44  ;;  %v18042_v44 = vsel %vm1197_vm9, %v4394_v33, %v17997_v54 }
0x3ac3   :  { %15279 = vmatprep.mubr.msk.f32.mxu0 %vm19935_vm0, %v16944_v1  ;;  %v4492_v45 = vrot.slane %v18042_v44, 2  ;;  %v4493_v41 = vrot.slane %v18042_v44, 3 }
0x3b8d   :  { %v4466_v30 = vpop.f32.mrb[24].mxu0 }
0x3b8e   :  { %v4471_v20 = vrot.slane %v4466_v30, 2  ;;  %v4472_v36 = vrot.slane %v4466_v30, 3  ;;  %v15242_v59 = vpop.f32.mrb[25].mxu0  ;;  %v4973_v30 = vld [vmem:[%s14513_s3 + $0x8] sm:$0xff] }
0x3b90   :  { %v4475_v52 = vadd.f32 %v4471_v20, %v17830_v25  ;;  %v4476_v39 = vadd.f32 %v4472_v36, %v17828_v22  ;;  %v18060_v20 = vpack.c.bf16 %v4973_v30, %v4972_v29 }
0x3b92   :  { %16493 = vtanh.f32 %v4475_v52  ;;  %v14616_v50 = vmul.f32 -1.442695, %v4475_v52  ;;  %v14617_v32 = vmul.f32 -1.442695, %v4476_v39  ;;  %15864 = vmatpush3.bf16.msra.mxu0 %v18060_v20 }
0x3b93   :  { %16495 = vtanh.f32 %v4476_v39  ;;  %15868 = vmatprep.subr.bf16.mxu0 %v16940_v0 }
0x3b94   :  { %16497 = vpow2.f32 %v14616_v50 }
0x3b95   :  { %v18035_v9 = vpop.f32.mrb[26].mxu0  ;;  %16499 = vpow2.f32 %v14617_v32  ;;  %v14621_v32 = vld [vmem:[%s14514_s7] ss:$0 sm:$0xff] }
0x3b96   :  { %v18037_v47 = vpop.f32.mrb[27].mxu0 }
0x3b9c   :  { %v16494_v43 = vpop.eup %16493 }
0x3b9d   :  { %v16496_v57 = vpop.eup %16495  ;;  %4504 = vrot.lane.b32.xlu1 %v16494_v43, %s16948_s22 }
0x3b9e   :  { %4506 = vrot.lane.b32.xlu0 %v16496_v57, %s16948_s22  ;;  %v16498_v48 = vpop.eup %16497 }
0x3b9f   :  { %v16500_v54 = vpop.eup %16499  ;;  %v4483_v4 = vadd.f32 1.0, %v16498_v48 }
0x3ba0   :  { %v4484_v3 = vadd.f32 1.0, %v16500_v54  ;;  %v18088_v54 = vadd.f32 %v14621_v32, %v18037_v47 }
0x3ba1   :  { %4494 = vrot.lane.b32.xlu1 %v4492_v45, %s16949_s23  ;;  %16501 = vrcp.f32 %v4483_v4 }
0x3ba2   :  { %4496 = vrot.lane.b32.xlu0 %v4493_v41, %s16949_s23  ;;  %16503 = vrcp.f32 %v4484_v3 }
0x3bab   :  { %v16502_v58 = vpop.eup %16501 }
0x3bac   :  { %v16504_v6 = vpop.eup %16503 }
0x3c0f   :  { %v4505_v12 = vpop.permute.xlu1 %4504 }
0x3c10   :  { %v4510_v24 = vmul.f32 %v16502_v58, %v4505_v12  ;;  %v4507_v10 = vpop.permute.xlu0 %4506 }
0x3c11   :  { %v4511_v55 = vmul.f32 %v16504_v6, %v4507_v10 }
0x3c12   :  { %4514 = vrot.lane.b32.xlu1 %v4510_v24, %s16949_s23 }
0x3c13   :  { %4516 = vrot.lane.b32.xlu0 %v4511_v55, %s16949_s23  ;;  %v4495_v34 = vpop.permute.xlu1 %4494 }
0x3c14   :  { %v4497_v61 = vpop.permute.xlu0 %4496  ;;  %v4500_v13 = vmul.f32 %v16502_v58, %v4495_v34 }
0x3c15   :  { %v4501_v51 = vmul.f32 %v16504_v6, %v4497_v61 }
0x3c84   :  { %v4515_v19 = vpop.permute.xlu1 %4514 }
0x3c85   :  { %v4520_v28 = vadd.f32 %v4515_v19, %v4500_v13  ;;  %v4517_v62 = vpop.permute.xlu0 %4516 }
0x3c86   :  { %v4521_v63 = vadd.f32 %v4517_v62, %v4501_v51 }
0x3c87   :  { %16505 = vtanh.f32 %v4520_v28  ;;  %v4546_v15 = vrot.slane %v4520_v28, 6 }
0x3c88   :  { %16507 = vtanh.f32 %v4521_v63  ;;  %v4547_v5 = vrot.slane %v4521_v63, 5 }
0x3c8a   :  { %v18053_v23 = vsel %vm19942_vm2, %v4547_v5, %v4546_v15 }
0x3c91   :  { %v16506_v31 = vpop.eup %16505 }
0x3c92   :  { %v16508_v7 = vpop.eup %16507  ;;  %4526 = vrot.lane.b32.xlu1 %v16506_v31, %s16951_s25 }
0x3c93   :  { %4528 = vrot.lane.b32.xlu0 %v16508_v7, %s16951_s25 }
0x3d04   :  { %v4527_v36 = vpop.permute.xlu1 %4526 }
0x3d05   :  { %v4532_v59 = vmul.f32 %v16502_v58, %v4527_v36  ;;  %v4529_v52 = vpop.permute.xlu0 %4528  ;;  %v18091_v58 = vadd.f32 %v18035_v9, %v14621_v32 }
0x3d06   :  { %v4533_v39 = vmul.f32 %v16504_v6, %v4529_v52 }
0x3d07   :  { %v4536_v33 = vrot.slane %v4532_v59, 6 }
0x3d08   :  { %v4537_v43 = vrot.slane %v4533_v39, 5 }
0x3d0a   :  { %v4538_v57 = vsel %vm19949_vm3, %v4537_v43, %v4536_v33  ;;  %vm19951_vm3 = vmmov %vm19942_vm2 }
0x3d0b   :  { %4539 = vrot.lane.b32.xlu1 %v4538_v57, %s16952_s26 }
0x3d7d   :  { %v18066_v45 = vpop.permute.xlu1 %4539 }
0x3d7e   :  { %v4543_v41 = vsel %vm1357_vm10, %v18066_v45, %v18022_v11  ;;  %v4542_v42 = vsel %vm1357_vm10, %v18066_v45, 0.0 }
0x3d7f   :  { %15248 = vmatmul.mubr.msk.f32.vlgmr.msra.gmra.mrb[26].mxu1 %vm190_vm1, %v4543_v41 }
0x3d80   :  { %15858 = vmatpush3.bf16.msra.mxu1 %v18060_v20  ;;  %15265 = vmatprep.mubr.msk.f32.mxu1 %vm19935_vm0, %v16944_v1 }
0x3d81   :  { %15859 = vmatprep.subr.bf16.mxu1 %v16940_v0 }
0x3d83   :  { %15266 = vmatmul.mubr.f32.vlgmr.msra.gmra.mrb[28].mxu1 %v16944_v1 }
0x3d84   :  { %15861 = vmatpush3.bf16.msra.mxu1 %v18060_v20  ;;  %15272 = vmatprep.mubr.msk.f32.mxu1 %vm19935_vm0, %v16944_v1 }
0x3d85   :  { %15865 = vmatprep.subr.bf16.mxu1 %v16940_v0 }
0x3e52   :  { %v18085_v11 = vpop.f32.mrb[26].mxu1 }
0x3e53   :  { %v15249_v50 = vpop.f32.mrb[27].mxu1 }
0x3e56   :  { %v5122_v48 = vpop.f32.mrb[28].mxu1 }
0x3e57   :  { %v5127_v4 = vrot.slane %v5122_v48, 1  ;;  %v15267_v3 = vpop.f32.mrb[29].mxu1  ;;  %v5128_v12 = vrot.slane %v5122_v48, 2 }
0x3e59   :  { %v5131_v6 = vadd.f32 %v5127_v4, %v18088_v54  ;;  %v5132_v24 = vadd.f32 %v5128_v12, %v18091_v58 }
0x3e5b   :  { %16509 = vtanh.f32 %v5131_v6  ;;  %v14624_v47 = vmul.f32 -1.442695, %v5131_v6  ;;  %v14625_v34 = vmul.f32 -1.442695, %v5132_v24 }
0x3e5c   :  { %16511 = vtanh.f32 %v5132_v24 }
0x3e5d   :  { %16513 = vpow2.f32 %v14624_v47 }
0x3e5e   :  { %16515 = vpow2.f32 %v14625_v34 }
0x3e65   :  { %v16510_v10 = vpop.eup %16509 }
0x3e66   :  { %v16512_v55 = vpop.eup %16511  ;;  %5151 = vrot.lane.b32.xlu0 %v16510_v10, %s16948_s22 }
0x3e67   :  { %5153 = vrot.lane.b32.xlu1 %v16512_v55, %s16948_s22  ;;  %v16514_v61 = vpop.eup %16513 }
0x3e68   :  { %v16516_v9 = vpop.eup %16515  ;;  %v5139_v13 = vadd.f32 1.0, %v16514_v61 }
0x3e69   :  { %v5140_v51 = vadd.f32 1.0, %v16516_v9 }
0x3e6a   :  { %16517 = vrcp.f32 %v5139_v13 }
0x3e6b   :  { %16519 = vrcp.f32 %v5140_v51 }
0x3e74   :  { %v16518_v19 = vpop.eup %16517 }
0x3e75   :  { %v16520_v62 = vpop.eup %16519  ;;  %v5147_v31 = vmul.f32 0.0, %v16518_v19 }
0x3e76   :  { %v5148_v7 = vmul.f32 0.0, %v16520_v62 }
0x3ed8   :  { %v5152_v28 = vpop.permute.xlu0 %5151 }
0x3ed9   :  { %v5154_v63 = vpop.permute.xlu1 %5153  ;;  %v5157_v15 = vmul.f32 %v16518_v19, %v5152_v28 }
0x3eda   :  { %v5158_v5 = vmul.f32 %v16520_v62, %v5154_v63 }
0x3edb   :  { %5161 = vrot.lane.b32.xlu0 %v5157_v15, %s16949_s23 }
0x3edc   :  { %5163 = vrot.lane.b32.xlu1 %v5158_v5, %s16949_s23 }
0x3f4d   :  { %v5162_v29 = vpop.permute.xlu0 %5161 }
0x3f4e   :  { %v5164_v30 = vpop.permute.xlu1 %5163  ;;  %v5167_v36 = vadd.f32 %v5162_v29, %v5147_v31 }
0x3f4f   :  { %v5168_v59 = vadd.f32 %v5164_v30, %v5148_v7 }
0x3f50   :  { %16521 = vtanh.f32 %v5167_v36  ;;  %v5192_v43 = vrot.slane %v5167_v36, 7 }
0x3f51   :  { %16523 = vtanh.f32 %v5168_v59  ;;  %v5193_v33 = vrot.slane %v5168_v59, 6 }
0x3f53   :  { %v5194_v57 = vsel %vm19950_vm4, %v5193_v33, %v5192_v43  ;;  %vm19952_vm4 = vmmov %vm19942_vm2 }
0x3f5a   :  { %v16522_v52 = vpop.eup %16521 }
0x3f5b   :  { %v16524_v39 = vpop.eup %16523  ;;  %5173 = vrot.lane.b32.xlu0 %v16522_v52, %s16951_s25 }
0x3f5c   :  { %5175 = vrot.lane.b32.xlu1 %v16524_v39, %s16951_s25 }
0x3f60   :  { %5195 = vrot.lane.b32.xlu1 %v5194_v57, %s16950_s24 }
0x3fcd   :  { %v5174_v41 = vpop.permute.xlu0 %5173 }
0x3fce   :  { %v5176_v50 = vpop.permute.xlu1 %5175  ;;  %v5179_v32 = vmul.f32 %v16518_v19, %v5174_v41 }
0x3fcf   :  { %v5180_v48 = vmul.f32 %v16520_v62, %v5176_v50 }
0x3fd0   :  { %v5183_v4 = vrot.slane %v5179_v32, 7 }
0x3fd1   :  { %v5184_v3 = vrot.slane %v5180_v48, 6 }
0x3fd2   :  { %v5196_v13 = vpop.permute.xlu1 %5195 }
0x3fd3   :  { %v5185_v12 = vsel %vm19942_vm2, %v5184_v3, %v5183_v4  ;;  %v18119_v19 = vsel %vm1517_vm11, %v5196_v13, 0.0 }
0x3fd4   :  { %5186 = vrot.lane.b32.xlu0 %v5185_v12, %s16952_s26  ;;  %v5294_v62 = vrot.slane %v18119_v19, 2  ;;  %v5295_v63 = vrot.slane %v18119_v19, 3 }
0x4046   :  { %v5187_v6 = vpop.permute.xlu0 %5186 }
0x4047   :  { %v18107_v24 = vsel %vm1517_vm11, %v5187_v6, 0.0 }
0x4048   :  { %15273 = vmatmul.mubr.msk.f32.vlgmr.msra.gmra.mrb[30].mxu1 %vm190_vm1, %v18107_v24 }
0x4049   :  { %15867 = vmatpush3.bf16.msra.mxu1 %v18060_v20  ;;  %15286 = vmatprep.mubr.msk.f32.mxu1 %vm19935_vm0, %v16944_v1 }
0x404a   :  { %15871 = vmatprep.subr.bf16.mxu1 %v16940_v0 }
0x411b   :  { %v5268_v10 = vpop.f32.mrb[30].mxu1 }
0x411c   :  { %v5273_v55 = vrot.slane %v5268_v10, 2  ;;  %v5274_v47 = vrot.slane %v5268_v10, 3  ;;  %v15274_v34 = vpop.f32.mrb[31].mxu1 }
0x411e   :  { %v5277_v61 = vadd.f32 %v5273_v55, %v18088_v54  ;;  %v5278_v9 = vadd.f32 %v5274_v47, %v18091_v58 }
0x4120   :  { %16525 = vtanh.f32 %v5277_v61  ;;  %v14627_v15 = vmul.f32 -1.442695, %v5277_v61  ;;  %v14628_v5 = vmul.f32 -1.442695, %v5278_v9 }
0x4121   :  { %16527 = vtanh.f32 %v5278_v9 }
0x4122   :  { %16529 = vpow2.f32 %v14627_v15 }
0x4123   :  { %16531 = vpow2.f32 %v14628_v5 }
0x412a   :  { %v16526_v51 = vpop.eup %16525 }
0x412b   :  { %v16528_v28 = vpop.eup %16527  ;;  %5306 = vrot.lane.b32.xlu0 %v16526_v51, %s16948_s22 }
0x412c   :  { %5308 = vrot.lane.b32.xlu1 %v16528_v28, %s16948_s22  ;;  %v16530_v31 = vpop.eup %16529 }
0x412d   :  { %v16532_v7 = vpop.eup %16531  ;;  %v5285_v29 = vadd.f32 1.0, %v16530_v31 }
0x412e   :  { %v5286_v30 = vadd.f32 1.0, %v16532_v7 }
0x412f   :  { %5296 = vrot.lane.b32.xlu0 %v5294_v62, %s16949_s23  ;;  %16533 = vrcp.f32 %v5285_v29 }
0x4130   :  { %5298 = vrot.lane.b32.xlu1 %v5295_v63, %s16949_s23  ;;  %16535 = vrcp.f32 %v5286_v30 }
0x4139   :  { %v16534_v36 = vpop.eup %16533 }
0x413a   :  { %v16536_v52 = vpop.eup %16535 }
0x419d   :  { %v5307_v59 = vpop.permute.xlu0 %5306 }
0x419e   :  { %v5309_v39 = vpop.permute.xlu1 %5308  ;;  %v5312_v33 = vmul.f32 %v16534_v36, %v5307_v59 }
0x419f   :  { %v5313_v43 = vmul.f32 %v16536_v52, %v5309_v39 }
0x41a0   :  { %5316 = vrot.lane.b32.xlu0 %v5312_v33, %s16949_s23 }
0x41a1   :  { %5318 = vrot.lane.b32.xlu1 %v5313_v43, %s16949_s23  ;;  %v5297_v57 = vpop.permute.xlu0 %5296 }
0x41a2   :  { %v5299_v41 = vpop.permute.xlu1 %5298  ;;  %v5302_v50 = vmul.f32 %v16534_v36, %v5297_v57 }
0x41a3   :  { %v5303_v32 = vmul.f32 %v16536_v52, %v5299_v41 }
0x4212   :  { %v5317_v48 = vpop.permute.xlu0 %5316 }
0x4213   :  { %v5319_v4 = vpop.permute.xlu1 %5318  ;;  %v5322_v3 = vadd.f32 %v5317_v48, %v5302_v50 }
0x4214   :  { %v5323_v12 = vadd.f32 %v5319_v4, %v5303_v32 }
0x4215   :  { %16537 = vtanh.f32 %v5322_v3  ;;  %v5348_v47 = vrot.slane %v5322_v3, 6 }
0x4216   :  { %16539 = vtanh.f32 %v5323_v12  ;;  %v5349_v55 = vrot.slane %v5323_v12, 5 }
0x4218   :  { %v5350_v34 = vsel %vm19951_vm3, %v5349_v55, %v5348_v47  ;;  %vm19953_vm3 = vmmov %vm19942_vm2 }
0x421f   :  { %v16538_v6 = vpop.eup %16537 }
0x4220   :  { %v16540_v10 = vpop.eup %16539  ;;  %5328 = vrot.lane.b32.xlu0 %v16538_v6, %s16951_s25 }
0x4221   :  { %5330 = vrot.lane.b32.xlu1 %v16540_v10, %s16951_s25 }
0x4225   :  { %5351 = vrot.lane.b32.xlu1 %v5350_v34, %s16950_s24 }
0x4292   :  { %v5329_v61 = vpop.permute.xlu0 %5328 }
0x4293   :  { %v5331_v9 = vpop.permute.xlu1 %5330  ;;  %v5334_v13 = vmul.f32 %v16534_v36, %v5329_v61 }
0x4294   :  { %v5335_v51 = vmul.f32 %v16536_v52, %v5331_v9 }
0x4295   :  { %v5338_v28 = vrot.slane %v5334_v13, 6 }
0x4296   :  { %v5339_v62 = vrot.slane %v5335_v51, 5 }
0x4297   :  { %v5352_v52 = vpop.permute.xlu1 %5351 }
0x4298   :  { %v5340_v63 = vsel %vm19952_vm4, %v5339_v62, %v5338_v28  ;;  %v18154_v33 = vsel %vm1357_vm10, %v5352_v52, %v18119_v19  ;;  %vm19954_vm4 = vmmov %vm19942_vm2 }
0x4299   :  { %5341 = vrot.lane.b32.xlu0 %v5340_v63, %s16952_s26  ;;  %v5450_v57 = vrot.slane %v18154_v33, 3  ;;  %v5451_v41 = vrot.slane %v18154_v33, 4 }
0x430b   :  { %v18135_v15 = vpop.permute.xlu0 %5341 }
0x430c   :  { %v18141_v5 = vsel %vm1357_vm10, %v18135_v15, %v18107_v24 }
0x430d   :  { %15280 = vmatmul.mubr.msk.f32.vlgmr.msra.gmra.mrb[28].mxu0 %vm190_vm1, %v18141_v5 }
0x430e   :  { %15870 = vmatpush3.bf16.msra.mxu0 %v18060_v20  ;;  %15293 = vmatprep.mubr.msk.f32.mxu0 %vm19935_vm0, %v16944_v1 }
0x430f   :  { %15874 = vmatprep.subr.bf16.mxu0 %v16940_v0 }
0x43e0   :  { %v5424_v31 = vpop.f32.mrb[28].mxu0 }
0x43e1   :  { %v5429_v7 = vrot.slane %v5424_v31, 3  ;;  %v5430_v29 = vrot.slane %v5424_v31, 4  ;;  %v15281_v30 = vpop.f32.mrb[29].mxu0 }
0x43e3   :  { %v5433_v36 = vadd.f32 %v5429_v7, %v18088_v54  ;;  %v5434_v59 = vadd.f32 %v5430_v29, %v18091_v58 }
0x43e5   :  { %16541 = vtanh.f32 %v5433_v36  ;;  %v14630_v50 = vmul.f32 -1.442695, %v5433_v36  ;;  %v14631_v32 = vmul.f32 -1.442695, %v5434_v59 }
0x43e6   :  { %16543 = vtanh.f32 %v5434_v59 }
0x43e7   :  { %16545 = vpow2.f32 %v14630_v50 }
0x43e8   :  { %16547 = vpow2.f32 %v14631_v32 }
0x43ef   :  { %v16542_v39 = vpop.eup %16541 }
0x43f0   :  { %v16544_v43 = vpop.eup %16543  ;;  %5462 = vrot.lane.b32.xlu0 %v16542_v39, %s16948_s22 }
0x43f1   :  { %5464 = vrot.lane.b32.xlu1 %v16544_v43, %s16948_s22  ;;  %v16546_v48 = vpop.eup %16545 }
0x43f2   :  { %v16548_v19 = vpop.eup %16547  ;;  %v5441_v4 = vadd.f32 1.0, %v16546_v48 }
0x43f3   :  { %v5442_v3 = vadd.f32 1.0, %v16548_v19 }
0x43f4   :  { %5452 = vrot.lane.b32.xlu0 %v5450_v57, %s16949_s23  ;;  %16549 = vrcp.f32 %v5441_v4 }
0x43f5   :  { %5454 = vrot.lane.b32.xlu1 %v5451_v41, %s16949_s23  ;;  %16551 = vrcp.f32 %v5442_v3 }
0x43fe   :  { %v16550_v12 = vpop.eup %16549 }
0x43ff   :  { %v16552_v10 = vpop.eup %16551 }
0x4462   :  { %v5463_v6 = vpop.permute.xlu0 %5462 }
0x4463   :  { %v5465_v55 = vpop.permute.xlu1 %5464  ;;  %v5468_v47 = vmul.f32 %v16550_v12, %v5463_v6 }
0x4464   :  { %v5469_v34 = vmul.f32 %v16552_v10, %v5465_v55 }
0x4465   :  { %5472 = vrot.lane.b32.xlu0 %v5468_v47, %s16949_s23 }
0x4466   :  { %5474 = vrot.lane.b32.xlu1 %v5469_v34, %s16949_s23  ;;  %v5453_v61 = vpop.permute.xlu0 %5452 }
0x4467   :  { %v5455_v9 = vpop.permute.xlu1 %5454  ;;  %v5458_v13 = vmul.f32 %v16550_v12, %v5453_v61 }
0x4468   :  { %v5459_v51 = vmul.f32 %v16552_v10, %v5455_v9 }
0x44d7   :  { %v5473_v28 = vpop.permute.xlu0 %5472 }
0x44d8   :  { %v5475_v62 = vpop.permute.xlu1 %5474  ;;  %v5478_v63 = vadd.f32 %v5473_v28, %v5458_v13 }
0x44d9   :  { %v5479_v31 = vadd.f32 %v5475_v62, %v5459_v51 }
0x44da   :  { %16553 = vtanh.f32 %v5478_v63  ;;  %v5504_v36 = vrot.slane %v5478_v63, 5 }
0x44db   :  { %16555 = vtanh.f32 %v5479_v31  ;;  %v5505_v30 = vrot.slane %v5479_v31, 4 }
0x44dd   :  { %v5506_v59 = vsel %vm19942_vm2, %v5505_v30, %v5504_v36 }
0x44e4   :  { %v16554_v7 = vpop.eup %16553 }
0x44e5   :  { %v16556_v29 = vpop.eup %16555  ;;  %5484 = vrot.lane.b32.xlu0 %v16554_v7, %s16951_s25 }
0x44e6   :  { %5486 = vrot.lane.b32.xlu1 %v16556_v29, %s16951_s25 }
0x44ea   :  { %5507 = vrot.lane.b32.xlu1 %v5506_v59, %s16950_s24 }
0x4557   :  { %v5485_v52 = vpop.permute.xlu0 %5484 }
0x4558   :  { %v5487_v39 = vpop.permute.xlu1 %5486  ;;  %v5490_v43 = vmul.f32 %v16550_v12, %v5485_v52 }
0x4559   :  { %v5491_v57 = vmul.f32 %v16552_v10, %v5487_v39 }
0x455a   :  { %v5494_v41 = vrot.slane %v5490_v43, 5 }
0x455b   :  { %v5495_v50 = vrot.slane %v5491_v57, 4 }
0x455d   :  { %v5496_v32 = vsel %vm19953_vm3, %v5495_v50, %v5494_v41  ;;  %vm19955_vm3 = vmmov %vm19942_vm2 }
0x455e   :  { %5497 = vrot.lane.b32.xlu0 %v5496_v32, %s16952_s26 }
0x45d0   :  { %v18170_v48 = vpop.permute.xlu0 %5497 }
0x45d1   :  { %v18176_v19 = vsel %vm1197_vm9, %v18170_v48, %v18141_v5  ;;  %v5508_v5 = vpop.permute.xlu1 %5507 }
0x45d2   :  { %15287 = vmatmul.mubr.msk.f32.vlgmr.msra.gmra.mrb[32].mxu1 %vm190_vm1, %v18176_v19  ;;  %v18189_v34 = vsel %vm1197_vm9, %v5508_v5, %v18154_v33 }
0x45d3   :  { %15873 = vmatpush3.bf16.msra.mxu1 %v18060_v20  ;;  %15300 = vmatprep.mubr.msk.f32.mxu1 %vm19935_vm0, %v16944_v1  ;;  %v5606_v9 = vrot.slane %v18189_v34, 4  ;;  %v5607_v13 = vrot.slane %v18189_v34, 5 }
0x45d4   :  { %15877 = vmatprep.subr.bf16.mxu1 %v16940_v0 }
0x46a5   :  { %v5580_v4 = vpop.f32.mrb[32].mxu1 }
0x46a6   :  { %v5585_v3 = vrot.slane %v5580_v4, 4  ;;  %v5586_v12 = vrot.slane %v5580_v4, 5  ;;  %v15288_v6 = vpop.f32.mrb[33].mxu1 }
0x46a8   :  { %v5589_v10 = vadd.f32 %v5585_v3, %v18088_v54  ;;  %v5590_v55 = vadd.f32 %v5586_v12, %v18091_v58 }
0x46aa   :  { %16557 = vtanh.f32 %v5589_v10  ;;  %v14633_v51 = vmul.f32 -1.442695, %v5589_v10  ;;  %v14634_v28 = vmul.f32 -1.442695, %v5590_v55 }
0x46ab   :  { %16559 = vtanh.f32 %v5590_v55 }
0x46ac   :  { %16561 = vpow2.f32 %v14633_v51 }
0x46ad   :  { %16563 = vpow2.f32 %v14634_v28 }
0x46b4   :  { %v16558_v47 = vpop.eup %16557 }
0x46b5   :  { %v16560_v61 = vpop.eup %16559  ;;  %5618 = vrot.lane.b32.xlu0 %v16558_v47, %s16948_s22 }
0x46b6   :  { %5620 = vrot.lane.b32.xlu1 %v16560_v61, %s16948_s22  ;;  %v16562_v62 = vpop.eup %16561 }
0x46b7   :  { %v16564_v33 = vpop.eup %16563  ;;  %v5597_v63 = vadd.f32 1.0, %v16562_v62 }
0x46b8   :  { %v5598_v31 = vadd.f32 1.0, %v16564_v33 }
0x46b9   :  { %5608 = vrot.lane.b32.xlu0 %v5606_v9, %s16949_s23  ;;  %16565 = vrcp.f32 %v5597_v63 }
0x46ba   :  { %5610 = vrot.lane.b32.xlu1 %v5607_v13, %s16949_s23  ;;  %16567 = vrcp.f32 %v5598_v31 }
0x46c3   :  { %v16566_v7 = vpop.eup %16565 }
0x46c4   :  { %v16568_v30 = vpop.eup %16567 }
0x4727   :  { %v5619_v29 = vpop.permute.xlu0 %5618 }
0x4728   :  { %v5621_v36 = vpop.permute.xlu1 %5620  ;;  %v5624_v59 = vmul.f32 %v16566_v7, %v5619_v29 }
0x4729   :  { %v5625_v52 = vmul.f32 %v16568_v30, %v5621_v36 }
0x472a   :  { %5628 = vrot.lane.b32.xlu0 %v5624_v59, %s16949_s23 }
0x472b   :  { %5630 = vrot.lane.b32.xlu1 %v5625_v52, %s16949_s23  ;;  %v5609_v39 = vpop.permute.xlu0 %5608 }
0x472c   :  { %v5611_v43 = vpop.permute.xlu1 %5610  ;;  %v5614_v57 = vmul.f32 %v16566_v7, %v5609_v39 }
0x472d   :  { %v5615_v41 = vmul.f32 %v16568_v30, %v5611_v43 }
0x479c   :  { %v5629_v50 = vpop.permute.xlu0 %5628 }
0x479d   :  { %v5631_v32 = vpop.permute.xlu1 %5630  ;;  %v5634_v4 = vadd.f32 %v5629_v50, %v5614_v57 }
0x479e   :  { %v5635_v3 = vadd.f32 %v5631_v32, %v5615_v41 }
0x479f   :  { %16569 = vtanh.f32 %v5634_v4  ;;  %v5660_v55 = vrot.slane %v5634_v4, 4 }
0x47a0   :  { %16571 = vtanh.f32 %v5635_v3  ;;  %v5661_v10 = vrot.slane %v5635_v3, 3 }
0x47a2   :  { %v5662_v5 = vsel %vm19954_vm4, %v5661_v10, %v5660_v55  ;;  %vm19956_vm4 = vmmov %vm19942_vm2 }
0x47a9   :  { %v16570_v12 = vpop.eup %16569 }
0x47aa   :  { %v16572_v6 = vpop.eup %16571  ;;  %5640 = vrot.lane.b32.xlu0 %v16570_v12, %s16951_s25 }
0x47ab   :  { %5642 = vrot.lane.b32.xlu1 %v16572_v6, %s16951_s25 }
0x47af   :  { %5663 = vrot.lane.b32.xlu1 %v5662_v5, %s16950_s24 }
0x481c   :  { %v5641_v47 = vpop.permute.xlu0 %5640 }
0x481d   :  { %v5643_v61 = vpop.permute.xlu1 %5642  ;;  %v5646_v9 = vmul.f32 %v16566_v7, %v5641_v47 }
0x481e   :  { %v5647_v13 = vmul.f32 %v16568_v30, %v5643_v61 }
0x481f   :  { %v5650_v51 = vrot.slane %v5646_v9, 4 }
0x4820   :  { %v5651_v28 = vrot.slane %v5647_v13, 3 }
0x4822   :  { %v5652_v62 = vsel %vm19942_vm2, %v5651_v28, %v5650_v51 }
0x4823   :  { %5653 = vrot.lane.b32.xlu0 %v5652_v62, %s16952_s26 }
0x4895   :  { %v18205_v33 = vpop.permute.xlu0 %5653 }
0x4896   :  { %v18211_v63 = vsel %vm1037_vm8, %v18205_v33, %v18176_v19  ;;  %v5664_v19 = vpop.permute.xlu1 %5663 }
0x4897   :  { %15294 = vmatmul.mubr.msk.f32.vlgmr.msra.gmra.mrb[30].mxu0 %vm190_vm1, %v18211_v63  ;;  %v18223_v39 = vsel %vm1037_vm8, %v5664_v19, %v18189_v34 }
0x4898   :  { %15876 = vmatpush3.bf16.msra.mxu0 %v18060_v20  ;;  %15307 = vmatprep.mubr.msk.f32.mxu0 %vm19935_vm0, %v16944_v1  ;;  %v5762_v57 = vrot.slane %v18223_v39, 5  ;;  %v5763_v41 = vrot.slane %v18223_v39, 6 }
0x496a   :  { %v5736_v31 = vpop.f32.mrb[30].mxu0 }
0x496b   :  { %v5741_v7 = vrot.slane %v5736_v31, 5  ;;  %v5742_v29 = vrot.slane %v5736_v31, 6  ;;  %v15295_v30 = vpop.f32.mrb[31].mxu0 }
0x496d   :  { %v5745_v36 = vadd.f32 %v5741_v7, %v18088_v54  ;;  %v5746_v59 = vadd.f32 %v5742_v29, %v18091_v58 }
0x496f   :  { %16573 = vtanh.f32 %v5745_v36  ;;  %v14636_v50 = vmul.f32 -1.442695, %v5745_v36  ;;  %v14637_v32 = vmul.f32 -1.442695, %v5746_v59 }
0x4970   :  { %16575 = vtanh.f32 %v5746_v59 }
0x4971   :  { %16577 = vpow2.f32 %v14636_v50 }
0x4972   :  { %16579 = vpow2.f32 %v14637_v32 }
0x4979   :  { %v16574_v52 = vpop.eup %16573 }
0x497a   :  { %v16576_v43 = vpop.eup %16575  ;;  %5774 = vrot.lane.b32.xlu0 %v16574_v52, %s16948_s22 }
0x497b   :  { %5776 = vrot.lane.b32.xlu1 %v16576_v43, %s16948_s22  ;;  %v16578_v4 = vpop.eup %16577 }
0x497c   :  { %v16580_v34 = vpop.eup %16579  ;;  %v5753_v3 = vadd.f32 1.0, %v16578_v4 }
0x497d   :  { %v5754_v12 = vadd.f32 1.0, %v16580_v34 }
0x497e   :  { %5764 = vrot.lane.b32.xlu0 %v5762_v57, %s16949_s23  ;;  %16581 = vrcp.f32 %v5753_v3 }
0x497f   :  { %5766 = vrot.lane.b32.xlu1 %v5763_v41, %s16949_s23  ;;  %16583 = vrcp.f32 %v5754_v12 }
0x4988   :  { %v16582_v6 = vpop.eup %16581 }
0x4989   :  { %v16584_v55 = vpop.eup %16583 }
0x49ec   :  { %v5775_v10 = vpop.permute.xlu0 %5774 }
0x49ed   :  { %v5777_v5 = vpop.permute.xlu1 %5776  ;;  %v5780_v47 = vmul.f32 %v16582_v6, %v5775_v10 }
0x49ee   :  { %v5781_v61 = vmul.f32 %v16584_v55, %v5777_v5 }
0x49ef   :  { %5784 = vrot.lane.b32.xlu0 %v5780_v47, %s16949_s23 }
0x49f0   :  { %5786 = vrot.lane.b32.xlu1 %v5781_v61, %s16949_s23  ;;  %v5765_v9 = vpop.permute.xlu0 %5764 }
0x49f1   :  { %v5767_v13 = vpop.permute.xlu1 %5766  ;;  %v5770_v51 = vmul.f32 %v16582_v6, %v5765_v9 }
0x49f2   :  { %v5771_v28 = vmul.f32 %v16584_v55, %v5767_v13 }
0x4a61   :  { %v5785_v62 = vpop.permute.xlu0 %5784 }
0x4a62   :  { %v5787_v31 = vpop.permute.xlu1 %5786  ;;  %v5790_v7 = vadd.f32 %v5785_v62, %v5770_v51 }
0x4a63   :  { %v5791_v29 = vadd.f32 %v5787_v31, %v5771_v28 }
0x4a64   :  { %16585 = vtanh.f32 %v5790_v7  ;;  %v5816_v19 = vrot.slane %v5790_v7, 3 }
0x4a65   :  { %16587 = vtanh.f32 %v5791_v29  ;;  %v5817_v59 = vrot.slane %v5791_v29, 2 }
0x4a67   :  { %v5818_v52 = vsel %vm19955_vm3, %v5817_v59, %v5816_v19  ;;  %vm19957_vm3 = vmmov %vm19942_vm2 }
0x4a6e   :  { %v16586_v30 = vpop.eup %16585 }
0x4a6f   :  { %v16588_v36 = vpop.eup %16587  ;;  %5796 = vrot.lane.b32.xlu0 %v16586_v30, %s16951_s25 }
0x4a70   :  { %5798 = vrot.lane.b32.xlu1 %v16588_v36, %s16951_s25 }
0x4a74   :  { %5819 = vrot.lane.b32.xlu1 %v5818_v52, %s16950_s24 }
0x4ae1   :  { %v5797_v43 = vpop.permute.xlu0 %5796 }
0x4ae2   :  { %v5799_v57 = vpop.permute.xlu1 %5798  ;;  %v5802_v41 = vmul.f32 %v16582_v6, %v5797_v43 }
0x4ae3   :  { %v5803_v50 = vmul.f32 %v16584_v55, %v5799_v57 }
0x4ae4   :  { %v5806_v32 = vrot.slane %v5802_v41, 3 }
0x4ae5   :  { %v5807_v4 = vrot.slane %v5803_v50, 2 }
0x4ae7   :  { %v5808_v34 = vsel %vm19956_vm4, %v5807_v4, %v5806_v32  ;;  %vm19958_vm4 = vmmov %vm19942_vm2 }
0x4ae8   :  { %5809 = vrot.lane.b32.xlu0 %v5808_v34, %s16952_s26 }
0x4b5a   :  { %v18239_v3 = vpop.permute.xlu0 %5809 }
0x4b5b   :  { %v18245_v12 = vsel %vm877_vm7, %v18239_v3, %v18211_v63  ;;  %v5820_v63 = vpop.permute.xlu1 %5819 }
0x4b5c   :  { %15301 = vmatmul.mubr.msk.f32.vlgmr.msra.gmra.mrb[34].mxu1 %vm190_vm1, %v18245_v12  ;;  %v18257_v13 = vsel %vm877_vm7, %v5820_v63, %v18223_v39 }
0x4b5d   :  { %15879 = vmatpush3.bf16.msra.mxu1 %v18060_v20  ;;  %15314 = vmatprep.mubr.msk.f32.mxu1 %vm19935_vm0, %v16944_v1  ;;  %v5918_v51 = vrot.slane %v18257_v13, 6  ;;  %v5919_v28 = vrot.slane %v18257_v13, 7 }
0x4c2f   :  { %v5892_v6 = vpop.f32.mrb[34].mxu1 }
0x4c30   :  { %v5897_v10 = vrot.slane %v5892_v6, 6  ;;  %v5898_v55 = vrot.slane %v5892_v6, 7  ;;  %v15302_v5 = vpop.f32.mrb[35].mxu1 }
0x4c32   :  { %v5901_v47 = vadd.f32 %v5897_v10, %v18088_v54  ;;  %v5902_v61 = vadd.f32 %v5898_v55, %v18091_v58 }
0x4c34   :  { %16589 = vtanh.f32 %v5901_v47  ;;  %v14639_v62 = vmul.f32 -1.442695, %v5901_v47  ;;  %v14640_v31 = vmul.f32 -1.442695, %v5902_v61 }
0x4c35   :  { %16591 = vtanh.f32 %v5902_v61 }
0x4c36   :  { %16593 = vpow2.f32 %v14639_v62 }
0x4c37   :  { %16595 = vpow2.f32 %v14640_v31 }
0x4c3e   :  { %v16590_v9 = vpop.eup %16589 }
0x4c3f   :  { %v16592_v20 = vpop.eup %16591  ;;  %5930 = vrot.lane.b32.xlu0 %v16590_v9, %s16948_s22 }
0x4c40   :  { %5932 = vrot.lane.b32.xlu1 %v16592_v20, %s16948_s22  ;;  %v16594_v7 = vpop.eup %16593 }
0x4c41   :  { %v16596_v39 = vpop.eup %16595  ;;  %v5909_v29 = vadd.f32 1.0, %v16594_v7 }
0x4c42   :  { %v5910_v30 = vadd.f32 1.0, %v16596_v39 }
0x4c43   :  { %5920 = vrot.lane.b32.xlu0 %v5918_v51, %s16949_s23  ;;  %16597 = vrcp.f32 %v5909_v29 }
0x4c44   :  { %5922 = vrot.lane.b32.xlu1 %v5919_v28, %s16949_s23  ;;  %16599 = vrcp.f32 %v5910_v30 }
0x4c4d   :  { %v16598_v36 = vpop.eup %16597 }
0x4c4e   :  { %v16600_v19 = vpop.eup %16599 }
0x4cb1   :  { %v5931_v59 = vpop.permute.xlu0 %5930 }
0x4cb2   :  { %v5933_v52 = vpop.permute.xlu1 %5932  ;;  %v5936_v43 = vmul.f32 %v16598_v36, %v5931_v59 }
0x4cb3   :  { %v5937_v57 = vmul.f32 %v16600_v19, %v5933_v52 }
0x4cb4   :  { %5940 = vrot.lane.b32.xlu0 %v5936_v43, %s16949_s23 }
0x4cb5   :  { %5942 = vrot.lane.b32.xlu1 %v5937_v57, %s16949_s23  ;;  %v5921_v41 = vpop.permute.xlu0 %5920 }
0x4cb6   :  { %v5923_v50 = vpop.permute.xlu1 %5922  ;;  %v5926_v32 = vmul.f32 %v16598_v36, %v5921_v41 }
0x4cb7   :  { %v5927_v4 = vmul.f32 %v16600_v19, %v5923_v50 }
0x4d26   :  { %v5941_v34 = vpop.permute.xlu0 %5940 }
0x4d27   :  { %v5943_v6 = vpop.permute.xlu1 %5942  ;;  %v5946_v10 = vadd.f32 %v5941_v34, %v5926_v32 }
0x4d28   :  { %v5947_v55 = vadd.f32 %v5943_v6, %v5927_v4 }
0x4d29   :  { %16601 = vtanh.f32 %v5946_v10  ;;  %v5972_v63 = vrot.slane %v5946_v10, 2 }
0x4d2a   :  { %16603 = vtanh.f32 %v5947_v55  ;;  %v5973_v61 = vrot.slane %v5947_v55, 1 }
0x4d2c   :  { %v5974_v9 = vsel %vm19942_vm2, %v5973_v61, %v5972_v63 }
0x4d33   :  { %v16602_v5 = vpop.eup %16601 }
0x4d34   :  { %v16604_v47 = vpop.eup %16603  ;;  %5952 = vrot.lane.b32.xlu0 %v16602_v5, %s16951_s25 }
0x4d35   :  { %5954 = vrot.lane.b32.xlu1 %v16604_v47, %s16951_s25 }
0x4d39   :  { %5975 = vrot.lane.b32.xlu1 %v5974_v9, %s16950_s24 }
0x4da6   :  { %v5953_v20 = vpop.permute.xlu0 %5952 }
0x4da7   :  { %v5955_v51 = vpop.permute.xlu1 %5954  ;;  %v5958_v28 = vmul.f32 %v16598_v36, %v5953_v20 }
0x4da8   :  { %v5959_v62 = vmul.f32 %v16600_v19, %v5955_v51 }
0x4da9   :  { %v5962_v31 = vrot.slane %v5958_v28, 2 }
0x4daa   :  { %v5963_v7 = vrot.slane %v5959_v62, 1 }
0x4dab   :  { %v5976_v41 = vpop.permute.xlu1 %5975 }
0x4dac   :  { %v5964_v39 = vsel %vm19957_vm3, %v5963_v7, %v5962_v31  ;;  %vm19959_vm3 = vmmov %vm19942_vm2 }
0x4dad   :  { %5965 = vrot.lane.b32.xlu0 %v5964_v39, %s16952_s26 }
0x4e1f   :  { %v18273_v29 = vpop.permute.xlu0 %5965 }
0x4e20   :  { %v5969_v30 = vsel %vm717_vm6, %v18273_v29, %v18245_v12  ;;  %v18286_v12 = vsel %vm717_vm6, %v5976_v41, %v18257_v13 }
0x4e21   :  { %15308 = vmatmul.mubr.msk.f32.vlgmr.msra.gmra.mrb[32].mxu0 %vm190_vm1, %v5969_v30  ;;  %v6073_v32 = vrot.slane %v18286_v12, 7 }
0x4ef4   :  { %v6048_v59 = vpop.f32.mrb[32].mxu0 }
0x4ef5   :  { %v6053_v52 = vrot.slane %v6048_v59, 7  ;;  %v6057_v36 = vadd.f32 %v6048_v59, %v18091_v58  ;;  %v15309_v19 = vpop.f32.mrb[33].mxu0 }
0x4ef7   :  { %v6056_v43 = vadd.f32 %v6053_v52, %v18088_v54  ;;  %16605 = vtanh.f32 %v6057_v36  ;;  %v14643_v4 = vmul.f32 -1.442695, %v6057_v36 }
0x4ef9   :  { %16607 = vtanh.f32 %v6056_v43  ;;  %v14642_v34 = vmul.f32 -1.442695, %v6056_v43 }
0x4efa   :  { %16609 = vpow2.f32 %v14643_v4 }
0x4efb   :  { %16611 = vpow2.f32 %v14642_v34 }
0x4f01   :  { %v16606_v57 = vpop.eup %16605 }
0x4f02   :  { %6086 = vrot.lane.b32.xlu1 %v16606_v57, %s16948_s22 }
0x4f03   :  { %v16608_v50 = vpop.eup %16607 }
0x4f04   :  { %6084 = vrot.lane.b32.xlu0 %v16608_v50, %s16948_s22  ;;  %v16610_v6 = vpop.eup %16609 }
0x4f05   :  { %v16612_v10 = vpop.eup %16611  ;;  %v6065_v55 = vadd.f32 1.0, %v16610_v6 }
0x4f06   :  { %6076 = vrot.lane.b32.xlu1 %v18286_v12, %s16949_s23  ;;  %v6064_v5 = vadd.f32 1.0, %v16612_v10 }
0x4f07   :  { %16613 = vrcp.f32 %v6065_v55 }
0x4f08   :  { %6074 = vrot.lane.b32.xlu0 %v6073_v32, %s16949_s23  ;;  %16615 = vrcp.f32 %v6064_v5 }
0x4f11   :  { %v16614_v13 = vpop.eup %16613 }
0x4f12   :  { %v16616_v63 = vpop.eup %16615 }
0x4f74   :  { %v6087_v47 = vpop.permute.xlu1 %6086 }
0x4f75   :  { %v6091_v61 = vmul.f32 %v16614_v13, %v6087_v47 }
0x4f76   :  { %v6085_v9 = vpop.permute.xlu0 %6084 }
0x4f77   :  { %6096 = vrot.lane.b32.xlu1 %v6091_v61, %s16949_s23  ;;  %v6090_v20 = vmul.f32 %v16616_v63, %v6085_v9 }
0x4f78   :  { %v6077_v51 = vpop.permute.xlu1 %6076 }
0x4f79   :  { %6094 = vrot.lane.b32.xlu0 %v6090_v20, %s16949_s23  ;;  %v6081_v28 = vmul.f32 %v16614_v13, %v6077_v51 }
0x4f7a   :  { %v6075_v62 = vpop.permute.xlu0 %6074 }
0x4f7b   :  { %v6080_v39 = vmul.f32 %v16616_v63, %v6075_v62 }
0x4fe9   :  { %v6097_v31 = vpop.permute.xlu1 %6096 }
0x4fea   :  { %v6101_v7 = vadd.f32 %v6097_v31, %v6081_v28 }
0x4feb   :  { %v6095_v59 = vpop.permute.xlu0 %6094 }
0x4fec   :  { %16617 = vtanh.f32 %v6101_v7  ;;  %v6100_v52 = vadd.f32 %v6095_v59, %v6080_v39 }
0x4fee   :  { %16619 = vtanh.f32 %v6100_v52  ;;  %v6125_v19 = vrot.slane %v6100_v52, 1 }
0x4ff0   :  { %v6126_v57 = vsel %vm19958_vm4, %v6101_v7, %v6125_v19  ;;  %vm6814_vm4 = vcmask 64512  }
0x4ff6   :  { %v16618_v36 = vpop.eup %16617 }
0x4ff7   :  { %6108 = vrot.lane.b32.xlu1 %v16618_v36, %s16951_s25 }
0x4ff8   :  { %v16620_v43 = vpop.eup %16619 }
0x4ff9   :  { %6106 = vrot.lane.b32.xlu0 %v16620_v43, %s16951_s25 }
0x4ffb   :  { %6127 = vrot.lane.b32.xlu1 %v6126_v57, %s16950_s24 }
0x5069   :  { %v6109_v41 = vpop.permute.xlu1 %6108 }
0x506a   :  { %v6113_v4 = vmul.f32 %v16614_v13, %v6109_v41 }
0x506b   :  { %v6107_v50 = vpop.permute.xlu0 %6106 }
0x506c   :  { %v6112_v32 = vmul.f32 %v16616_v63, %v6107_v50  ;;  %v4627_v63 = vrot.slane %v18085_v11, 1 }
0x506d   :  { %v6128_v51 = vpop.permute.xlu1 %6127 }
0x506e   :  { %v6116_v34 = vrot.slane %v6112_v32, 1  ;;  %v4631_v28 = vadd.f32 %v4627_v63, %v17830_v25  ;;  %v6130_v62 = vsel %vm559_vm5, %v6128_v51, %v18286_v12 }
0x5070   :  { %v6117_v6 = vsel %vm19942_vm2, %v6113_v4, %v6116_v34  ;;  %v14619_v12 = vmul.f32 -1.442695, %v4631_v28  ;;  %vm19960_vm2 = vcmp.eq.s32.totalorder %v17068_v56, 1 }
0x5071   :  { %6118 = vrot.lane.b32.xlu0 %v6117_v6, %s16952_s26 }
0x50e3   :  { %v18301_v10 = vpop.permute.xlu0 %6118 }
0x50e4   :  { %v6122_v55 = vsel %vm559_vm5, %v18301_v10, %v5969_v30 }
0x50e5   :  { %15315 = vmatmul.mubr.msk.f32.vlgmr.msra.gmra.mrb[36].mxu1 %vm190_vm1, %v6122_v55 }
0x51b8   :  { %v6200_v5 = vpop.f32.mrb[36].mxu1 }
0x51b9   :  { %v6205_v47 = vrot.slane %v6200_v5, 1  ;;  %v6208_v61 = vadd.f32 %v6200_v5, %v18088_v54  ;;  %v15316_v9 = vpop.f32.mrb[37].mxu1  ;;  %v6225_v54 = vrot.slane %v6130_v62, 1 }
0x51bb   :  { %v6209_v13 = vadd.f32 %v6205_v47, %v18091_v58  ;;  %16621 = vtanh.f32 %v6208_v61  ;;  %v14645_v25 = vmul.f32 -1.442695, %v6208_v61 }
0x51bd   :  { %16623 = vtanh.f32 %v6209_v13  ;;  %v14646_v31 = vmul.f32 -1.442695, %v6209_v13 }
0x51be   :  { %16625 = vtanh.f32 %v4631_v28 }
0x51bf   :  { %16627 = vpow2.f32 %v14645_v25 }
0x51c0   :  { %16629 = vpow2.f32 %v14646_v31 }
0x51c1   :  { %16631 = vpow2.f32 %v14619_v12 }
0x51c5   :  { %v16622_v20 = vpop.eup %16621 }
0x51c6   :  { %6236 = vrot.lane.b32.xlu1 %v16622_v20, %s16948_s22 }
0x51c7   :  { %v16624_v30 = vpop.eup %16623 }
0x51c8   :  { %6238 = vrot.lane.b32.xlu0 %v16624_v30, %s16948_s22  ;;  %v16626_v58 = vpop.eup %16625 }
0x51c9   :  { %v16628_v7 = vpop.eup %16627 }
0x51ca   :  { %4549 = vrot.lane.b32.xlu1 %v18053_v23, %s16950_s24  ;;  %v16630_v39 = vpop.eup %16629  ;;  %v6216_v59 = vadd.f32 1.0, %v16628_v7  ;;  %v4628_v23 = vrot.slane %v18085_v11, 2 }
0x51cb   :  { %v6217_v52 = vadd.f32 1.0, %v16630_v39  ;;  %v16632_v19 = vpop.eup %16631 }
0x51cc   :  { %6228 = vrot.lane.b32.xlu0 %v6225_v54, %s16949_s23  ;;  %16633 = vrcp.f32 %v6216_v59  ;;  %v4632_v36 = vadd.f32 %v4628_v23, %v17828_v22  ;;  %v4639_v41 = vadd.f32 1.0, %v16632_v19 }
0x51cd   :  { %16635 = vrcp.f32 %v6217_v52 }
0x51ce   :  { %16637 = vtanh.f32 %v4632_v36 }
0x51cf   :  { %16639 = vrcp.f32 %v4639_v41 }
0x51d0   :  { %6226 = vrot.lane.b32.xlu0 %v6130_v62, %s16949_s23 }
0x51d4   :  { %4660 = vrot.lane.b32.xlu0 %v16626_v58, %s16948_s22 }
0x51d6   :  { %v16634_v43 = vpop.eup %16633 }
0x51d7   :  { %v16636_v32 = vpop.eup %16635 }
0x51d8   :  { %v16638_v5 = vpop.eup %16637 }
0x51d9   :  { %v18331_v9 = vpop.eup %16639 }
0x5238   :  { %v6237_v57 = vpop.permute.xlu1 %6236 }
0x5239   :  { %v6242_v50 = vmul.f32 %v16634_v43, %v6237_v57 }
0x523a   :  { %v6239_v4 = vpop.permute.xlu0 %6238 }
0x523b   :  { %6246 = vrot.lane.b32.xlu0 %v6242_v50, %s16949_s23  ;;  %v6243_v34 = vmul.f32 %v16636_v32, %v6239_v4 }
0x523c   :  { %v4550_v6 = vpop.permute.xlu1 %4549 }
0x523d   :  { %v4552_v11 = vsel %vm1357_vm10, %v4550_v6, %v18042_v44  ;;  %6248 = vrot.lane.b32.xlu1 %v6243_v34, %s16949_s23  ;;  %v14620_v44 = vmul.f32 -1.442695, %v4632_v36 }
0x523e   :  { %v4649_v55 = vrot.slane %v4552_v11, 2  ;;  %v6229_v22 = vpop.permute.xlu0 %6228  ;;  %v4648_v61 = vrot.slane %v4552_v11, 1 }
0x523f   :  { %16641 = vpow2.f32 %v14620_v44  ;;  %v6233_v54 = vmul.f32 %v16636_v32, %v6229_v22 }
0x5240   :  { %4652 = vrot.lane.b32.xlu0 %v4649_v55, %s16949_s23 }
0x5241   :  { %4662 = vrot.lane.b32.xlu1 %v16638_v5, %s16948_s22 }
0x5242   :  { %v6227_v47 = vpop.permute.xlu0 %6226 }
0x5243   :  { %v6232_v28 = vmul.f32 %v16634_v43, %v6227_v47 }
0x5245   :  { %4650 = vrot.lane.b32.xlu1 %v4648_v61, %s16949_s23 }
0x5246   :  { %v4661_v13 = vpop.permute.xlu0 %4660 }
0x5247   :  { %v4666_v63 = vmul.f32 %v18331_v9, %v4661_v13  ;;  %v6645_v13 = vld [vmem:[%s14517_s10] sm:$0x1f] }
0x5248   :  { %v6664_v44 = vcombine.high %v6645_v13, %v6645_v13 }
0x5249   :  { %4670 = vrot.lane.b32.xlu1 %v4666_v63, %s16949_s23  ;;  %v16642_v20 = vpop.eup %16641  ;;  %v6646_v63 = vld [vmem:[%s14517_s10 + $0x8] sm:$0x1f]  ;;  %s16976_s10 = smov 25  }
0x524a   :  { %v4640_v51 = vadd.f32 1.0, %v16642_v20  ;;  %v6671_v20 = vrot.slane %v6645_v13, %v17606_v17  ;;  %v6553_v13 = vld [vmem:[%s18368_s14] sm:$0xff]  ;;  %s14526_s13 = sld [smem:[%s19928_s0 + %s16976_s10]]  }
0x524c   :  { %16643 = vrcp.f32 %v4640_v51  ;;  %v6678_v51 = vrot.slane %v6664_v44, %v17606_v17 }
0x5256   :  { %v18335_v31 = vpop.eup %16643 }
0x52ad   :  { %v6247_v30 = vpop.permute.xlu0 %6246 }
0x52ae   :  { %v6252_v62 = vadd.f32 %v6247_v30, %v6232_v28  ;;  %v6679_v28 = vcombine.high %v6671_v20, %v6671_v20 }
0x52af   :  { %v6249_v58 = vpop.permute.xlu1 %6248 }
0x52b0   :  { %16645 = vtanh.f32 %v6252_v62  ;;  %v6253_v25 = vadd.f32 %v6249_v58, %v6233_v54  ;;  %v6686_v54 = vrot.slane %v6671_v20, %v17606_v17  ;;  %v6693_v58 = vrot.slane %v6678_v51, %v17606_v17 }
0x52b2   :  { %16647 = vtanh.f32 %v6253_v25  ;;  %v4653_v41 = vpop.permute.xlu0 %4652  ;;  %v6700_v25 = vrot.slane %v6679_v28, %v17606_v17 }
0x52b3   :  { %v4663_v7 = vpop.permute.xlu1 %4662  ;;  %v4657_v50 = vmul.f32 %v18335_v31, %v4653_v41 }
0x52b4   :  { %v4667_v12 = vmul.f32 %v18335_v31, %v4663_v7 }
0x52b6   :  { %4672 = vrot.lane.b32.xlu0 %v4667_v12, %s16949_s23 }
0x52b7   :  { %v4651_v39 = vpop.permute.xlu1 %4650 }
0x52b8   :  { %v4656_v52 = vmul.f32 %v18331_v9, %v4651_v39 }
0x52ba   :  { %v16646_v59 = vpop.eup %16645 }
0x52bb   :  { %6258 = vrot.lane.b32.xlu0 %v16646_v59, %s16951_s25  ;;  %v4671_v23 = vpop.permute.xlu1 %4670  ;;  %v5344_v59 = vsel %vm1357_vm10, %v18135_v15, 0.0 }
0x52bc   :  { %v16648_v36 = vpop.eup %16647  ;;  %v4676_v19 = vadd.f32 %v4671_v23, %v4656_v52  ;;  %v6750_v52 = vcombine.low %v6686_v54, %v6700_v25  ;;  %v14651_v23 = vcombine.high %v6686_v54, %v6700_v25 }
0x52bd   :  { %6260 = vrot.lane.b32.xlu1 %v16648_v36, %s16951_s25 }
0x52be   :  { %16649 = vtanh.f32 %v4676_v19  ;;  %v5500_v19 = vsel %vm1197_vm9, %v18170_v48, 0.0  ;;  %v6760_v15 = vrot.slane %v6750_v52, %v17606_v17  ;;  %v6767_v48 = vrot.slane %v14651_v23, %v17606_v17 }
0x52c8   :  { %v16650_v57 = vpop.eup %16649 }
0x52c9   :  { %4682 = vrot.lane.b32.xlu1 %v16650_v57, %s16951_s25  ;;  %v5812_v57 = vsel %vm877_vm7, %v18239_v3, 0.0 }
0x5328   :  { %v4673_v4 = vpop.permute.xlu0 %4672 }
0x5329   :  { %v4677_v34 = vadd.f32 %v4673_v4, %v4657_v50  ;;  %v6121_v4 = vsel %vm559_vm5, %v18301_v10, 0.0 }
0x532b   :  { %16651 = vtanh.f32 %v4677_v34  ;;  %v5968_v34 = vsel %vm717_vm6, %v18273_v29, 0.0  ;;  %v5656_v29 = vsel %vm1037_vm8, %v18205_v33, 0.0 }
0x532c   :  { %v6329_v51 = vrot.slane %v5968_v34, %v17606_v17 }
0x532d   :  { %v6259_v6 = vpop.permute.xlu0 %6258 }
0x532e   :  { %v6264_v22 = vmul.f32 %v16634_v43, %v6259_v6  ;;  %v6710_v43 = vrot.slane %v6646_v63, %v17606_v17 }
0x532f   :  { %v6261_v11 = vpop.permute.xlu1 %6260 }
0x5330   :  { %v6265_v55 = vmul.f32 %v16636_v32, %v6261_v11  ;;  %v18355_v32 = vrot.slane %v18107_v24, %v17606_v17  ;;  %v6718_v30 = vcombine.high %v6710_v43, %v6710_v43  ;;  %v6725_v62 = vrot.slane %v6710_v43, %v17606_v17 }
0x5331   :  { %v6703_v24 = vcombine.high %v6646_v63, %v6646_v63  ;;  %v6554_v63 = vld [vmem:[%s18368_s14 + $0x8] sm:$0xff]  ;;  %v6352_v43 = vrot.slane %v5812_v57, %v17606_v17 }
0x5332   :  { %v6268_v5 = vrot.slane %v6265_v55, 7  ;;  %v6739_v7 = vrot.slane %v6718_v30, %v17606_v17  ;;  %v6444_v12 = vcombine.high %v18355_v32, %v18355_v32  ;;  %v6740_v39 = vcombine.high %v6725_v62, %v6725_v62 }
0x5333   :  { %v6752_v36 = vcombine.low %v6693_v58, %v6725_v62  ;;  %v6717_v50 = vrot.slane %v6703_v24, %v17606_v17  ;;  %v18402_v55 = vrot.slane %v5344_v59, %v17606_v17  ;;  %v15880_v28 = vpack.c.bf16 %v6554_v63, %v6553_v13  ;;  %v6742_v59 = vld [vmem:[%s18386_s18] sm:$0xff]  ;;  %s16978_s18 = smov 17  }
0x5334   :  { %v6269_v47 = vsel %vm19959_vm3, %v6268_v5, %v6264_v22  ;;  %v6753_v41 = vcombine.low %v6739_v7, %v6740_v39  ;;  %v6741_v11 = vcombine.high %v6739_v7, %v6739_v7  ;;  %v18405_v22 = vrot.slane %v5500_v19, %v17606_v17  ;;  %15328 = vmatprep.subr.mxu1 %v6742_v59  ;;  %v6556_v19 = vld [vmem:[%s18368_s14 + $0x18] sm:$0xff]  ;;  %s14518_s21 = sld [smem:[%s19928_s0 + %s16978_s18]]  }
0x5335   :  { %v16652_v61 = vpop.eup %16651  ;;  %6270 = vrot.lane.b32.xlu1 %v6269_v47, %s16952_s26  ;;  %v6774_v3 = vrot.slane %v6752_v36, %v17606_v17  ;;  %v6732_v6 = vrot.slane %v6717_v50, %v17606_v17  ;;  %v6782_v5 = vcombine.low %v6760_v15, %v6767_v48  ;;  %v6451_v47 = vrot.slane %v18355_v32, %v17606_v17  ;;  %v6555_v36 = vld [vmem:[%s18368_s14 + $0x10] sm:$0xff]  ;;  %s16977_s14 = smov 27   ;;  %s14538_s18 = sld [smem:[%s19928_s0 + %s16990_s15]]  }
0x5336   :  { %4684 = vrot.lane.b32.xlu0 %v16652_v61, %s16951_s25  ;;  %v6781_v10 = vrot.slane %v6753_v41, %v17606_v17  ;;  %v6306_v61 = vrot.slane %v6121_v4, %v17606_v17  ;;  %v18419_v33 = vrot.slane %v6444_v12, %v17606_v17  ;;  %v18422_v62 = vrot.slane %v5656_v29, %v17606_v17  ;;  %v6653_v41 = vld [vmem:[%s18399_s27] sm:$0xff]  ;;  %s18678_s17 = sld [smem:[%s19928_s0 + %s16977_s14]]  }
0x5337   :  { %v6799_v20 = vcombine.low %v6741_v11, %v6732_v6  ;;  %v6790_v30 = vrot.slane %v6782_v5, %v17606_v17  ;;  %v6422_v7 = vcombine.high %v18402_v55, %v18402_v55  ;;  %v6429_v24 = vrot.slane %v18402_v55, %v17606_v17  ;;  %15881 = vmatprep.subr.bf16.mxu0 %v15880_v28  ;;  %s14539_s14 = sld [smem:[%s19928_s0 + %s16989_s11]]  }
0x5338   :  { %v6783_v44 = vcombine.low %v6774_v3, %v6781_v10  ;;  %v6399_v12 = vcombine.high %v18405_v22, %v18405_v22  ;;  %v6406_v39 = vrot.slane %v18405_v22, %v17606_v17  ;;  %v6307_v52 = vcombine.high %v6306_v61, %v6306_v61  ;;  %15883 = vmatpush3.bf16.msra.mxu0 %v15880_v28  ;;  %v6654_v3 = vld [vmem:[%s18399_s27 + $0x8] sm:$0xff]  ;;  %s16979_s27 = smov 18   ;;  %s19579_s11 = sld [smem:[%s19928_s0 + %s16951_s25]]  }
0x5339   :  { %v6806_v25 = vrot.slane %v6799_v20, %v17606_v17  ;;  %v6353_v50 = vcombine.high %v6352_v43, %v6352_v43  ;;  %v6330_v4 = vcombine.high %v6329_v51, %v6329_v51  ;;  %v6314_v15 = vrot.slane %v6306_v61, %v17606_v17  ;;  %15329 = vmatpush3.msra.mxu1 %v6742_v59  ;;  %s18709_s30 = sld [smem:[%s19928_s0 + %s16979_s27]]  }
0x533a   :  { %v6797_v58 = vrot.slane %v6783_v44, %v17606_v17  ;;  %v15884_v48 = vpack.c.bf16 %v6556_v19, %v6555_v36  ;;  %v6376_v34 = vcombine.high %v18422_v62, %v18422_v62  ;;  %15888 = vmatprep.subr.bf16.mxu1 %v16940_v0  ;;  %v18446_v11 = vpack.c.bf16 %v6654_v3, %v6653_v41  ;;  %s19365_s27 = sld [smem:[%s19928_s0 + %s16991_s19]]  }
0x533b   :  { %v4683_v54 = vpop.permute.xlu1 %4682  ;;  %v6813_v57 = vrot.slane %v6806_v25, %v17606_v17  ;;  %v6383_v22 = vrot.slane %v18422_v62, %v17606_v17  ;;  %v6360_v29 = vrot.slane %v6352_v43, %v17606_v17  ;;  %v6337_v5 = vrot.slane %v6329_v51, %v17606_v17 }
0x533c   :  { %v6798_v23 = vcombine.low %v6790_v30, %v6797_v58  ;;  %v4688_v10 = vmul.f32 %v18331_v9, %v4683_v54  ;;  %15885 = vmatprep.subr.bf16.mxu0 %v15884_v48  ;;  %v6321_v9 = vrot.slane %v6307_v52, %v17606_v17  ;;  %v6367_v20 = vrot.slane %v6353_v50, %v17606_v17 }
0x533d   :  { %15887 = vmatpush3.bf16.msra.mxu0 %v15884_v48  ;;  %v6344_v43 = vrot.slane %v6330_v4, %v17606_v17  ;;  %v6462_v56 = vrot.slane %v6314_v15, %v17650_v21  ;;  %v6390_v54 = vrot.slane %v6376_v34, %v17606_v17  ;;  %v6482_v58 = vrot.slane %v6360_v29, %v17650_v21 }
0x533e   :  { %15330 = vmatprep.mubr.msk.f32.mxu1 %vm6814_vm4, %v6798_v23  ;;  %15891 = vmatprep.subr.bf16.mxu0 %v16940_v0  ;;  %v4692_v51 = vrot.slane %v4688_v10, 7  ;;  %v6472_v25 = vrot.slane %v6337_v5, %v17650_v21  ;;  %v6466_v59 = vrot.slane %v6321_v9, %v17650_v21  ;;  %vm19961_vm3 = vcmask 1040384  }
0x533f   :  { %15331 = vmatmul.mubr.msk.f32.vlgmr.msra.gmra.mrb[38].mxu1 %vm6814_vm4, %v6813_v57  ;;  %vm19962_vm4 = vcmask 1041409   ;;  %v6492_v19 = vrot.slane %v6383_v22, %v17650_v21  ;;  %v6476_v57 = vrot.slane %v6344_v43, %v17650_v21  ;;  %v6502_v50 = vrot.slane %v6406_v39, %v17650_v21 }
0x5340   :  { %15890 = vmatpush3.bf16.msra.mxu1 %v18446_v11  ;;  %15337 = vmatprep.mubr.msk.f32.mxu1 %vm19935_vm0, %v16944_v1  ;;  %v6486_v4 = vrot.slane %v6367_v20, %v17650_v21  ;;  %v6496_v3 = vrot.slane %v6390_v54, %v17650_v21  ;;  %v6522_v39 = vrot.slane %v6451_v47, %v17650_v21  ;;  %v4074_v20 = vsel %vm877_vm7, %v17944_v27, 0.0 }
0x5341   :  { %15894 = vmatprep.subr.bf16.mxu1 %v16940_v0  ;;  %v4230_v43 = vsel %vm1037_vm8, %v17978_v35, 0.0  ;;  %v4705_v27 = vrot.slane %v17846_v16, %v17606_v17 }
0x5342   :  { %v4799_v40 = vrot.slane %v4230_v43, %v17606_v17 }
0x5343   :  { %15338 = vmatmul.mubr.f32.vlgmr.msra.gmra.mrb[40].mxu1 %v16944_v1  ;;  %v4706_v45 = vcombine.high %v4705_v27, %v4705_v27 }
0x5344   :  { %15351 = vmatprep.mubr.msk.f32.mxu1 %vm19935_vm0, %v16944_v1  ;;  %v4800_v8 = vcombine.high %v4799_v40, %v4799_v40  ;;  %v4807_v16 = vrot.slane %v4799_v40, %v17606_v17 }
0x53a7   :  { %v6271_v6 = vpop.permute.xlu1 %6270 }
0x53a8   :  { %v6273_v61 = vsel %vm19960_vm2, %v6271_v6, 0.0  ;;  %v4685_v13 = vpop.permute.xlu0 %4684  ;;  %vm19963_vm2 = vmmov %vm19961_vm3 }
0x53a9   :  { %v6281_v63 = vrot.slane %v6273_v61, %v17606_v17  ;;  %v4689_v44 = vmul.f32 %v18335_v31, %v4685_v13  ;;  %v6413_v31 = vrot.slane %v6399_v12, %v17606_v17  ;;  %v6436_v12 = vrot.slane %v6422_v7, %v17606_v17 }
0x53aa   :  { %v6512_v7 = vrot.slane %v6429_v24, %v17650_v21  ;;  %v6526_v13 = vrot.slane %v18419_v33, %v17650_v21 }
0x53ab   :  { %v6282_v28 = vcombine.high %v6281_v63, %v6281_v63  ;;  %v6289_v30 = vrot.slane %v6281_v63, %v17606_v17  ;;  %v4693_v62 = vrot.slane %v4689_v44, 6  ;;  %v6506_v6 = vrot.slane %v6413_v31, %v17650_v21 }
0x53ac   :  { %v6516_v24 = vrot.slane %v6436_v12, %v17650_v21  ;;  %v3763_v63 = vsel %vm559_vm5, %v17874_v26, 0.0  ;;  %v3918_v44 = vsel %vm717_vm6, %v17909_v18, 0.0  ;;  %v4776_v26 = vrot.slane %v4074_v20, %v17606_v17 }
0x53ad   :  { %v6296_v52 = vrot.slane %v6282_v28, %v17606_v17  ;;  %v6529_v23 = vsel %vm19961_vm3, %v6289_v30, %v6462_v56  ;;  %v4694_v36 = vsel %vm19962_vm4, %v4693_v62, %v4692_v51  ;;  %vm19964_vm3 = vcmask 1044480  }
0x53ae   :  { %v6531_v41 = vsel %vm1785_vm13, %v6529_v23, %v6472_v25  ;;  %4695 = vrot.lane.b32.xlu0 %v4694_v36, %s16952_s26  ;;  %vm19965_vm4 = vcmask 1045504   ;;  %vm19967_vm0 = vmmov %vm19964_vm3  ;;  %v4730_v33 = vrot.slane %v3763_v63, %v17606_v17  ;;  %v4753_v56 = vrot.slane %v3918_v44, %v17606_v17 }
0x53af   :  { %v6530_v15 = vsel %vm19963_vm2, %v6296_v52, %v6466_v59  ;;  %v6533_v48 = vsel %vm1788_vm14, %v6531_v41, %v6482_v58  ;;  %vm19966_vm2 = vcmask 1046528   ;;  %vm19968_vm12 = vmmov %vm19965_vm4  ;;  %v4845_v51 = vrot.slane %v4542_v42, %v17606_v17 }
0x53b0   :  { %v6532_v34 = vsel %vm1785_vm13, %v6530_v15, %v6476_v57  ;;  %v6535_v10 = vsel %vm1791_vm15, %v6533_v48, %v6492_v19  ;;  %v4731_v18 = vcombine.high %v4730_v33, %v4730_v33  ;;  %v4754_v35 = vcombine.high %v4753_v56, %v4753_v56  ;;  %vm19973_vm7 = vmmov %vm19965_vm4 }
0x53b1   :  { %v6537_v22 = vsel %vm19964_vm3, %v6535_v10, %v6502_v50  ;;  %v6534_v29 = vsel %vm1788_vm14, %v6532_v34, %v6486_v4  ;;  %vm19969_vm3 = vmmov %vm19966_vm2  ;;  %v4738_v53 = vrot.slane %v4730_v33, %v17606_v17  ;;  %v4777_v2 = vcombine.high %v4776_v26, %v4776_v26 }
0x53b2   :  { %v6539_v55 = vsel %vm19965_vm4, %v6537_v22, %v6512_v7  ;;  %v6536_v5 = vsel %vm1791_vm15, %v6534_v29, %v6496_v3  ;;  %v4745_v28 = vrot.slane %v4731_v18, %v17606_v17  ;;  %v4761_v30 = vrot.slane %v4753_v56, %v17606_v17  ;;  %v6655_v56 = vld [vmem:[%s18550_s1] sm:$0xff]  ;;  %vm19974_vm8 = vmmov %vm19966_vm2  ;;  %s16980_s1 = smov 15  }
0x53b3   :  { %v6541_v61 = vsel %vm19966_vm2, %v6539_v55, %v6522_v39  ;;  %v6538_v9 = vsel %vm19967_vm0, %v6536_v5, %v6506_v6  ;;  %v4784_v62 = vrot.slane %v4776_v26, %v17606_v17  ;;  %v4823_v31 = vcombine.high %v4822_v49, %v4822_v49  ;;  %vm19976_vm10 = vmmov %vm19965_vm4  ;;  %s14516_s4 = sld [smem:[%s19928_s0 + %s16980_s1]]  }
0x53b4   :  { %6545 = vrot.lane.b32.xlu1 %v6541_v61, %s16949_s23  ;;  %v6540_v32 = vsel %vm19968_vm12, %v6538_v9, %v6516_v24  ;;  %v4768_v54 = vrot.slane %v4754_v35, %v17606_v17  ;;  %v4846_v58 = vcombine.high %v4845_v51, %v4845_v51  ;;  %v4887_v25 = vrot.slane %v4738_v53, %v17650_v21  ;;  %s14530_s1 = sld [smem:[%s19928_s0 + %s16992_s28]]  }
0x53b5   :  { %v6542_v47 = vsel %vm19969_vm3, %v6540_v32, %v6526_v13  ;;  %v4791_v59 = vrot.slane %v4777_v2, %v17606_v17  ;;  %v4830_v52 = vrot.slane %v4822_v49, %v17606_v17  ;;  %v4891_v23 = vrot.slane %v4745_v28, %v17650_v21 }
0x53b6   :  { %6547 = vrot.lane.b32.xlu0 %v6542_v47, %s16949_s23  ;;  %v4897_v36 = vrot.slane %v4761_v30, %v17650_v21  ;;  %v4814_v12 = vrot.slane %v4800_v8, %v17606_v17  ;;  %v4853_v19 = vrot.slane %v4845_v51, %v17606_v17  ;;  %v4713_v57 = vrot.slane %v4705_v27, %v17606_v17  ;;  %v14650_v8 = vld [vmem:[%s14525_s5] ss:$0 sm:$0xff]  ;;  %s16981_s5 = smov 19  }
0x53b7   :  { %v4720_v41 = vrot.slane %v4706_v45, %v17606_v17  ;;  %v4907_v50 = vrot.slane %v4784_v62, %v17650_v21  ;;  %v4837_v4 = vrot.slane %v4823_v31, %v17606_v17  ;;  %v4901_v48 = vrot.slane %v4768_v54, %v17650_v21  ;;  %s14520_s8 = sld [smem:[%s19928_s0 + %s16981_s5]]  }
0x53b8   :  { %v4917_v7 = vrot.slane %v4807_v16, %v17650_v21  ;;  %v4860_v3 = vrot.slane %v4846_v58, %v17606_v17  ;;  %vm19970_vm0 = vcmask 1040384   ;;  %v4911_v6 = vrot.slane %v4791_v59, %v17650_v21  ;;  %s19396_s5 = sld [smem:[%s19928_s0 + %s16993_s2]]  }
0x53b9   :  { %v4954_v10 = vsel %vm19970_vm0, %v4713_v57, %v4887_v25  ;;  %v4927_v39 = vrot.slane %v4830_v52, %v17650_v21  ;;  %vm19971_vm5 = vmmov %vm19970_vm0  ;;  %v4921_v24 = vrot.slane %v4814_v12, %v17650_v21  ;;  %v4937_v5 = vrot.slane %v4853_v19, %v17650_v21 }
0x53ba   :  { %v4955_v29 = vsel %vm19971_vm5, %v4720_v41, %v4891_v23  ;;  %v4956_v55 = vsel %vm1785_vm13, %v4954_v10, %v4897_v36  ;;  %v4931_v14 = vrot.slane %v4837_v4, %v17650_v21  ;;  %v4941_v47 = vrot.slane %v4860_v3, %v17650_v21 }
0x53bb   :  { %v4958_v9 = vsel %vm1788_vm14, %v4956_v55, %v4907_v50  ;;  %v4957_v32 = vsel %vm1785_vm13, %v4955_v29, %v4901_v48  ;;  %vm19972_vm6 = vcmask 1044480   ;;  %v18592_v53 = vpack.c.bf16 %v6656_v46, %v6655_v56 }
0x53bc   :  { %v4960_v63 = vsel %vm1791_vm15, %v4958_v9, %v4917_v7  ;;  %v4959_v43 = vsel %vm1788_vm14, %v4957_v32, %v4911_v6  ;;  %vm19975_vm9 = vmmov %vm19972_vm6  ;;  %vm19978_vm12 = vcmask 261120   ;;  %vm7546_vm3 = vcmask 58368  }
0x53bd   :  { %v4962_v20 = vsel %vm19972_vm6, %v4960_v63, %v4927_v39  ;;  %v4961_v42 = vsel %vm1791_vm15, %v4959_v43, %v4921_v24  ;;  %vm19979_vm4 = vmmov %vm19978_vm12  ;;  %vm18741_vm0 = vcmp.gt.s32.totalorder %v17053_v37, %v17055_v38  ;;  %vm19983_vm5 = vcmask 1041409  }
0x53be   :  { %v4964_v26 = vsel %vm19973_vm7, %v4962_v20, %v4937_v5  ;;  %v4963_v49 = vsel %vm19975_vm9, %v4961_v42, %v4931_v14  ;;  %v18751_v38 = vsub.s32 1, %v17600_v60  ;;  %vm7574_vm6 = vcmask 261248   ;;  %vm19984_vm7 = vmmov %vm19983_vm5 }
0x53bf   :  { %v4965_v51 = vsel %vm19976_vm10, %v4963_v49, %v4941_v47  ;;  %vm19986_vm9 = vmmov %vm19983_vm5  ;;  %vm19987_vm10 = vcmask 1040384  }
0x5412   :  { %v15332_v45 = vpop.f32.mrb[38].mxu1 }
0x5413   :  { %v18608_v62 = vadd.f32 %v15332_v45, %v14650_v8  ;;  %v6885_v31 = vpop.f32.mrb[39].mxu1 }
0x5414   :  { %v6886_v54 = vadd.f32 %v14650_v8, %v6885_v31  ;;  %v6658_v8 = vld [vmem:[%s14526_s13 + $0x8] sm:$0xff] }
0x5416   :  { %v6896_v16 = vcombine.high %v6886_v54, %v6886_v54  ;;  %v18611_v58 = vrot.slane %v6886_v54, %v17606_v17  ;;  %v7043_v25 = vpop.f32.mrb[40].mxu1 }
0x5417   :  { %v7054_v59 = vrot.slane %v7043_v25, %v17606_v17  ;;  %v15339_v52 = vpop.f32.mrb[41].mxu1 }
0x5418   :  { %v18615_v23 = vrot.slane %v6896_v16, %v17606_v17  ;;  %v18619_v36 = vrot.slane %v18611_v58, %v17606_v17 }
0x5419   :  { %v7055_v12 = vcombine.high %v7054_v59, %v7054_v59  ;;  %v7062_v19 = vrot.slane %v7054_v59, %v17606_v17 }
0x541a   :  { %v6912_v57 = vcombine.high %v18615_v23, %v18615_v23 }
0x541b   :  { %v7069_v41 = vrot.slane %v7055_v12, %v17606_v17  ;;  %v7072_v50 = vadd.f32 %v7062_v19, %v18619_v36 }
0x541c   :  { %v18627_v4 = vrot.slane %v6912_v57, %v17606_v17 }
0x5420   :  { %v4696_v15 = vpop.permute.xlu0 %4695 }
0x5421   :  { %v4698_v34 = vsel %vm1517_vm11, %v4696_v15, 0.0  ;;  %vm19977_vm11 = vmmov %vm19966_vm2  ;;  %vm19980_vm2 = vmmov 0   ;;  %v7073_v15 = vadd.f32 %v7069_v41, %v18627_v4 }
0x5422   :  { %v4868_v22 = vrot.slane %v4698_v34, %v17606_v17 }
0x5424   :  { %v4869_v61 = vcombine.high %v4868_v22, %v4868_v22  ;;  %v4876_v13 = vrot.slane %v4868_v22, %v17606_v17 }
0x5426   :  { %v4883_v44 = vrot.slane %v4869_v61, %v17606_v17  ;;  %v4947_v33 = vrot.slane %v4876_v13, %v17650_v21  ;;  %v6546_v18 = vpop.permute.xlu1 %6545 }
0x5428   :  { %v4966_v40 = vsel %vm19974_vm8, %v4964_v26, %v4947_v33  ;;  %v4951_v27 = vrot.slane %v4883_v44, %v17650_v21  ;;  %v6548_v2 = vpop.permute.xlu0 %6547  ;;  %vm19985_vm8 = vmmov %vm19983_vm5 }
0x5429   :  { %v6551_v35 = vsel %vm190_vm1, %v4966_v40, %v6546_v18 }
0x542a   :  { %v4967_v28 = vsel %vm19977_vm11, %v4965_v51, %v4951_v27  ;;  %15325 = vmatprep.mubr.msk.f32.mxu0 %vm19978_vm12, %v6551_v35  ;;  %v6659_v51 = vld [vmem:[%s14527_s9] sm:$0xff]  ;;  %vm19988_vm11 = vmmov %vm19987_vm10 }
0x542b   :  { %v6552_v30 = vsel %vm190_vm1, %v4967_v28, %v6548_v2  ;;  %v6660_v2 = vld [vmem:[%s14527_s9 + $0x8] sm:$0xff]  ;;  %v6657_v28 = vld [vmem:[%s14526_s13] sm:$0xff]  ;;  %s16982_s9 = smov 20   ;;  %vm19989_vm12 = vmmov %vm19983_vm5  ;;  %s16983_s13 = smov 33  }
0x542c   :  { %15326 = vmatmul.mubr.msk.f32.vlgmr.msra.gmra.mrb[34].mxu0 %vm19979_vm4, %v6552_v30  ;;  %v18655_v30 = vpack.c.bf16 %v6660_v2, %v6659_v51  ;;  %v18657_v45 = vpack.c.bf16 %v6658_v8, %v6657_v28  ;;  %s18905_s12 = sld [smem:[%s19928_s0 + %s16982_s9]]   ;;  %vm19990_vm4 = vmmov %vm19983_vm5 }
0x542d   :  { %15893 = vmatpush3.bf16.msra.mxu0 %v18592_v53  ;;  %15344 = vmatprep.mubr.msk.f32.mxu0 %vm19980_vm2, %v16944_v1  ;;  %s14534_s16 = sld [smem:[%s19928_s0 + %s16983_s13]]  }
0x542e   :  { %15897 = vmatprep.subr.bf16.mxu0 %v16940_v0  ;;  %15896 = vmatpush3.bf16.msra.mxu1 %v18655_v30 }
0x542f   :  { %15900 = vmatprep.subr.bf16.mxu1 %v16940_v0 }
0x5430   :  { %15345 = vmatmul.mubr.f32.vlgmr.msra.gmra.mrb[36].mxu0 %v16944_v1 }
0x5431   :  { %15358 = vmatprep.mubr.msk.f32.mxu0 %vm19980_vm2, %v16944_v1  ;;  %15899 = vmatpush3.bf16.msra.mxu0 %v18657_v45 }
0x5432   :  { %15903 = vmatprep.subr.bf16.mxu0 %v16940_v0  ;;  %15352 = vmatmul.mubr.f32.vlgmr.msra.gmra.mrb[42].mxu1 %v16944_v1 }
0x5433   :  { %15365 = vmatprep.mubr.msk.f32.mxu1 %vm19980_vm2, %v16944_v1 }
0x54ff   :  { %v18630_v48 = vpop.f32.mrb[34].mxu0 }
0x5500   :  { %v18632_v7 = vpop.f32.mrb[35].mxu0 }
0x5503   :  { %v7140_v3 = vpop.f32.mrb[36].mxu0 }
0x5504   :  { %v7151_v34 = vrot.slane %v7140_v3, %v17606_v17  ;;  %v15346_v10 = vpop.f32.mrb[37].mxu0 }
0x5505   :  { %v7285_v19 = vpop.f32.mrb[42].mxu1 }
0x5506   :  { %v7152_v6 = vcombine.high %v7151_v34, %v7151_v34  ;;  %v7159_v39 = vrot.slane %v7151_v34, %v17606_v17  ;;  %v15353_v57 = vpop.f32.mrb[43].mxu1 }
0x5508   :  { %v7166_v22 = vrot.slane %v7152_v6, %v17606_v17  ;;  %v7169_v29 = vadd.f32 %v7159_v39, %v7072_v50  ;;  %v18681_v50 = vld [vmem:[%s18678_s17] ss:$0 sm:$0xff] }
0x550a   :  { %v7170_v55 = vadd.f32 %v7166_v22, %v7073_v15  ;;  %16653 = vtanh.f32 %v7169_v29  ;;  %v14654_v14 = vmul.f32 -1.442695, %v7169_v29 }
0x550c   :  { %16655 = vtanh.f32 %v7170_v55  ;;  %v14655_v61 = vmul.f32 -1.442695, %v7170_v55 }
0x550d   :  { %16657 = vpow2.f32 %v14654_v14 }
0x550e   :  { %16659 = vpow2.f32 %v14655_v61 }
0x5514   :  { %v16654_v24 = vpop.eup %16653 }
0x5515   :  { %7189 = vrot.lane.b32.xlu1 %v16654_v24, %s16948_s22 }
0x5516   :  { %v16656_v5 = vpop.eup %16655 }
0x5517   :  { %7191 = vrot.lane.b32.xlu0 %v16656_v5, %s16948_s22  ;;  %v16658_v13 = vpop.eup %16657 }
0x5518   :  { %v16660_v9 = vpop.eup %16659  ;;  %v7177_v32 = vadd.f32 1.0, %v16658_v13 }
0x5519   :  { %v7178_v47 = vadd.f32 1.0, %v16660_v9  ;;  %v6647_v9 = vld [vmem:[%s14518_s21] sm:$0xff] }
0x551a   :  { %16661 = vrcp.f32 %v7177_v32  ;;  %v6648_v32 = vld [vmem:[%s14518_s21 + $0x8] sm:$0xff]  ;;  %s16985_s21 = smov 35  }
0x551b   :  { %16663 = vrcp.f32 %v7178_v47  ;;  %v18692_v47 = vpack.c.bf16 %v6648_v32, %v6647_v9  ;;  %v6651_v9 = vld [vmem:[%s14520_s8 + $0x8] sm:$0xff]  ;;  %s14536_s29 = sld [smem:[%s19928_s0 + %s16985_s21]]  }
0x551d   :  { %15902 = vmatpush3.bf16.msra.mxu1 %v18692_v47 }
0x551e   :  { %15906 = vmatprep.subr.bf16.mxu1 %v16940_v0 }
0x5524   :  { %v16662_v63 = vpop.eup %16661 }
0x5525   :  { %v16664_v20 = vpop.eup %16663  ;;  %v7185_v46 = vmul.f32 0.0, %v16662_v63 }
0x5526   :  { %v7186_v18 = vmul.f32 0.0, %v16664_v20 }
0x5587   :  { %v7190_v44 = vpop.permute.xlu1 %7189 }
0x5588   :  { %v7195_v33 = vmul.f32 %v16662_v63, %v7190_v44 }
0x5589   :  { %v7192_v43 = vpop.permute.xlu0 %7191 }
0x558a   :  { %7199 = vrot.lane.b32.xlu1 %v7195_v33, %s16949_s23  ;;  %v7196_v56 = vmul.f32 %v16664_v20, %v7192_v43  ;;  %v18715_v43 = vld [vmem:[%s18709_s30] ss:$0 sm:$0xff] }
0x558c   :  { %7201 = vrot.lane.b32.xlu0 %v7196_v56, %s16949_s23 }
0x55fc   :  { %v7200_v26 = vpop.permute.xlu1 %7199 }
0x55fd   :  { %v18641_v42 = vadd.f32 %v7200_v26, %v7185_v46 }
0x55fe   :  { %v7202_v40 = vpop.permute.xlu0 %7201 }
0x55ff   :  { %16665 = vtanh.f32 %v18641_v42  ;;  %v18644_v27 = vadd.f32 %v7202_v40, %v7186_v18  ;;  %v14647_v40 = vld [vmem:[%s14516_s4] ss:$0 sm:$0xff]  ;;  %s16987_s4 = smov 34  }
0x5600   :  { %v18721_v51 = vadd.f32 %v14647_v40, %v18632_v7  ;;  %v18726_v8 = vadd.f32 %v18630_v48, %v14647_v40  ;;  %v18735_v7 = vsub.s32 %v17053_v37, %v17600_v60  ;;  %s14535_s7 = sld [smem:[%s19928_s0 + %s16987_s4]]  }
0x5601   :  { %16667 = vtanh.f32 %v18644_v27 }
0x5609   :  { %v16666_v49 = vpop.eup %16665 }
0x560a   :  { %7211 = vrot.lane.b32.xlu1 %v16666_v49, %s16951_s25 }
0x560b   :  { %v16668_v35 = vpop.eup %16667 }
0x560c   :  { %7213 = vrot.lane.b32.xlu0 %v16668_v35, %s16951_s25 }
0x567c   :  { %v7212_v31 = vpop.permute.xlu1 %7211 }
0x567d   :  { %v7217_v16 = vmul.f32 %v16662_v63, %v7212_v31 }
0x567e   :  { %v7214_v54 = vpop.permute.xlu0 %7213 }
0x567f   :  { %v7218_v25 = vmul.f32 %v16664_v20, %v7214_v54 }
0x5681   :  { %v7291_v59 = vcombine.low %v7217_v16, %v7218_v25 }
0x5683   :  { %v7298_v52 = vrot.slane %v7291_v59, %v17606_v17 }
0x5685   :  { %v7305_v12 = vrot.slane %v7298_v52, %v17606_v17 }
0x5687   :  { %7306 = vrot.lane.b32.xlu1 %v7305_v12, %s16952_s26 }
0x56f9   :  { %v18669_v41 = vpop.permute.xlu1 %7306 }
0x56fa   :  { %15359 = vmatmul.mubr.msk.f32.vlgmr.msra.gmra.mrb[38].mxu0 %vm190_vm1, %v18669_v41 }
0x56fb   :  { %15372 = vmatprep.mubr.msk.f32.mxu0 %vm19980_vm2, %v16944_v1 }
0x57cd   :  { %v7376_v15 = vpop.f32.mrb[38].mxu0 }
0x57ce   :  { %v7377_v3 = vadd.f32 %v7376_v15, %v7285_v19  ;;  %v15360_v34 = vpop.f32.mrb[39].mxu0 }
0x57d0   :  { %v7386_v10 = vadd.f32 %v18681_v50, %v7377_v3 }
0x57d2   :  { %16669 = vtanh.f32 %v7386_v10  ;;  %v14658_v39 = vmul.f32 -1.442695, %v7386_v10 }
0x57d4   :  { %16671 = vpow2.f32 %v14658_v39 }
0x57dc   :  { %v16670_v6 = vpop.eup %16669 }
0x57dd   :  { %7396 = vrot.lane.b32.xlu0 %v16670_v6, %s16948_s22 }
0x57de   :  { %v16672_v22 = vpop.eup %16671 }
0x57df   :  { %v7390_v29 = vadd.f32 1.0, %v16672_v22 }
0x57e1   :  { %16673 = vrcp.f32 %v7390_v29 }
0x57eb   :  { %v16674_v55 = vpop.eup %16673 }
0x57ec   :  { %v7394_v14 = vmul.f32 0.0, %v16674_v55 }
0x584f   :  { %v7397_v24 = vpop.permute.xlu0 %7396 }
0x5850   :  { %v7399_v5 = vmul.f32 %v16674_v55, %v7397_v24 }
0x5852   :  { %7401 = vrot.lane.b32.xlu1 %v7399_v5, %s16949_s23 }
0x58c4   :  { %v7402_v61 = vpop.permute.xlu1 %7401 }
0x58c5   :  { %v18686_v13 = vadd.f32 %v7402_v61, %v7394_v14  ;;  %v6650_v61 = vld [vmem:[%s14520_s8] sm:$0xff]  ;;  %s14532_s8 = sld [smem:[%s19928_s0 + %s16994_s6]]  }
0x58c6   :  { %v18758_v32 = vpack.c.bf16 %v6651_v9, %v6650_v61 }
0x58c7   :  { %16675 = vtanh.f32 %v18686_v13 }
0x58c8   :  { %15905 = vmatpush3.bf16.msra.mxu0 %v18758_v32 }
0x58c9   :  { %15909 = vmatprep.subr.bf16.mxu0 %v16940_v0 }
0x58d1   :  { %v16676_v63 = vpop.eup %16675 }
0x58d2   :  { %7407 = vrot.lane.b32.xlu0 %v16676_v63, %s16951_s25 }
0x5944   :  { %v7408_v44 = vpop.permute.xlu0 %7407 }
0x5945   :  { %v7410_v33 = vmul.f32 %v16674_v55, %v7408_v44 }
0x5947   :  { %7418 = vrot.lane.b32.xlu1 %v7410_v33, %s16952_s26 }
0x59b9   :  { %v18698_v20 = vpop.permute.xlu1 %7418 }
0x59ba   :  { %15366 = vmatmul.mubr.msk.f32.vlgmr.msra.gmra.mrb[44].mxu1 %vm190_vm1, %v18698_v20 }
0x59bb   :  { %15908 = vmatpush3.bf16.msra.mxu1 %v18446_v11  ;;  %15379 = vmatprep.mubr.msk.f32.mxu1 %vm19980_vm2, %v16944_v1 }
0x59bc   :  { %15912 = vmatprep.subr.bf16.mxu1 %v16940_v0 }
0x5a8d   :  { %v7488_v56 = vpop.f32.mrb[44].mxu1 }
0x5a8e   :  { %v7489_v46 = vadd.f32 %v18715_v43, %v7488_v56  ;;  %v15367_v26 = vpop.f32.mrb[45].mxu1 }
0x5a90   :  { %v7499_v18 = vrot.slane %v7489_v46, %v17606_v17 }
0x5a92   :  { %v7500_v49 = vcombine.high %v7499_v18, %v7499_v18  ;;  %v7507_v35 = vrot.slane %v7499_v18, %v17606_v17 }
0x5a94   :  { %v7514_v2 = vrot.slane %v7500_v49, %v17606_v17  ;;  %v7518_v28 = vrot.slane %v7507_v35, %v17650_v21 }
0x5a96   :  { %v7525_v31 = vmul.f32 %v7518_v28, %v18721_v51  ;;  %v7522_v54 = vrot.slane %v7514_v2, %v17650_v21 }
0x5a98   :  { %v7527_v16 = vsel %vm190_vm1, %v7525_v31, 0.0  ;;  %v7526_v25 = vmul.f32 %v7522_v54, %v18726_v8 }
0x5a99   :  { %7528 = vadd.xlane.f32.xlu0 %v7527_v16 }
0x5a9a   :  { %v7530_v59 = vsel %vm190_vm1, %v7526_v25, 0.0 }
0x5a9b   :  { %7531 = vadd.xlane.f32.xlu1 %v7530_v59 }
0x5b26   :  { %v7529_v52 = vpop.xlane.xlu0 %7528 }
0x5b27   :  { %v7538_v48 = vrot.slane %v7529_v52, %v18735_v7 }
0x5b28   :  { %v7532_v12 = vpop.xlane.xlu1 %7531 }
0x5b29   :  { %v7542_v19 = vrot.slane %v7532_v12, %v18735_v7 }
0x5b2b   :  { %v7543_v15 = vsel %vm19983_vm5, %v7542_v19, %v7538_v48  ;;  %vm19991_vm5 = vmmov %vm19990_vm4 }
0x5b2c   :  { %v7545_v3 = vsel %vm18741_vm0, -1e+10, %v7543_v15 }
0x5b2d   :  { %v7547_v34 = vsel %vm7546_vm3, %v7545_v3, -inf }
0x5b2e   :  { %7548 = vmax.xlane.f32.xlu0 %v7547_v34 }
0x5bbb   :  { %v7549_v10 = vpop.xlane.xlu0 %7548 }
0x5bbc   :  { %v7550_v6 = vsub.f32 %v7545_v3, %v7549_v10  ;;  %v6911_v3 = vcombine.high %v18611_v58, %v18611_v58  ;;  %v18797_v10 = vrot.slane %v18615_v23, %v17606_v17 }
0x5bbe   :  { %v7551_v39 = vmul.f32 1.442695, %v7550_v6  ;;  %v6942_v58 = vcombine.high %v18797_v10, %v18797_v10 }
0x5bc0   :  { %16677 = vpow2.f32 %v7551_v39 }
0x5bca   :  { %v16678_v22 = vpop.eup %16677 }
0x5bcb   :  { %v7553_v29 = vsel %vm7546_vm3, %v16678_v22, 0.0 }
0x5bcc   :  { %7554 = vadd.xlane.f32.xlu0 %v7553_v29 }
0x5c59   :  { %v7555_v37 = vpop.xlane.xlu0 %7554 }
0x5c5a   :  { %16679 = vrcp.f32 %v7555_v37 }
0x5c64   :  { %v16680_v55 = vpop.eup %16679 }
0x5c65   :  { %v7557_v24 = vmul.f32 %v16680_v55, %v16678_v22  ;;  %v18803_v55 = vrot.slane %v6911_v3, %v17606_v17 }
0x5c67   :  { %v7568_v5 = vrot.slane %v7557_v24, %v18751_v38  ;;  %v7561_v14 = vrot.slane %v7557_v24, %v17650_v21 }
0x5c69   :  { %7570 = vbcast.lane.b32.xlu0 %v7568_v5, 256  ;;  %7563 = vbcast.lane.b32.xlu1 %v7561_v14, 256 }
0x5cdb   :  { %v7571_v60 = vpop.permute.xlu0 %7570  ;;  %v7564_v63 = vpop.permute.xlu1 %7563 }
0x5cdc   :  { %v7573_v44 = vmul.f32 %v7571_v60, %v18726_v8  ;;  %v7572_v33 = vmul.f32 %v7564_v63, %v18721_v51 }
0x5cde   :  { %v7582_v56 = vsel %vm7574_vm6, %v7573_v44, 0.0  ;;  %v7575_v46 = vsel %vm7574_vm6, %v7572_v33, 0.0 }
0x5cdf   :  { %v7583_v26 = vrot.slane %v7582_v56, 4  ;;  %v7576_v18 = vrot.slane %v7575_v46, 4 }
0x5ce1   :  { %v7584_v40 = vadd.f32 %v7583_v26, %v7582_v56  ;;  %v7577_v49 = vadd.f32 %v7576_v18, %v7575_v46 }
0x5ce3   :  { %v7585_v35 = vrot.slane %v7584_v40, 2  ;;  %v7578_v2 = vrot.slane %v7577_v49, 2 }
0x5ce5   :  { %v7586_v28 = vadd.f32 %v7585_v35, %v7584_v40  ;;  %v7579_v31 = vadd.f32 %v7578_v2, %v7577_v49 }
0x5ce7   :  { %v7587_v54 = vrot.slane %v7586_v28, 1  ;;  %v7580_v16 = vrot.slane %v7579_v31, 1 }
0x5ce9   :  { %v7581_v25 = vadd.f32 %v7580_v16, %v7579_v31  ;;  %v7588_v59 = vadd.f32 %v7587_v54, %v7586_v28 }
0x5ceb   :  { %v7597_v52 = vsel %vm19984_vm7, %v7588_v59, %v7581_v25  ;;  %vm19992_vm7 = vmmov %vm19990_vm4 }
0x5cec   :  { %7598 = vrot.lane.b32.xlu1 %v7597_v52, %s16950_s24 }
0x5d5e   :  { %v7599_v12 = vpop.permute.xlu1 %7598 }
0x5d5f   :  { %15373 = vmatmul.mubr.msk.f32.vlgmr.msra.gmra.mrb[40].mxu0 %vm190_vm1, %v7599_v12  ;;  %15380 = vmatmul.mubr.msk.f32.vlgmr.msra.gmra.mrb[46].mxu1 %vm190_vm1, %v7599_v12 }
0x5d60   :  { %15911 = vmatpush3.bf16.msra.mxu0 %v18592_v53  ;;  %15914 = vmatpush3.bf16.msra.mxu1 %v18655_v30 }
0x5d61   :  { %15386 = vmatprep.mubr.msk.f32.mxu0 %vm19980_vm2, %v16944_v1  ;;  %15393 = vmatprep.mubr.msk.f32.mxu1 %vm19980_vm2, %v16944_v1 }
0x5d62   :  { %15915 = vmatprep.subr.bf16.mxu0 %v16940_v0  ;;  %15918 = vmatprep.subr.bf16.mxu1 %v16940_v0 }
0x5d63   :  { %15387 = vmatmul.mubr.msk.f32.vlgmr.msra.gmra.mrb[42].mxu0 %vm190_vm1, %v18669_v41  ;;  %15394 = vmatmul.mubr.msk.f32.vlgmr.msra.gmra.mrb[48].mxu1 %vm190_vm1, %v18698_v20 }
0x5d64   :  { %15917 = vmatpush3.bf16.msra.mxu0 %v18657_v45  ;;  %15400 = vmatprep.mubr.msk.f32.mxu0 %vm19980_vm2, %v16944_v1 }
0x5d65   :  { %15920 = vmatpush3.bf16.msra.mxu1 %v18692_v47  ;;  %15407 = vmatprep.mubr.msk.f32.mxu1 %vm19980_vm2, %v16944_v1 }
0x5d66   :  { %15921 = vmatprep.subr.bf16.mxu0 %v16940_v0  ;;  %15924 = vmatprep.subr.bf16.mxu1 %v16940_v0 }
0x5e32   :  { %v18790_v48 = vpop.f32.mrb[40].mxu0  ;;  %v7738_v41 = vpop.f32.mrb[46].mxu1 }
0x5e33   :  { %v7749_v19 = vrot.slane %v7738_v41, %v17606_v17  ;;  %v15374_v20 = vpop.f32.mrb[41].mxu0  ;;  %v15381_v15 = vpop.f32.mrb[47].mxu1 }
0x5e35   :  { %v7750_v34 = vcombine.high %v7749_v19, %v7749_v19  ;;  %v7757_v6 = vrot.slane %v7749_v19, %v17606_v17 }
0x5e36   :  { %v7835_v39 = vpop.f32.mrb[42].mxu0  ;;  %v18800_v22 = vpop.f32.mrb[48].mxu1 }
0x5e37   :  { %v15388_v29 = vpop.f32.mrb[43].mxu0  ;;  %v15395_v37 = vpop.f32.mrb[49].mxu1  ;;  %v7764_v24 = vrot.slane %v7750_v34, %v17606_v17  ;;  %v7846_v5 = vrot.slane %v7835_v39, %v17606_v17  ;;  %v7767_v23 = vadd.f32 %v7757_v6, %v18803_v55 }
0x5e39   :  { %v7847_v14 = vcombine.high %v7846_v5, %v7846_v5  ;;  %v7854_v61 = vrot.slane %v7846_v5, %v17606_v17  ;;  %v7768_v9 = vadd.f32 %v7764_v24, %v6942_v58 }
0x5e3b   :  { %v7861_v60 = vrot.slane %v7847_v14, %v17606_v17  ;;  %v7864_v63 = vadd.f32 %v7854_v61, %v7767_v23 }
0x5e3d   :  { %v7865_v44 = vadd.f32 %v7861_v60, %v7768_v9  ;;  %16681 = vtanh.f32 %v7864_v63  ;;  %v14665_v46 = vmul.f32 -1.442695, %v7864_v63 }
0x5e3f   :  { %16683 = vtanh.f32 %v7865_v44  ;;  %v14666_v26 = vmul.f32 -1.442695, %v7865_v44 }
0x5e40   :  { %16685 = vpow2.f32 %v14665_v46 }
0x5e41   :  { %16687 = vpow2.f32 %v14666_v26 }
0x5e47   :  { %v16682_v33 = vpop.eup %16681 }
0x5e48   :  { %7884 = vrot.lane.b32.xlu1 %v16682_v33, %s16948_s22 }
0x5e49   :  { %v16684_v56 = vpop.eup %16683 }
0x5e4a   :  { %7886 = vrot.lane.b32.xlu0 %v16684_v56, %s16948_s22  ;;  %v16686_v18 = vpop.eup %16685 }
0x5e4b   :  { %v16688_v40 = vpop.eup %16687  ;;  %v7872_v49 = vadd.f32 1.0, %v16686_v18 }
0x5e4c   :  { %v7873_v35 = vadd.f32 1.0, %v16688_v40 }
0x5e4d   :  { %16689 = vrcp.f32 %v7872_v49 }
0x5e4e   :  { %16691 = vrcp.f32 %v7873_v35 }
0x5e57   :  { %v16690_v2 = vpop.eup %16689 }
0x5e58   :  { %v16692_v54 = vpop.eup %16691  ;;  %v7880_v59 = vmul.f32 %v16690_v2, %v18641_v42 }
0x5e59   :  { %v7881_v41 = vmul.f32 %v16692_v54, %v18644_v27 }
0x5eba   :  { %v7885_v28 = vpop.permute.xlu1 %7884 }
0x5ebb   :  { %v7890_v31 = vmul.f32 %v16690_v2, %v7885_v28 }
0x5ebc   :  { %v7887_v16 = vpop.permute.xlu0 %7886 }
0x5ebd   :  { %7894 = vrot.lane.b32.xlu1 %v7890_v31, %s16949_s23  ;;  %v7891_v25 = vmul.f32 %v16692_v54, %v7887_v16 }
0x5ebf   :  { %7896 = vrot.lane.b32.xlu0 %v7891_v25, %s16949_s23 }
0x5f2f   :  { %v7895_v52 = vpop.permute.xlu1 %7894 }
0x5f30   :  { %v18817_v12 = vadd.f32 %v7895_v52, %v7880_v59 }
0x5f31   :  { %v7897_v19 = vpop.permute.xlu0 %7896 }
0x5f32   :  { %16693 = vtanh.f32 %v18817_v12  ;;  %v18821_v20 = vadd.f32 %v7897_v19, %v7881_v41 }
0x5f34   :  { %16695 = vtanh.f32 %v18821_v20 }
0x5f3c   :  { %v16694_v15 = vpop.eup %16693 }
0x5f3d   :  { %7906 = vrot.lane.b32.xlu1 %v16694_v15, %s16951_s25 }
0x5f3e   :  { %v16696_v3 = vpop.eup %16695 }
0x5f3f   :  { %7908 = vrot.lane.b32.xlu0 %v16696_v3, %s16951_s25 }
0x5faf   :  { %v7907_v34 = vpop.permute.xlu1 %7906 }
0x5fb0   :  { %v7912_v6 = vmul.f32 %v16690_v2, %v7907_v34 }
0x5fb1   :  { %v7909_v42 = vpop.permute.xlu0 %7908 }
0x5fb2   :  { %v7913_v39 = vmul.f32 %v16692_v54, %v7909_v42 }
0x5fb4   :  { %v7986_v29 = vcombine.low %v7912_v6, %v7913_v39 }
0x5fb6   :  { %v7993_v27 = vrot.slane %v7986_v29, %v17606_v17 }
0x5fb8   :  { %v8000_v37 = vrot.slane %v7993_v27, %v17606_v17 }
0x5fba   :  { %8001 = vrot.lane.b32.xlu1 %v8000_v37, %s16952_s26 }
0x602c   :  { %v18829_v24 = vpop.permute.xlu1 %8001 }
0x602d   :  { %15401 = vmatmul.mubr.msk.f32.vlgmr.msra.gmra.mrb[44].mxu0 %vm190_vm1, %v18829_v24 }
0x602e   :  { %15923 = vmatpush3.bf16.msra.mxu0 %v18758_v32  ;;  %15414 = vmatprep.mubr.msk.f32.mxu0 %vm19980_vm2, %v16944_v1 }
0x602f   :  { %15927 = vmatprep.subr.bf16.mxu0 %v16940_v0 }
0x6100   :  { %v8071_v5 = vpop.f32.mrb[44].mxu0 }
0x6101   :  { %v8072_v58 = vadd.f32 %v8071_v5, %v18800_v22  ;;  %v15402_v23 = vpop.f32.mrb[45].mxu0 }
0x6103   :  { %v8075_v14 = vadd.f32 %v18681_v50, %v8072_v58 }
0x6105   :  { %16697 = vtanh.f32 %v8075_v14  ;;  %v14669_v9 = vmul.f32 -1.442695, %v8075_v14 }
0x6107   :  { %16699 = vpow2.f32 %v14669_v9 }
0x610f   :  { %v16698_v61 = vpop.eup %16697 }
0x6110   :  { %8085 = vrot.lane.b32.xlu0 %v16698_v61, %s16948_s22 }
0x6111   :  { %v16700_v60 = vpop.eup %16699 }
0x6112   :  { %v8079_v63 = vadd.f32 1.0, %v16700_v60 }
0x6114   :  { %16701 = vrcp.f32 %v8079_v63 }
0x611e   :  { %v16702_v44 = vpop.eup %16701 }
0x611f   :  { %v8083_v46 = vmul.f32 %v16702_v44, %v18686_v13 }
0x6182   :  { %v8086_v33 = vpop.permute.xlu0 %8085 }
0x6183   :  { %v8088_v56 = vmul.f32 %v16702_v44, %v8086_v33 }
0x6185   :  { %8090 = vrot.lane.b32.xlu1 %v8088_v56, %s16949_s23 }
0x61f7   :  { %v8091_v22 = vpop.permute.xlu1 %8090 }
0x61f8   :  { %v18842_v26 = vadd.f32 %v8091_v22, %v8083_v46 }
0x61fa   :  { %16703 = vtanh.f32 %v18842_v26 }
0x6204   :  { %v16704_v18 = vpop.eup %16703 }
0x6205   :  { %8096 = vrot.lane.b32.xlu0 %v16704_v18, %s16951_s25 }
0x6277   :  { %v8097_v40 = vpop.permute.xlu0 %8096 }
0x6278   :  { %v8099_v49 = vmul.f32 %v16702_v44, %v8097_v40 }
0x627a   :  { %8101 = vrot.lane.b32.xlu1 %v8099_v49, %s16952_s26 }
0x62ec   :  { %v18847_v35 = vpop.permute.xlu1 %8101 }
0x62ed   :  { %15408 = vmatmul.mubr.msk.f32.vlgmr.msra.gmra.mrb[50].mxu1 %vm190_vm1, %v18847_v35 }
0x62ee   :  { %15926 = vmatpush3.bf16.msra.mxu1 %v18446_v11  ;;  %15421 = vmatprep.mubr.msk.f32.mxu1 %vm19980_vm2, %v16944_v1 }
0x62ef   :  { %15930 = vmatprep.subr.bf16.mxu1 %v16940_v0 }
0x63c0   :  { %v8171_v13 = vpop.f32.mrb[50].mxu1 }
0x63c1   :  { %v8172_v2 = vadd.f32 %v18715_v43, %v8171_v13  ;;  %v15409_v28 = vpop.f32.mrb[51].mxu1 }
0x63c3   :  { %v8182_v31 = vrot.slane %v8172_v2, %v17606_v17 }
0x63c5   :  { %v8183_v54 = vcombine.high %v8182_v31, %v8182_v31  ;;  %v8190_v16 = vrot.slane %v8182_v31, %v17606_v17 }
0x63c7   :  { %v8197_v25 = vrot.slane %v8183_v54, %v17606_v17  ;;  %v8201_v59 = vrot.slane %v8190_v16, %v17650_v21 }
0x63c9   :  { %v8208_v52 = vmul.f32 %v8201_v59, %v18721_v51  ;;  %v8205_v41 = vrot.slane %v8197_v25, %v17650_v21 }
0x63cb   :  { %v8210_v19 = vsel %vm190_vm1, %v8208_v52, 0.0  ;;  %v8209_v15 = vmul.f32 %v8205_v41, %v18726_v8 }
0x63cc   :  { %8211 = vadd.xlane.f32.xlu0 %v8210_v19 }
0x63cd   :  { %v8213_v3 = vsel %vm190_vm1, %v8209_v15, 0.0 }
0x63ce   :  { %8214 = vadd.xlane.f32.xlu1 %v8213_v3 }
0x6459   :  { %v8212_v34 = vpop.xlane.xlu0 %8211 }
0x645a   :  { %v8221_v6 = vrot.slane %v8212_v34, %v18735_v7 }
0x645b   :  { %v8215_v42 = vpop.xlane.xlu1 %8214 }
0x645c   :  { %v8225_v39 = vrot.slane %v8215_v42, %v18735_v7 }
0x645e   :  { %v8226_v29 = vsel %vm19985_vm8, %v8225_v39, %v8221_v6  ;;  %vm19993_vm8 = vmmov %vm19990_vm4 }
0x645f   :  { %v8228_v27 = vsel %vm18741_vm0, -1e+10, %v8226_v29 }
0x6460   :  { %v8229_v37 = vsel %vm7546_vm3, %v8228_v27, -inf }
0x6461   :  { %8230 = vmax.xlane.f32.xlu0 %v8229_v37 }
0x64ee   :  { %v8231_v5 = vpop.xlane.xlu0 %8230 }
0x64ef   :  { %v8232_v58 = vsub.f32 %v8228_v27, %v8231_v5 }
0x64f1   :  { %v8233_v23 = vmul.f32 1.442695, %v8232_v58 }
0x64f3   :  { %16705 = vpow2.f32 %v8233_v23  ;;  %v6941_v23 = vcombine.high %v18619_v36, %v18619_v36 }
0x64fd   :  { %v16706_v14 = vpop.eup %16705 }
0x64fe   :  { %v8235_v61 = vsel %vm7546_vm3, %v16706_v14, 0.0 }
0x64ff   :  { %8236 = vadd.xlane.f32.xlu0 %v8235_v61 }
0x658c   :  { %v8237_v9 = vpop.xlane.xlu0 %8236 }
0x658d   :  { %16707 = vrcp.f32 %v8237_v9 }
0x6597   :  { %v16708_v60 = vpop.eup %16707 }
0x6598   :  { %v8239_v63 = vmul.f32 %v16708_v60, %v16706_v14 }
0x659a   :  { %v8250_v44 = vrot.slane %v8239_v63, %v18751_v38  ;;  %v8243_v33 = vrot.slane %v8239_v63, %v17650_v21 }
0x659c   :  { %8252 = vbcast.lane.b32.xlu0 %v8250_v44, 256  ;;  %8245 = vbcast.lane.b32.xlu1 %v8243_v33, 256 }
0x660e   :  { %v8253_v56 = vpop.permute.xlu0 %8252  ;;  %v8246_v46 = vpop.permute.xlu1 %8245 }
0x660f   :  { %v8255_v22 = vmul.f32 %v8253_v56, %v18726_v8  ;;  %v8254_v18 = vmul.f32 %v8246_v46, %v18721_v51 }
0x6611   :  { %v8263_v40 = vsel %vm7574_vm6, %v8255_v22, 0.0  ;;  %v8256_v49 = vsel %vm7574_vm6, %v8254_v18, 0.0 }
0x6612   :  { %v8264_v13 = vrot.slane %v8263_v40, 4  ;;  %v8257_v2 = vrot.slane %v8256_v49, 4 }
0x6614   :  { %v8265_v28 = vadd.f32 %v8264_v13, %v8263_v40  ;;  %v8258_v31 = vadd.f32 %v8257_v2, %v8256_v49 }
0x6616   :  { %v8266_v54 = vrot.slane %v8265_v28, 2  ;;  %v8259_v16 = vrot.slane %v8258_v31, 2 }
0x6618   :  { %v8267_v25 = vadd.f32 %v8266_v54, %v8265_v28  ;;  %v8260_v59 = vadd.f32 %v8259_v16, %v8258_v31 }
0x661a   :  { %v8268_v52 = vrot.slane %v8267_v25, 1  ;;  %v8261_v41 = vrot.slane %v8260_v59, 1 }
0x661c   :  { %v8262_v19 = vadd.f32 %v8261_v41, %v8260_v59  ;;  %v8269_v15 = vadd.f32 %v8268_v52, %v8267_v25 }
0x661e   :  { %v8272_v3 = vsel %vm19986_vm9, %v8269_v15, %v8262_v19  ;;  %vm10537_vm9 = vcmask 61440  }
0x661f   :  { %8273 = vrot.lane.b32.xlu1 %v8272_v3, %s16950_s24 }
0x6691   :  { %v8274_v34 = vpop.permute.xlu1 %8273 }
0x6692   :  { %15415 = vmatmul.mubr.msk.f32.vlgmr.msra.gmra.mrb[46].mxu0 %vm190_vm1, %v8274_v34  ;;  %15422 = vmatmul.mubr.msk.f32.vlgmr.msra.gmra.mrb[52].mxu1 %vm190_vm1, %v8274_v34 }
0x6693   :  { %15929 = vmatpush3.bf16.msra.mxu0 %v18592_v53  ;;  %15932 = vmatpush3.bf16.msra.mxu1 %v18655_v30 }
0x6694   :  { %15428 = vmatprep.mubr.msk.f32.mxu0 %vm19980_vm2, %v16944_v1  ;;  %15435 = vmatprep.mubr.msk.f32.mxu1 %vm19980_vm2, %v16944_v1 }
0x6695   :  { %15933 = vmatprep.subr.bf16.mxu0 %v16940_v0  ;;  %15936 = vmatprep.subr.bf16.mxu1 %v16940_v0 }
0x6696   :  { %15429 = vmatmul.mubr.msk.f32.vlgmr.msra.gmra.mrb[48].mxu0 %vm190_vm1, %v18829_v24  ;;  %15436 = vmatmul.mubr.msk.f32.vlgmr.msra.gmra.mrb[54].mxu1 %vm190_vm1, %v18847_v35  ;;  %v18908_v24 = vld [vmem:[%s18905_s12] ss:$0 sm:$0xff] }
0x6697   :  { %15935 = vmatpush3.bf16.msra.mxu0 %v18657_v45  ;;  %15442 = vmatprep.mubr.msk.f32.mxu0 %vm19980_vm2, %v16944_v1  ;;  %v7669_v35 = vadd.f32 %v18908_v24, %v18790_v48  ;;  %v6944_v48 = vcombine.high %v18627_v4, %v18627_v4 }
0x6698   :  { %15938 = vmatpush3.bf16.msra.mxu1 %v18692_v47  ;;  %15449 = vmatprep.mubr.msk.f32.mxu1 %vm19980_vm2, %v16944_v1 }
0x6699   :  { %15939 = vmatprep.subr.bf16.mxu0 %v16940_v0  ;;  %15942 = vmatprep.subr.bf16.mxu1 %v16940_v0  ;;  %v10379_v42 = vrot.slane %v7669_v35, %v17606_v17 }
0x669b   :  { %v10380_v9 = vcombine.high %v10379_v42, %v10379_v42  ;;  %v10387_v40 = vrot.slane %v10379_v42, %v17606_v17 }
0x669d   :  { %v10394_v31 = vrot.slane %v10380_v9, %v17606_v17 }
0x6765   :  { %v8343_v6 = vpop.f32.mrb[46].mxu0  ;;  %v8413_v39 = vpop.f32.mrb[52].mxu1 }
0x6766   :  { %v8344_v29 = vadd.f32 %v18908_v24, %v8343_v6  ;;  %v8424_v27 = vrot.slane %v8413_v39, %v17606_v17  ;;  %v15416_v37 = vpop.f32.mrb[47].mxu0  ;;  %v15423_v5 = vpop.f32.mrb[53].mxu1 }
0x6768   :  { %v10404_v58 = vrot.slane %v8344_v29, %v17606_v17  ;;  %v8425_v14 = vcombine.high %v8424_v27, %v8424_v27  ;;  %v8432_v61 = vrot.slane %v8424_v27, %v17606_v17 }
0x6769   :  { %v8510_v60 = vpop.f32.mrb[48].mxu0  ;;  %v18921_v63 = vpop.f32.mrb[54].mxu1 }
0x676a   :  { %v10405_v44 = vcombine.high %v10404_v58, %v10404_v58  ;;  %v10412_v33 = vrot.slane %v10404_v58, %v17606_v17  ;;  %v8439_v56 = vrot.slane %v8425_v14, %v17606_v17  ;;  %v8442_v46 = vadd.f32 %v8432_v61, %v6941_v23  ;;  %v15430_v22 = vpop.f32.mrb[49].mxu0  ;;  %v15437_v18 = vpop.f32.mrb[55].mxu1 }
0x676b   :  { %v8521_v36 = vrot.slane %v8510_v60, %v17606_v17 }
0x676c   :  { %v10419_v49 = vrot.slane %v10405_v44, %v17606_v17  ;;  %v10492_v13 = vrot.slane %v10412_v33, %v17650_v21  ;;  %v8443_v4 = vadd.f32 %v8439_v56, %v6944_v48 }
0x676d   :  { %v8522_v2 = vcombine.high %v8521_v36, %v8521_v36  ;;  %v8529_v28 = vrot.slane %v8521_v36, %v17606_v17 }
0x676e   :  { %v10496_v54 = vrot.slane %v10419_v49, %v17650_v21  ;;  %v18933_v16 = vsel %vm19987_vm10, %v10387_v40, %v10492_v13  ;;  %vm19995_vm10 = vmmov %vm19990_vm4 }
0x676f   :  { %v8536_v25 = vrot.slane %v8522_v2, %v17606_v17  ;;  %v8539_v59 = vadd.f32 %v8529_v28, %v8442_v46 }
0x6770   :  { %v18937_v52 = vsel %vm19988_vm11, %v10394_v31, %v10496_v54  ;;  %vm11480_vm11 = vcmask 523648  }
0x6771   :  { %v8540_v41 = vadd.f32 %v8536_v25, %v8443_v4  ;;  %16709 = vtanh.f32 %v8539_v59  ;;  %v14674_v3 = vmul.f32 -1.442695, %v8539_v59 }
0x6773   :  { %16711 = vtanh.f32 %v8540_v41  ;;  %v14675_v34 = vmul.f32 -1.442695, %v8540_v41 }
0x6774   :  { %16713 = vpow2.f32 %v14674_v3 }
0x6775   :  { %16715 = vpow2.f32 %v14675_v34 }
0x677b   :  { %v16710_v19 = vpop.eup %16709 }
0x677c   :  { %8559 = vrot.lane.b32.xlu1 %v16710_v19, %s16948_s22 }
0x677d   :  { %v16712_v15 = vpop.eup %16711 }
0x677e   :  { %8561 = vrot.lane.b32.xlu0 %v16712_v15, %s16948_s22  ;;  %v16714_v35 = vpop.eup %16713 }
0x677f   :  { %v16716_v42 = vpop.eup %16715  ;;  %v8547_v6 = vadd.f32 1.0, %v16714_v35 }
0x6780   :  { %v8548_v39 = vadd.f32 1.0, %v16716_v42 }
0x6781   :  { %16717 = vrcp.f32 %v8547_v6 }
0x6782   :  { %16719 = vrcp.f32 %v8548_v39 }
0x678b   :  { %v16718_v29 = vpop.eup %16717 }
0x678c   :  { %v16720_v5 = vpop.eup %16719  ;;  %v8555_v14 = vmul.f32 %v16718_v29, %v18817_v12 }
0x678d   :  { %v8556_v48 = vmul.f32 %v16720_v5, %v18821_v20 }
0x67ee   :  { %v8560_v27 = vpop.permute.xlu1 %8559 }
0x67ef   :  { %v8565_v37 = vmul.f32 %v16718_v29, %v8560_v27 }
0x67f0   :  { %v8562_v58 = vpop.permute.xlu0 %8561 }
0x67f1   :  { %8569 = vrot.lane.b32.xlu1 %v8565_v37, %s16949_s23  ;;  %v8566_v23 = vmul.f32 %v16720_v5, %v8562_v58 }
0x67f3   :  { %8571 = vrot.lane.b32.xlu0 %v8566_v23, %s16949_s23 }
0x6863   :  { %v8570_v61 = vpop.permute.xlu1 %8569 }
0x6864   :  { %v18944_v9 = vadd.f32 %v8570_v61, %v8555_v14 }
0x6865   :  { %v8572_v60 = vpop.permute.xlu0 %8571 }
0x6866   :  { %16721 = vtanh.f32 %v18944_v9  ;;  %v18948_v44 = vadd.f32 %v8572_v60, %v8556_v48 }
0x6868   :  { %16723 = vtanh.f32 %v18948_v44 }
0x6870   :  { %v16722_v33 = vpop.eup %16721 }
0x6871   :  { %8581 = vrot.lane.b32.xlu1 %v16722_v33, %s16951_s25 }
0x6872   :  { %v16724_v56 = vpop.eup %16723 }
0x6873   :  { %8583 = vrot.lane.b32.xlu0 %v16724_v56, %s16951_s25 }
0x68e3   :  { %v8582_v46 = vpop.permute.xlu1 %8581 }
0x68e4   :  { %v8587_v22 = vmul.f32 %v16718_v29, %v8582_v46 }
0x68e5   :  { %v8584_v12 = vpop.permute.xlu0 %8583 }
0x68e6   :  { %v8588_v18 = vmul.f32 %v16720_v5, %v8584_v12 }
0x68e8   :  { %v8661_v36 = vcombine.low %v8587_v22, %v8588_v18 }
0x68ea   :  { %v8668_v20 = vrot.slane %v8661_v36, %v17606_v17 }
0x68ec   :  { %v8675_v40 = vrot.slane %v8668_v20, %v17606_v17 }
0x68ee   :  { %8676 = vrot.lane.b32.xlu1 %v8675_v40, %s16952_s26 }
0x6960   :  { %v18956_v49 = vpop.permute.xlu1 %8676 }
0x6961   :  { %15443 = vmatmul.mubr.msk.f32.vlgmr.msra.gmra.mrb[50].mxu0 %vm190_vm1, %v18956_v49 }
0x6962   :  { %15941 = vmatpush3.bf16.msra.mxu0 %v18758_v32  ;;  %15456 = vmatprep.mubr.msk.f32.mxu0 %vm19980_vm2, %v16944_v1 }
0x6963   :  { %15945 = vmatprep.subr.bf16.mxu0 %v16940_v0 }
0x6a34   :  { %v8746_v13 = vpop.f32.mrb[50].mxu0 }
0x6a35   :  { %v8747_v4 = vadd.f32 %v8746_v13, %v18921_v63  ;;  %v15444_v2 = vpop.f32.mrb[51].mxu0 }
0x6a37   :  { %v8750_v28 = vadd.f32 %v18681_v50, %v8747_v4 }
0x6a39   :  { %16725 = vtanh.f32 %v8750_v28  ;;  %v14678_v54 = vmul.f32 -1.442695, %v8750_v28 }
0x6a3b   :  { %16727 = vpow2.f32 %v14678_v54 }
0x6a43   :  { %v16726_v31 = vpop.eup %16725 }
0x6a44   :  { %8760 = vrot.lane.b32.xlu0 %v16726_v31, %s16948_s22 }
0x6a45   :  { %v16728_v25 = vpop.eup %16727 }
0x6a46   :  { %v8754_v59 = vadd.f32 1.0, %v16728_v25 }
0x6a48   :  { %16729 = vrcp.f32 %v8754_v59 }
0x6a52   :  { %v16730_v41 = vpop.eup %16729 }
0x6a53   :  { %v8758_v3 = vmul.f32 %v16730_v41, %v18842_v26 }
0x6ab6   :  { %v8761_v19 = vpop.permute.xlu0 %8760 }
0x6ab7   :  { %v8763_v15 = vmul.f32 %v16730_v41, %v8761_v19 }
0x6ab9   :  { %8765 = vrot.lane.b32.xlu1 %v8763_v15, %s16949_s23 }
0x6b2b   :  { %v8766_v63 = vpop.permute.xlu1 %8765 }
0x6b2c   :  { %v18969_v34 = vadd.f32 %v8766_v63, %v8758_v3 }
0x6b2e   :  { %16731 = vtanh.f32 %v18969_v34 }
0x6b38   :  { %v16732_v50 = vpop.eup %16731 }
0x6b39   :  { %8771 = vrot.lane.b32.xlu0 %v16732_v50, %s16951_s25 }
0x6bab   :  { %v8772_v35 = vpop.permute.xlu0 %8771 }
0x6bac   :  { %v8774_v42 = vmul.f32 %v16730_v41, %v8772_v35 }
0x6bae   :  { %8776 = vrot.lane.b32.xlu1 %v8774_v42, %s16952_s26 }
0x6c20   :  { %v18974_v6 = vpop.permute.xlu1 %8776 }
0x6c21   :  { %15450 = vmatmul.mubr.msk.f32.vlgmr.msra.gmra.mrb[56].mxu1 %vm190_vm1, %v18974_v6 }
0x6c22   :  { %15944 = vmatpush3.bf16.msra.mxu1 %v18446_v11  ;;  %15463 = vmatprep.mubr.msk.f32.mxu1 %vm19980_vm2, %v16944_v1 }
0x6c23   :  { %15948 = vmatprep.subr.bf16.mxu1 %v16940_v0 }
0x6cf4   :  { %v8846_v26 = vpop.f32.mrb[56].mxu1 }
0x6cf5   :  { %v8847_v39 = vadd.f32 %v18715_v43, %v8846_v26  ;;  %v15451_v29 = vpop.f32.mrb[57].mxu1 }
0x6cf7   :  { %v8857_v27 = vrot.slane %v8847_v39, %v17606_v17 }
0x6cf9   :  { %v8858_v37 = vcombine.high %v8857_v27, %v8857_v27  ;;  %v8865_v5 = vrot.slane %v8857_v27, %v17606_v17 }
0x6cfb   :  { %v8872_v58 = vrot.slane %v8858_v37, %v17606_v17  ;;  %v8876_v23 = vrot.slane %v8865_v5, %v17650_v21 }
0x6cfd   :  { %v8883_v14 = vmul.f32 %v8876_v23, %v18721_v51  ;;  %v8880_v61 = vrot.slane %v8872_v58, %v17650_v21 }
0x6cff   :  { %v8885_v48 = vsel %vm190_vm1, %v8883_v14, 0.0  ;;  %v8884_v60 = vmul.f32 %v8880_v61, %v18726_v8 }
0x6d00   :  { %8886 = vadd.xlane.f32.xlu0 %v8885_v48 }
0x6d01   :  { %v8888_v43 = vsel %vm190_vm1, %v8884_v60, 0.0 }
0x6d02   :  { %8889 = vadd.xlane.f32.xlu1 %v8888_v43 }
0x6d8d   :  { %v8887_v33 = vpop.xlane.xlu0 %8886 }
0x6d8e   :  { %v8896_v46 = vrot.slane %v8887_v33, %v18735_v7 }
0x6d8f   :  { %v8890_v56 = vpop.xlane.xlu1 %8889 }
0x6d90   :  { %v8900_v12 = vrot.slane %v8890_v56, %v18735_v7 }
0x6d92   :  { %v8901_v22 = vsel %vm19989_vm12, %v8900_v12, %v8896_v46  ;;  %vm19996_vm12 = vmmov %vm19990_vm4 }
0x6d93   :  { %v8903_v18 = vsel %vm18741_vm0, -1e+10, %v8901_v22 }
0x6d94   :  { %v8904_v36 = vsel %vm7546_vm3, %v8903_v18, -inf }
0x6d95   :  { %8905 = vmax.xlane.f32.xlu0 %v8904_v36 }
0x6e22   :  { %v8906_v20 = vpop.xlane.xlu0 %8905 }
0x6e23   :  { %v8907_v40 = vsub.f32 %v8903_v18, %v8906_v20 }
0x6e25   :  { %v8908_v13 = vmul.f32 1.442695, %v8907_v40 }
0x6e27   :  { %16733 = vpow2.f32 %v8908_v13 }
0x6e31   :  { %v16734_v4 = vpop.eup %16733 }
0x6e32   :  { %v8910_v2 = vsel %vm7546_vm3, %v16734_v4, 0.0 }
0x6e33   :  { %8911 = vadd.xlane.f32.xlu0 %v8910_v2 }
0x6ec0   :  { %v8912_v28 = vpop.xlane.xlu0 %8911 }
0x6ec1   :  { %16735 = vrcp.f32 %v8912_v28 }
0x6ecb   :  { %v16736_v31 = vpop.eup %16735 }
0x6ecc   :  { %v8914_v54 = vmul.f32 %v16736_v31, %v16734_v4 }
0x6ece   :  { %v8925_v25 = vrot.slane %v8914_v54, %v18751_v38  ;;  %v8918_v59 = vrot.slane %v8914_v54, %v17650_v21  ;;  %v6943_v54 = vcombine.high %v18803_v55, %v18803_v55 }
0x6ed0   :  { %8927 = vbcast.lane.b32.xlu0 %v8925_v25, 256  ;;  %8920 = vbcast.lane.b32.xlu1 %v8918_v59, 256 }
0x6f42   :  { %v8928_v41 = vpop.permute.xlu0 %8927  ;;  %v8921_v19 = vpop.permute.xlu1 %8920 }
0x6f43   :  { %v8930_v15 = vmul.f32 %v8928_v41, %v18726_v8  ;;  %v8929_v3 = vmul.f32 %v8921_v19, %v18721_v51 }
0x6f45   :  { %v8938_v63 = vsel %vm7574_vm6, %v8930_v15, 0.0  ;;  %v8931_v50 = vsel %vm7574_vm6, %v8929_v3, 0.0 }
0x6f46   :  { %v8939_v35 = vrot.slane %v8938_v63, 4  ;;  %v8932_v42 = vrot.slane %v8931_v50, 4 }
0x6f48   :  { %v8940_v26 = vadd.f32 %v8939_v35, %v8938_v63  ;;  %v8933_v39 = vadd.f32 %v8932_v42, %v8931_v50 }
0x6f4a   :  { %v8941_v29 = vrot.slane %v8940_v26, 2  ;;  %v8934_v27 = vrot.slane %v8933_v39, 2 }
0x6f4c   :  { %v8942_v37 = vadd.f32 %v8941_v29, %v8940_v26  ;;  %v8935_v5 = vadd.f32 %v8934_v27, %v8933_v39 }
0x6f4e   :  { %v8943_v58 = vrot.slane %v8942_v37, 1  ;;  %v8936_v23 = vrot.slane %v8935_v5, 1 }
0x6f50   :  { %v8937_v14 = vadd.f32 %v8936_v23, %v8935_v5  ;;  %v8944_v61 = vadd.f32 %v8943_v58, %v8942_v37 }
0x6f52   :  { %v8947_v48 = vsel %vm19990_vm4, %v8944_v61, %v8937_v14 }
0x6f53   :  { %8948 = vrot.lane.b32.xlu1 %v8947_v48, %s16950_s24 }
0x6fc5   :  { %v8949_v60 = vpop.permute.xlu1 %8948 }
0x6fc6   :  { %15457 = vmatmul.mubr.msk.f32.vlgmr.msra.gmra.mrb[52].mxu0 %vm190_vm1, %v8949_v60  ;;  %15464 = vmatmul.mubr.msk.f32.vlgmr.msra.gmra.mrb[58].mxu1 %vm190_vm1, %v8949_v60 }
0x6fc7   :  { %15947 = vmatpush3.bf16.msra.mxu0 %v18592_v53  ;;  %15950 = vmatpush3.bf16.msra.mxu1 %v18655_v30 }
0x6fc8   :  { %15470 = vmatprep.mubr.msk.f32.mxu0 %vm19980_vm2, %v16944_v1  ;;  %15477 = vmatprep.mubr.msk.f32.mxu1 %vm19980_vm2, %v16944_v1 }
0x6fc9   :  { %15951 = vmatprep.subr.bf16.mxu0 %v16940_v0  ;;  %15954 = vmatprep.subr.bf16.mxu1 %v16940_v0 }
0x6fca   :  { %15471 = vmatmul.mubr.msk.f32.vlgmr.msra.gmra.mrb[54].mxu0 %vm190_vm1, %v18956_v49  ;;  %15478 = vmatmul.mubr.msk.f32.vlgmr.msra.gmra.mrb[60].mxu1 %vm190_vm1, %v18974_v6  ;;  %v19031_v49 = vrot.slane %v18608_v62, %v17606_v17 }
0x6fcb   :  { %15953 = vmatpush3.bf16.msra.mxu0 %v18657_v45  ;;  %15484 = vmatprep.mubr.msk.f32.mxu0 %vm19980_vm2, %v16944_v1 }
0x6fcc   :  { %15956 = vmatpush3.bf16.msra.mxu1 %v18692_v47  ;;  %15491 = vmatprep.mubr.msk.f32.mxu1 %vm19980_vm2, %v16944_v1  ;;  %v6959_v13 = vrot.slane %v19031_v49, %v17606_v17 }
0x6fcd   :  { %15957 = vmatprep.subr.bf16.mxu0 %v16940_v0  ;;  %15960 = vmatprep.subr.bf16.mxu1 %v16940_v0 }
0x7099   :  { %v9018_v43 = vpop.f32.mrb[52].mxu0  ;;  %v9088_v33 = vpop.f32.mrb[58].mxu1 }
0x709a   :  { %v9019_v6 = vadd.f32 %v18908_v24, %v9018_v43  ;;  %v9099_v56 = vrot.slane %v9088_v33, %v17606_v17  ;;  %v15458_v46 = vpop.f32.mrb[53].mxu0  ;;  %v15465_v12 = vpop.f32.mrb[59].mxu1 }
0x709c   :  { %v10427_v22 = vrot.slane %v9019_v6, %v17606_v17  ;;  %v9100_v18 = vcombine.high %v9099_v56, %v9099_v56  ;;  %v9107_v36 = vrot.slane %v9099_v56, %v17606_v17 }
0x709d   :  { %v9185_v20 = vpop.f32.mrb[54].mxu0  ;;  %v19037_v40 = vpop.f32.mrb[60].mxu1 }
0x709e   :  { %v10428_v4 = vcombine.high %v10427_v22, %v10427_v22  ;;  %v10435_v62 = vrot.slane %v10427_v22, %v17606_v17  ;;  %v9114_v2 = vrot.slane %v9100_v18, %v17606_v17  ;;  %v15472_v28 = vpop.f32.mrb[55].mxu0  ;;  %v15479_v31 = vpop.f32.mrb[61].mxu1  ;;  %v9196_v25 = vrot.slane %v9185_v20, %v17606_v17 }
0x709f   :  { %v9117_v15 = vadd.f32 %v9107_v36, %v6943_v54 }
0x70a0   :  { %v10442_v59 = vrot.slane %v10428_v4, %v17606_v17  ;;  %v10502_v41 = vrot.slane %v10435_v62, %v17650_v21  ;;  %v9118_v19 = vadd.f32 %v9114_v2, %v6959_v13  ;;  %v9197_v3 = vcombine.high %v9196_v25, %v9196_v25 }
0x70a1   :  { %v9204_v63 = vrot.slane %v9196_v25, %v17606_v17 }
0x70a2   :  { %v10506_v50 = vrot.slane %v10442_v59, %v17650_v21  ;;  %v19052_v35 = vsel %vm1785_vm13, %v18933_v16, %v10502_v41  ;;  %v9211_v42 = vrot.slane %v9197_v3, %v17606_v17  ;;  %v19086_v41 = vld [vmem:[%s18678_s17] ss:$0 sm:$0xff]  ;;  %s16984_s17 = smov 28  }
0x70a3   :  { %v9214_v55 = vadd.f32 %v9204_v63, %v9117_v15  ;;  %s14529_s20 = sld [smem:[%s19928_s0 + %s16984_s17]]  }
0x70a4   :  { %v19057_v26 = vsel %vm1785_vm13, %v18937_v52, %v10506_v50  ;;  %v9215_v39 = vadd.f32 %v9211_v42, %v9118_v19 }
0x70a5   :  { %16737 = vtanh.f32 %v9214_v55  ;;  %v14683_v37 = vmul.f32 -1.442695, %v9214_v55 }
0x70a6   :  { %16739 = vtanh.f32 %v9215_v39  ;;  %v14684_v5 = vmul.f32 -1.442695, %v9215_v39 }
0x70a7   :  { %16741 = vpow2.f32 %v14683_v37 }
0x70a8   :  { %16743 = vpow2.f32 %v14684_v5 }
0x70af   :  { %v16738_v29 = vpop.eup %16737 }
0x70b0   :  { %9234 = vrot.lane.b32.xlu1 %v16738_v29, %s16948_s22  ;;  %v16740_v27 = vpop.eup %16739 }
0x70b1   :  { %9236 = vrot.lane.b32.xlu0 %v16740_v27, %s16948_s22  ;;  %v16742_v16 = vpop.eup %16741 }
0x70b2   :  { %v16744_v58 = vpop.eup %16743  ;;  %v9222_v23 = vadd.f32 1.0, %v16742_v16 }
0x70b3   :  { %v9223_v14 = vadd.f32 1.0, %v16744_v58 }
0x70b4   :  { %16745 = vrcp.f32 %v9222_v23  ;;  %v19106_v23 = vld [vmem:[%s18709_s30] ss:$0 sm:$0xff]  ;;  %s16986_s30 = smov 36  }
0x70b5   :  { %16747 = vrcp.f32 %v9223_v14  ;;  %s14537_s3 = sld [smem:[%s19928_s0 + %s16986_s30]]  }
0x70be   :  { %v16746_v52 = vpop.eup %16745 }
0x70bf   :  { %v16748_v60 = vpop.eup %16747  ;;  %v9230_v6 = vmul.f32 %v16746_v52, %v18944_v9 }
0x70c0   :  { %v9231_v12 = vmul.f32 %v16748_v60, %v18948_v44 }
0x7122   :  { %v9235_v61 = vpop.permute.xlu1 %9234 }
0x7123   :  { %v9240_v48 = vmul.f32 %v16746_v52, %v9235_v61  ;;  %v9237_v43 = vpop.permute.xlu0 %9236 }
0x7124   :  { %v9241_v33 = vmul.f32 %v16748_v60, %v9237_v43 }
0x7125   :  { %9244 = vrot.lane.b32.xlu1 %v9240_v48, %s16949_s23 }
0x7126   :  { %9246 = vrot.lane.b32.xlu0 %v9241_v33, %s16949_s23 }
0x7197   :  { %v9245_v56 = vpop.permute.xlu1 %9244 }
0x7198   :  { %v19064_v46 = vadd.f32 %v9245_v56, %v9230_v6  ;;  %v9247_v22 = vpop.permute.xlu0 %9246 }
0x7199   :  { %v19068_v18 = vadd.f32 %v9247_v22, %v9231_v12 }
0x719a   :  { %16749 = vtanh.f32 %v19064_v46 }
0x719b   :  { %16751 = vtanh.f32 %v19068_v18 }
0x71a4   :  { %v16750_v36 = vpop.eup %16749 }
0x71a5   :  { %9256 = vrot.lane.b32.xlu1 %v16750_v36, %s16951_s25  ;;  %v16752_v20 = vpop.eup %16751 }
0x71a6   :  { %9258 = vrot.lane.b32.xlu0 %v16752_v20, %s16951_s25 }
0x7217   :  { %v9257_v13 = vpop.permute.xlu1 %9256 }
0x7218   :  { %v9259_v9 = vpop.permute.xlu0 %9258  ;;  %v9262_v4 = vmul.f32 %v16746_v52, %v9257_v13 }
0x7219   :  { %v9263_v62 = vmul.f32 %v16748_v60, %v9259_v9 }
0x721b   :  { %v9336_v2 = vcombine.low %v9262_v4, %v9263_v62 }
0x721d   :  { %v9343_v44 = vrot.slane %v9336_v2, %v17606_v17 }
0x721f   :  { %v9350_v28 = vrot.slane %v9343_v44, %v17606_v17 }
0x7221   :  { %9351 = vrot.lane.b32.xlu1 %v9350_v28, %s16952_s26 }
0x7293   :  { %v19076_v31 = vpop.permute.xlu1 %9351 }
0x7294   :  { %15485 = vmatmul.mubr.msk.f32.vlgmr.msra.gmra.mrb[56].mxu0 %vm190_vm1, %v19076_v31 }
0x7295   :  { %15959 = vmatpush3.bf16.msra.mxu0 %v18758_v32  ;;  %15498 = vmatprep.mubr.msk.f32.mxu0 %vm19980_vm2, %v16944_v1 }
0x7296   :  { %15963 = vmatprep.subr.bf16.mxu0 %v16940_v0 }
0x7367   :  { %v9421_v54 = vpop.f32.mrb[56].mxu0 }
0x7368   :  { %v9422_v25 = vadd.f32 %v9421_v54, %v19037_v40  ;;  %v15486_v59 = vpop.f32.mrb[57].mxu0 }
0x736a   :  { %v9425_v19 = vadd.f32 %v19086_v41, %v9422_v25 }
0x736c   :  { %16753 = vtanh.f32 %v9425_v19  ;;  %v14687_v3 = vmul.f32 -1.442695, %v9425_v19 }
0x736e   :  { %16755 = vpow2.f32 %v14687_v3 }
0x7376   :  { %v16754_v15 = vpop.eup %16753 }
0x7377   :  { %9435 = vrot.lane.b32.xlu0 %v16754_v15, %s16948_s22 }
0x7378   :  { %v16756_v63 = vpop.eup %16755 }
0x7379   :  { %v9429_v50 = vadd.f32 1.0, %v16756_v63 }
0x737b   :  { %16757 = vrcp.f32 %v9429_v50 }
0x7385   :  { %v16758_v42 = vpop.eup %16757 }
0x7386   :  { %v9433_v40 = vmul.f32 %v16758_v42, %v18969_v34 }
0x73e9   :  { %v9436_v55 = vpop.permute.xlu0 %9435 }
0x73ea   :  { %v9438_v39 = vmul.f32 %v16758_v42, %v9436_v55 }
0x73ec   :  { %9440 = vrot.lane.b32.xlu1 %v9438_v39, %s16949_s23 }
0x745e   :  { %v9441_v29 = vpop.permute.xlu1 %9440 }
0x745f   :  { %v19092_v27 = vadd.f32 %v9441_v29, %v9433_v40 }
0x7461   :  { %16759 = vtanh.f32 %v19092_v27 }
0x746b   :  { %v16760_v37 = vpop.eup %16759 }
0x746c   :  { %9446 = vrot.lane.b32.xlu0 %v16760_v37, %s16951_s25 }
0x74de   :  { %v9447_v5 = vpop.permute.xlu0 %9446 }
0x74df   :  { %v9449_v16 = vmul.f32 %v16758_v42, %v9447_v5 }
0x74e1   :  { %9451 = vrot.lane.b32.xlu1 %v9449_v16, %s16952_s26 }
0x7553   :  { %v19097_v58 = vpop.permute.xlu1 %9451 }
0x7554   :  { %15492 = vmatmul.mubr.msk.f32.vlgmr.msra.gmra.mrb[62].mxu1 %vm190_vm1, %v19097_v58 }
0x7555   :  { %15962 = vmatpush3.bf16.msra.mxu1 %v18446_v11  ;;  %15505 = vmatprep.mubr.msk.f32.mxu1 %vm19980_vm2, %v16944_v1 }
0x7556   :  { %15966 = vmatprep.subr.bf16.mxu1 %v16940_v0 }
0x7627   :  { %v9521_v34 = vpop.f32.mrb[62].mxu1 }
0x7628   :  { %v9522_v14 = vadd.f32 %v19106_v23, %v9521_v34  ;;  %v15493_v52 = vpop.f32.mrb[63].mxu1 }
0x762a   :  { %v9532_v61 = vrot.slane %v9522_v14, %v17606_v17 }
0x762c   :  { %v9533_v48 = vcombine.high %v9532_v61, %v9532_v61  ;;  %v9540_v60 = vrot.slane %v9532_v61, %v17606_v17 }
0x762e   :  { %v9547_v43 = vrot.slane %v9533_v48, %v17606_v17  ;;  %v9551_v11 = vrot.slane %v9540_v60, %v17650_v21 }
0x7630   :  { %v9558_v33 = vmul.f32 %v9551_v11, %v18721_v51  ;;  %v9555_v6 = vrot.slane %v9547_v43, %v17650_v21 }
0x7632   :  { %v9560_v56 = vsel %vm190_vm1, %v9558_v33, 0.0  ;;  %v9559_v12 = vmul.f32 %v9555_v6, %v18726_v8 }
0x7633   :  { %9561 = vadd.xlane.f32.xlu0 %v9560_v56 }
0x7634   :  { %v9563_v22 = vsel %vm190_vm1, %v9559_v12, 0.0 }
0x7635   :  { %9564 = vadd.xlane.f32.xlu1 %v9563_v22 }
0x76c0   :  { %v9562_v36 = vpop.xlane.xlu0 %9561 }
0x76c1   :  { %v9571_v13 = vrot.slane %v9562_v36, %v18735_v7 }
0x76c2   :  { %v9565_v20 = vpop.xlane.xlu1 %9564 }
0x76c3   :  { %v9575_v9 = vrot.slane %v9565_v20, %v18735_v7 }
0x76c5   :  { %v9576_v4 = vsel %vm19991_vm5, %v9575_v9, %v9571_v13  ;;  %vm19997_vm5 = vmmov %vm19990_vm4 }
0x76c6   :  { %v9578_v62 = vsel %vm18741_vm0, -1e+10, %v9576_v4 }
0x76c7   :  { %v9579_v2 = vsel %vm7546_vm3, %v9578_v62, -inf }
0x76c8   :  { %9580 = vmax.xlane.f32.xlu0 %v9579_v2 }
0x7755   :  { %v9581_v44 = vpop.xlane.xlu0 %9580 }
0x7756   :  { %v9582_v28 = vsub.f32 %v9578_v62, %v9581_v44 }
0x7758   :  { %v9583_v54 = vmul.f32 1.442695, %v9582_v28 }
0x775a   :  { %16761 = vpow2.f32 %v9583_v54 }
0x7764   :  { %v16762_v25 = vpop.eup %16761 }
0x7765   :  { %v9585_v59 = vsel %vm7546_vm3, %v16762_v25, 0.0 }
0x7766   :  { %9586 = vadd.xlane.f32.xlu0 %v9585_v59 }
0x77f3   :  { %v9587_v19 = vpop.xlane.xlu0 %9586 }
0x77f4   :  { %16763 = vrcp.f32 %v9587_v19 }
0x77fe   :  { %v16764_v15 = vpop.eup %16763 }
0x77ff   :  { %v9589_v3 = vmul.f32 %v16764_v15, %v16762_v25 }
0x7801   :  { %v9600_v63 = vrot.slane %v9589_v3, %v18751_v38  ;;  %v9593_v50 = vrot.slane %v9589_v3, %v17650_v21 }
0x7803   :  { %9602 = vbcast.lane.b32.xlu0 %v9600_v63, 256  ;;  %9595 = vbcast.lane.b32.xlu1 %v9593_v50, 256 }
0x7875   :  { %v9603_v42 = vpop.permute.xlu0 %9602  ;;  %v9596_v55 = vpop.permute.xlu1 %9595 }
0x7876   :  { %v9605_v39 = vmul.f32 %v9603_v42, %v18726_v8  ;;  %v9604_v40 = vmul.f32 %v9596_v55, %v18721_v51 }
0x7878   :  { %v9613_v29 = vsel %vm7574_vm6, %v9605_v39, 0.0  ;;  %v9606_v37 = vsel %vm7574_vm6, %v9604_v40, 0.0 }
0x7879   :  { %v9614_v5 = vrot.slane %v9613_v29, 4  ;;  %v9607_v16 = vrot.slane %v9606_v37, 4 }
0x787b   :  { %v9615_v34 = vadd.f32 %v9614_v5, %v9613_v29  ;;  %v9608_v14 = vadd.f32 %v9607_v16, %v9606_v37 }
0x787d   :  { %v9616_v52 = vrot.slane %v9615_v34, 2  ;;  %v9609_v61 = vrot.slane %v9608_v14, 2 }
0x787f   :  { %v9617_v48 = vadd.f32 %v9616_v52, %v9615_v34  ;;  %v9610_v60 = vadd.f32 %v9609_v61, %v9608_v14 }
0x7881   :  { %v9618_v43 = vrot.slane %v9617_v48, 1  ;;  %v9611_v11 = vrot.slane %v9610_v60, 1 }
0x7883   :  { %v9612_v33 = vadd.f32 %v9611_v11, %v9610_v60  ;;  %v9619_v6 = vadd.f32 %v9618_v43, %v9617_v48 }
0x7885   :  { %v9622_v56 = vsel %vm19992_vm7, %v9619_v6, %v9612_v33  ;;  %vm19998_vm7 = vcmask 1040384  }
0x7886   :  { %9623 = vrot.lane.b32.xlu1 %v9622_v56, %s16950_s24 }
0x78f8   :  { %v9624_v12 = vpop.permute.xlu1 %9623 }
0x78f9   :  { %15499 = vmatmul.mubr.msk.f32.vlgmr.msra.gmra.mrb[58].mxu0 %vm190_vm1, %v9624_v12  ;;  %15506 = vmatmul.mubr.msk.f32.vlgmr.msra.gmra.mrb[64].mxu1 %vm190_vm1, %v9624_v12 }
0x78fa   :  { %15965 = vmatpush3.bf16.msra.mxu0 %v18592_v53  ;;  %15968 = vmatpush3.bf16.msra.mxu1 %v18655_v30 }
0x78fb   :  { %15512 = vmatprep.mubr.msk.f32.mxu0 %vm19980_vm2, %v16944_v1  ;;  %15519 = vmatprep.mubr.msk.f32.mxu1 %vm19980_vm2, %v16944_v1 }
0x78fc   :  { %15969 = vmatprep.subr.bf16.mxu0 %v16940_v0  ;;  %15972 = vmatprep.subr.bf16.mxu1 %v16940_v0 }
0x78fd   :  { %15513 = vmatmul.mubr.msk.f32.vlgmr.msra.gmra.mrb[60].mxu0 %vm190_vm1, %v19076_v31  ;;  %15520 = vmatmul.mubr.msk.f32.vlgmr.msra.gmra.mrb[66].mxu1 %vm190_vm1, %v19097_v58  ;;  %v6952_v31 = vcombine.high %v19031_v49, %v19031_v49 }
0x78fe   :  { %15971 = vmatpush3.bf16.msra.mxu0 %v18657_v45  ;;  %15526 = vmatprep.mubr.msk.f32.mxu0 %vm19980_vm2, %v16944_v1 }
0x78ff   :  { %15974 = vmatpush3.bf16.msra.mxu1 %v18692_v47  ;;  %15533 = vmatprep.mubr.msk.f32.mxu1 %vm19980_vm2, %v16944_v1  ;;  %v6966_v62 = vrot.slane %v6952_v31, %v17606_v17 }
0x7900   :  { %15975 = vmatprep.subr.bf16.mxu0 %v16940_v0 }
0x79cc   :  { %v9693_v53 = vpop.f32.mrb[58].mxu0  ;;  %v9763_v30 = vpop.f32.mrb[64].mxu1 }
0x79cd   :  { %v9694_v22 = vadd.f32 %v18908_v24, %v9693_v53  ;;  %v9774_v58 = vrot.slane %v9763_v30, %v17606_v17  ;;  %v15500_v45 = vpop.f32.mrb[59].mxu0  ;;  %v15507_v36 = vpop.f32.mrb[65].mxu1 }
0x79cf   :  { %v10450_v20 = vrot.slane %v9694_v22, %v17606_v17  ;;  %v9775_v13 = vcombine.high %v9774_v58, %v9774_v58  ;;  %v9782_v47 = vrot.slane %v9774_v58, %v17606_v17 }
0x79d0   :  { %v9860_v9 = vpop.f32.mrb[60].mxu0  ;;  %v19160_v4 = vpop.f32.mrb[66].mxu1 }
0x79d1   :  { %v10451_v2 = vcombine.high %v10450_v20, %v10450_v20  ;;  %v10458_v44 = vrot.slane %v10450_v20, %v17606_v17  ;;  %v9789_v49 = vrot.slane %v9775_v13, %v17606_v17  ;;  %v15514_v24 = vpop.f32.mrb[61].mxu0  ;;  %v15521_v28 = vpop.f32.mrb[67].mxu1  ;;  %v9871_v54 = vrot.slane %v9860_v9, %v17606_v17 }
0x79d2   :  { %v9792_v15 = vadd.f32 %v9782_v47, %v18797_v10 }
0x79d3   :  { %v10465_v25 = vrot.slane %v10451_v2, %v17606_v17  ;;  %v10512_v59 = vrot.slane %v10458_v44, %v17650_v21  ;;  %v9793_v19 = vadd.f32 %v9789_v49, %v6966_v62  ;;  %v9872_v3 = vcombine.high %v9871_v54, %v9871_v54 }
0x79d4   :  { %v9879_v63 = vrot.slane %v9871_v54, %v17606_v17 }
0x79d5   :  { %v10516_v50 = vrot.slane %v10465_v25, %v17650_v21  ;;  %v19173_v42 = vsel %vm1788_vm14, %v19052_v35, %v10512_v59  ;;  %v9886_v55 = vrot.slane %v9872_v3, %v17606_v17 }
0x79d6   :  { %v9889_v39 = vadd.f32 %v9879_v63, %v9792_v15 }
0x79d7   :  { %v19178_v40 = vsel %vm1788_vm14, %v19057_v26, %v10516_v50  ;;  %v9890_v29 = vadd.f32 %v9886_v55, %v9793_v19 }
0x79d8   :  { %16765 = vtanh.f32 %v9889_v39  ;;  %v14692_v5 = vmul.f32 -1.442695, %v9889_v39 }
0x79d9   :  { %16767 = vtanh.f32 %v9890_v29  ;;  %v14693_v16 = vmul.f32 -1.442695, %v9890_v29 }
0x79da   :  { %16769 = vpow2.f32 %v14692_v5 }
0x79db   :  { %16771 = vpow2.f32 %v14693_v16 }
0x79e2   :  { %v16766_v10 = vpop.eup %16765 }
0x79e3   :  { %9909 = vrot.lane.b32.xlu1 %v16766_v10, %s16948_s22  ;;  %v16768_v37 = vpop.eup %16767 }
0x79e4   :  { %9911 = vrot.lane.b32.xlu0 %v16768_v37, %s16948_s22  ;;  %v16770_v35 = vpop.eup %16769 }
0x79e5   :  { %v16772_v34 = vpop.eup %16771  ;;  %v9897_v14 = vadd.f32 1.0, %v16770_v35 }
0x79e6   :  { %v9898_v52 = vadd.f32 1.0, %v16772_v34 }
0x79e7   :  { %16773 = vrcp.f32 %v9897_v14 }
0x79e8   :  { %16775 = vrcp.f32 %v9898_v52 }
0x79f1   :  { %v16774_v26 = vpop.eup %16773 }
0x79f2   :  { %v16776_v60 = vpop.eup %16775  ;;  %v9905_v33 = vmul.f32 %v16774_v26, %v19064_v46 }
0x79f3   :  { %v9906_v12 = vmul.f32 %v16776_v60, %v19068_v18 }
0x7a55   :  { %v9910_v61 = vpop.permute.xlu1 %9909 }
0x7a56   :  { %v9915_v48 = vmul.f32 %v16774_v26, %v9910_v61  ;;  %v9912_v43 = vpop.permute.xlu0 %9911 }
0x7a57   :  { %v9916_v11 = vmul.f32 %v16776_v60, %v9912_v43 }
0x7a58   :  { %9919 = vrot.lane.b32.xlu1 %v9915_v48, %s16949_s23 }
0x7a59   :  { %9921 = vrot.lane.b32.xlu0 %v9916_v11, %s16949_s23 }
0x7aca   :  { %v9920_v6 = vpop.permute.xlu1 %9919 }
0x7acb   :  { %v9925_v56 = vadd.f32 %v9920_v6, %v9905_v33  ;;  %v9922_v53 = vpop.permute.xlu0 %9921 }
0x7acc   :  { %v9926_v30 = vadd.f32 %v9922_v53, %v9906_v12 }
0x7acd   :  { %16777 = vtanh.f32 %v9925_v56 }
0x7ace   :  { %16779 = vtanh.f32 %v9926_v30 }
0x7ad7   :  { %v16778_v31 = vpop.eup %16777 }
0x7ad8   :  { %9931 = vrot.lane.b32.xlu1 %v16778_v31, %s16951_s25  ;;  %v16780_v22 = vpop.eup %16779 }
0x7ad9   :  { %9933 = vrot.lane.b32.xlu0 %v16780_v22, %s16951_s25 }
0x7b4a   :  { %v9932_v58 = vpop.permute.xlu1 %9931 }
0x7b4b   :  { %v9934_v45 = vpop.permute.xlu0 %9933  ;;  %v9937_v36 = vmul.f32 %v16774_v26, %v9932_v58 }
0x7b4c   :  { %v9938_v20 = vmul.f32 %v16776_v60, %v9934_v45 }
0x7b4e   :  { %v10011_v13 = vcombine.low %v9937_v36, %v9938_v20  ;;  %v10637_v20 = vld [vmem:[%s14534_s16] sm:$0xff] }
0x7b50   :  { %v10018_v46 = vrot.slane %v10011_v13, %v17606_v17  ;;  %v10638_v13 = vld [vmem:[%s14534_s16 + $0x8] sm:$0xff] }
0x7b52   :  { %v10025_v47 = vrot.slane %v10018_v46, %v17606_v17  ;;  %v10540_v46 = vld [vmem:[%s14529_s20] sm:$0x1f] }
0x7b54   :  { %10026 = vrot.lane.b32.xlu1 %v10025_v47, %s16952_s26  ;;  %v15978_v47 = vpack.c.bf16 %v10638_v13, %v10637_v20 }
0x7b56   :  { %15979 = vmatprep.subr.bf16.mxu1 %v15978_v47 }
0x7bc6   :  { %v10027_v18 = vpop.permute.xlu1 %10026 }
0x7bc7   :  { %15527 = vmatmul.mubr.msk.f32.vlgmr.msra.gmra.mrb[62].mxu0 %vm190_vm1, %v10027_v18  ;;  %v10541_v18 = vld [vmem:[%s14529_s20 + $0x8] sm:$0x1f] }
0x7bc8   :  { %15977 = vmatpush3.bf16.msra.mxu0 %v18758_v32  ;;  %15540 = vmatprep.mubr.msk.f32.mxu0 %vm19980_vm2, %v16944_v1 }
0x7bc9   :  { %15982 = vmatprep.subr.bf16.mxu0 %v16940_v0 }
0x7c9a   :  { %v10096_v9 = vpop.f32.mrb[62].mxu0 }
0x7c9b   :  { %v10097_v62 = vadd.f32 %v10096_v9, %v19160_v4  ;;  %v15528_v2 = vpop.f32.mrb[63].mxu0  ;;  %v10559_v9 = vcombine.high %v10540_v46, %v10540_v46 }
0x7c9c   :  { %v10598_v2 = vcombine.high %v10541_v18, %v10541_v18 }
0x7c9d   :  { %v10100_v44 = vadd.f32 %v19086_v41, %v10097_v62  ;;  %v10566_v62 = vrot.slane %v10540_v46, %v17606_v17 }
0x7c9f   :  { %16781 = vtanh.f32 %v10100_v44  ;;  %v14696_v24 = vmul.f32 -1.442695, %v10100_v44  ;;  %v10605_v44 = vrot.slane %v10541_v18, %v17606_v17 }
0x7ca1   :  { %16783 = vpow2.f32 %v14696_v24  ;;  %v10574_v24 = vcombine.high %v10566_v62, %v10566_v62 }
0x7ca9   :  { %v16782_v49 = vpop.eup %16781 }
0x7caa   :  { %10110 = vrot.lane.b32.xlu0 %v16782_v49, %s16948_s22  ;;  %v10573_v49 = vrot.slane %v10559_v9, %v17606_v17 }
0x7cab   :  { %v16784_v28 = vpop.eup %16783 }
0x7cac   :  { %v10104_v54 = vadd.f32 1.0, %v16784_v28  ;;  %v10581_v28 = vrot.slane %v10566_v62, %v17606_v17  ;;  %v14699_v62 = vld [vmem:[%s14537_s3] ss:$0 sm:$0xff] }
0x7cae   :  { %16785 = vrcp.f32 %v10104_v54  ;;  %v10613_v54 = vcombine.high %v10605_v44, %v10605_v44 }
0x7cb8   :  { %v16786_v32 = vpop.eup %16785 }
0x7cb9   :  { %v10108_v19 = vmul.f32 %v16786_v32, %v19092_v27 }
0x7d1c   :  { %v10111_v25 = vpop.permute.xlu0 %10110 }
0x7d1d   :  { %v10113_v59 = vmul.f32 %v16786_v32, %v10111_v25  ;;  %v10612_v25 = vrot.slane %v10598_v2, %v17606_v17  ;;  %v10548_v2 = vld [vmem:[%s14535_s7] sm:$0xff] }
0x7d1f   :  { %10115 = vrot.lane.b32.xlu1 %v10113_v59, %s16949_s23  ;;  %v10588_v59 = vrot.slane %v10573_v49, %v17606_v17 }
0x7d91   :  { %v10116_v4 = vpop.permute.xlu1 %10115 }
0x7d92   :  { %v10118_v15 = vadd.f32 %v10116_v4, %v10108_v19  ;;  %v10595_v19 = vrot.slane %v10574_v24, %v17606_v17  ;;  %v10634_v4 = vrot.slane %v10613_v54, %v17606_v17 }
0x7d94   :  { %16787 = vtanh.f32 %v10118_v15 }
0x7d9e   :  { %v16788_v41 = vpop.eup %16787 }
0x7d9f   :  { %10121 = vrot.lane.b32.xlu0 %v16788_v41, %s16951_s25  ;;  %v10627_v41 = vrot.slane %v10612_v25, %v17606_v17 }
0x7e11   :  { %v10122_v3 = vpop.permute.xlu0 %10121 }
0x7e12   :  { %v10124_v63 = vmul.f32 %v16786_v32, %v10122_v3  ;;  %v10620_v32 = vrot.slane %v10605_v44, %v17606_v17  ;;  %v10646_v3 = vcombine.low %v10581_v28, %v10595_v19  ;;  %v10549_v44 = vld [vmem:[%s14535_s7 + $0x8] sm:$0xff] }
0x7e13   :  { %v19276_v54 = vpack.c.bf16 %v10549_v44, %v10548_v2 }
0x7e14   :  { %10126 = vrot.lane.b32.xlu1 %v10124_v63, %s16952_s26  ;;  %v10635_v15 = vcombine.high %v10620_v32, %v10620_v32  ;;  %v14700_v63 = vcombine.high %v10581_v28, %v10595_v19 }
0x7e86   :  { %v10127_v50 = vpop.permute.xlu1 %10126 }
0x7e87   :  { %15534 = vmatmul.mubr.msk.f32.vlgmr.msra.gmra.mrb[68].mxu1 %vm190_vm1, %v10127_v50  ;;  %v10648_v50 = vcombine.low %v10588_v59, %v10620_v32 }
0x7e88   :  { %15981 = vmatpush3.bf16.msra.mxu1 %v15978_v47 }
0x7e89   :  { %15985 = vmatprep.subr.bf16.mxu1 %v16940_v0 }
0x7f5a   :  { %v10196_v55 = vpop.f32.mrb[68].mxu1 }
0x7f5b   :  { %v10197_v39 = vadd.f32 %v19106_v23, %v10196_v55  ;;  %v15535_v29 = vpop.f32.mrb[69].mxu1  ;;  %v10649_v55 = vcombine.low %v10634_v4, %v10635_v15 }
0x7f5c   :  { %v10656_v29 = vrot.slane %v10646_v3, %v17606_v17 }
0x7f5d   :  { %v10207_v10 = vrot.slane %v10197_v39, %v17606_v17  ;;  %v10636_v39 = vcombine.high %v10634_v4, %v10634_v4 }
0x7f5f   :  { %v10208_v27 = vcombine.high %v10207_v10, %v10207_v10  ;;  %v10215_v37 = vrot.slane %v10207_v10, %v17606_v17  ;;  %v10663_v10 = vrot.slane %v14700_v63, %v17606_v17  ;;  %v16936_v63 = vld [vmem:[%s18905_s12] ss:$0 sm:$0xff] }
0x7f61   :  { %v10222_v5 = vrot.slane %v10208_v27, %v17606_v17  ;;  %v10226_v16 = vrot.slane %v10215_v37, %v17650_v21  ;;  %v10670_v27 = vrot.slane %v10648_v50, %v17606_v17  ;;  %v10677_v37 = vrot.slane %v10649_v55, %v17606_v17 }
0x7f63   :  { %v10233_v35 = vmul.f32 %v10226_v16, %v18721_v51  ;;  %v10230_v34 = vrot.slane %v10222_v5, %v17650_v21  ;;  %v10695_v5 = vcombine.low %v10636_v39, %v10627_v41  ;;  %v10678_v16 = vcombine.low %v10656_v29, %v10663_v10 }
0x7f65   :  { %v10235_v14 = vsel %vm190_vm1, %v10233_v35, 0.0  ;;  %v10234_v52 = vmul.f32 %v10230_v34, %v18726_v8  ;;  %v10679_v35 = vcombine.low %v10670_v27, %v10677_v37  ;;  %v10702_v34 = vrot.slane %v10695_v5, %v17606_v17 }
0x7f66   :  { %10236 = vadd.xlane.f32.xlu0 %v10235_v14  ;;  %v10686_v14 = vrot.slane %v10678_v16, %v17606_v17 }
0x7f67   :  { %v10238_v23 = vsel %vm190_vm1, %v10234_v52, 0.0  ;;  %v10693_v52 = vrot.slane %v10679_v35, %v17606_v17 }
0x7f68   :  { %10239 = vadd.xlane.f32.xlu1 %v10238_v23  ;;  %v10709_v23 = vrot.slane %v10702_v34, %v17606_v17 }
0x7ff3   :  { %v10237_v26 = vpop.xlane.xlu0 %10236 }
0x7ff4   :  { %v10246_v48 = vrot.slane %v10237_v26, %v18735_v7  ;;  %v10694_v26 = vcombine.low %v10686_v14, %v10693_v52 }
0x7ff5   :  { %v10240_v61 = vpop.xlane.xlu1 %10239 }
0x7ff6   :  { %v10250_v60 = vrot.slane %v10240_v61, %v18735_v7  ;;  %15547 = vmatprep.mubr.msk.f32.mxu1 %vm190_vm1, %v10694_v26 }
0x7ff7   :  { %15548 = vmatmul.mubr.msk.f32.vlgmr.msra.gmra.mrb[70].mxu1 %vm190_vm1, %v10709_v23 }
0x7ff8   :  { %v10251_v43 = vsel %vm19993_vm8, %v10250_v60, %v10246_v48  ;;  %15561 = vmatprep.mubr.msk.f32.mxu1 %vm19980_vm2, %v16944_v1  ;;  %vm19999_vm8 = vmmov %vm19998_vm7 }
0x7ff9   :  { %v10253_v11 = vsel %vm18741_vm0, -1e+10, %v10251_v43 }
0x7ffa   :  { %v10254_v33 = vsel %vm7546_vm3, %v10253_v11, -inf }
0x7ffb   :  { %10255 = vmax.xlane.f32.xlu0 %v10254_v33 }
0x8088   :  { %v10256_v6 = vpop.xlane.xlu0 %10255 }
0x8089   :  { %v10257_v56 = vsub.f32 %v10253_v11, %v10256_v6  ;;  %v10550_v6 = vld [vmem:[%s14536_s29] sm:$0xff] }
0x808b   :  { %v10258_v12 = vmul.f32 1.442695, %v10257_v56  ;;  %v10551_v56 = vld [vmem:[%s14536_s29 + $0x8] sm:$0xff] }
0x808d   :  { %16789 = vpow2.f32 %v10258_v12 }
0x8097   :  { %v16790_v53 = vpop.eup %16789 }
0x8098   :  { %v10260_v30 = vsel %vm7546_vm3, %v16790_v53, 0.0 }
0x8099   :  { %10261 = vadd.xlane.f32.xlu0 %v10260_v30  ;;  %v19259_v30 = vpack.c.bf16 %v10551_v56, %v10550_v6 }
0x809b   :  { %15987 = vmatpush3.bf16.msra.mxu1 %v19259_v30 }
0x809c   :  { %15991 = vmatprep.subr.bf16.mxu1 %v16940_v0 }
0x809e   :  { %15562 = vmatmul.mubr.f32.vlgmr.msra.gmra.mrb[72].mxu1 %v16944_v1 }
0x809f   :  { %15575 = vmatprep.mubr.msk.f32.mxu1 %vm19980_vm2, %v16944_v1 }
0x80ca   :  { %v15549_v49 = vpop.f32.mrb[70].mxu1 }
0x80cb   :  { %v19274_v24 = vadd.f32 %v15549_v49, %v14699_v62  ;;  %v10780_v28 = vpop.f32.mrb[71].mxu1 }
0x80cc   :  { %v10781_v19 = vadd.f32 %v14699_v62, %v10780_v28 }
0x80ce   :  { %v10791_v4 = vcombine.high %v10781_v19, %v10781_v19  ;;  %v19292_v39 = vrot.slane %v10781_v19, %v17606_v17 }
0x80d0   :  { %v19287_v15 = vrot.slane %v10791_v4, %v17606_v17  ;;  %v19304_v14 = vrot.slane %v19292_v39, %v17606_v17 }
0x80d2   :  { %v10807_v29 = vcombine.high %v19287_v15, %v19287_v15 }
0x80d4   :  { %v19307_v52 = vrot.slane %v10807_v29, %v17606_v17  ;;  %v10553_v29 = vld [vmem:[%s14538_s18 + $0x8] sm:$0xff] }
0x8126   :  { %v10262_v31 = vpop.xlane.xlu0 %10261 }
0x8127   :  { %16791 = vrcp.f32 %v10262_v31 }
0x8131   :  { %v16792_v22 = vpop.eup %16791 }
0x8132   :  { %v10264_v58 = vmul.f32 %v16792_v22, %v16790_v53 }
0x8134   :  { %v10275_v45 = vrot.slane %v10264_v58, %v18751_v38  ;;  %v10268_v36 = vrot.slane %v10264_v58, %v17650_v21 }
0x8136   :  { %10277 = vbcast.lane.b32.xlu0 %v10275_v45, 256  ;;  %10270 = vbcast.lane.b32.xlu1 %v10268_v36, 256 }
0x8171   :  { %v11035_v25 = vpop.f32.mrb[72].mxu1 }
0x8172   :  { %v15563_v59 = vpop.f32.mrb[73].mxu1  ;;  %v11046_v3 = vrot.slane %v11035_v25, %v17606_v17 }
0x8174   :  { %v11047_v37 = vcombine.high %v11046_v3, %v11046_v3  ;;  %v11054_v23 = vrot.slane %v11046_v3, %v17606_v17  ;;  %v10554_v3 = vld [vmem:[%s14539_s14] sm:$0xff] }
0x81a8   :  { %v10278_v61 = vpop.permute.xlu0 %10277  ;;  %v10271_v48 = vpop.permute.xlu1 %10270 }
0x81a9   :  { %v10280_v60 = vmul.f32 %v10278_v61, %v18726_v8  ;;  %v10279_v43 = vmul.f32 %v10271_v48, %v18721_v51 }
0x81ab   :  { %v10288_v11 = vsel %vm7574_vm6, %v10280_v60, 0.0  ;;  %v10281_v33 = vsel %vm7574_vm6, %v10279_v43, 0.0  ;;  %vm19994_vm6 = vmmov %vm19990_vm4  ;;  %v11061_v43 = vrot.slane %v11047_v37, %v17606_v17 }
0x81ac   :  { %v10289_v12 = vrot.slane %v10288_v11, 4  ;;  %v10282_v53 = vrot.slane %v10281_v33, 4 }
0x81ae   :  { %v10290_v31 = vadd.f32 %v10289_v12, %v10288_v11  ;;  %v10283_v22 = vadd.f32 %v10282_v53, %v10281_v33 }
0x81b0   :  { %v10291_v58 = vrot.slane %v10290_v31, 2  ;;  %v10284_v45 = vrot.slane %v10283_v22, 2 }
0x81b2   :  { %v10292_v36 = vadd.f32 %v10291_v58, %v10290_v31  ;;  %v10285_v20 = vadd.f32 %v10284_v45, %v10283_v22 }
0x81b4   :  { %v10293_v13 = vrot.slane %v10292_v36, 1  ;;  %v10286_v46 = vrot.slane %v10285_v20, 1 }
0x81b6   :  { %v10287_v47 = vadd.f32 %v10286_v46, %v10285_v20  ;;  %v10294_v18 = vadd.f32 %v10293_v13, %v10292_v36 }
0x81b8   :  { %v10297_v9 = vsel %vm19994_vm6, %v10294_v18, %v10287_v47  ;;  %vm20000_vm6 = vmmov %vm19990_vm4 }
0x81b9   :  { %10298 = vrot.lane.b32.xlu1 %v10297_v9, %s16950_s24  ;;  %s16988_s24 = smov 40  }
0x81ba   :  { %s14541_s10 = sld [smem:[%s19928_s0 + %s16988_s24]]  }
0x822b   :  { %v10299_v32 = vpop.permute.xlu1 %10298 }
0x822c   :  { %15541 = vmatmul.mubr.msk.f32.vlgmr.msra.gmra.mrb[64].mxu0 %vm190_vm1, %v10299_v32 }
0x822d   :  { %15984 = vmatpush3.bf16.msra.mxu0 %v19276_v54  ;;  %15554 = vmatprep.mubr.msk.f32.mxu0 %vm19980_vm2, %v16944_v1 }
0x822e   :  { %15988 = vmatprep.subr.bf16.mxu0 %v16940_v0 }
0x8230   :  { %15555 = vmatmul.mubr.f32.vlgmr.msra.gmra.mrb[66].mxu0 %v16944_v1 }
0x8231   :  { %15568 = vmatprep.mubr.msk.f32.mxu0 %vm19980_vm2, %v16944_v1 }
0x82ff   :  { %v10368_v41 = vpop.f32.mrb[64].mxu0 }
0x8300   :  { %v10369_v50 = vadd.f32 %v16936_v63, %v10368_v41  ;;  %v15542_v55 = vpop.f32.mrb[65].mxu0  ;;  %v10555_v63 = vld [vmem:[%s14539_s14 + $0x8] sm:$0xff] }
0x8301   :  { %v19342_v55 = vpack.c.bf16 %v10555_v63, %v10554_v3 }
0x8302   :  { %v10473_v10 = vrot.slane %v10369_v50, %v17606_v17  ;;  %v10552_v50 = vld [vmem:[%s14538_s18] sm:$0xff] }
0x8303   :  { %v10938_v27 = vpop.f32.mrb[66].mxu0  ;;  %15990 = vmatpush3.bf16.msra.mxu0 %v19342_v55 }
0x8304   :  { %v10474_v5 = vcombine.high %v10473_v10, %v10473_v10  ;;  %v10481_v16 = vrot.slane %v10473_v10, %v17606_v17  ;;  %v10949_v35 = vrot.slane %v10938_v27, %v17606_v17  ;;  %v15556_v34 = vpop.f32.mrb[67].mxu0  ;;  %v19344_v10 = vpack.c.bf16 %v10553_v29, %v10552_v50  ;;  %15994 = vmatprep.subr.bf16.mxu0 %v16940_v0 }
0x8306   :  { %v10488_v26 = vrot.slane %v10474_v5, %v17606_v17  ;;  %v10522_v61 = vrot.slane %v10481_v16, %v17650_v21  ;;  %v10950_v48 = vcombine.high %v10949_v35, %v10949_v35  ;;  %v10957_v60 = vrot.slane %v10949_v35, %v17606_v17  ;;  %15993 = vmatpush3.bf16.msra.mxu1 %v19344_v10 }
0x8307   :  { %15997 = vmatprep.subr.bf16.mxu1 %v16940_v0  ;;  %15569 = vmatmul.mubr.f32.vlgmr.msra.gmra.mrb[68].mxu0 %v16944_v1 }
0x8308   :  { %v10526_v11 = vrot.slane %v10488_v26, %v17650_v21  ;;  %v10535_v33 = vsel %vm1791_vm15, %v19173_v42, %v10522_v61  ;;  %v10964_v6 = vrot.slane %v10950_v48, %v17606_v17  ;;  %v10967_v56 = vadd.f32 %v10957_v60, %v19304_v14  ;;  %15582 = vmatprep.mubr.msk.f32.mxu0 %vm19980_vm2, %v16944_v1  ;;  %v19368_v60 = vld [vmem:[%s19365_s27] ss:$0 sm:$0xff] }
0x8309   :  { %10538 = vst.msk [vmem:[%s14541_s10] sm:$0x1f] %vm10537_vm9, %v10535_v33 }
0x830a   :  { %v10536_v12 = vsel %vm1791_vm15, %v19178_v40, %v10526_v11  ;;  %v10968_v53 = vadd.f32 %v10964_v6, %v19307_v52  ;;  %v11064_v31 = vadd.f32 %v11054_v23, %v10967_v56 }
0x830b   :  { %10539 = vst.msk [vmem:[%s14541_s10 + $0x8] sm:$0x1f] %vm10537_vm9, %v10536_v12  ;;  %vm20001_vm9 = vmmov %vm19990_vm4 }
0x830c   :  { %v11065_v22 = vadd.f32 %v11061_v43, %v10968_v53  ;;  %16793 = vtanh.f32 %v11064_v31  ;;  %v14703_v45 = vmul.f32 -1.442695, %v11064_v31 }
0x830e   :  { %16795 = vtanh.f32 %v11065_v22  ;;  %v14704_v36 = vmul.f32 -1.442695, %v11065_v22 }
0x830f   :  { %16797 = vpow2.f32 %v14703_v45 }
0x8310   :  { %16799 = vpow2.f32 %v14704_v36 }
0x8316   :  { %v16794_v58 = vpop.eup %16793 }
0x8317   :  { %11084 = vrot.lane.b32.xlu1 %v16794_v58, %s16948_s22 }
0x8318   :  { %v16796_v42 = vpop.eup %16795 }
0x8319   :  { %11086 = vrot.lane.b32.xlu0 %v16796_v42, %s16948_s22  ;;  %v16798_v20 = vpop.eup %16797 }
0x831a   :  { %v16800_v40 = vpop.eup %16799  ;;  %v11072_v13 = vadd.f32 1.0, %v16798_v20 }
0x831b   :  { %v11073_v46 = vadd.f32 1.0, %v16800_v40  ;;  %v10542_v40 = vld [vmem:[%s14530_s1] sm:$0xff] }
0x831c   :  { %16801 = vrcp.f32 %v11072_v13  ;;  %v10543_v13 = vld [vmem:[%s14530_s1 + $0x8] sm:$0xff] }
0x831d   :  { %16803 = vrcp.f32 %v11073_v46  ;;  %v19379_v46 = vpack.c.bf16 %v10543_v13, %v10542_v40  ;;  %v10545_v13 = vld [vmem:[%s14532_s8] sm:$0xff] }
0x831f   :  { %15996 = vmatpush3.bf16.msra.mxu0 %v19379_v46 }
0x8320   :  { %16000 = vmatprep.subr.bf16.mxu0 %v16940_v0 }
0x8326   :  { %v16802_v47 = vpop.eup %16801 }
0x8327   :  { %v16804_v62 = vpop.eup %16803  ;;  %v11080_v49 = vmul.f32 0.0, %v16802_v47 }
0x8328   :  { %v11081_v25 = vmul.f32 0.0, %v16804_v62 }
0x8389   :  { %v11085_v18 = vpop.permute.xlu1 %11084 }
0x838a   :  { %v11090_v9 = vmul.f32 %v16802_v47, %v11085_v18 }
0x838b   :  { %v11087_v2 = vpop.permute.xlu0 %11086 }
0x838c   :  { %11094 = vrot.lane.b32.xlu1 %v11090_v9, %s16949_s23  ;;  %v11091_v44 = vmul.f32 %v16804_v62, %v11087_v2  ;;  %v19399_v2 = vld [vmem:[%s19396_s5] ss:$0 sm:$0xff] }
0x838e   :  { %11096 = vrot.lane.b32.xlu0 %v11091_v44, %s16949_s23 }
0x83da   :  { %v11180_v26 = vpop.f32.mrb[68].mxu0 }
0x83db   :  { %v15570_v61 = vpop.f32.mrb[69].mxu0 }
0x83fe   :  { %v11095_v28 = vpop.permute.xlu1 %11094 }
0x83ff   :  { %v19328_v32 = vadd.f32 %v11095_v28, %v11080_v49 }
0x8400   :  { %v11097_v59 = vpop.permute.xlu0 %11096 }
0x8401   :  { %16805 = vtanh.f32 %v19328_v32  ;;  %v19331_v19 = vadd.f32 %v11097_v59, %v11081_v25 }
0x8403   :  { %16807 = vtanh.f32 %v19331_v19 }
0x840b   :  { %v16806_v4 = vpop.eup %16805 }
0x840c   :  { %11106 = vrot.lane.b32.xlu1 %v16806_v4, %s16951_s25 }
0x840d   :  { %v16808_v41 = vpop.eup %16807 }
0x840e   :  { %11108 = vrot.lane.b32.xlu0 %v16808_v41, %s16951_s25 }
0x847e   :  { %v11107_v27 = vpop.permute.xlu1 %11106 }
0x847f   :  { %v11112_v5 = vmul.f32 %v16802_v47, %v11107_v27 }
0x8480   :  { %v11109_v37 = vpop.permute.xlu0 %11108 }
0x8481   :  { %v11113_v16 = vmul.f32 %v16804_v62, %v11109_v37 }
0x8483   :  { %v11186_v35 = vcombine.low %v11112_v5, %v11113_v16 }
0x8485   :  { %v11193_v34 = vrot.slane %v11186_v35, %v17606_v17 }
0x8487   :  { %v11200_v23 = vrot.slane %v11193_v34, %v17606_v17 }
0x8489   :  { %11201 = vrot.lane.b32.xlu1 %v11200_v23, %s16952_s26 }
0x84fb   :  { %v19356_v48 = vpop.permute.xlu1 %11201 }
0x84fc   :  { %15576 = vmatmul.mubr.msk.f32.vlgmr.msra.gmra.mrb[74].mxu1 %vm190_vm1, %v19356_v48 }
0x84fd   :  { %15589 = vmatprep.mubr.msk.f32.mxu1 %vm19980_vm2, %v16944_v1 }
0x85cf   :  { %v11271_v43 = vpop.f32.mrb[74].mxu1 }
0x85d0   :  { %v11272_v11 = vadd.f32 %v11271_v43, %v11180_v26  ;;  %v15577_v33 = vpop.f32.mrb[75].mxu1 }
0x85d2   :  { %v11281_v6 = vadd.f32 %v19368_v60, %v11272_v11 }
0x85d4   :  { %16809 = vtanh.f32 %v11281_v6  ;;  %v14707_v12 = vmul.f32 -1.442695, %v11281_v6 }
0x85d6   :  { %16811 = vpow2.f32 %v14707_v12 }
0x85de   :  { %v16810_v56 = vpop.eup %16809 }
0x85df   :  { %11291 = vrot.lane.b32.xlu0 %v16810_v56, %s16948_s22 }
0x85e0   :  { %v16812_v53 = vpop.eup %16811 }
0x85e1   :  { %v11285_v31 = vadd.f32 1.0, %v16812_v53 }
0x85e3   :  { %16813 = vrcp.f32 %v11285_v31 }
0x85ed   :  { %v16814_v22 = vpop.eup %16813 }
0x85ee   :  { %v11289_v45 = vmul.f32 0.0, %v16814_v22 }
0x8651   :  { %v11292_v58 = vpop.permute.xlu0 %11291 }
0x8652   :  { %v11294_v42 = vmul.f32 %v16814_v22, %v11292_v58 }
0x8654   :  { %11296 = vrot.lane.b32.xlu1 %v11294_v42, %s16949_s23 }
0x86c6   :  { %v11297_v36 = vpop.permute.xlu1 %11296 }
0x86c7   :  { %v19373_v20 = vadd.f32 %v11297_v36, %v11289_v45 }
0x86c9   :  { %16815 = vtanh.f32 %v19373_v20 }
0x86d3   :  { %v16816_v47 = vpop.eup %16815 }
0x86d4   :  { %11302 = vrot.lane.b32.xlu0 %v16816_v47, %s16951_s25  ;;  %v10546_v47 = vld [vmem:[%s14532_s8 + $0x8] sm:$0xff] }
0x8746   :  { %v11303_v18 = vpop.permute.xlu0 %11302 }
0x8747   :  { %v11305_v9 = vmul.f32 %v16814_v22, %v11303_v18  ;;  %v19427_v18 = vpack.c.bf16 %v10546_v47, %v10545_v13 }
0x8749   :  { %11313 = vrot.lane.b32.xlu1 %v11305_v9, %s16952_s26  ;;  %15999 = vmatpush3.bf16.msra.mxu1 %v19427_v18 }
0x874a   :  { %16003 = vmatprep.subr.bf16.mxu1 %v16940_v0 }
0x87bb   :  { %v19385_v62 = vpop.permute.xlu1 %11313 }
0x87bc   :  { %15583 = vmatmul.mubr.msk.f32.vlgmr.msra.gmra.mrb[70].mxu0 %vm190_vm1, %v19385_v62 }
0x87bd   :  { %16002 = vmatpush3.bf16.msra.mxu0 %v19276_v54  ;;  %15596 = vmatprep.mubr.msk.f32.mxu0 %vm19980_vm2, %v16944_v1 }
0x87be   :  { %16006 = vmatprep.subr.bf16.mxu0 %v16940_v0 }
0x888f   :  { %v11383_v44 = vpop.f32.mrb[70].mxu0 }
0x8890   :  { %v11384_v49 = vadd.f32 %v19399_v2, %v11383_v44  ;;  %v15584_v28 = vpop.f32.mrb[71].mxu0 }
0x8892   :  { %v11394_v25 = vrot.slane %v11384_v49, %v17606_v17 }
0x8894   :  { %v11395_v59 = vcombine.high %v11394_v25, %v11394_v25  ;;  %v11402_v4 = vrot.slane %v11394_v25, %v17606_v17 }
0x8896   :  { %v11409_v41 = vrot.slane %v11395_v59, %v17606_v17  ;;  %v11413_v3 = vrot.slane %v11402_v4, %v17650_v21 }
0x8898   :  { %11418 = vrot.lane.b32.xlu0 %v11413_v3, %s16951_s25  ;;  %v11417_v63 = vrot.slane %v11409_v41, %v17650_v21 }
0x889a   :  { %11420 = vrot.lane.b32.xlu1 %v11417_v63, %s16951_s25 }
0x890a   :  { %v11419_v50 = vpop.permute.xlu0 %11418 }
0x890b   :  { %v11424_v29 = vmul.f32 %v11419_v50, %v18721_v51 }
0x890c   :  { %v11421_v27 = vpop.permute.xlu1 %11420 }
0x890d   :  { %v11425_v37 = vmul.f32 %v11421_v27, %v18726_v8  ;;  %11428 = vrot.lane.b32.xlu0 %v11424_v29, %s16948_s22 }
0x890f   :  { %11430 = vrot.lane.b32.xlu1 %v11425_v37, %s16948_s22 }
0x897f   :  { %v11429_v5 = vpop.permute.xlu0 %11428 }
0x8980   :  { %v11434_v16 = vsel %vm190_vm1, %v11429_v5, 0.0 }
0x8981   :  { %11435 = vadd.xlane.f32.xlu0 %v11434_v16  ;;  %v11431_v35 = vpop.permute.xlu1 %11430 }
0x8982   :  { %v11437_v34 = vsel %vm190_vm1, %v11431_v35, 0.0 }
0x8983   :  { %11438 = vadd.xlane.f32.xlu1 %v11437_v34 }
0x8a0e   :  { %v11436_v23 = vpop.xlane.xlu0 %11435 }
0x8a0f   :  { %v11445_v61 = vrot.slane %v11436_v23, %v18735_v7 }
0x8a10   :  { %v11439_v26 = vpop.xlane.xlu1 %11438 }
0x8a11   :  { %v11449_v43 = vrot.slane %v11439_v26, %v18735_v7 }
0x8a13   :  { %v11450_v11 = vsel %vm19995_vm10, %v11449_v43, %v11445_v61  ;;  %vm20003_vm10 = vmmov %vm19990_vm4 }
0x8a14   :  { %v11452_v33 = vsel %vm18741_vm0, -1e+10, %v11450_v11 }
0x8a15   :  { %v11453_v6 = vsel %vm7546_vm3, %v11452_v33, -inf }
0x8a16   :  { %11454 = vmax.xlane.f32.xlu0 %v11453_v6 }
0x8aa3   :  { %v11455_v56 = vpop.xlane.xlu0 %11454 }
0x8aa4   :  { %v11456_v12 = vsub.f32 %v11452_v33, %v11455_v56  ;;  %v10806_v33 = vcombine.high %v19292_v39, %v19292_v39  ;;  %v19466_v56 = vrot.slane %v19287_v15, %v17606_v17 }
0x8aa6   :  { %v11457_v53 = vmul.f32 1.442695, %v11456_v12  ;;  %v10837_v39 = vcombine.high %v19466_v56, %v19466_v56 }
0x8aa8   :  { %16817 = vpow2.f32 %v11457_v53 }
0x8ab2   :  { %v16818_v31 = vpop.eup %16817 }
0x8ab3   :  { %v11459_v22 = vsel %vm7546_vm3, %v16818_v31, 0.0 }
0x8ab4   :  { %11460 = vadd.xlane.f32.xlu0 %v11459_v22 }
0x8b41   :  { %v11461_v58 = vpop.xlane.xlu0 %11460 }
0x8b42   :  { %16819 = vrcp.f32 %v11461_v58 }
0x8b4c   :  { %v16820_v42 = vpop.eup %16819 }
0x8b4d   :  { %v11463_v45 = vmul.f32 %v16820_v42, %v16818_v31  ;;  %v19472_v42 = vrot.slane %v10806_v33, %v17606_v17 }
0x8b4f   :  { %v11474_v36 = vrot.slane %v11463_v45, %v18751_v38  ;;  %v11467_v40 = vrot.slane %v11463_v45, %v17650_v21 }
0x8b51   :  { %11476 = vbcast.lane.b32.xlu0 %v11474_v36, 256  ;;  %11469 = vbcast.lane.b32.xlu1 %v11467_v40, 256 }
0x8bc3   :  { %v11477_v9 = vpop.permute.xlu0 %11476  ;;  %v11470_v44 = vpop.permute.xlu1 %11469 }
0x8bc4   :  { %v11479_v49 = vmul.f32 %v11477_v9, %v18726_v8  ;;  %v11478_v28 = vmul.f32 %v11470_v44, %v18721_v51 }
0x8bc6   :  { %v11488_v25 = vsel %vm11480_vm11, %v11479_v49, 0.0  ;;  %v11481_v59 = vsel %vm11480_vm11, %v11478_v28, 0.0 }
0x8bc7   :  { %v11489_v4 = vrot.slane %v11488_v25, 4  ;;  %v11482_v41 = vrot.slane %v11481_v59, 4 }
0x8bc9   :  { %v11490_v3 = vadd.f32 %v11489_v4, %v11488_v25  ;;  %v11483_v63 = vadd.f32 %v11482_v41, %v11481_v59 }
0x8bcb   :  { %v11491_v50 = vrot.slane %v11490_v3, 2  ;;  %v11484_v29 = vrot.slane %v11483_v63, 2 }
0x8bcd   :  { %v11492_v27 = vadd.f32 %v11491_v50, %v11490_v3  ;;  %v11485_v37 = vadd.f32 %v11484_v29, %v11483_v63 }
0x8bcf   :  { %v11493_v5 = vrot.slane %v11492_v27, 1  ;;  %v11486_v16 = vrot.slane %v11485_v37, 1 }
0x8bd1   :  { %v11494_v35 = vadd.f32 %v11493_v5, %v11492_v27  ;;  %v11487_v34 = vadd.f32 %v11486_v16, %v11485_v37 }
0x8bd3   :  { %v11503_v23 = vsel %vm19996_vm12, %v11494_v35, %v11487_v34 }
0x8bd4   :  { %11504 = vrot.lane.b32.xlu1 %v11503_v23, %s16952_s26 }
0x8c46   :  { %v11505_v26 = vpop.permute.xlu1 %11504 }
0x8c47   :  { %15590 = vmatmul.mubr.msk.f32.vlgmr.msra.gmra.mrb[76].mxu1 %vm190_vm1, %v11505_v26  ;;  %15597 = vmatmul.mubr.msk.f32.vlgmr.msra.gmra.mrb[72].mxu0 %vm190_vm1, %v11505_v26 }
0x8c48   :  { %16005 = vmatpush3.bf16.msra.mxu1 %v19259_v30  ;;  %16008 = vmatpush3.bf16.msra.mxu0 %v19342_v55 }
0x8c49   :  { %15603 = vmatprep.mubr.msk.f32.mxu1 %vm19980_vm2, %v16944_v1  ;;  %15610 = vmatprep.mubr.msk.f32.mxu0 %vm19980_vm2, %v16944_v1 }
0x8c4a   :  { %16009 = vmatprep.subr.bf16.mxu1 %v16940_v0  ;;  %16012 = vmatprep.subr.bf16.mxu0 %v16940_v0 }
0x8c4b   :  { %15604 = vmatmul.mubr.msk.f32.vlgmr.msra.gmra.mrb[78].mxu1 %vm190_vm1, %v19356_v48  ;;  %15611 = vmatmul.mubr.msk.f32.vlgmr.msra.gmra.mrb[74].mxu0 %vm190_vm1, %v19385_v62 }
0x8c4c   :  { %16011 = vmatpush3.bf16.msra.mxu1 %v19344_v10  ;;  %15617 = vmatprep.mubr.msk.f32.mxu1 %vm19980_vm2, %v16944_v1 }
0x8c4d   :  { %16014 = vmatpush3.bf16.msra.mxu0 %v19379_v46  ;;  %15624 = vmatprep.mubr.msk.f32.mxu0 %vm19980_vm2, %v16944_v1 }
0x8c4e   :  { %16015 = vmatprep.subr.bf16.mxu1 %v16940_v0  ;;  %16018 = vmatprep.subr.bf16.mxu0 %v16940_v0 }
0x8d1a   :  { %v19459_v61 = vpop.f32.mrb[76].mxu1  ;;  %v11644_v48 = vpop.f32.mrb[72].mxu0 }
0x8d1b   :  { %v11655_v43 = vrot.slane %v11644_v48, %v17606_v17  ;;  %v15591_v62 = vpop.f32.mrb[77].mxu1  ;;  %v15598_v11 = vpop.f32.mrb[73].mxu0 }
0x8d1d   :  { %v11656_v6 = vcombine.high %v11655_v43, %v11655_v43  ;;  %v11663_v12 = vrot.slane %v11655_v43, %v17606_v17 }
0x8d1e   :  { %v11741_v53 = vpop.f32.mrb[78].mxu1  ;;  %v19469_v31 = vpop.f32.mrb[74].mxu0 }
0x8d1f   :  { %v15605_v22 = vpop.f32.mrb[79].mxu1  ;;  %v15612_v58 = vpop.f32.mrb[75].mxu0  ;;  %v11670_v45 = vrot.slane %v11656_v6, %v17606_v17  ;;  %v11752_v36 = vrot.slane %v11741_v53, %v17606_v17  ;;  %v11673_v15 = vadd.f32 %v11663_v12, %v19472_v42 }
0x8d21   :  { %v11753_v40 = vcombine.high %v11752_v36, %v11752_v36  ;;  %v11760_v13 = vrot.slane %v11752_v36, %v17606_v17  ;;  %v11674_v47 = vadd.f32 %v11670_v45, %v10837_v39 }
0x8d23   :  { %v11767_v9 = vrot.slane %v11753_v40, %v17606_v17  ;;  %v11770_v44 = vadd.f32 %v11760_v13, %v11673_v15 }
0x8d25   :  { %v11771_v49 = vadd.f32 %v11767_v9, %v11674_v47  ;;  %16821 = vtanh.f32 %v11770_v44  ;;  %v14714_v59 = vmul.f32 -1.442695, %v11770_v44 }
0x8d27   :  { %16823 = vtanh.f32 %v11771_v49  ;;  %v14715_v4 = vmul.f32 -1.442695, %v11771_v49 }
0x8d28   :  { %16825 = vpow2.f32 %v14714_v59 }
0x8d29   :  { %16827 = vpow2.f32 %v14715_v4 }
0x8d2f   :  { %v16822_v28 = vpop.eup %16821 }
0x8d30   :  { %11790 = vrot.lane.b32.xlu1 %v16822_v28, %s16948_s22 }
0x8d31   :  { %v16824_v25 = vpop.eup %16823 }
0x8d32   :  { %11792 = vrot.lane.b32.xlu0 %v16824_v25, %s16948_s22  ;;  %v16826_v41 = vpop.eup %16825 }
0x8d33   :  { %v16828_v3 = vpop.eup %16827  ;;  %v11778_v63 = vadd.f32 1.0, %v16826_v41 }
0x8d34   :  { %v11779_v50 = vadd.f32 1.0, %v16828_v3 }
0x8d35   :  { %16829 = vrcp.f32 %v11778_v63 }
0x8d36   :  { %16831 = vrcp.f32 %v11779_v50 }
0x8d3f   :  { %v16830_v29 = vpop.eup %16829 }
0x8d40   :  { %v16832_v5 = vpop.eup %16831  ;;  %v11786_v34 = vmul.f32 %v16830_v29, %v19328_v32 }
0x8d41   :  { %v11787_v48 = vmul.f32 %v16832_v5, %v19331_v19 }
0x8da2   :  { %v11791_v27 = vpop.permute.xlu1 %11790 }
0x8da3   :  { %v11796_v37 = vmul.f32 %v16830_v29, %v11791_v27 }
0x8da4   :  { %v11793_v16 = vpop.permute.xlu0 %11792 }
0x8da5   :  { %11800 = vrot.lane.b32.xlu1 %v11796_v37, %s16949_s23  ;;  %v11797_v35 = vmul.f32 %v16832_v5, %v11793_v16 }
0x8da7   :  { %11802 = vrot.lane.b32.xlu0 %v11797_v35, %s16949_s23 }
0x8e17   :  { %v11801_v23 = vpop.permute.xlu1 %11800 }
0x8e18   :  { %v19486_v26 = vadd.f32 %v11801_v23, %v11786_v34 }
0x8e19   :  { %v11803_v43 = vpop.permute.xlu0 %11802 }
0x8e1a   :  { %16833 = vtanh.f32 %v19486_v26  ;;  %v19490_v62 = vadd.f32 %v11803_v43, %v11787_v48 }
0x8e1c   :  { %16835 = vtanh.f32 %v19490_v62 }
0x8e24   :  { %v16834_v11 = vpop.eup %16833 }
0x8e25   :  { %11812 = vrot.lane.b32.xlu1 %v16834_v11, %s16951_s25 }
0x8e26   :  { %v16836_v33 = vpop.eup %16835 }
0x8e27   :  { %11814 = vrot.lane.b32.xlu0 %v16836_v33, %s16951_s25 }
0x8e97   :  { %v11813_v6 = vpop.permute.xlu1 %11812 }
0x8e98   :  { %v11818_v12 = vmul.f32 %v16830_v29, %v11813_v6 }
0x8e99   :  { %v11815_v32 = vpop.permute.xlu0 %11814 }
0x8e9a   :  { %v11819_v53 = vmul.f32 %v16832_v5, %v11815_v32 }
0x8e9c   :  { %v11892_v22 = vcombine.low %v11818_v12, %v11819_v53 }
0x8e9e   :  { %v11899_v19 = vrot.slane %v11892_v22, %v17606_v17 }
0x8ea0   :  { %v11906_v58 = vrot.slane %v11899_v19, %v17606_v17 }
0x8ea2   :  { %11907 = vrot.lane.b32.xlu1 %v11906_v58, %s16952_s26 }
0x8f14   :  { %v19498_v45 = vpop.permute.xlu1 %11907 }
0x8f15   :  { %15618 = vmatmul.mubr.msk.f32.vlgmr.msra.gmra.mrb[80].mxu1 %vm190_vm1, %v19498_v45 }
0x8f16   :  { %16017 = vmatpush3.bf16.msra.mxu1 %v19427_v18  ;;  %15631 = vmatprep.mubr.msk.f32.mxu1 %vm19980_vm2, %v16944_v1 }
0x8f17   :  { %16021 = vmatprep.subr.bf16.mxu1 %v16940_v0 }
0x8fe8   :  { %v11977_v36 = vpop.f32.mrb[80].mxu1 }
0x8fe9   :  { %v11978_v39 = vadd.f32 %v11977_v36, %v19469_v31  ;;  %v15619_v15 = vpop.f32.mrb[81].mxu1 }
0x8feb   :  { %v11981_v40 = vadd.f32 %v19368_v60, %v11978_v39 }
0x8fed   :  { %16837 = vtanh.f32 %v11981_v40  ;;  %v14718_v47 = vmul.f32 -1.442695, %v11981_v40 }
0x8fef   :  { %16839 = vpow2.f32 %v14718_v47 }
0x8ff7   :  { %v16838_v13 = vpop.eup %16837 }
0x8ff8   :  { %11991 = vrot.lane.b32.xlu0 %v16838_v13, %s16948_s22 }
0x8ff9   :  { %v16840_v9 = vpop.eup %16839 }
0x8ffa   :  { %v11985_v44 = vadd.f32 1.0, %v16840_v9 }
0x8ffc   :  { %16841 = vrcp.f32 %v11985_v44 }
0x9006   :  { %v16842_v49 = vpop.eup %16841 }
0x9007   :  { %v11989_v59 = vmul.f32 %v16842_v49, %v19373_v20 }
0x906a   :  { %v11992_v28 = vpop.permute.xlu0 %11991 }
0x906b   :  { %v11994_v25 = vmul.f32 %v16842_v49, %v11992_v28 }
0x906d   :  { %11996 = vrot.lane.b32.xlu1 %v11994_v25, %s16949_s23 }
0x90df   :  { %v11997_v31 = vpop.permute.xlu1 %11996 }
0x90e0   :  { %v19511_v4 = vadd.f32 %v11997_v31, %v11989_v59 }
0x90e2   :  { %16843 = vtanh.f32 %v19511_v4 }
0x90ec   :  { %v16844_v41 = vpop.eup %16843 }
0x90ed   :  { %12002 = vrot.lane.b32.xlu0 %v16844_v41, %s16951_s25 }
0x915f   :  { %v12003_v3 = vpop.permute.xlu0 %12002 }
0x9160   :  { %v12005_v63 = vmul.f32 %v16842_v49, %v12003_v3 }
0x9162   :  { %12007 = vrot.lane.b32.xlu1 %v12005_v63, %s16952_s26 }
0x91d4   :  { %v19516_v50 = vpop.permute.xlu1 %12007 }
0x91d5   :  { %15625 = vmatmul.mubr.msk.f32.vlgmr.msra.gmra.mrb[76].mxu0 %vm190_vm1, %v19516_v50 }
0x91d6   :  { %16020 = vmatpush3.bf16.msra.mxu0 %v19276_v54  ;;  %15638 = vmatprep.mubr.msk.f32.mxu0 %vm19980_vm2, %v16944_v1 }
0x91d7   :  { %16024 = vmatprep.subr.bf16.mxu0 %v16940_v0 }
0x92a8   :  { %v12077_v20 = vpop.f32.mrb[76].mxu0 }
0x92a9   :  { %v12078_v29 = vadd.f32 %v19399_v2, %v12077_v20  ;;  %v15626_v27 = vpop.f32.mrb[77].mxu0 }
0x92ab   :  { %v12088_v37 = vrot.slane %v12078_v29, %v17606_v17 }
0x92ad   :  { %v12089_v5 = vcombine.high %v12088_v37, %v12088_v37  ;;  %v12096_v16 = vrot.slane %v12088_v37, %v17606_v17 }
0x92af   :  { %v12103_v35 = vrot.slane %v12089_v5, %v17606_v17  ;;  %v12107_v34 = vrot.slane %v12096_v16, %v17650_v21 }
0x92b1   :  { %12112 = vrot.lane.b32.xlu0 %v12107_v34, %s16951_s25  ;;  %v12111_v23 = vrot.slane %v12103_v35, %v17650_v21 }
0x92b3   :  { %12114 = vrot.lane.b32.xlu1 %v12111_v23, %s16951_s25 }
0x9323   :  { %v12113_v48 = vpop.permute.xlu0 %12112 }
0x9324   :  { %v12118_v43 = vmul.f32 %v12113_v48, %v18721_v51 }
0x9325   :  { %v12115_v11 = vpop.permute.xlu1 %12114 }
0x9326   :  { %v12119_v33 = vmul.f32 %v12115_v11, %v18726_v8  ;;  %12122 = vrot.lane.b32.xlu0 %v12118_v43, %s16948_s22 }
0x9328   :  { %12124 = vrot.lane.b32.xlu1 %v12119_v33, %s16948_s22 }
0x9398   :  { %v12123_v6 = vpop.permute.xlu0 %12122 }
0x9399   :  { %v12128_v32 = vsel %vm190_vm1, %v12123_v6, 0.0 }
0x939a   :  { %12129 = vadd.xlane.f32.xlu0 %v12128_v32  ;;  %v12125_v12 = vpop.permute.xlu1 %12124 }
0x939b   :  { %v12131_v53 = vsel %vm190_vm1, %v12125_v12, 0.0 }
0x939c   :  { %12132 = vadd.xlane.f32.xlu1 %v12131_v53 }
0x9427   :  { %v12130_v22 = vpop.xlane.xlu0 %12129 }
0x9428   :  { %v12139_v58 = vrot.slane %v12130_v22, %v18735_v7 }
0x9429   :  { %v12133_v19 = vpop.xlane.xlu1 %12132 }
0x942a   :  { %v12143_v36 = vrot.slane %v12133_v19, %v18735_v7 }
0x942c   :  { %v12144_v39 = vsel %vm19990_vm4, %v12143_v36, %v12139_v58 }
0x942d   :  { %v12146_v15 = vsel %vm18741_vm0, -1e+10, %v12144_v39 }
0x942e   :  { %v12147_v40 = vsel %vm7546_vm3, %v12146_v15, -inf }
0x942f   :  { %12148 = vmax.xlane.f32.xlu0 %v12147_v40 }
0x94bc   :  { %v12149_v13 = vpop.xlane.xlu0 %12148 }
0x94bd   :  { %v12150_v47 = vsub.f32 %v12146_v15, %v12149_v13 }
0x94bf   :  { %v12151_v9 = vmul.f32 1.442695, %v12150_v47 }
0x94c1   :  { %16845 = vpow2.f32 %v12151_v9 }
0x94cb   :  { %v16846_v44 = vpop.eup %16845 }
0x94cc   :  { %v12153_v49 = vsel %vm7546_vm3, %v16846_v44, 0.0 }
0x94cd   :  { %12154 = vadd.xlane.f32.xlu0 %v12153_v49 }
0x955a   :  { %v12155_v28 = vpop.xlane.xlu0 %12154 }
0x955b   :  { %16847 = vrcp.f32 %v12155_v28 }
0x9565   :  { %v16848_v25 = vpop.eup %16847 }
0x9566   :  { %v12157_v59 = vmul.f32 %v16848_v25, %v16846_v44 }
0x9568   :  { %v12168_v31 = vrot.slane %v12157_v59, %v18751_v38  ;;  %v12161_v41 = vrot.slane %v12157_v59, %v17650_v21 }
0x956a   :  { %12170 = vbcast.lane.b32.xlu0 %v12168_v31, 256  ;;  %12163 = vbcast.lane.b32.xlu1 %v12161_v41, 256 }
0x95dc   :  { %v12171_v3 = vpop.permute.xlu0 %12170  ;;  %v12164_v63 = vpop.permute.xlu1 %12163 }
0x95dd   :  { %v12173_v20 = vmul.f32 %v12171_v3, %v18726_v8  ;;  %v12172_v29 = vmul.f32 %v12164_v63, %v18721_v51  ;;  %v10836_v3 = vcombine.high %v19304_v14, %v19304_v14 }
0x95df   :  { %v12181_v27 = vsel %vm11480_vm11, %v12173_v20, 0.0  ;;  %v12174_v37 = vsel %vm11480_vm11, %v12172_v29, 0.0 }
0x95e0   :  { %v12182_v5 = vrot.slane %v12181_v27, 4  ;;  %v12175_v16 = vrot.slane %v12174_v37, 4 }
0x95e2   :  { %v12183_v35 = vadd.f32 %v12182_v5, %v12181_v27  ;;  %v12176_v34 = vadd.f32 %v12175_v16, %v12174_v37  ;;  %v10839_v5 = vcombine.high %v19307_v52, %v19307_v52 }
0x95e4   :  { %v12184_v23 = vrot.slane %v12183_v35, 2  ;;  %v12177_v48 = vrot.slane %v12176_v34, 2 }
0x95e6   :  { %v12185_v43 = vadd.f32 %v12184_v23, %v12183_v35  ;;  %v12178_v11 = vadd.f32 %v12177_v48, %v12176_v34 }
0x95e8   :  { %v12186_v33 = vrot.slane %v12185_v43, 1  ;;  %v12179_v6 = vrot.slane %v12178_v11, 1 }
0x95ea   :  { %v12187_v32 = vadd.f32 %v12186_v33, %v12185_v43  ;;  %v12180_v12 = vadd.f32 %v12179_v6, %v12178_v11 }
0x95ec   :  { %v12190_v53 = vsel %vm19997_vm5, %v12187_v32, %v12180_v12 }
0x95ed   :  { %12191 = vrot.lane.b32.xlu1 %v12190_v53, %s16952_s26 }
0x965f   :  { %v12192_v22 = vpop.permute.xlu1 %12191 }
0x9660   :  { %15632 = vmatmul.mubr.msk.f32.vlgmr.msra.gmra.mrb[82].mxu1 %vm190_vm1, %v12192_v22  ;;  %15639 = vmatmul.mubr.msk.f32.vlgmr.msra.gmra.mrb[78].mxu0 %vm190_vm1, %v12192_v22 }
0x9661   :  { %16023 = vmatpush3.bf16.msra.mxu1 %v19259_v30  ;;  %16026 = vmatpush3.bf16.msra.mxu0 %v19342_v55 }
0x9662   :  { %15645 = vmatprep.mubr.msk.f32.mxu1 %vm19980_vm2, %v16944_v1  ;;  %15652 = vmatprep.mubr.msk.f32.mxu0 %vm19980_vm2, %v16944_v1 }
0x9663   :  { %16027 = vmatprep.subr.bf16.mxu1 %v16940_v0  ;;  %16030 = vmatprep.subr.bf16.mxu0 %v16940_v0 }
0x9664   :  { %15646 = vmatmul.mubr.msk.f32.vlgmr.msra.gmra.mrb[84].mxu1 %vm190_vm1, %v19498_v45  ;;  %15653 = vmatmul.mubr.msk.f32.vlgmr.msra.gmra.mrb[80].mxu0 %vm190_vm1, %v19516_v50  ;;  %v19582_v45 = vld [vmem:[%s19579_s11] ss:$0 sm:$0xff] }
0x9665   :  { %16029 = vmatpush3.bf16.msra.mxu1 %v19344_v10  ;;  %15659 = vmatprep.mubr.msk.f32.mxu1 %vm19980_vm2, %v16944_v1  ;;  %v11575_v50 = vadd.f32 %v19582_v45, %v19459_v61 }
0x9666   :  { %16032 = vmatpush3.bf16.msra.mxu0 %v19379_v46  ;;  %15666 = vmatprep.mubr.msk.f32.mxu0 %vm19980_vm2, %v16944_v1 }
0x9667   :  { %16033 = vmatprep.subr.bf16.mxu1 %v16940_v0  ;;  %16036 = vmatprep.subr.bf16.mxu0 %v16940_v0  ;;  %v14333_v36 = vrot.slane %v11575_v50, %v17606_v17 }
0x9669   :  { %v14334_v25 = vcombine.high %v14333_v36, %v14333_v36  ;;  %v14341_v29 = vrot.slane %v14333_v36, %v17606_v17 }
0x966b   :  { %v14348_v23 = vrot.slane %v14334_v25, %v17606_v17 }
0x9733   :  { %v12261_v19 = vpop.f32.mrb[82].mxu1  ;;  %v12331_v58 = vpop.f32.mrb[78].mxu0 }
0x9734   :  { %v12262_v39 = vadd.f32 %v19582_v45, %v12261_v19  ;;  %v12342_v15 = vrot.slane %v12331_v58, %v17606_v17  ;;  %v15633_v40 = vpop.f32.mrb[83].mxu1  ;;  %v15640_v13 = vpop.f32.mrb[79].mxu0 }
0x9736   :  { %v14358_v47 = vrot.slane %v12262_v39, %v17606_v17  ;;  %v12343_v9 = vcombine.high %v12342_v15, %v12342_v15  ;;  %v12350_v44 = vrot.slane %v12342_v15, %v17606_v17 }
0x9737   :  { %v12428_v49 = vpop.f32.mrb[84].mxu1  ;;  %v19591_v28 = vpop.f32.mrb[80].mxu0 }
0x9738   :  { %v14359_v61 = vcombine.high %v14358_v47, %v14358_v47  ;;  %v14366_v59 = vrot.slane %v14358_v47, %v17606_v17  ;;  %v15647_v31 = vpop.f32.mrb[85].mxu1  ;;  %v15654_v41 = vpop.f32.mrb[81].mxu0  ;;  %v12357_v63 = vrot.slane %v12343_v9, %v17606_v17  ;;  %v12439_v20 = vrot.slane %v12428_v49, %v17606_v17 }
0x9739   :  { %v12360_v16 = vadd.f32 %v12350_v44, %v10836_v3 }
0x973a   :  { %v14373_v27 = vrot.slane %v14359_v61, %v17606_v17  ;;  %v14446_v37 = vrot.slane %v14366_v59, %v17650_v21  ;;  %v12440_v35 = vcombine.high %v12439_v20, %v12439_v20  ;;  %v12447_v34 = vrot.slane %v12439_v20, %v17606_v17 }
0x973b   :  { %v12361_v43 = vadd.f32 %v12357_v63, %v10839_v5 }
0x973c   :  { %v14450_v14 = vrot.slane %v14373_v27, %v17650_v21  ;;  %v19607_v48 = vsel %vm19998_vm7, %v14341_v29, %v14446_v37  ;;  %v12454_v11 = vrot.slane %v12440_v35, %v17606_v17  ;;  %v12457_v33 = vadd.f32 %v12447_v34, %v12360_v16 }
0x973e   :  { %v19611_v6 = vsel %vm19999_vm8, %v14348_v23, %v14450_v14  ;;  %v12458_v32 = vadd.f32 %v12454_v11, %v12361_v43  ;;  %16849 = vtanh.f32 %v12457_v33  ;;  %v14723_v53 = vmul.f32 -1.442695, %v12457_v33 }
0x9740   :  { %16851 = vtanh.f32 %v12458_v32  ;;  %v14724_v22 = vmul.f32 -1.442695, %v12458_v32 }
0x9741   :  { %16853 = vpow2.f32 %v14723_v53 }
0x9742   :  { %16855 = vpow2.f32 %v14724_v22 }
0x9748   :  { %v16850_v52 = vpop.eup %16849 }
0x9749   :  { %12477 = vrot.lane.b32.xlu1 %v16850_v52, %s16948_s22 }
0x974a   :  { %v16852_v12 = vpop.eup %16851 }
0x974b   :  { %12479 = vrot.lane.b32.xlu0 %v16852_v12, %s16948_s22  ;;  %v16854_v50 = vpop.eup %16853 }
0x974c   :  { %v16856_v19 = vpop.eup %16855  ;;  %v12465_v58 = vadd.f32 1.0, %v16854_v50 }
0x974d   :  { %v12466_v36 = vadd.f32 1.0, %v16856_v19 }
0x974e   :  { %16857 = vrcp.f32 %v12465_v58 }
0x974f   :  { %16859 = vrcp.f32 %v12466_v36 }
0x9758   :  { %v16858_v39 = vpop.eup %16857 }
0x9759   :  { %v16860_v13 = vpop.eup %16859  ;;  %v12473_v44 = vmul.f32 %v16858_v39, %v19486_v26 }
0x975a   :  { %v12474_v61 = vmul.f32 %v16860_v13, %v19490_v62 }
0x97bb   :  { %v12478_v15 = vpop.permute.xlu1 %12477 }
0x97bc   :  { %v12483_v40 = vmul.f32 %v16858_v39, %v12478_v15 }
0x97bd   :  { %v12480_v47 = vpop.permute.xlu0 %12479 }
0x97be   :  { %12487 = vrot.lane.b32.xlu1 %v12483_v40, %s16949_s23  ;;  %v12484_v9 = vmul.f32 %v16860_v13, %v12480_v47 }
0x97c0   :  { %12489 = vrot.lane.b32.xlu0 %v12484_v9, %s16949_s23 }
0x9830   :  { %v12488_v49 = vpop.permute.xlu1 %12487 }
0x9831   :  { %v19618_v25 = vadd.f32 %v12488_v49, %v12473_v44 }
0x9832   :  { %v12490_v59 = vpop.permute.xlu0 %12489 }
0x9833   :  { %16861 = vtanh.f32 %v19618_v25  ;;  %v19622_v31 = vadd.f32 %v12490_v59, %v12474_v61 }
0x9835   :  { %16863 = vtanh.f32 %v19622_v31 }
0x983d   :  { %v16862_v41 = vpop.eup %16861 }
0x983e   :  { %12499 = vrot.lane.b32.xlu1 %v16862_v41, %s16951_s25 }
0x983f   :  { %v16864_v3 = vpop.eup %16863 }
0x9840   :  { %12501 = vrot.lane.b32.xlu0 %v16864_v3, %s16951_s25 }
0x98b0   :  { %v12500_v63 = vpop.permute.xlu1 %12499 }
0x98b1   :  { %v12505_v20 = vmul.f32 %v16858_v39, %v12500_v63 }
0x98b2   :  { %v12502_v26 = vpop.permute.xlu0 %12501 }
0x98b3   :  { %v12506_v29 = vmul.f32 %v16860_v13, %v12502_v26 }
0x98b5   :  { %v12579_v27 = vcombine.low %v12505_v20, %v12506_v29 }
0x98b7   :  { %v12586_v62 = vrot.slane %v12579_v27, %v17606_v17 }
0x98b9   :  { %v12593_v37 = vrot.slane %v12586_v62, %v17606_v17 }
0x98bb   :  { %12594 = vrot.lane.b32.xlu1 %v12593_v37, %s16952_s26 }
0x992d   :  { %v19630_v5 = vpop.permute.xlu1 %12594 }
0x992e   :  { %15660 = vmatmul.mubr.msk.f32.vlgmr.msra.gmra.mrb[86].mxu1 %vm190_vm1, %v19630_v5 }
0x992f   :  { %16035 = vmatpush3.bf16.msra.mxu1 %v19427_v18  ;;  %15673 = vmatprep.mubr.msk.f32.mxu1 %vm19980_vm2, %v16944_v1 }
0x9930   :  { %16039 = vmatprep.subr.bf16.mxu1 %v16940_v0 }
0x9a01   :  { %v12664_v16 = vpop.f32.mrb[86].mxu1 }
0x9a02   :  { %v12665_v35 = vadd.f32 %v12664_v16, %v19591_v28  ;;  %v15661_v34 = vpop.f32.mrb[87].mxu1 }
0x9a04   :  { %v12668_v23 = vadd.f32 %v19368_v60, %v12665_v35 }
0x9a06   :  { %16865 = vtanh.f32 %v12668_v23  ;;  %v14727_v43 = vmul.f32 -1.442695, %v12668_v23 }
0x9a08   :  { %16867 = vpow2.f32 %v14727_v43 }
0x9a10   :  { %v16866_v14 = vpop.eup %16865 }
0x9a11   :  { %12678 = vrot.lane.b32.xlu0 %v16866_v14, %s16948_s22 }
0x9a12   :  { %v16868_v11 = vpop.eup %16867 }
0x9a13   :  { %v12672_v33 = vadd.f32 1.0, %v16868_v11 }
0x9a15   :  { %16869 = vrcp.f32 %v12672_v33 }
0x9a1f   :  { %v16870_v32 = vpop.eup %16869 }
0x9a20   :  { %v12676_v53 = vmul.f32 %v16870_v32, %v19511_v4 }
0x9a83   :  { %v12679_v52 = vpop.permute.xlu0 %12678 }
0x9a84   :  { %v12681_v12 = vmul.f32 %v16870_v32, %v12679_v52 }
0x9a86   :  { %12683 = vrot.lane.b32.xlu1 %v12681_v12, %s16949_s23 }
0x9af8   :  { %v12684_v28 = vpop.permute.xlu1 %12683 }
0x9af9   :  { %v19643_v22 = vadd.f32 %v12684_v28, %v12676_v53 }
0x9afb   :  { %16871 = vtanh.f32 %v19643_v22 }
0x9b05   :  { %v16872_v60 = vpop.eup %16871 }
0x9b06   :  { %12689 = vrot.lane.b32.xlu0 %v16872_v60, %s16951_s25 }
0x9b78   :  { %v12690_v50 = vpop.permute.xlu0 %12689 }
0x9b79   :  { %v12692_v19 = vmul.f32 %v16870_v32, %v12690_v50 }
0x9b7b   :  { %12694 = vrot.lane.b32.xlu1 %v12692_v19, %s16952_s26 }
0x9bed   :  { %v19648_v58 = vpop.permute.xlu1 %12694 }
0x9bee   :  { %15667 = vmatmul.mubr.msk.f32.vlgmr.msra.gmra.mrb[82].mxu0 %vm190_vm1, %v19648_v58 }
0x9bef   :  { %16038 = vmatpush3.bf16.msra.mxu0 %v19276_v54  ;;  %15680 = vmatprep.mubr.msk.f32.mxu0 %vm19980_vm2, %v16944_v1 }
0x9bf0   :  { %16042 = vmatprep.subr.bf16.mxu0 %v16940_v0 }
0x9cc1   :  { %v12764_v4 = vpop.f32.mrb[82].mxu0 }
0x9cc2   :  { %v12765_v36 = vadd.f32 %v19399_v2, %v12764_v4  ;;  %v15668_v39 = vpop.f32.mrb[83].mxu0 }
0x9cc4   :  { %v12775_v15 = vrot.slane %v12765_v36, %v17606_v17 }
0x9cc6   :  { %v12776_v40 = vcombine.high %v12775_v15, %v12775_v15  ;;  %v12783_v13 = vrot.slane %v12775_v15, %v17606_v17 }
0x9cc8   :  { %v12790_v47 = vrot.slane %v12776_v40, %v17606_v17  ;;  %v12794_v9 = vrot.slane %v12783_v13, %v17650_v21 }
0x9cca   :  { %12799 = vrot.lane.b32.xlu0 %v12794_v9, %s16951_s25  ;;  %v12798_v44 = vrot.slane %v12790_v47, %v17650_v21 }
0x9ccc   :  { %12801 = vrot.lane.b32.xlu1 %v12798_v44, %s16951_s25 }
0x9d3c   :  { %v12800_v49 = vpop.permute.xlu0 %12799 }
0x9d3d   :  { %v12805_v61 = vmul.f32 %v12800_v49, %v18721_v51 }
0x9d3e   :  { %v12802_v2 = vpop.permute.xlu1 %12801 }
0x9d3f   :  { %v12806_v59 = vmul.f32 %v12802_v2, %v18726_v8  ;;  %12809 = vrot.lane.b32.xlu0 %v12805_v61, %s16948_s22 }
0x9d41   :  { %12811 = vrot.lane.b32.xlu1 %v12806_v59, %s16948_s22 }
0x9db1   :  { %v12810_v41 = vpop.permute.xlu0 %12809 }
0x9db2   :  { %v12815_v3 = vsel %vm190_vm1, %v12810_v41, 0.0 }
0x9db3   :  { %12816 = vadd.xlane.f32.xlu0 %v12815_v3  ;;  %v12812_v63 = vpop.permute.xlu1 %12811 }
0x9db4   :  { %v12818_v26 = vsel %vm190_vm1, %v12812_v63, 0.0 }
0x9db5   :  { %12819 = vadd.xlane.f32.xlu1 %v12818_v26 }
0x9e40   :  { %v12817_v20 = vpop.xlane.xlu0 %12816 }
0x9e41   :  { %v12826_v27 = vrot.slane %v12817_v20, %v18735_v7 }
0x9e42   :  { %v12820_v29 = vpop.xlane.xlu1 %12819 }
0x9e43   :  { %v12830_v62 = vrot.slane %v12820_v29, %v18735_v7 }
0x9e45   :  { %v12831_v37 = vsel %vm20000_vm6, %v12830_v62, %v12826_v27 }
0x9e46   :  { %v12833_v16 = vsel %vm18741_vm0, -1e+10, %v12831_v37 }
0x9e47   :  { %v12834_v35 = vsel %vm7546_vm3, %v12833_v16, -inf }
0x9e48   :  { %12835 = vmax.xlane.f32.xlu0 %v12834_v35 }
0x9ed5   :  { %v12836_v34 = vpop.xlane.xlu0 %12835 }
0x9ed6   :  { %v12837_v23 = vsub.f32 %v12833_v16, %v12836_v34 }
0x9ed8   :  { %v12838_v14 = vmul.f32 1.442695, %v12837_v23 }
0x9eda   :  { %16873 = vpow2.f32 %v12838_v14 }
0x9ee4   :  { %v16874_v43 = vpop.eup %16873 }
0x9ee5   :  { %v12840_v11 = vsel %vm7546_vm3, %v16874_v43, 0.0 }
0x9ee6   :  { %12841 = vadd.xlane.f32.xlu0 %v12840_v11 }
0x9f73   :  { %v12842_v33 = vpop.xlane.xlu0 %12841 }
0x9f74   :  { %16875 = vrcp.f32 %v12842_v33 }
0x9f7e   :  { %v16876_v32 = vpop.eup %16875 }
0x9f7f   :  { %v12844_v52 = vmul.f32 %v16876_v32, %v16874_v43 }
0x9f81   :  { %v12855_v12 = vrot.slane %v12844_v52, %v18751_v38  ;;  %v12848_v53 = vrot.slane %v12844_v52, %v17650_v21  ;;  %v10838_v52 = vcombine.high %v19472_v42, %v19472_v42 }
0x9f83   :  { %12857 = vbcast.lane.b32.xlu0 %v12855_v12, 256  ;;  %12850 = vbcast.lane.b32.xlu1 %v12848_v53, 256 }
0x9ff5   :  { %v12858_v28 = vpop.permute.xlu0 %12857  ;;  %v12851_v60 = vpop.permute.xlu1 %12850 }
0x9ff6   :  { %v12860_v50 = vmul.f32 %v12858_v28, %v18726_v8  ;;  %v12859_v19 = vmul.f32 %v12851_v60, %v18721_v51 }
0x9ff8   :  { %v12868_v4 = vsel %vm11480_vm11, %v12860_v50, 0.0  ;;  %v12861_v36 = vsel %vm11480_vm11, %v12859_v19, 0.0 }
0x9ff9   :  { %v12869_v39 = vrot.slane %v12868_v4, 4  ;;  %v12862_v15 = vrot.slane %v12861_v36, 4 }
0x9ffb   :  { %v12870_v40 = vadd.f32 %v12869_v39, %v12868_v4  ;;  %v12863_v13 = vadd.f32 %v12862_v15, %v12861_v36 }
0x9ffd   :  { %v12871_v47 = vrot.slane %v12870_v40, 2  ;;  %v12864_v9 = vrot.slane %v12863_v13, 2 }
0x9fff   :  { %v12872_v44 = vadd.f32 %v12871_v47, %v12870_v40  ;;  %v12865_v49 = vadd.f32 %v12864_v9, %v12863_v13 }
0xa001   :  { %v12873_v61 = vrot.slane %v12872_v44, 1  ;;  %v12866_v2 = vrot.slane %v12865_v49, 1 }
0xa003   :  { %v12874_v59 = vadd.f32 %v12873_v61, %v12872_v44  ;;  %v12867_v41 = vadd.f32 %v12866_v2, %v12865_v49 }
0xa005   :  { %v12877_v3 = vsel %vm20001_vm9, %v12874_v59, %v12867_v41 }
0xa006   :  { %12878 = vrot.lane.b32.xlu1 %v12877_v3, %s16952_s26 }
0xa078   :  { %v12879_v63 = vpop.permute.xlu1 %12878 }
0xa079   :  { %15674 = vmatmul.mubr.msk.f32.vlgmr.msra.gmra.mrb[88].mxu1 %vm190_vm1, %v12879_v63  ;;  %15681 = vmatmul.mubr.msk.f32.vlgmr.msra.gmra.mrb[84].mxu0 %vm190_vm1, %v12879_v63 }
0xa07a   :  { %16041 = vmatpush3.bf16.msra.mxu1 %v19259_v30  ;;  %16044 = vmatpush3.bf16.msra.mxu0 %v19342_v55 }
0xa07b   :  { %15687 = vmatprep.mubr.msk.f32.mxu1 %vm19980_vm2, %v16944_v1  ;;  %15694 = vmatprep.mubr.msk.f32.mxu0 %vm19980_vm2, %v16944_v1 }
0xa07c   :  { %16045 = vmatprep.subr.bf16.mxu1 %v16940_v0  ;;  %16048 = vmatprep.subr.bf16.mxu0 %v16940_v0 }
0xa07d   :  { %15688 = vmatmul.mubr.msk.f32.vlgmr.msra.gmra.mrb[90].mxu1 %vm190_vm1, %v19630_v5  ;;  %15695 = vmatmul.mubr.msk.f32.vlgmr.msra.gmra.mrb[86].mxu0 %vm190_vm1, %v19648_v58  ;;  %v19709_v5 = vrot.slane %v19274_v24, %v17606_v17 }
0xa07e   :  { %16047 = vmatpush3.bf16.msra.mxu1 %v19344_v10  ;;  %15701 = vmatprep.mubr.msk.f32.mxu1 %vm19980_vm2, %v16944_v1 }
0xa07f   :  { %16050 = vmatpush3.bf16.msra.mxu0 %v19379_v46  ;;  %15708 = vmatprep.mubr.msk.f32.mxu0 %vm19980_vm2, %v16944_v1  ;;  %v10854_v14 = vrot.slane %v19709_v5, %v17606_v17 }
0xa080   :  { %16051 = vmatprep.subr.bf16.mxu1 %v16940_v0  ;;  %16054 = vmatprep.subr.bf16.mxu0 %v16940_v0 }
0xa14c   :  { %v12948_v26 = vpop.f32.mrb[88].mxu1  ;;  %v13018_v20 = vpop.f32.mrb[84].mxu0 }
0xa14d   :  { %v12949_v58 = vadd.f32 %v19582_v45, %v12948_v26  ;;  %v13029_v29 = vrot.slane %v13018_v20, %v17606_v17  ;;  %v15675_v27 = vpop.f32.mrb[89].mxu1  ;;  %v15682_v62 = vpop.f32.mrb[85].mxu0 }
0xa14f   :  { %v14381_v37 = vrot.slane %v12949_v58, %v17606_v17  ;;  %v13030_v16 = vcombine.high %v13029_v29, %v13029_v29  ;;  %v13037_v35 = vrot.slane %v13029_v29, %v17606_v17 }
0xa150   :  { %v13115_v34 = vpop.f32.mrb[90].mxu1  ;;  %v19715_v23 = vpop.f32.mrb[86].mxu0 }
0xa151   :  { %v14382_v43 = vcombine.high %v14381_v37, %v14381_v37  ;;  %v14389_v24 = vrot.slane %v14381_v37, %v17606_v17  ;;  %v13044_v11 = vrot.slane %v13030_v16, %v17606_v17  ;;  %v15689_v33 = vpop.f32.mrb[91].mxu1  ;;  %v15696_v32 = vpop.f32.mrb[87].mxu0  ;;  %v13126_v12 = vrot.slane %v13115_v34, %v17606_v17 }
0xa152   :  { %v13047_v50 = vadd.f32 %v13037_v35, %v10838_v52 }
0xa153   :  { %v14396_v53 = vrot.slane %v14382_v43, %v17606_v17  ;;  %v14456_v28 = vrot.slane %v14389_v24, %v17650_v21  ;;  %v13048_v60 = vadd.f32 %v13044_v11, %v10854_v14  ;;  %v13127_v19 = vcombine.high %v13126_v12, %v13126_v12 }
0xa154   :  { %v13134_v4 = vrot.slane %v13126_v12, %v17606_v17 }
0xa155   :  { %v14460_v36 = vrot.slane %v14396_v53, %v17650_v21  ;;  %v19730_v39 = vsel %vm1785_vm13, %v19607_v48, %v14456_v28  ;;  %v13141_v15 = vrot.slane %v13127_v19, %v17606_v17  ;;  %v19764_v28 = vld [vmem:[%s19365_s27] ss:$0 sm:$0xff] }
0xa156   :  { %v13144_v42 = vadd.f32 %v13134_v4, %v13047_v50 }
0xa157   :  { %v19735_v40 = vsel %vm1785_vm13, %v19611_v6, %v14460_v36  ;;  %v13145_v13 = vadd.f32 %v13141_v15, %v13048_v60  ;;  %vm20002_vm13 = vmmov %vm19990_vm4 }
0xa158   :  { %16877 = vtanh.f32 %v13144_v42  ;;  %v14732_v44 = vmul.f32 -1.442695, %v13144_v42 }
0xa159   :  { %16879 = vtanh.f32 %v13145_v13  ;;  %v14733_v49 = vmul.f32 -1.442695, %v13145_v13 }
0xa15a   :  { %16881 = vpow2.f32 %v14732_v44 }
0xa15b   :  { %16883 = vpow2.f32 %v14733_v49 }
0xa162   :  { %v16878_v47 = vpop.eup %16877 }
0xa163   :  { %13164 = vrot.lane.b32.xlu1 %v16878_v47, %s16948_s22  ;;  %v16880_v9 = vpop.eup %16879 }
0xa164   :  { %13166 = vrot.lane.b32.xlu0 %v16880_v9, %s16948_s22  ;;  %v16882_v48 = vpop.eup %16881 }
0xa165   :  { %v16884_v61 = vpop.eup %16883  ;;  %v13152_v2 = vadd.f32 1.0, %v16882_v48 }
0xa166   :  { %v13153_v59 = vadd.f32 1.0, %v16884_v61 }
0xa167   :  { %16885 = vrcp.f32 %v13152_v2  ;;  %v19784_v2 = vld [vmem:[%s19396_s5] ss:$0 sm:$0xff] }
0xa168   :  { %16887 = vrcp.f32 %v13153_v59 }
0xa171   :  { %v16886_v6 = vpop.eup %16885 }
0xa172   :  { %v16888_v63 = vpop.eup %16887  ;;  %v13160_v58 = vmul.f32 %v16886_v6, %v19618_v25 }
0xa173   :  { %v13161_v62 = vmul.f32 %v16888_v63, %v19622_v31 }
0xa1d5   :  { %v13165_v41 = vpop.permute.xlu1 %13164 }
0xa1d6   :  { %v13170_v3 = vmul.f32 %v16886_v6, %v13165_v41  ;;  %v13167_v26 = vpop.permute.xlu0 %13166 }
0xa1d7   :  { %v13171_v20 = vmul.f32 %v16888_v63, %v13167_v26 }
0xa1d8   :  { %13174 = vrot.lane.b32.xlu1 %v13170_v3, %s16949_s23 }
0xa1d9   :  { %13176 = vrot.lane.b32.xlu0 %v13171_v20, %s16949_s23 }
0xa24a   :  { %v13175_v29 = vpop.permute.xlu1 %13174 }
0xa24b   :  { %v19742_v27 = vadd.f32 %v13175_v29, %v13160_v58  ;;  %v13177_v37 = vpop.permute.xlu0 %13176 }
0xa24c   :  { %v19746_v16 = vadd.f32 %v13177_v37, %v13161_v62 }
0xa24d   :  { %16889 = vtanh.f32 %v19742_v27 }
0xa24e   :  { %16891 = vtanh.f32 %v19746_v16 }
0xa257   :  { %v16890_v35 = vpop.eup %16889 }
0xa258   :  { %13186 = vrot.lane.b32.xlu1 %v16890_v35, %s16951_s25  ;;  %v16892_v34 = vpop.eup %16891 }
0xa259   :  { %13188 = vrot.lane.b32.xlu0 %v16892_v34, %s16951_s25 }
0xa2ca   :  { %v13187_v14 = vpop.permute.xlu1 %13186 }
0xa2cb   :  { %v13189_v25 = vpop.permute.xlu0 %13188  ;;  %v13192_v43 = vmul.f32 %v16886_v6, %v13187_v14 }
0xa2cc   :  { %v13193_v24 = vmul.f32 %v16888_v63, %v13189_v25 }
0xa2ce   :  { %v13266_v11 = vcombine.low %v13192_v43, %v13193_v24 }
0xa2d0   :  { %v13273_v31 = vrot.slane %v13266_v11, %v17606_v17 }
0xa2d2   :  { %v13280_v33 = vrot.slane %v13273_v31, %v17606_v17 }
0xa2d4   :  { %13281 = vrot.lane.b32.xlu1 %v13280_v33, %s16952_s26 }
0xa346   :  { %v19754_v32 = vpop.permute.xlu1 %13281 }
0xa347   :  { %15702 = vmatmul.mubr.msk.f32.vlgmr.msra.gmra.mrb[92].mxu1 %vm190_vm1, %v19754_v32 }
0xa348   :  { %16053 = vmatpush3.bf16.msra.mxu1 %v19427_v18  ;;  %15715 = vmatprep.mubr.msk.f32.mxu1 %vm19980_vm2, %v16944_v1 }
0xa349   :  { %16057 = vmatprep.subr.bf16.mxu1 %v16940_v0 }
0xa41a   :  { %v13351_v52 = vpop.f32.mrb[92].mxu1 }
0xa41b   :  { %v13352_v12 = vadd.f32 %v13351_v52, %v19715_v23  ;;  %v15703_v53 = vpop.f32.mrb[93].mxu1 }
0xa41d   :  { %v13355_v60 = vadd.f32 %v19764_v28, %v13352_v12 }
0xa41f   :  { %16893 = vtanh.f32 %v13355_v60  ;;  %v14736_v19 = vmul.f32 -1.442695, %v13355_v60 }
0xa421   :  { %16895 = vpow2.f32 %v14736_v19 }
0xa429   :  { %v16894_v50 = vpop.eup %16893 }
0xa42a   :  { %13365 = vrot.lane.b32.xlu0 %v16894_v50, %s16948_s22 }
0xa42b   :  { %v16896_v4 = vpop.eup %16895 }
0xa42c   :  { %v13359_v36 = vadd.f32 1.0, %v16896_v4 }
0xa42e   :  { %16897 = vrcp.f32 %v13359_v36 }
0xa438   :  { %v16898_v15 = vpop.eup %16897 }
0xa439   :  { %v13363_v23 = vmul.f32 %v16898_v15, %v19643_v22 }
0xa49c   :  { %v13366_v42 = vpop.permute.xlu0 %13365 }
0xa49d   :  { %v13368_v13 = vmul.f32 %v16898_v15, %v13366_v42 }
0xa49f   :  { %13370 = vrot.lane.b32.xlu1 %v13368_v13, %s16949_s23 }
0xa511   :  { %v13371_v47 = vpop.permute.xlu1 %13370 }
0xa512   :  { %v19770_v9 = vadd.f32 %v13371_v47, %v13363_v23 }
0xa514   :  { %16899 = vtanh.f32 %v19770_v9 }
0xa51e   :  { %v16900_v44 = vpop.eup %16899 }
0xa51f   :  { %13376 = vrot.lane.b32.xlu0 %v16900_v44, %s16951_s25 }
0xa591   :  { %v13377_v49 = vpop.permute.xlu0 %13376 }
0xa592   :  { %v13379_v48 = vmul.f32 %v16898_v15, %v13377_v49 }
0xa594   :  { %13381 = vrot.lane.b32.xlu1 %v13379_v48, %s16952_s26 }
0xa606   :  { %v19775_v61 = vpop.permute.xlu1 %13381 }
0xa607   :  { %15709 = vmatmul.mubr.msk.f32.vlgmr.msra.gmra.mrb[88].mxu0 %vm190_vm1, %v19775_v61 }
0xa608   :  { %16056 = vmatpush3.bf16.msra.mxu0 %v19276_v54  ;;  %15722 = vmatprep.mubr.msk.f32.mxu0 %vm19980_vm2, %v16944_v1 }
0xa609   :  { %16060 = vmatprep.subr.bf16.mxu0 %v16940_v0 }
0xa6da   :  { %v13451_v22 = vpop.f32.mrb[88].mxu0 }
0xa6db   :  { %v13452_v59 = vadd.f32 %v19784_v2, %v13451_v22  ;;  %v15710_v6 = vpop.f32.mrb[89].mxu0 }
0xa6dd   :  { %v13462_v41 = vrot.slane %v13452_v59, %v17606_v17 }
0xa6df   :  { %v13463_v3 = vcombine.high %v13462_v41, %v13462_v41  ;;  %v13470_v63 = vrot.slane %v13462_v41, %v17606_v17 }
0xa6e1   :  { %v13477_v26 = vrot.slane %v13463_v3, %v17606_v17  ;;  %v13481_v54 = vrot.slane %v13470_v63, %v17650_v21 }
0xa6e3   :  { %13486 = vrot.lane.b32.xlu0 %v13481_v54, %s16951_s25  ;;  %v13485_v20 = vrot.slane %v13477_v26, %v17650_v21 }
0xa6e5   :  { %13488 = vrot.lane.b32.xlu1 %v13485_v20, %s16951_s25 }
0xa755   :  { %v13487_v58 = vpop.permute.xlu0 %13486 }
0xa756   :  { %v13492_v29 = vmul.f32 %v13487_v58, %v18721_v51 }
0xa757   :  { %v13489_v62 = vpop.permute.xlu1 %13488 }
0xa758   :  { %v13493_v37 = vmul.f32 %v13489_v62, %v18726_v8  ;;  %13496 = vrot.lane.b32.xlu0 %v13492_v29, %s16948_s22 }
0xa75a   :  { %13498 = vrot.lane.b32.xlu1 %v13493_v37, %s16948_s22 }
0xa7ca   :  { %v13497_v35 = vpop.permute.xlu0 %13496 }
0xa7cb   :  { %v13502_v34 = vsel %vm190_vm1, %v13497_v35, 0.0 }
0xa7cc   :  { %13503 = vadd.xlane.f32.xlu0 %v13502_v34  ;;  %v13499_v14 = vpop.permute.xlu1 %13498 }
0xa7cd   :  { %v13505_v25 = vsel %vm190_vm1, %v13499_v14, 0.0 }
0xa7ce   :  { %13506 = vadd.xlane.f32.xlu1 %v13505_v25 }
0xa859   :  { %v13504_v43 = vpop.xlane.xlu0 %13503 }
0xa85a   :  { %v13513_v11 = vrot.slane %v13504_v43, %v18735_v7 }
0xa85b   :  { %v13507_v24 = vpop.xlane.xlu1 %13506 }
0xa85c   :  { %v13517_v31 = vrot.slane %v13507_v24, %v18735_v7 }
0xa85e   :  { %v13518_v33 = vsel %vm20002_vm13, %v13517_v31, %v13513_v11 }
0xa85f   :  { %v13520_v52 = vsel %vm18741_vm0, -1e+10, %v13518_v33 }
0xa860   :  { %v13521_v12 = vsel %vm7546_vm3, %v13520_v52, -inf }
0xa861   :  { %13522 = vmax.xlane.f32.xlu0 %v13521_v12 }
0xa8ee   :  { %v13523_v53 = vpop.xlane.xlu0 %13522 }
0xa8ef   :  { %v13524_v60 = vsub.f32 %v13520_v52, %v13523_v53 }
0xa8f1   :  { %v13525_v50 = vmul.f32 1.442695, %v13524_v60 }
0xa8f3   :  { %16901 = vpow2.f32 %v13525_v50 }
0xa8fd   :  { %v16902_v19 = vpop.eup %16901 }
0xa8fe   :  { %v13527_v4 = vsel %vm7546_vm3, %v16902_v19, 0.0 }
0xa8ff   :  { %13528 = vadd.xlane.f32.xlu0 %v13527_v4 }
0xa98c   :  { %v13529_v36 = vpop.xlane.xlu0 %13528 }
0xa98d   :  { %16903 = vrcp.f32 %v13529_v36 }
0xa997   :  { %v16904_v15 = vpop.eup %16903 }
0xa998   :  { %v13531_v42 = vmul.f32 %v16904_v15, %v16902_v19 }
0xa99a   :  { %v13542_v13 = vrot.slane %v13531_v42, %v18751_v38  ;;  %v13535_v23 = vrot.slane %v13531_v42, %v17650_v21 }
0xa99c   :  { %13544 = vbcast.lane.b32.xlu0 %v13542_v13, 256  ;;  %13537 = vbcast.lane.b32.xlu1 %v13535_v23, 256 }
0xaa0e   :  { %v13545_v47 = vpop.permute.xlu0 %13544  ;;  %v13538_v44 = vpop.permute.xlu1 %13537 }
0xaa0f   :  { %v13547_v49 = vmul.f32 %v13545_v47, %v18726_v8  ;;  %v13546_v48 = vmul.f32 %v13538_v44, %v18721_v51 }
0xaa11   :  { %v13555_v22 = vsel %vm11480_vm11, %v13547_v49, 0.0  ;;  %v13548_v59 = vsel %vm11480_vm11, %v13546_v48, 0.0 }
0xaa12   :  { %v13556_v6 = vrot.slane %v13555_v22, 4  ;;  %v13549_v41 = vrot.slane %v13548_v59, 4 }
0xaa14   :  { %v13557_v3 = vadd.f32 %v13556_v6, %v13555_v22  ;;  %v13550_v63 = vadd.f32 %v13549_v41, %v13548_v59 }
0xaa16   :  { %v13558_v26 = vrot.slane %v13557_v3, 2  ;;  %v13551_v54 = vrot.slane %v13550_v63, 2 }
0xaa18   :  { %v13559_v20 = vadd.f32 %v13558_v26, %v13557_v3  ;;  %v13552_v58 = vadd.f32 %v13551_v54, %v13550_v63 }
0xaa1a   :  { %v13560_v29 = vrot.slane %v13559_v20, 1  ;;  %v13553_v62 = vrot.slane %v13552_v58, 1 }
0xaa1c   :  { %v13561_v37 = vadd.f32 %v13560_v29, %v13559_v20  ;;  %v13554_v35 = vadd.f32 %v13553_v62, %v13552_v58 }
0xaa1e   :  { %v13564_v34 = vsel %vm20003_vm10, %v13561_v37, %v13554_v35 }
0xaa1f   :  { %13565 = vrot.lane.b32.xlu1 %v13564_v34, %s16952_s26 }
0xaa91   :  { %v13566_v14 = vpop.permute.xlu1 %13565 }
0xaa92   :  { %15716 = vmatmul.mubr.msk.f32.vlgmr.msra.gmra.mrb[94].mxu1 %vm190_vm1, %v13566_v14  ;;  %15723 = vmatmul.mubr.msk.f32.vlgmr.msra.gmra.mrb[90].mxu0 %vm190_vm1, %v13566_v14 }
0xaa93   :  { %16059 = vmatpush3.bf16.msra.mxu1 %v19259_v30  ;;  %16062 = vmatpush3.bf16.msra.mxu0 %v19342_v55 }
0xaa94   :  { %15729 = vmatprep.mubr.msk.f32.mxu1 %vm19980_vm2, %v16944_v1  ;;  %15736 = vmatprep.mubr.msk.f32.mxu0 %vm19980_vm2, %v16944_v1 }
0xaa95   :  { %16063 = vmatprep.subr.bf16.mxu1 %v16940_v0  ;;  %16066 = vmatprep.subr.bf16.mxu0 %v16940_v0 }
0xaa96   :  { %15730 = vmatmul.mubr.msk.f32.vlgmr.msra.gmra.mrb[96].mxu1 %vm190_vm1, %v19754_v32  ;;  %15737 = vmatmul.mubr.msk.f32.vlgmr.msra.gmra.mrb[92].mxu0 %vm190_vm1, %v19775_v61  ;;  %v10847_v32 = vcombine.high %v19709_v5, %v19709_v5 }
0xaa97   :  { %16065 = vmatpush3.bf16.msra.mxu1 %v19344_v10  ;;  %15743 = vmatprep.mubr.msk.f32.mxu1 %vm19980_vm2, %v16944_v1 }
0xaa98   :  { %16068 = vmatpush3.bf16.msra.mxu0 %v19379_v46  ;;  %15750 = vmatprep.mubr.msk.f32.mxu0 %vm19980_vm2, %v16944_v1 }
0xaa99   :  { %16069 = vmatprep.subr.bf16.mxu1 %v16940_v0  ;;  %v10861_v0 = vrot.slane %v10847_v32, %v17606_v17 }
0xab65   :  { %v13635_v30 = vpop.f32.mrb[94].mxu1  ;;  %v13705_v55 = vpop.f32.mrb[90].mxu0 }
0xab66   :  { %v13636_v25 = vadd.f32 %v19582_v45, %v13635_v30  ;;  %v13716_v61 = vrot.slane %v13705_v55, %v17606_v17  ;;  %v15717_v10 = vpop.f32.mrb[95].mxu1  ;;  %v15724_v43 = vpop.f32.mrb[91].mxu0 }
0xab68   :  { %v14404_v24 = vrot.slane %v13636_v25, %v17606_v17  ;;  %v13717_v11 = vcombine.high %v13716_v61, %v13716_v61  ;;  %v13724_v46 = vrot.slane %v13716_v61, %v17606_v17 }
0xab69   :  { %v13802_v31 = vpop.f32.mrb[96].mxu1  ;;  %v19842_v33 = vpop.f32.mrb[92].mxu0 }
0xab6a   :  { %v14405_v52 = vcombine.high %v14404_v24, %v14404_v24  ;;  %v14412_v12 = vrot.slane %v14404_v24, %v17606_v17  ;;  %v13731_v5 = vrot.slane %v13717_v11, %v17606_v17  ;;  %v15731_v45 = vpop.f32.mrb[97].mxu1  ;;  %v15738_v53 = vpop.f32.mrb[93].mxu0  ;;  %v13813_v60 = vrot.slane %v13802_v31, %v17606_v17 }
0xab6b   :  { %v13734_v36 = vadd.f32 %v13724_v46, %v19466_v56 }
0xab6c   :  { %v14419_v50 = vrot.slane %v14405_v52, %v17606_v17  ;;  %v14466_v19 = vrot.slane %v14412_v12, %v17650_v21  ;;  %v13735_v4 = vadd.f32 %v13731_v5, %v10861_v0  ;;  %v13814_v15 = vcombine.high %v13813_v60, %v13813_v60 }
0xab6d   :  { %v13821_v42 = vrot.slane %v13813_v60, %v17606_v17 }
0xab6e   :  { %v14470_v13 = vrot.slane %v14419_v50, %v17650_v21  ;;  %v19855_v23 = vsel %vm1788_vm14, %v19730_v39, %v14466_v19  ;;  %v13828_v47 = vrot.slane %v13814_v15, %v17606_v17 }
0xab6f   :  { %v13831_v44 = vadd.f32 %v13821_v42, %v13734_v36 }
0xab70   :  { %v19860_v49 = vsel %vm1788_vm14, %v19735_v40, %v14470_v13  ;;  %v13832_v48 = vadd.f32 %v13828_v47, %v13735_v4  ;;  %vm20004_vm14 = vmmov %vm19990_vm4 }
0xab71   :  { %16905 = vtanh.f32 %v13831_v44  ;;  %v14741_v59 = vmul.f32 -1.442695, %v13831_v44 }
0xab72   :  { %16907 = vtanh.f32 %v13832_v48  ;;  %v14742_v6 = vmul.f32 -1.442695, %v13832_v48 }
0xab73   :  { %16909 = vpow2.f32 %v14741_v59 }
0xab74   :  { %16911 = vpow2.f32 %v14742_v6 }
0xab7b   :  { %v16906_v56 = vpop.eup %16905 }
0xab7c   :  { %13851 = vrot.lane.b32.xlu1 %v16906_v56, %s16948_s22  ;;  %v16908_v22 = vpop.eup %16907 }
0xab7d   :  { %13853 = vrot.lane.b32.xlu0 %v16908_v22, %s16948_s22  ;;  %v16910_v39 = vpop.eup %16909 }
0xab7e   :  { %v16912_v41 = vpop.eup %16911  ;;  %v13839_v3 = vadd.f32 1.0, %v16910_v39 }
0xab7f   :  { %v13840_v63 = vadd.f32 1.0, %v16912_v41 }
0xab80   :  { %16913 = vrcp.f32 %v13839_v3 }
0xab81   :  { %16915 = vrcp.f32 %v13840_v63 }
0xab8a   :  { %v16914_v40 = vpop.eup %16913 }
0xab8b   :  { %v16916_v20 = vpop.eup %16915  ;;  %v13847_v62 = vmul.f32 %v16914_v40, %v19742_v27 }
0xab8c   :  { %v13848_v34 = vmul.f32 %v16916_v20, %v19746_v16 }
0xabee   :  { %v13852_v26 = vpop.permute.xlu1 %13851 }
0xabef   :  { %v13857_v54 = vmul.f32 %v16914_v40, %v13852_v26  ;;  %v13854_v58 = vpop.permute.xlu0 %13853 }
0xabf0   :  { %v13858_v29 = vmul.f32 %v16916_v20, %v13854_v58 }
0xabf1   :  { %13861 = vrot.lane.b32.xlu1 %v13857_v54, %s16949_s23 }
0xabf2   :  { %13863 = vrot.lane.b32.xlu0 %v13858_v29, %s16949_s23 }
0xac63   :  { %v13862_v37 = vpop.permute.xlu1 %13861 }
0xac64   :  { %v13867_v35 = vadd.f32 %v13862_v37, %v13847_v62  ;;  %v13864_v14 = vpop.permute.xlu0 %13863 }
0xac65   :  { %v13868_v30 = vadd.f32 %v13864_v14, %v13848_v34 }
0xac66   :  { %16917 = vtanh.f32 %v13867_v35 }
0xac67   :  { %16919 = vtanh.f32 %v13868_v30 }
0xac70   :  { %v16918_v55 = vpop.eup %16917 }
0xac71   :  { %13873 = vrot.lane.b32.xlu1 %v16918_v55, %s16951_s25  ;;  %v16920_v32 = vpop.eup %16919 }
0xac72   :  { %13875 = vrot.lane.b32.xlu0 %v16920_v32, %s16951_s25 }
0xace3   :  { %v13874_v25 = vpop.permute.xlu1 %13873 }
0xace4   :  { %v13876_v61 = vpop.permute.xlu0 %13875  ;;  %v13879_v10 = vmul.f32 %v16914_v40, %v13874_v25 }
0xace5   :  { %v13880_v43 = vmul.f32 %v16916_v20, %v13876_v61 }
0xace7   :  { %v13953_v24 = vcombine.low %v13879_v10, %v13880_v43 }
0xace9   :  { %v13960_v27 = vrot.slane %v13953_v24, %v17606_v17 }
0xaceb   :  { %v13967_v11 = vrot.slane %v13960_v27, %v17606_v17 }
0xaced   :  { %13968 = vrot.lane.b32.xlu1 %v13967_v11, %s16952_s26 }
0xad5f   :  { %v13969_v16 = vpop.permute.xlu1 %13968 }
0xad60   :  { %15744 = vmatmul.mubr.msk.f32.vlgmr.msra.gmra.mrb[98].mxu1 %vm190_vm1, %v13969_v16 }
0xad61   :  { %16071 = vmatpush3.bf16.msra.mxu1 %v19427_v18  ;;  %15757 = vmatprep.mubr.msk.f32.mxu1 %vm19980_vm2, %v16944_v1  ;;  %vm20005_vm2 = vmmov %vm19990_vm4 }
0xae33   :  { %v14038_v46 = vpop.f32.mrb[98].mxu1 }
0xae34   :  { %v14039_v31 = vadd.f32 %v14038_v46, %v19842_v33  ;;  %v15745_v0 = vpop.f32.mrb[99].mxu1 }
0xae36   :  { %v14042_v52 = vadd.f32 %v19764_v28, %v14039_v31 }
0xae38   :  { %16921 = vtanh.f32 %v14042_v52  ;;  %v14745_v5 = vmul.f32 -1.442695, %v14042_v52 }
0xae3a   :  { %16923 = vpow2.f32 %v14745_v5 }
0xae42   :  { %v16922_v12 = vpop.eup %16921 }
0xae43   :  { %14052 = vrot.lane.b32.xlu0 %v16922_v12, %s16948_s22 }
0xae44   :  { %v16924_v45 = vpop.eup %16923 }
0xae45   :  { %v14046_v53 = vadd.f32 1.0, %v16924_v45 }
0xae47   :  { %16925 = vrcp.f32 %v14046_v53 }
0xae51   :  { %v16926_v60 = vpop.eup %16925 }
0xae52   :  { %v14050_v1 = vmul.f32 %v16926_v60, %v19770_v9 }
0xaeb5   :  { %v14053_v18 = vpop.permute.xlu0 %14052 }
0xaeb6   :  { %v14055_v50 = vmul.f32 %v16926_v60, %v14053_v18 }
0xaeb8   :  { %14057 = vrot.lane.b32.xlu1 %v14055_v50, %s16949_s23 }
0xaf2a   :  { %v14058_v33 = vpop.permute.xlu1 %14057 }
0xaf2b   :  { %v14060_v19 = vadd.f32 %v14058_v33, %v14050_v1 }
0xaf2d   :  { %16927 = vtanh.f32 %v14060_v19  ;;  %v16939_v19 = vld [vmem:[%s19579_s11] ss:$0 sm:$0xff] }
0xaf37   :  { %v16928_v28 = vpop.eup %16927 }
0xaf38   :  { %14063 = vrot.lane.b32.xlu0 %v16928_v28, %s16951_s25 }
0xafaa   :  { %v14064_v4 = vpop.permute.xlu0 %14063 }
0xafab   :  { %v14066_v36 = vmul.f32 %v16926_v60, %v14064_v4 }
0xafad   :  { %14068 = vrot.lane.b32.xlu1 %v14066_v36, %s16952_s26 }
0xb01f   :  { %v14069_v15 = vpop.permute.xlu1 %14068 }
0xb020   :  { %15751 = vmatmul.mubr.msk.f32.vlgmr.msra.gmra.mrb[94].mxu0 %vm190_vm1, %v14069_v15 }
0xb0f3   :  { %v14138_v42 = vpop.f32.mrb[94].mxu0 }
0xb0f4   :  { %v14139_v13 = vadd.f32 %v19784_v2, %v14138_v42  ;;  %v15752_v47 = vpop.f32.mrb[95].mxu0 }
0xb0f6   :  { %v14149_v44 = vrot.slane %v14139_v13, %v17606_v17 }
0xb0f8   :  { %v14150_v9 = vcombine.high %v14149_v44, %v14149_v44  ;;  %v14157_v48 = vrot.slane %v14149_v44, %v17606_v17 }
0xb0fa   :  { %v14164_v56 = vrot.slane %v14150_v9, %v17606_v17  ;;  %v14168_v22 = vrot.slane %v14157_v48, %v17650_v21 }
0xb0fc   :  { %14173 = vrot.lane.b32.xlu0 %v14168_v22, %s16951_s25  ;;  %v14172_v59 = vrot.slane %v14164_v56, %v17650_v21 }
0xb0fe   :  { %14175 = vrot.lane.b32.xlu1 %v14172_v59, %s16951_s25 }
0xb16e   :  { %v14174_v6 = vpop.permute.xlu0 %14173 }
0xb16f   :  { %v14179_v39 = vmul.f32 %v14174_v6, %v18721_v51 }
0xb170   :  { %v14176_v2 = vpop.permute.xlu1 %14175 }
0xb171   :  { %v14180_v41 = vmul.f32 %v14176_v2, %v18726_v8  ;;  %14183 = vrot.lane.b32.xlu0 %v14179_v39, %s16948_s22 }
0xb173   :  { %14185 = vrot.lane.b32.xlu1 %v14180_v41, %s16948_s22  ;;  %s16995_s22 = smov 41  }
0xb174   :  { %s14542_s12 = sld [smem:[%s19928_s0 + %s16995_s22]]  }
0xb1e3   :  { %v14184_v3 = vpop.permute.xlu0 %14183 }
0xb1e4   :  { %v14189_v63 = vsel %vm190_vm1, %v14184_v3, 0.0 }
0xb1e5   :  { %14190 = vadd.xlane.f32.xlu0 %v14189_v63  ;;  %v14186_v40 = vpop.permute.xlu1 %14185 }
0xb1e6   :  { %v14192_v26 = vsel %vm190_vm1, %v14186_v40, 0.0 }
0xb1e7   :  { %14193 = vadd.xlane.f32.xlu1 %v14192_v26 }
0xb272   :  { %v14191_v54 = vpop.xlane.xlu0 %14190 }
0xb273   :  { %v14200_v58 = vrot.slane %v14191_v54, %v18735_v7 }
0xb274   :  { %v14194_v20 = vpop.xlane.xlu1 %14193 }
0xb275   :  { %v14204_v29 = vrot.slane %v14194_v20, %v18735_v7 }
0xb277   :  { %v14205_v62 = vsel %vm20004_vm14, %v14204_v29, %v14200_v58 }
0xb278   :  { %v14207_v37 = vsel %vm18741_vm0, -1e+10, %v14205_v62 }
0xb279   :  { %v14208_v35 = vsel %vm7546_vm3, %v14207_v37, -inf }
0xb27a   :  { %14209 = vmax.xlane.f32.xlu0 %v14208_v35 }
0xb307   :  { %v14210_v34 = vpop.xlane.xlu0 %14209 }
0xb308   :  { %v14211_v14 = vsub.f32 %v14207_v37, %v14210_v34 }
0xb30a   :  { %v14212_v30 = vmul.f32 1.442695, %v14211_v14 }
0xb30c   :  { %16929 = vpow2.f32 %v14212_v30 }
0xb316   :  { %v16930_v55 = vpop.eup %16929 }
0xb317   :  { %v14214_v32 = vsel %vm7546_vm3, %v16930_v55, 0.0  ;;  %vm14491_vm3 = vcmask 69632  }
0xb318   :  { %14215 = vadd.xlane.f32.xlu0 %v14214_v32 }
0xb3a5   :  { %v14216_v25 = vpop.xlane.xlu0 %14215 }
0xb3a6   :  { %16931 = vrcp.f32 %v14216_v25 }
0xb3b0   :  { %v16932_v61 = vpop.eup %16931 }
0xb3b1   :  { %v14218_v7 = vmul.f32 %v16932_v61, %v16930_v55 }
0xb3b3   :  { %v14229_v10 = vrot.slane %v14218_v7, %v18751_v38  ;;  %v14222_v57 = vrot.slane %v14218_v7, %v17650_v21 }
0xb3b5   :  { %14231 = vbcast.lane.b32.xlu0 %v14229_v10, 256  ;;  %14224 = vbcast.lane.b32.xlu1 %v14222_v57, 256 }
0xb427   :  { %v14232_v43 = vpop.permute.xlu0 %14231  ;;  %v14225_v24 = vpop.permute.xlu1 %14224 }
0xb428   :  { %v14234_v27 = vmul.f32 %v14232_v43, %v18726_v8  ;;  %v14233_v11 = vmul.f32 %v14225_v24, %v18721_v51 }
0xb42a   :  { %v14242_v16 = vsel %vm11480_vm11, %v14234_v27, 0.0  ;;  %v14235_v46 = vsel %vm11480_vm11, %v14233_v11, 0.0 }
0xb42b   :  { %v14243_v31 = vrot.slane %v14242_v16, 4  ;;  %v14236_v0 = vrot.slane %v14235_v46, 4 }
0xb42d   :  { %v14244_v52 = vadd.f32 %v14243_v31, %v14242_v16  ;;  %v14237_v12 = vadd.f32 %v14236_v0, %v14235_v46 }
0xb42f   :  { %v14245_v38 = vrot.slane %v14244_v52, 2  ;;  %v14238_v5 = vrot.slane %v14237_v12, 2 }
0xb431   :  { %v14246_v45 = vadd.f32 %v14245_v38, %v14244_v52  ;;  %v14239_v53 = vadd.f32 %v14238_v5, %v14237_v12 }
0xb433   :  { %v14247_v60 = vrot.slane %v14246_v45, 1  ;;  %v14240_v18 = vrot.slane %v14239_v53, 1 }
0xb435   :  { %v14248_v50 = vadd.f32 %v14247_v60, %v14246_v45  ;;  %v14241_v1 = vadd.f32 %v14240_v18, %v14239_v53 }
0xb437   :  { %v14251_v8 = vsel %vm20005_vm2, %v14248_v50, %v14241_v1 }
0xb438   :  { %14252 = vrot.lane.b32.xlu1 %v14251_v8, %s16952_s26 }
0xb4aa   :  { %v14253_v51 = vpop.permute.xlu1 %14252 }
0xb4ab   :  { %15758 = vmatmul.mubr.msk.f32.vlgmr.msra.gmra.mrb[100].mxu1 %vm190_vm1, %v14253_v51 }
0xb57e   :  { %v14322_v33 = vpop.f32.mrb[100].mxu1 }
0xb57f   :  { %v14323_v28 = vadd.f32 %v16939_v19, %v14322_v33  ;;  %v15759_v4 = vpop.f32.mrb[101].mxu1 }
0xb581   :  { %v14427_v36 = vrot.slane %v14323_v28, %v17606_v17 }
0xb583   :  { %v14428_v15 = vcombine.high %v14427_v36, %v14427_v36  ;;  %v14435_v42 = vrot.slane %v14427_v36, %v17606_v17 }
0xb585   :  { %v14442_v13 = vrot.slane %v14428_v15, %v17606_v17  ;;  %v14476_v47 = vrot.slane %v14435_v42, %v17650_v21 }
0xb587   :  { %v14480_v44 = vrot.slane %v14442_v13, %v17650_v21  ;;  %v14489_v9 = vsel %vm1791_vm15, %v19855_v23, %v14476_v47 }
0xb588   :  { %14492 = vst.msk [vmem:[%s14542_s12] sm:$0x1f] %vm14491_vm3, %v14489_v9 }
0xb589   :  { %v14490_v48 = vsel %vm1791_vm15, %v19860_v49, %v14480_v44 }
0xb58a   :  { %14493 = vst.msk [vmem:[%s14542_s12 + $0x8] sm:$0x1f] %vm14491_vm3, %v14490_v48 }

</bundles_post_ra>
